<compile_context>
chip_gen: v7x
topology: tpu7x:2x2x1
jax: 0.10.0
libtpu: 0.0.40
codegen_flags: <defaults>
</compile_context>

<pallas_src>
import functools

import jax
import jax.numpy as jnp
from jax import lax
from jax.experimental import pallas as pl
from jax.experimental.pallas import tpu as pltpu

# ---- hyper-parameters from HyeonukCandidateModel1.__init__ -------------------
STATE_DIM = 8          # d_src       (small synthetic value)
MAX_POINT_NUM = 8      # len_max / L (small synthetic value)
N_LAYERS = 4
N_HEAD = 12
D_K = 32
D_V = 32
D_MODEL = 384
D_INNER = 1536
LN_EPS = 1e-5          # nn.LayerNorm default
NEG_BIG = -1e30


# ---- small helpers -------------------------------------------------------------
def _layernorm(x, g, b):
    mean = jnp.mean(x, axis=-1, keepdims=True)
    xc = x - mean
    var = jnp.mean(xc * xc, axis=-1, keepdims=True)
    return xc * lax.rsqrt(var + LN_EPS) * g + b


# ---- fused encoder kernel -------------------------------------------------------
def _encoder_kernel(
        # non-layer inputs (constant block across the grid)
        x_ref, pos_ref, bias_ref, src_w_ref, src_b_ref, fc_w_ref, fc_b_ref,
        # per-layer (stacked, streamed along the grid axis)
        wqkv_ref, bqkv_ref, wo_ref, bo_ref, ln1_g_ref, ln1_b_ref,
        w1_ref, b1_ref, w2_ref, b2_ref, ln2_g_ref, ln2_b_ref,
        # output + scratch
        out_ref, h_ref):
    l = pl.program_id(0)
    scale = 1.0 / (float(D_K) ** 0.5)

    # ---- grid step 0: input vector projection (vector_input=True, position=False)
    @pl.when(l == 0)
    def _():
        x = x_ref[...].astype(jnp.bfloat16)
        h_ref[...] = (jnp.dot(x, src_w_ref[...],
                              preferred_element_type=jnp.float32)
                      + src_b_ref[...])

    h = h_ref[...]                                    # (M, D_MODEL) f32, resident
    residual = h

    # ---- fused Q|K|V projection: one MXU pass, lane-dense 1152-wide result
    qkv = (jnp.dot(h.astype(jnp.bfloat16), wqkv_ref[...],
                   preferred_element_type=jnp.float32) + bqkv_ref[...])

    # ---- multi-head self attention entirely in VMEM (no host transposes).
    # bias_ref holds 0 for same-sequence pairs and -1e30 for cross-batch pairs,
    # so one (M, M) score matrix per head == per-sequence attention.
    bias = bias_ref[...]
    k_off = N_HEAD * D_K
    v_off = 2 * N_HEAD * D_K
    head_outs = []
    for hd in range(N_HEAD):
        qh = qkv[:, hd * D_K:(hd + 1) * D_K]                       # (M, 32)
        kh = qkv[:, k_off + hd * D_K:k_off + (hd + 1) * D_K]       # (M, 32)
        vh = qkv[:, v_off + hd * D_V:v_off + (hd + 1) * D_V]       # (M, 32)
        s = lax.dot_general(qh, kh, (((1,), (1,)), ((), ())),
                            preferred_element_type=jnp.float32)     # (M, M)
        s = s * scale + bias
        s = s - jnp.max(s, axis=-1, keepdims=True)
        p = jnp.exp(s)
        p = p * pl.reciprocal(jnp.sum(p, axis=-1, keepdims=True), approx=True)
        head_outs.append(jnp.dot(p, vh, preferred_element_type=jnp.float32))
    attn = jnp.concatenate(head_outs, axis=-1)                      # (M, H*D_V)

    # ---- attention output projection + residual + LayerNorm (post-norm)
    o = (jnp.dot(attn.astype(jnp.bfloat16), wo_ref[...],
                 preferred_element_type=jnp.float32) + bo_ref[...])
    h = _layernorm(o + residual, ln1_g_ref[...], ln1_b_ref[...])

    # ---- position-wise FFN + residual + LayerNorm; (M, 1536) stays in VMEM
    residual = h
    f = jnp.maximum(
        jnp.dot(h.astype(jnp.bfloat16), w1_ref[...],
                preferred_element_type=jnp.float32) + b1_ref[...], 0.0)
    f = (jnp.dot(f.astype(jnp.bfloat16), w2_ref[...],
                 preferred_element_type=jnp.float32) + b2_ref[...])
    h = _layernorm(f + residual, ln2_g_ref[...], ln2_b_ref[...])
    h_ref[...] = h

    # ---- last grid step: fc head + `pos == -1` masking, fused epilogue
    @pl.when(l == N_LAYERS - 1)
    def _():
        y = (jnp.dot(h, fc_w_ref[...], preferred_element_type=jnp.float32)
             + fc_b_ref[...])                                       # (M, 1)
        out_ref[...] = jnp.where(pos_ref[...] == -1, 0.0, y)


# ---- wrapper ---------------------------------------------------------------------
def forward(params, x, pos):
    """x: (B, L, STATE_DIM) float32 ; pos: (B, L) int -> (B, L) float32."""
    B, L, _ = x.shape
    M = B * L

    x2 = x.reshape(M, STATE_DIM)
    pos2 = pos.reshape(M, 1).astype(jnp.int32)

    # additive attention bias: 0 within a sequence, -1e30 across sequences
    batch_ids = jnp.arange(M, dtype=jnp.int32) // L
    attn_bias = jnp.where(batch_ids[:, None] == batch_ids[None, :],
                          0.0, NEG_BIG).astype(jnp.float32)

    def const_spec(shape):
        return pl.BlockSpec(shape, lambda l: (0,) * len(shape))

    def layer_spec(arr):
        nd = arr.ndim
        return pl.BlockSpec((None,) + arr.shape[1:],
                            lambda l: (l,) + (0,) * (nd - 1))

    in_specs = [
        const_spec((M, STATE_DIM)),        # x
        const_spec((M, 1)),                # pos
        const_spec((M, M)),                # attention bias
        const_spec((STATE_DIM, D_MODEL)),  # src_w
        const_spec((1, D_MODEL)),          # src_b
        const_spec((D_MODEL, 1)),          # fc_w
        const_spec((1, 1)),                # fc_b
        layer_spec(params["wqkv"]), layer_spec(params["bqkv"]),
        layer_spec(params["wo"]), layer_spec(params["bo"]),
        layer_spec(params["ln1_g"]), layer_spec(params["ln1_b"]),
        layer_spec(params["w1"]), layer_spec(params["b1"]),
        layer_spec(params["w2"]), layer_spec(params["b2"]),
        layer_spec(params["ln2_g"]), layer_spec(params["ln2_b"]),
    ]

    # TODO(synk): for large batches add a leading 'parallel' grid axis over row
    # tiles so v7x's second TensorCore is engaged; unnecessary at B*L = 16.
    out = pl.pallas_call(
        _encoder_kernel,
        out_shape=jax.ShapeDtypeStruct((M, 1), jnp.float32),
        grid_spec=pltpu.PrefetchScalarGridSpec(
            num_scalar_prefetch=0,
            grid=(N_LAYERS,),
            in_specs=in_specs,
            out_specs=const_spec((M, 1)),
            scratch_shapes=[pltpu.VMEM((M, D_MODEL), jnp.float32)]),
        compiler_params=pltpu.CompilerParams(
            dimension_semantics=("arbitrary",),
            vmem_limit_bytes=32 * 1024 * 1024),
    )(x2, pos2, attn_bias,
      params["src_w"], params["src_b"], params["fc_w"], params["fc_b"],
      params["wqkv"], params["bqkv"], params["wo"], params["bo"],
      params["ln1_g"], params["ln1_b"], params["w1"], params["b1"],
      params["w2"], params["b2"], params["ln2_g"], params["ln2_b"])

    return out.reshape(B, L)


# ---- deterministic parameter construction ------------------------------------------
def _dense_init(key, fan_in, fan_out):
    kw, kb = jax.random.split(key)
    bound = fan_in ** -0.5
    w = jax.random.uniform(kw, (fan_in, fan_out), jnp.float32, -bound, bound)
    b = jax.random.uniform(kb, (fan_out,), jnp.float32, -bound, bound)
    return w, b


def init_params(key):
    keys = jax.random.split(key, 2 + N_LAYERS)
    params = {}

    src_w, src_b = _dense_init(keys[0], STATE_DIM, D_MODEL)
    params["src_w"] = src_w.astype(jnp.bfloat16)
    params["src_b"] = src_b.reshape(1, D_MODEL)

    stacks = {k: [] for k in ("wqkv", "bqkv", "wo", "bo", "ln1_g", "ln1_b",
                              "w1", "b1", "w2", "b2", "ln2_g", "ln2_b")}
    for l in range(N_LAYERS):
        lk = jax.random.split(keys[2 + l], 6)
        wq, bq = _dense_init(lk[0], D_MODEL, N_HEAD * D_K)
        wk, bk = _dense_init(lk[1], D_MODEL, N_HEAD * D_K)
        wv, bv = _dense_init(lk[2], D_MODEL, N_HEAD * D_V)
        stacks["wqkv"].append(jnp.concatenate([wq, wk, wv], axis=1))
        stacks["bqkv"].append(jnp.concatenate([bq, bk, bv]).reshape(1, -1))
        w, b = _dense_init(lk[3], N_HEAD * D_V, D_MODEL)
        stacks["wo"].append(w)
        stacks["bo"].append(b.reshape(1, -1))
        stacks["ln1_g"].append(jnp.ones((1, D_MODEL), jnp.float32))
        stacks["ln1_b"].append(jnp.zeros((1, D_MODEL), jnp.float32))
        w, b = _dense_init(lk[4], D_MODEL, D_INNER)
        stacks["w1"].append(w)
        stacks["b1"].append(b.reshape(1, -1))
        w, b = _dense_init(lk[5], D_INNER, D_MODEL)
        stacks["w2"].append(w)
        stacks["b2"].append(b.reshape(1, -1))
        stacks["ln2_g"].append(jnp.ones((1, D_MODEL), jnp.float32))
        stacks["ln2_b"].append(jnp.zeros((1, D_MODEL), jnp.float32))

    bf16_keys = {"wqkv", "wo", "w1", "w2"}    # matmul weights streamed as bf16
    for k, v in stacks.items():
        arr = jnp.stack(v)
        params[k] = arr.astype(jnp.bfloat16) if k in bf16_keys else arr

    # fc: kaiming-uniform weight (synthetic deterministic init), zero bias
    fc_w, _ = _dense_init(keys[1], D_MODEL, 1)
    params["fc_w"] = fc_w
    params["fc_b"] = jnp.zeros((1, 1), jnp.float32)
    return params


# ---- pure-JAX reference (same bf16-quantised weights, f32 math) ----------------------
def reference_forward(params, x, pos):
    B, L, _ = x.shape
    M = B * L
    scale = 1.0 / (float(D_K) ** 0.5)
    h = (x.reshape(M, STATE_DIM) @ params["src_w"].astype(jnp.float32)
         + params["src_b"])
    for l in range(N_LAYERS):
        qkv = h @ params["wqkv"][l].astype(jnp.float32) + params["bqkv"][l]
        q, k, v = jnp.split(qkv, 3, axis=-1)
        heads = lambda t: t.reshape(B, L, N_HEAD, D_K).transpose(0, 2, 1, 3)
        s = jnp.einsum("bhqd,bhkd->bhqk", heads(q), heads(k)) * scale
        p = jax.nn.softmax(s, axis=-1)
        o = (jnp.einsum("bhqk,bhkd->bhqd", p, heads(v))
             .transpose(0, 2, 1, 3).reshape(M, N_HEAD * D_V))
        o = o @ params["wo"][l].astype(jnp.float32) + params["bo"][l]
        h = _layernorm(o + h, params["ln1_g"][l], params["ln1_b"][l])
        f = jax.nn.relu(h @ params["w1"][l].astype(jnp.float32) + params["b1"][l])
        f = f @ params["w2"][l].astype(jnp.float32) + params["b2"][l]
        h = _layernorm(f + h, params["ln2_g"][l], params["ln2_b"][l])
    y = (h @ params["fc_w"] + params["fc_b"]).reshape(B, L)
    return jnp.where(pos == -1, 0.0, y)


# ---- driver -----------------------------------------------------------------------
if __name__ == "__main__":
    key = jax.random.PRNGKey(0)
    kp, kx = jax.random.split(key)

    params = init_params(kp)

    B = 2
    x = jax.random.normal(kx, (B, MAX_POINT_NUM, STATE_DIM), jnp.float32)
    pos = jnp.tile(jnp.arange(MAX_POINT_NUM, dtype=jnp.int32)[None, :], (B, 1))
    pos = pos.at[1, -1].set(-1)          # exercise the `pos == -1` masking path

    out = jax.jit(forward)(params, x, pos)
    jax.block_until_ready(out)

    assert out.shape == (B, MAX_POINT_NUM)
    assert bool(out[1, -1] == 0.0)       # masked position zeroed

    ref = jax.jit(reference_forward)(params, x, pos)
    jax.block_until_ready(ref)
    assert jnp.allclose(out, ref, atol=5e-2, rtol=5e-2), (
        f"max abs err {float(jnp.max(jnp.abs(out - ref)))}")

    print("KERNEL_OK")
</pallas_src>

<mosaic_0001>
module attributes {stable_mosaic.version = 11 : i64} {
  func.func @_encoder_kernel(%arg0: i32, %arg1: memref<16x8xf32, #tpu.memory_space<vmem>>, %arg2: memref<16x1xi32, #tpu.memory_space<vmem>>, %arg3: memref<16x16xf32, #tpu.memory_space<vmem>>, %arg4: memref<8x384xbf16, #tpu.memory_space<vmem>>, %arg5: memref<1x384xf32, #tpu.memory_space<vmem>>, %arg6: memref<384x1xf32, #tpu.memory_space<vmem>>, %arg7: memref<1x1xf32, #tpu.memory_space<vmem>>, %arg8: memref<1x384x1152xbf16, #tpu.memory_space<vmem>>, %arg9: memref<1x1x1152xf32, #tpu.memory_space<vmem>>, %arg10: memref<1x384x384xbf16, #tpu.memory_space<vmem>>, %arg11: memref<1x1x384xf32, #tpu.memory_space<vmem>>, %arg12: memref<1x1x384xf32, #tpu.memory_space<vmem>>, %arg13: memref<1x1x384xf32, #tpu.memory_space<vmem>>, %arg14: memref<1x384x1536xbf16, #tpu.memory_space<vmem>>, %arg15: memref<1x1x1536xf32, #tpu.memory_space<vmem>>, %arg16: memref<1x1536x384xbf16, #tpu.memory_space<vmem>>, %arg17: memref<1x1x384xf32, #tpu.memory_space<vmem>>, %arg18: memref<1x1x384xf32, #tpu.memory_space<vmem>>, %arg19: memref<1x1x384xf32, #tpu.memory_space<vmem>>, %arg20: memref<16x1xf32, #tpu.memory_space<vmem>>, %arg21: memref<16x384xf32, #tpu.memory_space<vmem>>) attributes {dimension_semantics = [#tpu.dimension_semantics<arbitrary>], iteration_bounds = array<i64: 4>, scalar_prefetch = 0 : i64, scratch_operands = 1 : i64, tpu.core_type = #tpu.core_type<tc>, window_params = [{pipeline_mode = #tpu.pipeline_mode<synchronous>, transform_indices = @transform_0, window_bounds = array<i64: 16, 8>}, {pipeline_mode = #tpu.pipeline_mode<synchronous>, transform_indices = @transform_1, window_bounds = array<i64: 16, 1>}, {pipeline_mode = #tpu.pipeline_mode<synchronous>, transform_indices = @transform_2, window_bounds = array<i64: 16, 16>}, {pipeline_mode = #tpu.pipeline_mode<synchronous>, transform_indices = @transform_3, window_bounds = array<i64: 8, 384>}, {pipeline_mode = #tpu.pipeline_mode<synchronous>, transform_indices = @transform_4, window_bounds = array<i64: 1, 384>}, {pipeline_mode = #tpu.pipeline_mode<synchronous>, transform_indices = @transform_5, window_bounds = array<i64: 384, 1>}, {pipeline_mode = #tpu.pipeline_mode<synchronous>, transform_indices = @transform_6, window_bounds = array<i64: 1, 1>}, {transform_indices = @transform_7, window_bounds = array<i64: 1, 384, 1152>}, {transform_indices = @transform_8, window_bounds = array<i64: 1, 1, 1152>}, {transform_indices = @transform_9, window_bounds = array<i64: 1, 384, 384>}, {transform_indices = @transform_10, window_bounds = array<i64: 1, 1, 384>}, {transform_indices = @transform_11, window_bounds = array<i64: 1, 1, 384>}, {transform_indices = @transform_12, window_bounds = array<i64: 1, 1, 384>}, {transform_indices = @transform_13, window_bounds = array<i64: 1, 384, 1536>}, {transform_indices = @transform_14, window_bounds = array<i64: 1, 1, 1536>}, {transform_indices = @transform_15, window_bounds = array<i64: 1, 1536, 384>}, {transform_indices = @transform_16, window_bounds = array<i64: 1, 1, 384>}, {transform_indices = @transform_17, window_bounds = array<i64: 1, 1, 384>}, {transform_indices = @transform_18, window_bounds = array<i64: 1, 1, 384>}, {pipeline_mode = #tpu.pipeline_mode<synchronous>, transform_indices = @transform_19, window_bounds = array<i64: 16, 1>}]} {
    %c0_i32 = arith.constant 0 : i32
    %0 = arith.cmpi eq, %arg0, %c0_i32 : i32
    %1 = arith.extui %0 : i1 to i32
    %c0_i32_0 = arith.constant 0 : i32
    %2 = arith.cmpi ne, %1, %c0_i32_0 : i32
    scf.if %2 {
      %c0_117 = arith.constant 0 : index
      %c0_118 = arith.constant 0 : index
      %310 = vector.load %arg1[%c0_117, %c0_118] : memref<16x8xf32, #tpu.memory_space<vmem>>, vector<16x8xf32>
      %311 = arith.truncf %310 : vector<16x8xf32> to vector<16x8xbf16>
      %c0_119 = arith.constant 0 : index
      %c0_120 = arith.constant 0 : index
      %312 = vector.load %arg4[%c0_119, %c0_120] : memref<8x384xbf16, #tpu.memory_space<vmem>>, vector<8x384xbf16>
      %cst_121 = arith.constant dense<0.000000e+00> : vector<16x384xf32>
      %313 = tpu.matmul %311, %312, %cst_121 {dimension_numbers = #tpu.dot_dimension_numbers<[1], [0], [0], [1], [0, 0, 1, 1], [], []>} : vector<16x8xbf16>, vector<8x384xbf16>, vector<16x384xf32> -> vector<16x384xf32>
      %c0_122 = arith.constant 0 : index
      %c0_123 = arith.constant 0 : index
      %314 = vector.load %arg5[%c0_122, %c0_123] : memref<1x384xf32, #tpu.memory_space<vmem>>, vector<1x384xf32>
      %315 = vector.broadcast %314 : vector<1x384xf32> to vector<16x384xf32>
      %316 = arith.addf %313, %315 : vector<16x384xf32>
      %c0_124 = arith.constant 0 : index
      %c0_125 = arith.constant 0 : index
      %317 = vector.load %arg21[%c0_124, %c0_125] : memref<16x384xf32, #tpu.memory_space<vmem>>, vector<16x384xf32>
      tpu.vector_store %arg21[%c0_124, %c0_125], %316 {strides = array<i32>} : memref<16x384xf32, #tpu.memory_space<vmem>>, vector<16x384xf32>,
    } else {
    }
    %c0 = arith.constant 0 : index
    %c0_1 = arith.constant 0 : index
    %3 = vector.load %arg21[%c0, %c0_1] : memref<16x384xf32, #tpu.memory_space<vmem>>, vector<16x384xf32>
    %4 = arith.truncf %3 : vector<16x384xf32> to vector<16x384xbf16>
    %c0_2 = arith.constant 0 : index
    %c0_3 = arith.constant 0 : index
    %c0_4 = arith.constant 0 : index
    %5 = vector.load %arg8[%c0_2, %c0_3, %c0_4] : memref<1x384x1152xbf16, #tpu.memory_space<vmem>>, vector<1x384x1152xbf16>
    %6 = vector.shape_cast %5 : vector<1x384x1152xbf16> to vector<384x1152xbf16>
    %cst = arith.constant dense<0.000000e+00> : vector<16x1152xf32>
    %7 = tpu.matmul %4, %6, %cst {dimension_numbers = #tpu.dot_dimension_numbers<[1], [0], [0], [1], [0, 0, 1, 1], [], []>} : vector<16x384xbf16>, vector<384x1152xbf16>, vector<16x1152xf32> -> vector<16x1152xf32>
    %c0_5 = arith.constant 0 : index
    %c0_6 = arith.constant 0 : index
    %c0_7 = arith.constant 0 : index
    %8 = vector.load %arg9[%c0_5, %c0_6, %c0_7] : memref<1x1x1152xf32, #tpu.memory_space<vmem>>, vector<1x1x1152xf32>
    %9 = vector.shape_cast %8 : vector<1x1x1152xf32> to vector<1x1152xf32>
    %10 = vector.broadcast %9 : vector<1x1152xf32> to vector<16x1152xf32>
    %11 = arith.addf %7, %10 : vector<16x1152xf32>
    %c0_8 = arith.constant 0 : index
    %c0_9 = arith.constant 0 : index
    %12 = vector.load %arg3[%c0_8, %c0_9] : memref<16x16xf32, #tpu.memory_space<vmem>>, vector<16x16xf32>
    %13 = vector.extract_strided_slice %11 {offsets = [0, 0], sizes = [16, 32], strides = [1, 1]} : vector<16x1152xf32> to vector<16x32xf32>
    %14 = vector.extract_strided_slice %11 {offsets = [0, 384], sizes = [16, 32], strides = [1, 1]} : vector<16x1152xf32> to vector<16x32xf32>
    %15 = vector.extract_strided_slice %11 {offsets = [0, 768], sizes = [16, 32], strides = [1, 1]} : vector<16x1152xf32> to vector<16x32xf32>
    %cst_10 = arith.constant dense<0.000000e+00> : vector<16x16xf32>
    %16 = tpu.matmul %13, %14, %cst_10 {dimension_numbers = #tpu.dot_dimension_numbers<[1], [1], [0], [0], [0, 0, 1, 0], [], []>} : vector<16x32xf32>, vector<16x32xf32>, vector<16x16xf32> -> vector<16x16xf32>
    %cst_11 = arith.constant 0.176776692 : f32
    %17 = vector.broadcast %cst_11 : f32 to vector<16x16xf32>
    %18 = arith.mulf %16, %17 : vector<16x16xf32>
    %19 = arith.addf %18, %12 : vector<16x16xf32>
    %cst_12 = arith.constant dense<0xFF800000> : vector<16xf32>
    %20 = vector.multi_reduction <maximumf>, %19, %cst_12 [1] : vector<16x16xf32> to vector<16xf32>
    %21 = vector.shape_cast %20 : vector<16xf32> to vector<16x1xf32>
    %22 = vector.broadcast %21 : vector<16x1xf32> to vector<16x16xf32>
    %23 = arith.subf %19, %22 : vector<16x16xf32>
    %24 = math.exp %23 : vector<16x16xf32>
    %cst_13 = arith.constant dense<0.000000e+00> : vector<16xf32>
    %25 = vector.multi_reduction <add>, %24, %cst_13 [1] : vector<16x16xf32> to vector<16xf32>
    %26 = vector.shape_cast %25 : vector<16xf32> to vector<16x1xf32>
    %27 = tpu.reciprocal %26 {approx = true} : vector<16x1xf32> -> vector<16x1xf32>
    %28 = vector.broadcast %27 : vector<16x1xf32> to vector<16x16xf32>
    %29 = arith.mulf %24, %28 : vector<16x16xf32>
    %cst_14 = arith.constant dense<0.000000e+00> : vector<16x32xf32>
    %30 = tpu.matmul %29, %15, %cst_14 {dimension_numbers = #tpu.dot_dimension_numbers<[1], [0], [0], [1], [0, 0, 1, 1], [], []>} : vector<16x16xf32>, vector<16x32xf32>, vector<16x32xf32> -> vector<16x32xf32>
    %31 = vector.extract_strided_slice %11 {offsets = [0, 32], sizes = [16, 32], strides = [1, 1]} : vector<16x1152xf32> to vector<16x32xf32>
    %32 = vector.extract_strided_slice %11 {offsets = [0, 416], sizes = [16, 32], strides = [1, 1]} : vector<16x1152xf32> to vector<16x32xf32>
    %33 = vector.extract_strided_slice %11 {offsets = [0, 800], sizes = [16, 32], strides = [1, 1]} : vector<16x1152xf32> to vector<16x32xf32>
    %cst_15 = arith.constant dense<0.000000e+00> : vector<16x16xf32>
    %34 = tpu.matmul %31, %32, %cst_15 {dimension_numbers = #tpu.dot_dimension_numbers<[1], [1], [0], [0], [0, 0, 1, 0], [], []>} : vector<16x32xf32>, vector<16x32xf32>, vector<16x16xf32> -> vector<16x16xf32>
    %cst_16 = arith.constant 0.176776692 : f32
    %35 = vector.broadcast %cst_16 : f32 to vector<16x16xf32>
    %36 = arith.mulf %34, %35 : vector<16x16xf32>
    %37 = arith.addf %36, %12 : vector<16x16xf32>
    %cst_17 = arith.constant dense<0xFF800000> : vector<16xf32>
    %38 = vector.multi_reduction <maximumf>, %37, %cst_17 [1] : vector<16x16xf32> to vector<16xf32>
    %39 = vector.shape_cast %38 : vector<16xf32> to vector<16x1xf32>
    %40 = vector.broadcast %39 : vector<16x1xf32> to vector<16x16xf32>
    %41 = arith.subf %37, %40 : vector<16x16xf32>
    %42 = math.exp %41 : vector<16x16xf32>
    %cst_18 = arith.constant dense<0.000000e+00> : vector<16xf32>
    %43 = vector.multi_reduction <add>, %42, %cst_18 [1] : vector<16x16xf32> to vector<16xf32>
    %44 = vector.shape_cast %43 : vector<16xf32> to vector<16x1xf32>
    %45 = tpu.reciprocal %44 {approx = true} : vector<16x1xf32> -> vector<16x1xf32>
    %46 = vector.broadcast %45 : vector<16x1xf32> to vector<16x16xf32>
    %47 = arith.mulf %42, %46 : vector<16x16xf32>
    %cst_19 = arith.constant dense<0.000000e+00> : vector<16x32xf32>
    %48 = tpu.matmul %47, %33, %cst_19 {dimension_numbers = #tpu.dot_dimension_numbers<[1], [0], [0], [1], [0, 0, 1, 1], [], []>} : vector<16x16xf32>, vector<16x32xf32>, vector<16x32xf32> -> vector<16x32xf32>
    %49 = vector.extract_strided_slice %11 {offsets = [0, 64], sizes = [16, 32], strides = [1, 1]} : vector<16x1152xf32> to vector<16x32xf32>
    %50 = vector.extract_strided_slice %11 {offsets = [0, 448], sizes = [16, 32], strides = [1, 1]} : vector<16x1152xf32> to vector<16x32xf32>
    %51 = vector.extract_strided_slice %11 {offsets = [0, 832], sizes = [16, 32], strides = [1, 1]} : vector<16x1152xf32> to vector<16x32xf32>
    %cst_20 = arith.constant dense<0.000000e+00> : vector<16x16xf32>
    %52 = tpu.matmul %49, %50, %cst_20 {dimension_numbers = #tpu.dot_dimension_numbers<[1], [1], [0], [0], [0, 0, 1, 0], [], []>} : vector<16x32xf32>, vector<16x32xf32>, vector<16x16xf32> -> vector<16x16xf32>
    %cst_21 = arith.constant 0.176776692 : f32
    %53 = vector.broadcast %cst_21 : f32 to vector<16x16xf32>
    %54 = arith.mulf %52, %53 : vector<16x16xf32>
    %55 = arith.addf %54, %12 : vector<16x16xf32>
    %cst_22 = arith.constant dense<0xFF800000> : vector<16xf32>
    %56 = vector.multi_reduction <maximumf>, %55, %cst_22 [1] : vector<16x16xf32> to vector<16xf32>
    %57 = vector.shape_cast %56 : vector<16xf32> to vector<16x1xf32>
    %58 = vector.broadcast %57 : vector<16x1xf32> to vector<16x16xf32>
    %59 = arith.subf %55, %58 : vector<16x16xf32>
    %60 = math.exp %59 : vector<16x16xf32>
    %cst_23 = arith.constant dense<0.000000e+00> : vector<16xf32>
    %61 = vector.multi_reduction <add>, %60, %cst_23 [1] : vector<16x16xf32> to vector<16xf32>
    %62 = vector.shape_cast %61 : vector<16xf32> to vector<16x1xf32>
    %63 = tpu.reciprocal %62 {approx = true} : vector<16x1xf32> -> vector<16x1xf32>
    %64 = vector.broadcast %63 : vector<16x1xf32> to vector<16x16xf32>
    %65 = arith.mulf %60, %64 : vector<16x16xf32>
    %cst_24 = arith.constant dense<0.000000e+00> : vector<16x32xf32>
    %66 = tpu.matmul %65, %51, %cst_24 {dimension_numbers = #tpu.dot_dimension_numbers<[1], [0], [0], [1], [0, 0, 1, 1], [], []>} : vector<16x16xf32>, vector<16x32xf32>, vector<16x32xf32> -> vector<16x32xf32>
    %67 = vector.extract_strided_slice %11 {offsets = [0, 96], sizes = [16, 32], strides = [1, 1]} : vector<16x1152xf32> to vector<16x32xf32>
    %68 = vector.extract_strided_slice %11 {offsets = [0, 480], sizes = [16, 32], strides = [1, 1]} : vector<16x1152xf32> to vector<16x32xf32>
    %69 = vector.extract_strided_slice %11 {offsets = [0, 864], sizes = [16, 32], strides = [1, 1]} : vector<16x1152xf32> to vector<16x32xf32>
    %cst_25 = arith.constant dense<0.000000e+00> : vector<16x16xf32>
    %70 = tpu.matmul %67, %68, %cst_25 {dimension_numbers = #tpu.dot_dimension_numbers<[1], [1], [0], [0], [0, 0, 1, 0], [], []>} : vector<16x32xf32>, vector<16x32xf32>, vector<16x16xf32> -> vector<16x16xf32>
    %cst_26 = arith.constant 0.176776692 : f32
    %71 = vector.broadcast %cst_26 : f32 to vector<16x16xf32>
    %72 = arith.mulf %70, %71 : vector<16x16xf32>
    %73 = arith.addf %72, %12 : vector<16x16xf32>
    %cst_27 = arith.constant dense<0xFF800000> : vector<16xf32>
    %74 = vector.multi_reduction <maximumf>, %73, %cst_27 [1] : vector<16x16xf32> to vector<16xf32>
    %75 = vector.shape_cast %74 : vector<16xf32> to vector<16x1xf32>
    %76 = vector.broadcast %75 : vector<16x1xf32> to vector<16x16xf32>
    %77 = arith.subf %73, %76 : vector<16x16xf32>
    %78 = math.exp %77 : vector<16x16xf32>
    %cst_28 = arith.constant dense<0.000000e+00> : vector<16xf32>
    %79 = vector.multi_reduction <add>, %78, %cst_28 [1] : vector<16x16xf32> to vector<16xf32>
    %80 = vector.shape_cast %79 : vector<16xf32> to vector<16x1xf32>
    %81 = tpu.reciprocal %80 {approx = true} : vector<16x1xf32> -> vector<16x1xf32>
    %82 = vector.broadcast %81 : vector<16x1xf32> to vector<16x16xf32>
    %83 = arith.mulf %78, %82 : vector<16x16xf32>
    %cst_29 = arith.constant dense<0.000000e+00> : vector<16x32xf32>
    %84 = tpu.matmul %83, %69, %cst_29 {dimension_numbers = #tpu.dot_dimension_numbers<[1], [0], [0], [1], [0, 0, 1, 1], [], []>} : vector<16x16xf32>, vector<16x32xf32>, vector<16x32xf32> -> vector<16x32xf32>
    %85 = vector.extract_strided_slice %11 {offsets = [0, 128], sizes = [16, 32], strides = [1, 1]} : vector<16x1152xf32> to vector<16x32xf32>
    %86 = vector.extract_strided_slice %11 {offsets = [0, 512], sizes = [16, 32], strides = [1, 1]} : vector<16x1152xf32> to vector<16x32xf32>
    %87 = vector.extract_strided_slice %11 {offsets = [0, 896], sizes = [16, 32], strides = [1, 1]} : vector<16x1152xf32> to vector<16x32xf32>
    %cst_30 = arith.constant dense<0.000000e+00> : vector<16x16xf32>
    %88 = tpu.matmul %85, %86, %cst_30 {dimension_numbers = #tpu.dot_dimension_numbers<[1], [1], [0], [0], [0, 0, 1, 0], [], []>} : vector<16x32xf32>, vector<16x32xf32>, vector<16x16xf32> -> vector<16x16xf32>
    %cst_31 = arith.constant 0.176776692 : f32
    %89 = vector.broadcast %cst_31 : f32 to vector<16x16xf32>
    %90 = arith.mulf %88, %89 : vector<16x16xf32>
    %91 = arith.addf %90, %12 : vector<16x16xf32>
    %cst_32 = arith.constant dense<0xFF800000> : vector<16xf32>
    %92 = vector.multi_reduction <maximumf>, %91, %cst_32 [1] : vector<16x16xf32> to vector<16xf32>
    %93 = vector.shape_cast %92 : vector<16xf32> to vector<16x1xf32>
    %94 = vector.broadcast %93 : vector<16x1xf32> to vector<16x16xf32>
    %95 = arith.subf %91, %94 : vector<16x16xf32>
    %96 = math.exp %95 : vector<16x16xf32>
    %cst_33 = arith.constant dense<0.000000e+00> : vector<16xf32>
    %97 = vector.multi_reduction <add>, %96, %cst_33 [1] : vector<16x16xf32> to vector<16xf32>
    %98 = vector.shape_cast %97 : vector<16xf32> to vector<16x1xf32>
    %99 = tpu.reciprocal %98 {approx = true} : vector<16x1xf32> -> vector<16x1xf32>
    %100 = vector.broadcast %99 : vector<16x1xf32> to vector<16x16xf32>
    %101 = arith.mulf %96, %100 : vector<16x16xf32>
    %cst_34 = arith.constant dense<0.000000e+00> : vector<16x32xf32>
    %102 = tpu.matmul %101, %87, %cst_34 {dimension_numbers = #tpu.dot_dimension_numbers<[1], [0], [0], [1], [0, 0, 1, 1], [], []>} : vector<16x16xf32>, vector<16x32xf32>, vector<16x32xf32> -> vector<16x32xf32>
    %103 = vector.extract_strided_slice %11 {offsets = [0, 160], sizes = [16, 32], strides = [1, 1]} : vector<16x1152xf32> to vector<16x32xf32>
    %104 = vector.extract_strided_slice %11 {offsets = [0, 544], sizes = [16, 32], strides = [1, 1]} : vector<16x1152xf32> to vector<16x32xf32>
    %105 = vector.extract_strided_slice %11 {offsets = [0, 928], sizes = [16, 32], strides = [1, 1]} : vector<16x1152xf32> to vector<16x32xf32>
    %cst_35 = arith.constant dense<0.000000e+00> : vector<16x16xf32>
    %106 = tpu.matmul %103, %104, %cst_35 {dimension_numbers = #tpu.dot_dimension_numbers<[1], [1], [0], [0], [0, 0, 1, 0], [], []>} : vector<16x32xf32>, vector<16x32xf32>, vector<16x16xf32> -> vector<16x16xf32>
    %cst_36 = arith.constant 0.176776692 : f32
    %107 = vector.broadcast %cst_36 : f32 to vector<16x16xf32>
    %108 = arith.mulf %106, %107 : vector<16x16xf32>
    %109 = arith.addf %108, %12 : vector<16x16xf32>
    %cst_37 = arith.constant dense<0xFF800000> : vector<16xf32>
    %110 = vector.multi_reduction <maximumf>, %109, %cst_37 [1] : vector<16x16xf32> to vector<16xf32>
    %111 = vector.shape_cast %110 : vector<16xf32> to vector<16x1xf32>
    %112 = vector.broadcast %111 : vector<16x1xf32> to vector<16x16xf32>
    %113 = arith.subf %109, %112 : vector<16x16xf32>
    %114 = math.exp %113 : vector<16x16xf32>
    %cst_38 = arith.constant dense<0.000000e+00> : vector<16xf32>
    %115 = vector.multi_reduction <add>, %114, %cst_38 [1] : vector<16x16xf32> to vector<16xf32>
    %116 = vector.shape_cast %115 : vector<16xf32> to vector<16x1xf32>
    %117 = tpu.reciprocal %116 {approx = true} : vector<16x1xf32> -> vector<16x1xf32>
    %118 = vector.broadcast %117 : vector<16x1xf32> to vector<16x16xf32>
    %119 = arith.mulf %114, %118 : vector<16x16xf32>
    %cst_39 = arith.constant dense<0.000000e+00> : vector<16x32xf32>
    %120 = tpu.matmul %119, %105, %cst_39 {dimension_numbers = #tpu.dot_dimension_numbers<[1], [0], [0], [1], [0, 0, 1, 1], [], []>} : vector<16x16xf32>, vector<16x32xf32>, vector<16x32xf32> -> vector<16x32xf32>
    %121 = vector.extract_strided_slice %11 {offsets = [0, 192], sizes = [16, 32], strides = [1, 1]} : vector<16x1152xf32> to vector<16x32xf32>
    %122 = vector.extract_strided_slice %11 {offsets = [0, 576], sizes = [16, 32], strides = [1, 1]} : vector<16x1152xf32> to vector<16x32xf32>
    %123 = vector.extract_strided_slice %11 {offsets = [0, 960], sizes = [16, 32], strides = [1, 1]} : vector<16x1152xf32> to vector<16x32xf32>
    %cst_40 = arith.constant dense<0.000000e+00> : vector<16x16xf32>
    %124 = tpu.matmul %121, %122, %cst_40 {dimension_numbers = #tpu.dot_dimension_numbers<[1], [1], [0], [0], [0, 0, 1, 0], [], []>} : vector<16x32xf32>, vector<16x32xf32>, vector<16x16xf32> -> vector<16x16xf32>
    %cst_41 = arith.constant 0.176776692 : f32
    %125 = vector.broadcast %cst_41 : f32 to vector<16x16xf32>
    %126 = arith.mulf %124, %125 : vector<16x16xf32>
    %127 = arith.addf %126, %12 : vector<16x16xf32>
    %cst_42 = arith.constant dense<0xFF800000> : vector<16xf32>
    %128 = vector.multi_reduction <maximumf>, %127, %cst_42 [1] : vector<16x16xf32> to vector<16xf32>
    %129 = vector.shape_cast %128 : vector<16xf32> to vector<16x1xf32>
    %130 = vector.broadcast %129 : vector<16x1xf32> to vector<16x16xf32>
    %131 = arith.subf %127, %130 : vector<16x16xf32>
    %132 = math.exp %131 : vector<16x16xf32>
    %cst_43 = arith.constant dense<0.000000e+00> : vector<16xf32>
    %133 = vector.multi_reduction <add>, %132, %cst_43 [1] : vector<16x16xf32> to vector<16xf32>
    %134 = vector.shape_cast %133 : vector<16xf32> to vector<16x1xf32>
    %135 = tpu.reciprocal %134 {approx = true} : vector<16x1xf32> -> vector<16x1xf32>
    %136 = vector.broadcast %135 : vector<16x1xf32> to vector<16x16xf32>
    %137 = arith.mulf %132, %136 : vector<16x16xf32>
    %cst_44 = arith.constant dense<0.000000e+00> : vector<16x32xf32>
    %138 = tpu.matmul %137, %123, %cst_44 {dimension_numbers = #tpu.dot_dimension_numbers<[1], [0], [0], [1], [0, 0, 1, 1], [], []>} : vector<16x16xf32>, vector<16x32xf32>, vector<16x32xf32> -> vector<16x32xf32>
    %139 = vector.extract_strided_slice %11 {offsets = [0, 224], sizes = [16, 32], strides = [1, 1]} : vector<16x1152xf32> to vector<16x32xf32>
    %140 = vector.extract_strided_slice %11 {offsets = [0, 608], sizes = [16, 32], strides = [1, 1]} : vector<16x1152xf32> to vector<16x32xf32>
    %141 = vector.extract_strided_slice %11 {offsets = [0, 992], sizes = [16, 32], strides = [1, 1]} : vector<16x1152xf32> to vector<16x32xf32>
    %cst_45 = arith.constant dense<0.000000e+00> : vector<16x16xf32>
    %142 = tpu.matmul %139, %140, %cst_45 {dimension_numbers = #tpu.dot_dimension_numbers<[1], [1], [0], [0], [0, 0, 1, 0], [], []>} : vector<16x32xf32>, vector<16x32xf32>, vector<16x16xf32> -> vector<16x16xf32>
    %cst_46 = arith.constant 0.176776692 : f32
    %143 = vector.broadcast %cst_46 : f32 to vector<16x16xf32>
    %144 = arith.mulf %142, %143 : vector<16x16xf32>
    %145 = arith.addf %144, %12 : vector<16x16xf32>
    %cst_47 = arith.constant dense<0xFF800000> : vector<16xf32>
    %146 = vector.multi_reduction <maximumf>, %145, %cst_47 [1] : vector<16x16xf32> to vector<16xf32>
    %147 = vector.shape_cast %146 : vector<16xf32> to vector<16x1xf32>
    %148 = vector.broadcast %147 : vector<16x1xf32> to vector<16x16xf32>
    %149 = arith.subf %145, %148 : vector<16x16xf32>
    %150 = math.exp %149 : vector<16x16xf32>
    %cst_48 = arith.constant dense<0.000000e+00> : vector<16xf32>
    %151 = vector.multi_reduction <add>, %150, %cst_48 [1] : vector<16x16xf32> to vector<16xf32>
    %152 = vector.shape_cast %151 : vector<16xf32> to vector<16x1xf32>
    %153 = tpu.reciprocal %152 {approx = true} : vector<16x1xf32> -> vector<16x1xf32>
    %154 = vector.broadcast %153 : vector<16x1xf32> to vector<16x16xf32>
    %155 = arith.mulf %150, %154 : vector<16x16xf32>
    %cst_49 = arith.constant dense<0.000000e+00> : vector<16x32xf32>
    %156 = tpu.matmul %155, %141, %cst_49 {dimension_numbers = #tpu.dot_dimension_numbers<[1], [0], [0], [1], [0, 0, 1, 1], [], []>} : vector<16x16xf32>, vector<16x32xf32>, vector<16x32xf32> -> vector<16x32xf32>
    %157 = vector.extract_strided_slice %11 {offsets = [0, 256], sizes = [16, 32], strides = [1, 1]} : vector<16x1152xf32> to vector<16x32xf32>
    %158 = vector.extract_strided_slice %11 {offsets = [0, 640], sizes = [16, 32], strides = [1, 1]} : vector<16x1152xf32> to vector<16x32xf32>
    %159 = vector.extract_strided_slice %11 {offsets = [0, 1024], sizes = [16, 32], strides = [1, 1]} : vector<16x1152xf32> to vector<16x32xf32>
    %cst_50 = arith.constant dense<0.000000e+00> : vector<16x16xf32>
    %160 = tpu.matmul %157, %158, %cst_50 {dimension_numbers = #tpu.dot_dimension_numbers<[1], [1], [0], [0], [0, 0, 1, 0], [], []>} : vector<16x32xf32>, vector<16x32xf32>, vector<16x16xf32> -> vector<16x16xf32>
    %cst_51 = arith.constant 0.176776692 : f32
    %161 = vector.broadcast %cst_51 : f32 to vector<16x16xf32>
    %162 = arith.mulf %160, %161 : vector<16x16xf32>
    %163 = arith.addf %162, %12 : vector<16x16xf32>
    %cst_52 = arith.constant dense<0xFF800000> : vector<16xf32>
    %164 = vector.multi_reduction <maximumf>, %163, %cst_52 [1] : vector<16x16xf32> to vector<16xf32>
    %165 = vector.shape_cast %164 : vector<16xf32> to vector<16x1xf32>
    %166 = vector.broadcast %165 : vector<16x1xf32> to vector<16x16xf32>
    %167 = arith.subf %163, %166 : vector<16x16xf32>
    %168 = math.exp %167 : vector<16x16xf32>
    %cst_53 = arith.constant dense<0.000000e+00> : vector<16xf32>
    %169 = vector.multi_reduction <add>, %168, %cst_53 [1] : vector<16x16xf32> to vector<16xf32>
    %170 = vector.shape_cast %169 : vector<16xf32> to vector<16x1xf32>
    %171 = tpu.reciprocal %170 {approx = true} : vector<16x1xf32> -> vector<16x1xf32>
    %172 = vector.broadcast %171 : vector<16x1xf32> to vector<16x16xf32>
    %173 = arith.mulf %168, %172 : vector<16x16xf32>
    %cst_54 = arith.constant dense<0.000000e+00> : vector<16x32xf32>
    %174 = tpu.matmul %173, %159, %cst_54 {dimension_numbers = #tpu.dot_dimension_numbers<[1], [0], [0], [1], [0, 0, 1, 1], [], []>} : vector<16x16xf32>, vector<16x32xf32>, vector<16x32xf32> -> vector<16x32xf32>
    %175 = vector.extract_strided_slice %11 {offsets = [0, 288], sizes = [16, 32], strides = [1, 1]} : vector<16x1152xf32> to vector<16x32xf32>
    %176 = vector.extract_strided_slice %11 {offsets = [0, 672], sizes = [16, 32], strides = [1, 1]} : vector<16x1152xf32> to vector<16x32xf32>
    %177 = vector.extract_strided_slice %11 {offsets = [0, 1056], sizes = [16, 32], strides = [1, 1]} : vector<16x1152xf32> to vector<16x32xf32>
    %cst_55 = arith.constant dense<0.000000e+00> : vector<16x16xf32>
    %178 = tpu.matmul %175, %176, %cst_55 {dimension_numbers = #tpu.dot_dimension_numbers<[1], [1], [0], [0], [0, 0, 1, 0], [], []>} : vector<16x32xf32>, vector<16x32xf32>, vector<16x16xf32> -> vector<16x16xf32>
    %cst_56 = arith.constant 0.176776692 : f32
    %179 = vector.broadcast %cst_56 : f32 to vector<16x16xf32>
    %180 = arith.mulf %178, %179 : vector<16x16xf32>
    %181 = arith.addf %180, %12 : vector<16x16xf32>
    %cst_57 = arith.constant dense<0xFF800000> : vector<16xf32>
    %182 = vector.multi_reduction <maximumf>, %181, %cst_57 [1] : vector<16x16xf32> to vector<16xf32>
    %183 = vector.shape_cast %182 : vector<16xf32> to vector<16x1xf32>
    %184 = vector.broadcast %183 : vector<16x1xf32> to vector<16x16xf32>
    %185 = arith.subf %181, %184 : vector<16x16xf32>
    %186 = math.exp %185 : vector<16x16xf32>
    %cst_58 = arith.constant dense<0.000000e+00> : vector<16xf32>
    %187 = vector.multi_reduction <add>, %186, %cst_58 [1] : vector<16x16xf32> to vector<16xf32>
    %188 = vector.shape_cast %187 : vector<16xf32> to vector<16x1xf32>
    %189 = tpu.reciprocal %188 {approx = true} : vector<16x1xf32> -> vector<16x1xf32>
    %190 = vector.broadcast %189 : vector<16x1xf32> to vector<16x16xf32>
    %191 = arith.mulf %186, %190 : vector<16x16xf32>
    %cst_59 = arith.constant dense<0.000000e+00> : vector<16x32xf32>
    %192 = tpu.matmul %191, %177, %cst_59 {dimension_numbers = #tpu.dot_dimension_numbers<[1], [0], [0], [1], [0, 0, 1, 1], [], []>} : vector<16x16xf32>, vector<16x32xf32>, vector<16x32xf32> -> vector<16x32xf32>
    %193 = vector.extract_strided_slice %11 {offsets = [0, 320], sizes = [16, 32], strides = [1, 1]} : vector<16x1152xf32> to vector<16x32xf32>
    %194 = vector.extract_strided_slice %11 {offsets = [0, 704], sizes = [16, 32], strides = [1, 1]} : vector<16x1152xf32> to vector<16x32xf32>
    %195 = vector.extract_strided_slice %11 {offsets = [0, 1088], sizes = [16, 32], strides = [1, 1]} : vector<16x1152xf32> to vector<16x32xf32>
    %cst_60 = arith.constant dense<0.000000e+00> : vector<16x16xf32>
    %196 = tpu.matmul %193, %194, %cst_60 {dimension_numbers = #tpu.dot_dimension_numbers<[1], [1], [0], [0], [0, 0, 1, 0], [], []>} : vector<16x32xf32>, vector<16x32xf32>, vector<16x16xf32> -> vector<16x16xf32>
    %cst_61 = arith.constant 0.176776692 : f32
    %197 = vector.broadcast %cst_61 : f32 to vector<16x16xf32>
    %198 = arith.mulf %196, %197 : vector<16x16xf32>
    %199 = arith.addf %198, %12 : vector<16x16xf32>
    %cst_62 = arith.constant dense<0xFF800000> : vector<16xf32>
    %200 = vector.multi_reduction <maximumf>, %199, %cst_62 [1] : vector<16x16xf32> to vector<16xf32>
    %201 = vector.shape_cast %200 : vector<16xf32> to vector<16x1xf32>
    %202 = vector.broadcast %201 : vector<16x1xf32> to vector<16x16xf32>
    %203 = arith.subf %199, %202 : vector<16x16xf32>
    %204 = math.exp %203 : vector<16x16xf32>
    %cst_63 = arith.constant dense<0.000000e+00> : vector<16xf32>
    %205 = vector.multi_reduction <add>, %204, %cst_63 [1] : vector<16x16xf32> to vector<16xf32>
    %206 = vector.shape_cast %205 : vector<16xf32> to vector<16x1xf32>
    %207 = tpu.reciprocal %206 {approx = true} : vector<16x1xf32> -> vector<16x1xf32>
    %208 = vector.broadcast %207 : vector<16x1xf32> to vector<16x16xf32>
    %209 = arith.mulf %204, %208 : vector<16x16xf32>
    %cst_64 = arith.constant dense<0.000000e+00> : vector<16x32xf32>
    %210 = tpu.matmul %209, %195, %cst_64 {dimension_numbers = #tpu.dot_dimension_numbers<[1], [0], [0], [1], [0, 0, 1, 1], [], []>} : vector<16x16xf32>, vector<16x32xf32>, vector<16x32xf32> -> vector<16x32xf32>
    %211 = vector.extract_strided_slice %11 {offsets = [0, 352], sizes = [16, 32], strides = [1, 1]} : vector<16x1152xf32> to vector<16x32xf32>
    %212 = vector.extract_strided_slice %11 {offsets = [0, 736], sizes = [16, 32], strides = [1, 1]} : vector<16x1152xf32> to vector<16x32xf32>
    %213 = vector.extract_strided_slice %11 {offsets = [0, 1120], sizes = [16, 32], strides = [1, 1]} : vector<16x1152xf32> to vector<16x32xf32>
    %cst_65 = arith.constant dense<0.000000e+00> : vector<16x16xf32>
    %214 = tpu.matmul %211, %212, %cst_65 {dimension_numbers = #tpu.dot_dimension_numbers<[1], [1], [0], [0], [0, 0, 1, 0], [], []>} : vector<16x32xf32>, vector<16x32xf32>, vector<16x16xf32> -> vector<16x16xf32>
    %cst_66 = arith.constant 0.176776692 : f32
    %215 = vector.broadcast %cst_66 : f32 to vector<16x16xf32>
    %216 = arith.mulf %214, %215 : vector<16x16xf32>
    %217 = arith.addf %216, %12 : vector<16x16xf32>
    %cst_67 = arith.constant dense<0xFF800000> : vector<16xf32>
    %218 = vector.multi_reduction <maximumf>, %217, %cst_67 [1] : vector<16x16xf32> to vector<16xf32>
    %219 = vector.shape_cast %218 : vector<16xf32> to vector<16x1xf32>
    %220 = vector.broadcast %219 : vector<16x1xf32> to vector<16x16xf32>
    %221 = arith.subf %217, %220 : vector<16x16xf32>
    %222 = math.exp %221 : vector<16x16xf32>
    %cst_68 = arith.constant dense<0.000000e+00> : vector<16xf32>
    %223 = vector.multi_reduction <add>, %222, %cst_68 [1] : vector<16x16xf32> to vector<16xf32>
    %224 = vector.shape_cast %223 : vector<16xf32> to vector<16x1xf32>
    %225 = tpu.reciprocal %224 {approx = true} : vector<16x1xf32> -> vector<16x1xf32>
    %226 = vector.broadcast %225 : vector<16x1xf32> to vector<16x16xf32>
    %227 = arith.mulf %222, %226 : vector<16x16xf32>
    %cst_69 = arith.constant dense<0.000000e+00> : vector<16x32xf32>
    %228 = tpu.matmul %227, %213, %cst_69 {dimension_numbers = #tpu.dot_dimension_numbers<[1], [0], [0], [1], [0, 0, 1, 1], [], []>} : vector<16x16xf32>, vector<16x32xf32>, vector<16x32xf32> -> vector<16x32xf32>
    %229 = tpu.concatenate %30, %48, %66, %84, %102, %120, %138, %156, %174, %192, %210, %228 in 1 : vector<16x32xf32>, vector<16x32xf32>, vector<16x32xf32>, vector<16x32xf32>, vector<16x32xf32>, vector<16x32xf32>, vector<16x32xf32>, vector<16x32xf32>, vector<16x32xf32>, vector<16x32xf32>, vector<16x32xf32>, vector<16x32xf32> -> vector<16x384xf32>
    %230 = arith.truncf %229 : vector<16x384xf32> to vector<16x384xbf16>
    %c0_70 = arith.constant 0 : index
    %c0_71 = arith.constant 0 : index
    %c0_72 = arith.constant 0 : index
    %231 = vector.load %arg10[%c0_70, %c0_71, %c0_72] : memref<1x384x384xbf16, #tpu.memory_space<vmem>>, vector<1x384x384xbf16>
    %232 = vector.shape_cast %231 : vector<1x384x384xbf16> to vector<384x384xbf16>
    %cst_73 = arith.constant dense<0.000000e+00> : vector<16x384xf32>
    %233 = tpu.matmul %230, %232, %cst_73 {dimension_numbers = #tpu.dot_dimension_numbers<[1], [0], [0], [1], [0, 0, 1, 1], [], []>} : vector<16x384xbf16>, vector<384x384xbf16>, vector<16x384xf32> -> vector<16x384xf32>
    %c0_74 = arith.constant 0 : index
    %c0_75 = arith.constant 0 : index
    %c0_76 = arith.constant 0 : index
    %234 = vector.load %arg11[%c0_74, %c0_75, %c0_76] : memref<1x1x384xf32, #tpu.memory_space<vmem>>, vector<1x1x384xf32>
    %235 = vector.shape_cast %234 : vector<1x1x384xf32> to vector<1x384xf32>
    %236 = vector.broadcast %235 : vector<1x384xf32> to vector<16x384xf32>
    %237 = arith.addf %233, %236 : vector<16x384xf32>
    %238 = arith.addf %237, %3 : vector<16x384xf32>
    %c0_77 = arith.constant 0 : index
    %c0_78 = arith.constant 0 : index
    %c0_79 = arith.constant 0 : index
    %239 = vector.load %arg12[%c0_77, %c0_78, %c0_79] : memref<1x1x384xf32, #tpu.memory_space<vmem>>, vector<1x1x384xf32>
    %240 = vector.shape_cast %239 : vector<1x1x384xf32> to vector<1x384xf32>
    %c0_80 = arith.constant 0 : index
    %c0_81 = arith.constant 0 : index
    %c0_82 = arith.constant 0 : index
    %241 = vector.load %arg13[%c0_80, %c0_81, %c0_82] : memref<1x1x384xf32, #tpu.memory_space<vmem>>, vector<1x1x384xf32>
    %242 = vector.shape_cast %241 : vector<1x1x384xf32> to vector<1x384xf32>
    %cst_83 = arith.constant dense<0.000000e+00> : vector<16xf32>
    %243 = vector.multi_reduction <add>, %238, %cst_83 [1] : vector<16x384xf32> to vector<16xf32>
    %244 = vector.shape_cast %243 : vector<16xf32> to vector<16x1xf32>
    %cst_84 = arith.constant 3.840000e+02 : f32
    %245 = vector.broadcast %cst_84 : f32 to vector<16x1xf32>
    %246 = arith.divf %244, %245 : vector<16x1xf32>
    %247 = vector.broadcast %246 : vector<16x1xf32> to vector<16x384xf32>
    %248 = arith.subf %238, %247 : vector<16x384xf32>
    %249 = arith.mulf %248, %248 : vector<16x384xf32>
    %cst_85 = arith.constant dense<0.000000e+00> : vector<16xf32>
    %250 = vector.multi_reduction <add>, %249, %cst_85 [1] : vector<16x384xf32> to vector<16xf32>
    %251 = vector.shape_cast %250 : vector<16xf32> to vector<16x1xf32>
    %cst_86 = arith.constant 3.840000e+02 : f32
    %252 = vector.broadcast %cst_86 : f32 to vector<16x1xf32>
    %253 = arith.divf %251, %252 : vector<16x1xf32>
    %cst_87 = arith.constant 9.99999974E-6 : f32
    %254 = vector.broadcast %cst_87 : f32 to vector<16x1xf32>
    %255 = arith.addf %253, %254 : vector<16x1xf32>
    %256 = math.rsqrt %255 : vector<16x1xf32>
    %257 = vector.broadcast %256 : vector<16x1xf32> to vector<16x384xf32>
    %258 = arith.mulf %248, %257 : vector<16x384xf32>
    %259 = vector.broadcast %240 : vector<1x384xf32> to vector<16x384xf32>
    %260 = arith.mulf %258, %259 : vector<16x384xf32>
    %261 = vector.broadcast %242 : vector<1x384xf32> to vector<16x384xf32>
    %262 = arith.addf %260, %261 : vector<16x384xf32>
    %263 = arith.truncf %262 : vector<16x384xf32> to vector<16x384xbf16>
    %c0_88 = arith.constant 0 : index
    %c0_89 = arith.constant 0 : index
    %c0_90 = arith.constant 0 : index
    %264 = vector.load %arg14[%c0_88, %c0_89, %c0_90] : memref<1x384x1536xbf16, #tpu.memory_space<vmem>>, vector<1x384x1536xbf16>
    %265 = vector.shape_cast %264 : vector<1x384x1536xbf16> to vector<384x1536xbf16>
    %cst_91 = arith.constant dense<0.000000e+00> : vector<16x1536xf32>
    %266 = tpu.matmul %263, %265, %cst_91 {dimension_numbers = #tpu.dot_dimension_numbers<[1], [0], [0], [1], [0, 0, 1, 1], [], []>} : vector<16x384xbf16>, vector<384x1536xbf16>, vector<16x1536xf32> -> vector<16x1536xf32>
    %c0_92 = arith.constant 0 : index
    %c0_93 = arith.constant 0 : index
    %c0_94 = arith.constant 0 : index
    %267 = vector.load %arg15[%c0_92, %c0_93, %c0_94] : memref<1x1x1536xf32, #tpu.memory_space<vmem>>, vector<1x1x1536xf32>
    %268 = vector.shape_cast %267 : vector<1x1x1536xf32> to vector<1x1536xf32>
    %269 = vector.broadcast %268 : vector<1x1536xf32> to vector<16x1536xf32>
    %270 = arith.addf %266, %269 : vector<16x1536xf32>
    %cst_95 = arith.constant 0.000000e+00 : f32
    %271 = vector.broadcast %cst_95 : f32 to vector<16x1536xf32>
    %272 = arith.maximumf %270, %271 : vector<16x1536xf32>
    %273 = arith.truncf %272 : vector<16x1536xf32> to vector<16x1536xbf16>
    %c0_96 = arith.constant 0 : index
    %c0_97 = arith.constant 0 : index
    %c0_98 = arith.constant 0 : index
    %274 = vector.load %arg16[%c0_96, %c0_97, %c0_98] : memref<1x1536x384xbf16, #tpu.memory_space<vmem>>, vector<1x1536x384xbf16>
    %275 = vector.shape_cast %274 : vector<1x1536x384xbf16> to vector<1536x384xbf16>
    %cst_99 = arith.constant dense<0.000000e+00> : vector<16x384xf32>
    %276 = tpu.matmul %273, %275, %cst_99 {dimension_numbers = #tpu.dot_dimension_numbers<[1], [0], [0], [1], [0, 0, 1, 1], [], []>} : vector<16x1536xbf16>, vector<1536x384xbf16>, vector<16x384xf32> -> vector<16x384xf32>
    %c0_100 = arith.constant 0 : index
    %c0_101 = arith.constant 0 : index
    %c0_102 = arith.constant 0 : index
    %277 = vector.load %arg17[%c0_100, %c0_101, %c0_102] : memref<1x1x384xf32, #tpu.memory_space<vmem>>, vector<1x1x384xf32>
    %278 = vector.shape_cast %277 : vector<1x1x384xf32> to vector<1x384xf32>
    %279 = vector.broadcast %278 : vector<1x384xf32> to vector<16x384xf32>
    %280 = arith.addf %276, %279 : vector<16x384xf32>
    %281 = arith.addf %280, %262 : vector<16x384xf32>
    %c0_103 = arith.constant 0 : index
    %c0_104 = arith.constant 0 : index
    %c0_105 = arith.constant 0 : index
    %282 = vector.load %arg18[%c0_103, %c0_104, %c0_105] : memref<1x1x384xf32, #tpu.memory_space<vmem>>, vector<1x1x384xf32>
    %283 = vector.shape_cast %282 : vector<1x1x384xf32> to vector<1x384xf32>
    %c0_106 = arith.constant 0 : index
    %c0_107 = arith.constant 0 : index
    %c0_108 = arith.constant 0 : index
    %284 = vector.load %arg19[%c0_106, %c0_107, %c0_108] : memref<1x1x384xf32, #tpu.memory_space<vmem>>, vector<1x1x384xf32>
    %285 = vector.shape_cast %284 : vector<1x1x384xf32> to vector<1x384xf32>
    %cst_109 = arith.constant dense<0.000000e+00> : vector<16xf32>
    %286 = vector.multi_reduction <add>, %281, %cst_109 [1] : vector<16x384xf32> to vector<16xf32>
    %287 = vector.shape_cast %286 : vector<16xf32> to vector<16x1xf32>
    %cst_110 = arith.constant 3.840000e+02 : f32
    %288 = vector.broadcast %cst_110 : f32 to vector<16x1xf32>
    %289 = arith.divf %287, %288 : vector<16x1xf32>
    %290 = vector.broadcast %289 : vector<16x1xf32> to vector<16x384xf32>
    %291 = arith.subf %281, %290 : vector<16x384xf32>
    %292 = arith.mulf %291, %291 : vector<16x384xf32>
    %cst_111 = arith.constant dense<0.000000e+00> : vector<16xf32>
    %293 = vector.multi_reduction <add>, %292, %cst_111 [1] : vector<16x384xf32> to vector<16xf32>
    %294 = vector.shape_cast %293 : vector<16xf32> to vector<16x1xf32>
    %cst_112 = arith.constant 3.840000e+02 : f32
    %295 = vector.broadcast %cst_112 : f32 to vector<16x1xf32>
    %296 = arith.divf %294, %295 : vector<16x1xf32>
    %cst_113 = arith.constant 9.99999974E-6 : f32
    %297 = vector.broadcast %cst_113 : f32 to vector<16x1xf32>
    %298 = arith.addf %296, %297 : vector<16x1xf32>
    %299 = math.rsqrt %298 : vector<16x1xf32>
    %300 = vector.broadcast %299 : vector<16x1xf32> to vector<16x384xf32>
    %301 = arith.mulf %291, %300 : vector<16x384xf32>
    %302 = vector.broadcast %283 : vector<1x384xf32> to vector<16x384xf32>
    %303 = arith.mulf %301, %302 : vector<16x384xf32>
    %304 = vector.broadcast %285 : vector<1x384xf32> to vector<16x384xf32>
    %305 = arith.addf %303, %304 : vector<16x384xf32>
    %c0_114 = arith.constant 0 : index
    %c0_115 = arith.constant 0 : index
    %306 = vector.load %arg21[%c0_114, %c0_115] : memref<16x384xf32, #tpu.memory_space<vmem>>, vector<16x384xf32>
    tpu.vector_store %arg21[%c0_114, %c0_115], %305 {strides = array<i32>} : memref<16x384xf32, #tpu.memory_space<vmem>>, vector<16x384xf32>,
    %c3_i32 = arith.constant 3 : i32
    %307 = arith.cmpi eq, %arg0, %c3_i32 : i32
    %308 = arith.extui %307 : i1 to i32
    %c0_i32_116 = arith.constant 0 : i32
    %309 = arith.cmpi ne, %308, %c0_i32_116 : i32
    scf.if %309 {
      %c0_117 = arith.constant 0 : index
      %c0_118 = arith.constant 0 : index
      %310 = vector.load %arg6[%c0_117, %c0_118] : memref<384x1xf32, #tpu.memory_space<vmem>>, vector<384x1xf32>
      %cst_119 = arith.constant dense<0.000000e+00> : vector<16x1xf32>
      %311 = tpu.matmul %305, %310, %cst_119 {dimension_numbers = #tpu.dot_dimension_numbers<[1], [0], [0], [1], [0, 0, 1, 1], [], []>} : vector<16x384xf32>, vector<384x1xf32>, vector<16x1xf32> -> vector<16x1xf32>
      %c0_120 = arith.constant 0 : index
      %c0_121 = arith.constant 0 : index
      %312 = vector.load %arg7[%c0_120, %c0_121] : memref<1x1xf32, #tpu.memory_space<vmem>>, vector<1x1xf32>
      %313 = vector.broadcast %312 : vector<1x1xf32> to vector<16x1xf32>
      %314 = arith.addf %311, %313 : vector<16x1xf32>
      %c0_122 = arith.constant 0 : index
      %c0_123 = arith.constant 0 : index
      %315 = vector.load %arg2[%c0_122, %c0_123] : memref<16x1xi32, #tpu.memory_space<vmem>>, vector<16x1xi32>
      %c-1_i32 = arith.constant -1 : i32
      %316 = vector.broadcast %c-1_i32 : i32 to vector<16x1xi32>
      %317 = arith.cmpi eq, %315, %316 : vector<16x1xi32>
      %cst_124 = arith.constant 0.000000e+00 : f32
      %318 = vector.broadcast %cst_124 : f32 to vector<16x1xf32>
      %319 = arith.select %317, %318, %314 : vector<16x1xi1>, vector<16x1xf32>
      %c0_125 = arith.constant 0 : index
      %c0_126 = arith.constant 0 : index
      %320 = vector.load %arg20[%c0_125, %c0_126] : memref<16x1xf32, #tpu.memory_space<vmem>>, vector<16x1xf32>
      tpu.vector_store %arg20[%c0_125, %c0_126], %319 {strides = array<i32>} : memref<16x1xf32, #tpu.memory_space<vmem>>, vector<16x1xf32>,
    } else {
    }
    return
  }
  func.func @transform_0(%arg0: i32) -> (i32, i32) {
    %c0_i32 = arith.constant 0 : i32
    %c0_i32_0 = arith.constant 0 : i32
    %c0_i32_1 = arith.constant 0 : i32
    return %c0_i32, %c0_i32_0 : i32, i32
  }
  func.func @transform_1(%arg0: i32) -> (i32, i32) {
    %c0_i32 = arith.constant 0 : i32
    %c0_i32_0 = arith.constant 0 : i32
    %c0_i32_1 = arith.constant 0 : i32
    return %c0_i32, %c0_i32_0 : i32, i32
  }
  func.func @transform_2(%arg0: i32) -> (i32, i32) {
    %c0_i32 = arith.constant 0 : i32
    %c0_i32_0 = arith.constant 0 : i32
    %c0_i32_1 = arith.constant 0 : i32
    return %c0_i32, %c0_i32_0 : i32, i32
  }
  func.func @transform_3(%arg0: i32) -> (i32, i32) {
    %c0_i32 = arith.constant 0 : i32
    %c0_i32_0 = arith.constant 0 : i32
    %c0_i32_1 = arith.constant 0 : i32
    return %c0_i32, %c0_i32_0 : i32, i32
  }
  func.func @transform_4(%arg0: i32) -> (i32, i32) {
    %c0_i32 = arith.constant 0 : i32
    %c0_i32_0 = arith.constant 0 : i32
    %c0_i32_1 = arith.constant 0 : i32
    return %c0_i32, %c0_i32_0 : i32, i32
  }
  func.func @transform_5(%arg0: i32) -> (i32, i32) {
    %c0_i32 = arith.constant 0 : i32
    %c0_i32_0 = arith.constant 0 : i32
    %c0_i32_1 = arith.constant 0 : i32
    return %c0_i32, %c0_i32_0 : i32, i32
  }
  func.func @transform_6(%arg0: i32) -> (i32, i32) {
    %c0_i32 = arith.constant 0 : i32
    %c0_i32_0 = arith.constant 0 : i32
    %c0_i32_1 = arith.constant 0 : i32
    return %c0_i32, %c0_i32_0 : i32, i32
  }
  func.func @transform_7(%arg0: i32) -> (i32, i32, i32) {
    %c0_i32 = arith.constant 0 : i32
    %c0_i32_0 = arith.constant 0 : i32
    %c0_i32_1 = arith.constant 0 : i32
    return %arg0, %c0_i32, %c0_i32_0 : i32, i32, i32
  }
  func.func @transform_8(%arg0: i32) -> (i32, i32, i32) {
    %c0_i32 = arith.constant 0 : i32
    %c0_i32_0 = arith.constant 0 : i32
    %c0_i32_1 = arith.constant 0 : i32
    return %arg0, %c0_i32, %c0_i32_0 : i32, i32, i32
  }
  func.func @transform_9(%arg0: i32) -> (i32, i32, i32) {
    %c0_i32 = arith.constant 0 : i32
    %c0_i32_0 = arith.constant 0 : i32
    %c0_i32_1 = arith.constant 0 : i32
    return %arg0, %c0_i32, %c0_i32_0 : i32, i32, i32
  }
  func.func @transform_10(%arg0: i32) -> (i32, i32, i32) {
    %c0_i32 = arith.constant 0 : i32
    %c0_i32_0 = arith.constant 0 : i32
    %c0_i32_1 = arith.constant 0 : i32
    return %arg0, %c0_i32, %c0_i32_0 : i32, i32, i32
  }
  func.func @transform_11(%arg0: i32) -> (i32, i32, i32) {
    %c0_i32 = arith.constant 0 : i32
    %c0_i32_0 = arith.constant 0 : i32
    %c0_i32_1 = arith.constant 0 : i32
    return %arg0, %c0_i32, %c0_i32_0 : i32, i32, i32
  }
  func.func @transform_12(%arg0: i32) -> (i32, i32, i32) {
    %c0_i32 = arith.constant 0 : i32
    %c0_i32_0 = arith.constant 0 : i32
    %c0_i32_1 = arith.constant 0 : i32
    return %arg0, %c0_i32, %c0_i32_0 : i32, i32, i32
  }
  func.func @transform_13(%arg0: i32) -> (i32, i32, i32) {
    %c0_i32 = arith.constant 0 : i32
    %c0_i32_0 = arith.constant 0 : i32
    %c0_i32_1 = arith.constant 0 : i32
    return %arg0, %c0_i32, %c0_i32_0 : i32, i32, i32
  }
  func.func @transform_14(%arg0: i32) -> (i32, i32, i32) {
    %c0_i32 = arith.constant 0 : i32
    %c0_i32_0 = arith.constant 0 : i32
    %c0_i32_1 = arith.constant 0 : i32
    return %arg0, %c0_i32, %c0_i32_0 : i32, i32, i32
  }
  func.func @transform_15(%arg0: i32) -> (i32, i32, i32) {
    %c0_i32 = arith.constant 0 : i32
    %c0_i32_0 = arith.constant 0 : i32
    %c0_i32_1 = arith.constant 0 : i32
    return %arg0, %c0_i32, %c0_i32_0 : i32, i32, i32
  }
  func.func @transform_16(%arg0: i32) -> (i32, i32, i32) {
    %c0_i32 = arith.constant 0 : i32
    %c0_i32_0 = arith.constant 0 : i32
    %c0_i32_1 = arith.constant 0 : i32
    return %arg0, %c0_i32, %c0_i32_0 : i32, i32, i32
  }
  func.func @transform_17(%arg0: i32) -> (i32, i32, i32) {
    %c0_i32 = arith.constant 0 : i32
    %c0_i32_0 = arith.constant 0 : i32
    %c0_i32_1 = arith.constant 0 : i32
    return %arg0, %c0_i32, %c0_i32_0 : i32, i32, i32
  }
  func.func @transform_18(%arg0: i32) -> (i32, i32, i32) {
    %c0_i32 = arith.constant 0 : i32
    %c0_i32_0 = arith.constant 0 : i32
    %c0_i32_1 = arith.constant 0 : i32
    return %arg0, %c0_i32, %c0_i32_0 : i32, i32, i32
  }
  func.func @transform_19(%arg0: i32) -> (i32, i32) {
    %c0_i32 = arith.constant 0 : i32
    %c0_i32_0 = arith.constant 0 : i32
    %c0_i32_1 = arith.constant 0 : i32
    return %c0_i32, %c0_i32_0 : i32, i32
  }
}

</mosaic_0001>

<bundles_post_ra>
// kernel: forward.1
= control target key start
LH: loop header
LB: loop body
LE: loop exit
PB: predicated region body
PF: predicated region fallthrough
CT: control target
= control target key end

     0   :  { %s18255_s0 = inlined_call_operand.hbm [shape: f32[16,8], index: 0, kind: input, shape index: {}]   ;;  %s18256_s1 = inlined_call_operand.vmem [shape: s32[16,1], index: 1, kind: input, shape index: {}]   ;;  %s18257_s2 = inlined_call_operand.vmem [shape: f32[16,16], index: 2, kind: input, shape index: {}]   ;;  %s18258_s3 = inlined_call_operand.hbm [shape: bf16[8,384], index: 3, kind: input, shape index: {}]   ;;  %s18259_s4 = inlined_call_operand.hbm [shape: f32[1,384], index: 4, kind: input, shape index: {}]   ;;  %s18260_s5 = inlined_call_operand.vmem [shape: f32[384,1], index: 5, kind: input, shape index: {}]   ;;  %s18261_s6 = inlined_call_operand.<no memory space> [shape: f32[1,1], index: 6, kind: input, shape index: {}]   ;;  %s18262_s7 = inlined_call_operand.hbm [shape: bf16[4,384,1152], index: 7, kind: input, shape index: {}]   ;;  %s18263_s8 = inlined_call_operand.hbm [shape: f32[4,1,1152], index: 8, kind: input, shape index: {}]   ;;  %s18264_s9 = inlined_call_operand.hbm [shape: bf16[4,384,384], index: 9, kind: input, shape index: {}]   ;;  %s18265_s10 = inlined_call_operand.hbm [shape: f32[4,1,384], index: 10, kind: input, shape index: {}]   ;;  %s18266_s11 = inlined_call_operand.hbm [shape: f32[4,1,384], index: 11, kind: input, shape index: {}]   ;;  %s18267_s12 = inlined_call_operand.hbm [shape: f32[4,1,384], index: 12, kind: input, shape index: {}]   ;;  %s18268_s13 = inlined_call_operand.hbm [shape: bf16[4,384,1536], index: 13, kind: input, shape index: {}]   ;;  %s18269_s14 = inlined_call_operand.hbm [shape: f32[4,1,1536], index: 14, kind: input, shape index: {}]   ;;  %s18270_s15 = inlined_call_operand.hbm [shape: bf16[4,1536,384], index: 15, kind: input, shape index: {}]   ;;  %s18271_s16 = inlined_call_operand.hbm [shape: f32[4,1,384], index: 16, kind: input, shape index: {}]   ;;  %s18272_s17 = inlined_call_operand.hbm [shape: f32[4,1,384], index: 17, kind: input, shape index: {}]   ;;  %s18273_s18 = inlined_call_operand.hbm [shape: f32[4,1,384], index: 18, kind: input, shape index: {}]   ;;  %s18274_s19 = inlined_call_operand.vmem [shape: f32[16,1], index: 19, kind: output, shape index: {}]  }
   0x1   :  { %18313 = sst [smem:[#allocation42_spill]] %s18255_s0  ;;  %v24_v0 = vstv %s18261_s6 }
   0x2   :  { %18314 = sst [smem:[#allocation43_spill]] %s18256_s1  ;;  %25 = vst [vmem:[#allocation3] sm:$0x1] %v24_v0 }
   0x3   :  { %18315 = sst [smem:[#allocation44_spill]] %s18257_s2 }
   0x4   :  { %18316 = sst [smem:[#allocation45_spill]] %s18258_s3 }
   0x5   :  { %18317 = sst [smem:[#allocation46_spill]] %s18260_s5 }
   0x6   :  { %18318 = sst [smem:[#allocation47_spill]] %s18262_s7 }
   0x7   :  { %18319 = sst [smem:[#allocation48_spill]] %s18264_s9 }
   0x8   :  { %18320 = sst [smem:[#allocation49_spill]] %s18266_s11 }
   0x9   :  { %18321 = sst [smem:[#allocation50_spill]] %s18268_s13 }
   0xa   :  { %18322 = sst [smem:[#allocation51_spill]] %s18269_s14 }
   0xb   :  { %18323 = sst [smem:[#allocation52_spill]] %s18270_s15 }
   0xc   :  { %18324 = sst [smem:[#allocation53_spill]] %s18271_s16 }
   0xd   :  { %18325 = sst [smem:[#allocation54_spill]] %s18273_s18 }
   0xe   :  { %18326 = sst [smem:[#allocation55_spill]] %s18274_s19 }
   0xf   :  { %26 = vsyncpa [#allocation5], 0 }
  0x10   :  { %27 = vsyncpa [#allocation7], 0 }
  0x11   :  { %28 = vsyncpa [#allocation10], 0 }
  0x12   :  { %30 = vsyncpa [#allocation10 + $0x1], 0 }
  0x13   :  { %31 = vsyncpa [#allocation13], 0 }
  0x14   :  { %33 = vsyncpa [#allocation13 + $0x1], 0 }
  0x15   :  { %34 = vsyncpa [#allocation16], 0 }
  0x16   :  { %36 = vsyncpa [#allocation16 + $0x1], 0 }
  0x17   :  { %37 = vsyncpa [#allocation19], 0 }
  0x18   :  { %39 = vsyncpa [#allocation19 + $0x1], 0 }
  0x19   :  { %40 = vsyncpa [#allocation22], 0 }
  0x1a   :  { %42 = vsyncpa [#allocation22 + $0x1], 0 }
  0x1b   :  { %43 = vsyncpa [#allocation25], 0 }
  0x1c   :  { %45 = vsyncpa [#allocation25 + $0x1], 0  ;;  %s15870_s20 = smov 0   ;;  %s15872_s21 = smov 0  }
  0x1d   :  { %s15874_s6 = smov 0   ;;  %s15876_s1 = smov 0  }
  0x1e LB: > { %18327 = sst [smem:[#allocation35_spill]] %s15725_s21  ;;  %s15889_s22 = sadd.s32 4294967295, %s15733_s1   ;;  %s15733_s1 = sphi %s15876_s1, %s18391_s1   ;;  %s15729_s6 = sphi %s15874_s6, %s18394_s6   ;;  %s15725_s21 = sphi %s15872_s21, %s18393_s21   ;;  %s15721_s20 = sphi %s15870_s20, %s18392_s20  }
  0x1f   : > { %18328 = sst [smem:[#allocation36_spill]] %s15729_s6  ;;  %s15892_s2 = sadd.s32 1, %s15733_s1  }
  0x20   : > { %18329 = sst [smem:[#allocation37_spill]] %s15889_s22  ;;  %s202_s23 = ssub.s32 %s15733_s1, %s15892_s2 }
  0x21   : > { %18330 = sst [smem:[#allocation38_spill]] %s15892_s2  ;;  %s205_s24 = sadd.s32 1, %s15729_s6 }
  0x22   : > { %p203_p0 = scmp.eq.s32.totalorder %s202_s23, 0  ;;  %p212_p1 = scmp.ne.s32.totalorder %s15729_s6, %s15725_s21 }
  0x23   : > { %p213_p2 = scmp.eq.s32.totalorder %s15733_s1, 0  ;;  %p218_p3 = scmp.ne.s32.totalorder %s15725_s21, %s15721_s20 }
  0x24   : > { %s15902_s25 = scalar_select %p203_p0, %s15729_s6, %s205_s24  }
  0x25   : > { %p15904_p4 = por %p213_p2, %p212_p1  ;;  %p18287_p5 = scmp.eq.s32.totalorder %s15889_s22, 0 }
  0x26   : > { %18331 = sst [smem:[#allocation39_spill]] %s15902_s25  ;;  %p11718_p6 = scmp.ge.s32.totalorder %s15733_s1, 1 }
  0x27   : > { %p536_p7 = scmp.lt.s32.totalorder %s15733_s1, 5  ;;  %p15913_p8 = por %p18287_p5, %p218_p3 }
  0x28   : > { %s15735_s28 = smov [#allocation6]   ;;  %p13696_p12 = scmp.lt.s32.totalorder %s15733_s1, 4 }
  0x29   : > { %s18333_s26 = scalar_select %p15913_p8, 1, 0 }
  0x2a   : > { %p15918_p10 = pnand %p11718_p6, %p536_p7  ;;  %s568_s29 = sshll.u32 %s15735_s28, 4  ;;  %s569_s29 = int_to_ptr.vmem [resolvable:$true] %s568_s29 }
  0x2b   : > { %18334 = sst [smem:[#allocation40_spill]] %s18333_s26  ;;  %s15926_s0 = sand.u32 1, %s15733_s1  }
  0x2c   : > { %s18335_s27 = scalar_select %p15918_p10, 1, 0 }
  0x2d   : > { %p13646_p11 = pneg %p15918_p10  ;;  %p15936_p0 = pnand %p13696_p12, %p15904_p4 }
  0x2e   : > { %18336 = sst [smem:[#allocation41_spill]] %s18335_s27  ;;  %s15941_s23 = sand.u32 1, %s15729_s6  }
  0x2f   : > { %p15930_p13 = pnand %p13646_p11, %p18287_p5  ;;  %s13580_s24 = smul.u32 1728, %s15941_s23 }
  0x30   : > { %s18338_s20 = scalar_select %p15936_p0, 1, 0 }
  0x31   : > { %s18337_s30 = scalar_select %p15930_p13, 1, 0 }
  0x32   : > { %s18339_s2 = sld [smem:[#allocation45_spill]]  ;;  %p15952_p2 = pneg %p15930_p13 }
  0x34   : > { %s18340_s3 = scalar_select %p15952_p2, 1, 0 }
  0x38   : > { %s15227_s19 = scalar_lea.hbm %s18339_s2, 192 }
  0x39   : > { %p15228_p1 = scmp.ne.s32.totalorder %s18339_s2, %s15227_s19  ;;  %p15234_p6 = scmp.lt.u32.totalorder %s15227_s19, %s18339_s2 }
  0x3b   : > { %p15230_p3 = pnand %p15952_p2, %p15228_p1 }
  0x3d   : > { %p15231_p4 = pneg %p15230_p3 }
  0x3f   : > { %p15236_p7 = pnand %p15234_p6, %p15231_p4 }
  0x41   : > { %15239 = shalt.err (!%p15236_p7)
}
  0x42   : > { %s15240_s25 = scalar_lea.vmem %s569_s29, 192  ;;  %p15248_p5 = scmp.lt.s32.totalorder %s569_s29, %s569_s29 }
  0x43   : > { %p15241_p11 = scmp.ne.s32.totalorder %s569_s29, %s15240_s25  ;;  %p15249_p8 = scmp.lt.s32.totalorder %s15240_s25, %s15240_s25 }
  0x45   : > { %p15243_p12 = pnand %p15241_p11, %p15952_p2  ;;  %p15250_p10 = por %p15249_p8, %p15248_p5 }
  0x47   : > { %p15244_p9 = pneg %p15243_p12 }
  0x49   : > { %p15251_p0 = pnand %p15250_p10, %p15244_p9 }
  0x4b   : > { %15254 = shalt.err (!%p15251_p0)
}
  0x4c   : > { %13652 = dma.hbm_to_vmem [thread:$0]  (!%p15930_p13), %s18339_s2, 192, %s569_s29, [#allocation7]  }
  0x4d   : > { %s13581_s19 = smul.u32 27648, %s15733_s1  ;;  %s600_s21 = scalar_lea.vmem [#allocation9], %s13580_s24 }
  0x4e   : > { %s607_s6 = sshll.u32 %s600_s21, 4  ;;  %s18341_s7 = sld [smem:[#allocation47_spill]]  ;;  %s15969_s6 = int_to_ptr.vmem [resolvable:$true] %s607_s6 }
  0x4f   : > { %s18302_s27 = scalar_lea.sflag [#allocation10], %s15926_s0  ;;  %p18342_p8 = scmp.ne.s32.totalorder %s18338_s20, 0 }
  0x51   : > { %p15981_p9 = pneg %p18342_p8 }
  0x53   : > { %s18343_s29 = scalar_select %p15981_p9, 1, 0 }
  0x54   : > { %s15974_s25 = scalar_lea.hbm %s18341_s7, %s13581_s19  ;;  %s15260_s26 = scalar_lea.hbm %s18341_s7, 110592 }
  0x55   : > { %s15255_s5 = scalar_lea.hbm %s15974_s25, 27648  ;;  %p15261_p1 = scmp.lt.u32.totalorder %s15974_s25, %s18341_s7 }
  0x56   : > { %p15256_p5 = scmp.ne.s32.totalorder %s15974_s25, %s15255_s5  ;;  %p15262_p3 = scmp.lt.u32.totalorder %s15260_s26, %s15255_s5 }
  0x57   : > { %p15264_p6 = scmp.lt.u32.totalorder %s15255_s5, %s15974_s25 }
  0x58   : > { %p15258_p10 = pnand %p15981_p9, %p15256_p5  ;;  %p15263_p4 = por %p15262_p3, %p15261_p1 }
  0x5a   : > { %p15259_p0 = pneg %p15258_p10  ;;  %p15265_p7 = por %p15264_p6, %p15263_p4 }
  0x5c   : > { %p15266_p11 = pnand %p15265_p7, %p15259_p0 }
  0x5e   : > { %15269 = shalt.err (!%p15266_p11)
}
  0x5f   : > { %s15270_s28 = scalar_lea.vmem %s15969_s6, 27648  ;;  %s15736_s24 = smov [#allocation9]  }
  0x60   : > { %p15271_p12 = scmp.ne.s32.totalorder %s15969_s6, %s15270_s28  ;;  %s15275_s22 = sshll.u32 %s15736_s24, 4  ;;  %s15276_s22 = int_to_ptr.vmem [resolvable:$false] %s15275_s22 }
  0x61   : > { %s15277_s19 = scalar_lea.vmem %s15276_s22, 55296  ;;  %p15278_p13 = scmp.lt.s32.totalorder %s15969_s6, %s15276_s22 }
  0x62   : > { %p15273_p5 = pnand %p15271_p12, %p15981_p9  ;;  %p15279_p2 = scmp.lt.s32.totalorder %s15277_s19, %s15270_s28 }
  0x64   : > { %p15274_p10 = pneg %p15273_p5  ;;  %p15280_p1 = por %p15279_p2, %p15278_p13 }
  0x66   : > { %p15281_p3 = pnand %p15280_p1, %p15274_p10 }
  0x68   : > { %15284 = shalt.err (!%p15281_p3)
}
  0x69   : > { %s15737_s5 = smov 576   ;;  %s15738_s26 = smov 36  }
  0x6a   : > { %13659 = dma.hbm_to_vmem [thread:$0]  (!%p18342_p8), %s15974_s25, 27648, %s15969_s6, %s18302_s27, %s15737_s5, %s15737_s5, %s15738_s26  }
  0x6b   : > { %s13584_s21 = smul.u32 576, %s15941_s23  ;;  %s18344_s9 = sld [smem:[#allocation48_spill]] }
  0x6c   : > { %s13585_s24 = smul.u32 9216, %s15733_s1  ;;  %s18303_s16 = scalar_lea.sflag [#allocation13], %s15926_s0 }
  0x6d   : > { %s640_s2 = scalar_lea.vmem [#allocation12], %s13584_s21  ;;  %s16016_s18 = smul.u32 3, %s15941_s23 }
  0x6e   : > { %s647_s7 = sshll.u32 %s640_s2, 4  ;;  %s16013_s7 = int_to_ptr.vmem [resolvable:$true] %s647_s7 }
  0x71   : > { %s16011_s19 = scalar_lea.hbm %s18344_s9, %s13585_s24  ;;  %s15290_s5 = scalar_lea.hbm %s18344_s9, 36864 }
  0x72   : > { %s15285_s14 = scalar_lea.hbm %s16011_s19, 9216  ;;  %p15291_p4 = scmp.lt.u32.totalorder %s16011_s19, %s18344_s9 }
  0x73   : > { %p15286_p13 = scmp.ne.s32.totalorder %s16011_s19, %s15285_s14  ;;  %p15292_p6 = scmp.lt.u32.totalorder %s15290_s5, %s15285_s14 }
  0x74   : > { %p15294_p11 = scmp.lt.u32.totalorder %s15285_s14, %s16011_s19 }
  0x75   : > { %p15288_p2 = pnand %p15286_p13, %p15981_p9  ;;  %p15293_p7 = por %p15292_p6, %p15291_p4 }
  0x77   : > { %p15289_p0 = pneg %p15288_p2  ;;  %p15295_p12 = por %p15294_p11, %p15293_p7 }
  0x79   : > { %p15296_p5 = pnand %p15295_p12, %p15289_p0 }
  0x7b   : > { %15299 = shalt.err (!%p15296_p5)
}
  0x7c   : > { %s15300_s2 = scalar_lea.vmem %s16013_s7, 9216  ;;  %s15739_s21 = smov [#allocation12]  }
  0x7d   : > { %p15301_p10 = scmp.ne.s32.totalorder %s16013_s7, %s15300_s2  ;;  %s15305_s28 = sshll.u32 %s15739_s21, 4  ;;  %s15306_s28 = int_to_ptr.vmem [resolvable:$false] %s15305_s28 }
  0x7e   : > { %s15307_s22 = scalar_lea.vmem %s15306_s28, 18432  ;;  %p15308_p13 = scmp.lt.s32.totalorder %s16013_s7, %s15306_s28 }
  0x7f   : > { %p15303_p1 = pnand %p15301_p10, %p15981_p9  ;;  %p15309_p2 = scmp.lt.s32.totalorder %s15307_s22, %s15300_s2 }
  0x81   : > { %p15304_p3 = pneg %p15303_p1  ;;  %p15310_p4 = por %p15309_p2, %p15308_p13 }
  0x83   : > { %p15311_p6 = pnand %p15310_p4, %p15304_p3 }
  0x85   : > { %15314 = shalt.err (!%p15311_p6)
}
  0x86   : > { %s18304_s14 = smov 192   ;;  %s18306_s6 = smov 12  }
  0x87   : > { %13665 = dma.hbm_to_vmem [thread:$0]  (!%p18342_p8), %s16011_s19, 9216, %s16013_s7, %s18303_s16, %s18304_s14, %s18304_s14, %s18306_s6  }
  0x88   : > { %s16046_s25 = smul.u32 48, %s15733_s1  ;;  %s18345_s11 = sld [smem:[#allocation49_spill]] }
  0x89   : > { %s680_s2 = scalar_lea.vmem [#allocation15], %s16016_s18  ;;  %s13592_s28 = smul.u32 2304, %s15941_s23 }
  0x8a   : > { %s688_s21 = sshll.u32 %s680_s2, 4  ;;  %s18305_s22 = scalar_lea.sflag [#allocation16], %s15926_s0  ;;  %s16055_s21 = int_to_ptr.vmem [resolvable:$true] %s688_s21 }
  0x8e   : > { %s16052_s24 = scalar_lea.hbm %s18345_s11, %s16046_s25  ;;  %s15320_s5 = scalar_lea.hbm %s18345_s11, 192 }
  0x8f   : > { %s15315_s27 = scalar_lea.hbm %s16052_s24, 48  ;;  %p15321_p12 = scmp.lt.u32.totalorder %s16052_s24, %s18345_s11 }
  0x90   : > { %p15316_p0 = scmp.ne.s32.totalorder %s16052_s24, %s15315_s27  ;;  %p15322_p5 = scmp.lt.u32.totalorder %s15320_s5, %s15315_s27 }
  0x91   : > { %p15324_p1 = scmp.lt.u32.totalorder %s15315_s27, %s16052_s24 }
  0x92   : > { %p15318_p7 = pnand %p15316_p0, %p15981_p9  ;;  %p15323_p10 = por %p15322_p5, %p15321_p12 }
  0x94   : > { %p15319_p11 = pneg %p15318_p7  ;;  %p15325_p3 = por %p15324_p1, %p15323_p10 }
  0x96   : > { %p15326_p13 = pnand %p15325_p3, %p15319_p11 }
  0x98   : > { %15329 = shalt.err (!%p15326_p13)
}
  0x99   : > { %s15330_s2 = scalar_lea.vmem %s16055_s21, 48  ;;  %s15742_s7 = smov [#allocation15]  }
  0x9a   : > { %p15331_p2 = scmp.ne.s32.totalorder %s16055_s21, %s15330_s2  ;;  %s15335_s19 = sshll.u32 %s15742_s7, 4  ;;  %s15336_s19 = int_to_ptr.vmem [resolvable:$false] %s15335_s19 }
  0x9b   : > { %s15337_s16 = scalar_lea.vmem %s15336_s19, 96  ;;  %p15338_p0 = scmp.lt.s32.totalorder %s16055_s21, %s15336_s19 }
  0x9c   : > { %p15333_p4 = pnand %p15331_p2, %p15981_p9  ;;  %p15339_p7 = scmp.lt.s32.totalorder %s15337_s16, %s15330_s2 }
  0x9e   : > { %p15334_p6 = pneg %p15333_p4  ;;  %p15340_p12 = por %p15339_p7, %p15338_p0 }
  0xa0   : > { %p15341_p5 = pnand %p15340_p12, %p15334_p6 }
  0xa2   : > { %15344 = shalt.err (!%p15341_p5)
}
  0xa3   : > { %13671 = dma.hbm_to_vmem [thread:$0]  (!%p18342_p8), %s16052_s24, 48, %s16055_s21, %s18305_s22  }
  0xa4   : > { %s13593_s27 = smul.u32 36864, %s15733_s1  ;;  %s718_s5 = scalar_lea.vmem [#allocation18], %s13592_s28 }
  0xa5   : > { %s725_s26 = sshll.u32 %s718_s5, 4  ;;  %s18346_s13 = sld [smem:[#allocation50_spill]]  ;;  %s16092_s26 = int_to_ptr.vmem [resolvable:$true] %s725_s26 }
  0xa6   : > { %s18310_s16 = scalar_lea.sflag [#allocation19], %s15926_s0 }
  0xab   : > { %s16090_s19 = scalar_lea.hbm %s18346_s13, %s13593_s27  ;;  %s15350_s5 = scalar_lea.hbm %s18346_s13, 147456 }
  0xac   : > { %s15345_s14 = scalar_lea.hbm %s16090_s19, 36864  ;;  %p15351_p3 = scmp.lt.u32.totalorder %s16090_s19, %s18346_s13 }
  0xad   : > { %p15346_p11 = scmp.ne.s32.totalorder %s16090_s19, %s15345_s14  ;;  %p15352_p13 = scmp.lt.u32.totalorder %s15350_s5, %s15345_s14 }
  0xae   : > { %p15354_p4 = scmp.lt.u32.totalorder %s15345_s14, %s16090_s19 }
  0xaf   : > { %p15348_p10 = pnand %p15346_p11, %p15981_p9  ;;  %p15353_p2 = por %p15352_p13, %p15351_p3 }
  0xb1   : > { %p15349_p1 = pneg %p15348_p10  ;;  %p15355_p6 = por %p15354_p4, %p15353_p2 }
  0xb3   : > { %p15356_p0 = pnand %p15355_p6, %p15349_p1 }
  0xb5   : > { %15359 = shalt.err (!%p15356_p0)
}
  0xb6   : > { %s15360_s7 = scalar_lea.vmem %s16092_s26, 36864  ;;  %s15743_s24 = smov [#allocation18]  }
  0xb7   : > { %p15361_p7 = scmp.ne.s32.totalorder %s16092_s26, %s15360_s7  ;;  %s15365_s21 = sshll.u32 %s15743_s24, 4  ;;  %s15366_s21 = int_to_ptr.vmem [resolvable:$false] %s15365_s21 }
  0xb8   : > { %s15367_s22 = scalar_lea.vmem %s15366_s21, 73728  ;;  %p15368_p11 = scmp.lt.s32.totalorder %s16092_s26, %s15366_s21 }
  0xb9   : > { %p15363_p12 = pnand %p15361_p7, %p15981_p9  ;;  %p15369_p10 = scmp.lt.s32.totalorder %s15367_s22, %s15360_s7 }
  0xbb   : > { %p15364_p5 = pneg %p15363_p12  ;;  %p15370_p3 = por %p15369_p10, %p15368_p11 }
  0xbd   : > { %p15371_p13 = pnand %p15370_p3, %p15364_p5 }
  0xbf   : > { %15374 = shalt.err (!%p15371_p13)
}
  0xc0   : > { %s15744_s14 = smov 768   ;;  %s15745_s5 = smov 48  }
  0xc1   : > { %13677 = dma.hbm_to_vmem [thread:$0]  (!%p18342_p8), %s16090_s19, 36864, %s16092_s26, %s18310_s16, %s15744_s14, %s15744_s14, %s15745_s5  }
  0xc2   : > { %s18347_s15 = sld [smem:[#allocation52_spill]]  ;;  %s758_s21 = scalar_lea.vmem [#allocation21], %s13592_s28 }
  0xc3   : > { %s765_s22 = sshll.u32 %s758_s21, 4  ;;  %s18308_s6 = scalar_lea.sflag [#allocation22], %s15926_s0  ;;  %s16127_s22 = int_to_ptr.vmem [resolvable:$true] %s765_s22 }
  0xc8   : > { %s16123_s7 = scalar_lea.hbm %s18347_s15, %s13593_s27  ;;  %s15380_s27 = scalar_lea.hbm %s18347_s15, 147456 }
  0xc9   : > { %s15375_s9 = scalar_lea.hbm %s16123_s7, 36864  ;;  %p15381_p6 = scmp.lt.u32.totalorder %s16123_s7, %s18347_s15 }
  0xca   : > { %p15376_p1 = scmp.ne.s32.totalorder %s16123_s7, %s15375_s9  ;;  %p15382_p0 = scmp.lt.u32.totalorder %s15380_s27, %s15375_s9 }
  0xcb   : > { %p15384_p12 = scmp.lt.u32.totalorder %s15375_s9, %s16123_s7 }
  0xcc   : > { %p15378_p2 = pnand %p15376_p1, %p15981_p9  ;;  %p15383_p7 = por %p15382_p0, %p15381_p6 }
  0xce   : > { %p15379_p4 = pneg %p15378_p2  ;;  %p15385_p5 = por %p15384_p12, %p15383_p7 }
  0xd0   : > { %p15386_p11 = pnand %p15385_p5, %p15379_p4 }
  0xd2   : > { %15389 = shalt.err (!%p15386_p11)
}
  0xd3   : > { %s15390_s28 = scalar_lea.vmem %s16127_s22, 36864  ;;  %s15746_s2 = smov [#allocation21]  }
  0xd4   : > { %p15391_p10 = scmp.ne.s32.totalorder %s16127_s22, %s15390_s28  ;;  %s15395_s24 = sshll.u32 %s15746_s2, 4  ;;  %s15396_s24 = int_to_ptr.vmem [resolvable:$false] %s15395_s24 }
  0xd5   : > { %s15397_s21 = scalar_lea.vmem %s15396_s24, 73728  ;;  %p15398_p1 = scmp.lt.s32.totalorder %s16127_s22, %s15396_s24 }
  0xd6   : > { %p15393_p3 = pnand %p15391_p10, %p15981_p9  ;;  %p15399_p2 = scmp.lt.s32.totalorder %s15397_s21, %s15390_s28 }
  0xd8   : > { %p15394_p13 = pneg %p15393_p3  ;;  %p15400_p6 = por %p15399_p2, %p15398_p1 }
  0xda   : > { %p15401_p0 = pnand %p15400_p6, %p15394_p13 }
  0xdc   : > { %15404 = shalt.err (!%p15401_p0)
}
  0xdd   : > { %s18348_s9 = smov 12   ;;  %s18349_s26 = smov 192  }
  0xde   : > { %13683 = dma.hbm_to_vmem [thread:$0]  (!%p18342_p8), %s16123_s7, 36864, %s16127_s22, %s18308_s6, %s18349_s26, %s18349_s26, %s18348_s9  }
  0xdf   : > { %s16160_s14 = scalar_lea.hbm %s18272_s17, %s16046_s25  ;;  %s798_s5 = scalar_lea.vmem [#allocation24], %s16016_s18 }
  0xe0   : > { %s806_s28 = sshll.u32 %s798_s5, 4  ;;  %s18309_s2 = scalar_lea.sflag [#allocation25], %s15926_s0  ;;  %s807_s28 = int_to_ptr.vmem [resolvable:$true] %s806_s28 }
  0xe1   : > { %s15405_s24 = scalar_lea.hbm %s16160_s14, 48  ;;  %s15410_s22 = scalar_lea.hbm %s18272_s17, 192 }
  0xe2   : > { %p15406_p4 = scmp.ne.s32.totalorder %s16160_s14, %s15405_s24  ;;  %p15411_p5 = scmp.lt.u32.totalorder %s16160_s14, %s18272_s17 }
  0xe3   : > { %p15412_p11 = scmp.lt.u32.totalorder %s15410_s22, %s15405_s24  ;;  %p15414_p3 = scmp.lt.u32.totalorder %s15405_s24, %s16160_s14 }
  0xe4   : > { %p15408_p7 = pnand %p15406_p4, %p15981_p9 }
  0xe5   : > { %p15413_p10 = por %p15412_p11, %p15411_p5 }
  0xe6   : > { %p15409_p12 = pneg %p15408_p7 }
  0xe7   : > { %p15415_p13 = por %p15414_p3, %p15413_p10 }
  0xe9   : > { %p15416_p1 = pnand %p15415_p13, %p15409_p12 }
  0xeb   : > { %15419 = shalt.err (!%p15416_p1)
}
  0xec   : > { %s15420_s19 = scalar_lea.vmem %s807_s28, 48  ;;  %s15747_s27 = smov [#allocation24]  }
  0xed   : > { %p15421_p2 = scmp.ne.s32.totalorder %s807_s28, %s15420_s19  ;;  %s15425_s5 = sshll.u32 %s15747_s27, 4  ;;  %s15426_s5 = int_to_ptr.vmem [resolvable:$false] %s15425_s5 }
  0xee   : > { %s15427_s21 = scalar_lea.vmem %s15426_s5, 96  ;;  %p15428_p4 = scmp.lt.s32.totalorder %s807_s28, %s15426_s5 }
  0xef   : > { %p15423_p6 = pnand %p15421_p2, %p15981_p9  ;;  %p15429_p7 = scmp.lt.s32.totalorder %s15427_s21, %s15420_s19 }
  0xf1   : > { %p15424_p0 = pneg %p15423_p6  ;;  %p15430_p8 = por %p15429_p7, %p15428_p4 }
  0xf3   : > { %p15431_p5 = pnand %p15430_p8, %p15424_p0 }
  0xf5   : > { %15434 = shalt.err (!%p15431_p5)
}
  0xf6   : > { %p18350_p11 = scmp.ne.s32.totalorder %s18338_s20, 0  ;;  %s15748_s24 = smov [#allocation4]  }
  0xf7   : > { %s548_s7 = sshll.u32 %s15748_s24, 4  ;;  %s18351_s26 = sld [smem:[#allocation42_spill]]  ;;  %s549_s7 = int_to_ptr.vmem [resolvable:$true] %s548_s7 }
  0xf8   : > { %13689 = dma.hbm_to_vmem [thread:$0]  (!%p18350_p11), %s16160_s14, 48, %s807_s28, %s18309_s2  }
  0xf9   : > { %p18352_p8 = scmp.ne.s32.totalorder %s18340_s3, 0 }
  0xfd   : > { %s15435_s27 = scalar_lea.hbm %s18351_s26, 256 }
  0xfe   : > { %p15436_p12 = scmp.ne.s32.totalorder %s18351_s26, %s15435_s27  ;;  %p15442_p13 = scmp.lt.u32.totalorder %s15435_s27, %s18351_s26 }
 0x100   : > { %p15438_p10 = pnand %p15436_p12, %p18352_p8 }
 0x102   : > { %p15439_p3 = pneg %p15438_p10 }
 0x104   : > { %p15444_p1 = pnand %p15442_p13, %p15439_p3 }
 0x106   : > { %15447 = shalt.err (!%p15444_p1)
}
 0x107   : > { %s15448_s14 = scalar_lea.vmem %s549_s7, 256  ;;  %p15456_p4 = scmp.lt.s32.totalorder %s549_s7, %s549_s7 }
 0x108   : > { %p15449_p2 = scmp.ne.s32.totalorder %s549_s7, %s15448_s14  ;;  %p15457_p7 = scmp.lt.s32.totalorder %s15448_s14, %s15448_s14 }
 0x10a   : > { %p15451_p6 = pnand %p15449_p2, %p18352_p8  ;;  %p15458_p5 = por %p15457_p7, %p15456_p4 }
 0x10c   : > { %p15452_p0 = pneg %p15451_p6 }
 0x10e   : > { %p15459_p11 = pnand %p15458_p5, %p15452_p0 }
 0x110   : > { %15462 = shalt.err (!%p15459_p11)
}
 0x111   : > { %s15749_s6 = smov 128   ;;  %s15750_s28 = smov 8  }
 0x112   : > { %p18353_p12 = scmp.ne.s32.totalorder %s18337_s30, 0  ;;  %s13582_s9 = smul.u32 9, %s15941_s23 }
 0x113   : > { %s15751_s27 = smov [#allocation8]   ;;  %s13583_s19 = smul.u32 144, %s15733_s1 }
 0x114   : > { %13649 = dma.hbm_to_vmem [thread:$0]  (!%p18353_p12), %s18351_s26, 256, %s549_s7, [#allocation5], %s15749_s6, %s15749_s6, %s15750_s28  }
 0x115   : > { %s579_s5 = sshll.u32 %s15751_s27, 4  ;;  %s15463_s2 = scalar_lea.hbm %s18259_s4, 48  ;;  %s580_s5 = int_to_ptr.vmem [resolvable:$true] %s579_s5 }
 0x116   : > { %p15464_p11 = scmp.ne.s32.totalorder %s18259_s4, %s15463_s2  ;;  %p15470_p13 = scmp.lt.u32.totalorder %s15463_s2, %s18259_s4 }
 0x118   : > { %p15466_p10 = pnand %p15464_p11, %p18352_p8 }
 0x11a   : > { %p15467_p3 = pneg %p15466_p10 }
 0x11c   : > { %p15472_p1 = pnand %p15470_p13, %p15467_p3 }
 0x11e   : > { %15475 = shalt.err (!%p15472_p1)
}
 0x11f   : > { %s15476_s7 = scalar_lea.vmem %s580_s5, 48  ;;  %s15483_s6 = scalar_lea.vmem %s580_s5, 64 }
 0x120   : > { %p15477_p2 = scmp.ne.s32.totalorder %s580_s5, %s15476_s7  ;;  %p15484_p4 = scmp.lt.s32.totalorder %s580_s5, %s580_s5 }
 0x121   : > { %p15485_p7 = scmp.lt.s32.totalorder %s15483_s6, %s15476_s7 }
 0x122   : > { %p15479_p6 = pnand %p15477_p2, %p18352_p8 }
 0x123   : > { %p15486_p5 = por %p15485_p7, %p15484_p4 }
 0x124   : > { %p15480_p0 = pneg %p15479_p6 }
 0x126   : > { %p15487_p9 = pnand %p15486_p5, %p15480_p0 }
 0x128   : > { %15490 = shalt.err (!%p15487_p9)
}
 0x129   : > { %13655 = dma.hbm_to_vmem [thread:$0]  (!%p18353_p12), %s18259_s4, 48, %s580_s5, [#allocation7]  }
 0x12a   : > { %s16224_s2 = scalar_lea.hbm %s18263_s8, %s13583_s19  ;;  %s621_s3 = scalar_lea.vmem [#allocation11], %s13582_s9 }
 0x12b   : > { %s629_s28 = sshll.u32 %s621_s3, 4  ;;  %s15491_s24 = scalar_lea.hbm %s16224_s2, 144  ;;  %s630_s28 = int_to_ptr.vmem [resolvable:$true] %s629_s28 }
 0x12c   : > { %p15492_p9 = scmp.ne.s32.totalorder %s16224_s2, %s15491_s24  ;;  %p18354_p8 = scmp.ne.s32.totalorder %s18343_s29, 0 }
 0x12d   : > { %s15496_s27 = scalar_lea.hbm %s18263_s8, 576  ;;  %p15497_p12 = scmp.lt.u32.totalorder %s16224_s2, %s18263_s8 }
 0x12e   : > { %p15494_p11 = pnand %p15492_p9, %p18354_p8  ;;  %p15498_p3 = scmp.lt.u32.totalorder %s15496_s27, %s15491_s24 }
 0x12f   : > { %p15500_p1 = scmp.lt.u32.totalorder %s15491_s24, %s16224_s2 }
 0x130   : > { %p15495_p10 = pneg %p15494_p11  ;;  %p15499_p13 = por %p15498_p3, %p15497_p12 }
 0x132   : > { %p15501_p2 = por %p15500_p1, %p15499_p13 }
 0x134   : > { %p15502_p6 = pnand %p15501_p2, %p15495_p10 }
 0x136   : > { %15505 = shalt.err (!%p15502_p6)
}
 0x137   : > { %s15506_s9 = scalar_lea.vmem %s630_s28, 144  ;;  %s15752_s19 = smov [#allocation11]  }
 0x138   : > { %p15507_p0 = scmp.ne.s32.totalorder %s630_s28, %s15506_s9  ;;  %s15511_s14 = sshll.u32 %s15752_s19, 4  ;;  %s15512_s14 = int_to_ptr.vmem [resolvable:$false] %s15511_s14 }
 0x139   : > { %s15513_s7 = scalar_lea.vmem %s15512_s14, 288  ;;  %p15514_p5 = scmp.lt.s32.totalorder %s630_s28, %s15512_s14 }
 0x13a   : > { %p15509_p4 = pnand %p15507_p0, %p18354_p8  ;;  %p15515_p9 = scmp.lt.s32.totalorder %s15513_s7, %s15506_s9 }
 0x13c   : > { %p15510_p7 = pneg %p15509_p4  ;;  %p15516_p11 = por %p15515_p9, %p15514_p5 }
 0x13e   : > { %p15517_p3 = pnand %p15516_p11, %p15510_p7 }
 0x140   : > { %15520 = shalt.err (!%p15517_p3)
}
 0x141   : > { %p18355_p12 = scmp.ne.s32.totalorder %s18338_s20, 0  ;;  %s18356_s6 = scalar_lea.sflag [#allocation10], %s15926_s0 }
 0x142   : > { %s16249_s13 = scalar_lea.hbm %s18265_s10, %s16046_s25  ;;  %s661_s15 = scalar_lea.vmem [#allocation14], %s16016_s18 }
 0x143   : > { %13662 = dma.hbm_to_vmem [thread:$0]  (!%p18355_p12), %s16224_s2, 144, %s630_s28, %s18356_s6  }
 0x144   : > { %s669_s3 = sshll.u32 %s661_s15, 4  ;;  %s15521_s24 = scalar_lea.hbm %s16249_s13, 48  ;;  %s670_s3 = int_to_ptr.vmem [resolvable:$true] %s669_s3 }
 0x145   : > { %p15522_p10 = scmp.ne.s32.totalorder %s16249_s13, %s15521_s24  ;;  %s15526_s2 = scalar_lea.hbm %s18265_s10, 192 }
 0x146   : > { %p15527_p2 = scmp.lt.u32.totalorder %s16249_s13, %s18265_s10  ;;  %p15528_p6 = scmp.lt.u32.totalorder %s15526_s2, %s15521_s24 }
 0x147   : > { %p15524_p13 = pnand %p15522_p10, %p18354_p8  ;;  %p15530_p4 = scmp.lt.u32.totalorder %s15521_s24, %s16249_s13 }
 0x148   : > { %p15529_p0 = por %p15528_p6, %p15527_p2 }
 0x149   : > { %p15525_p1 = pneg %p15524_p13 }
 0x14a   : > { %p15531_p7 = por %p15530_p4, %p15529_p0 }
 0x14c   : > { %p15532_p5 = pnand %p15531_p7, %p15525_p1 }
 0x14e   : > { %15535 = shalt.err (!%p15532_p5)
}
 0x14f   : > { %s15536_s5 = scalar_lea.vmem %s670_s3, 48  ;;  %s15753_s21 = smov [#allocation14]  }
 0x150   : > { %p15537_p9 = scmp.ne.s32.totalorder %s670_s3, %s15536_s5  ;;  %s15541_s9 = sshll.u32 %s15753_s21, 4  ;;  %s15542_s9 = int_to_ptr.vmem [resolvable:$false] %s15541_s9 }
 0x151   : > { %s15543_s19 = scalar_lea.vmem %s15542_s9, 96  ;;  %p15544_p10 = scmp.lt.s32.totalorder %s670_s3, %s15542_s9 }
 0x152   : > { %p15539_p11 = pnand %p15537_p9, %p18354_p8  ;;  %p15545_p13 = scmp.lt.s32.totalorder %s15543_s19, %s15536_s5 }
 0x154   : > { %p15540_p3 = pneg %p15539_p11  ;;  %p15546_p12 = por %p15545_p13, %p15544_p10 }
 0x156   : > { %p15547_p2 = pnand %p15546_p12, %p15540_p3 }
 0x158   : > { %15550 = shalt.err (!%p15547_p2)
}
 0x159   : > { %p18357_p6 = scmp.ne.s32.totalorder %s18338_s20, 0  ;;  %s18358_s14 = scalar_lea.sflag [#allocation13], %s15926_s0 }
 0x15a   : > { %s16275_s11 = scalar_lea.hbm %s18267_s12, %s16046_s25  ;;  %s699_s16 = scalar_lea.vmem [#allocation17], %s16016_s18 }
 0x15b   : > { %13668 = dma.hbm_to_vmem [thread:$0]  (!%p18357_p6), %s16249_s13, 48, %s670_s3, %s18358_s14  }
 0x15c   : > { %s707_s15 = sshll.u32 %s699_s16, 4  ;;  %s13594_s24 = smul.u32 12, %s15941_s23  ;;  %s708_s15 = int_to_ptr.vmem [resolvable:$true] %s707_s15 }
 0x15d   : > { %s15551_s30 = scalar_lea.hbm %s16275_s11, 48  ;;  %s15556_s3 = scalar_lea.hbm %s18267_s12, 192 }
 0x15e   : > { %p15552_p12 = scmp.ne.s32.totalorder %s16275_s11, %s15551_s30  ;;  %p15557_p4 = scmp.lt.u32.totalorder %s16275_s11, %s18267_s12 }
 0x15f   : > { %p15558_p7 = scmp.lt.u32.totalorder %s15556_s3, %s15551_s30  ;;  %p15560_p9 = scmp.lt.u32.totalorder %s15551_s30, %s16275_s11 }
 0x160   : > { %p15554_p1 = pnand %p15552_p12, %p18354_p8 }
 0x161   : > { %p15559_p5 = por %p15558_p7, %p15557_p4 }
 0x162   : > { %p15555_p0 = pneg %p15554_p1 }
 0x163   : > { %p15561_p11 = por %p15560_p9, %p15559_p5 }
 0x165   : > { %p15562_p3 = pnand %p15561_p11, %p15555_p0 }
 0x167   : > { %15565 = shalt.err (!%p15562_p3)
}
 0x168   : > { %s15566_s23 = scalar_lea.vmem %s708_s15, 48  ;;  %s15754_s27 = smov [#allocation17]  }
 0x169   : > { %p15567_p10 = scmp.ne.s32.totalorder %s708_s15, %s15566_s23  ;;  %s15571_s5 = sshll.u32 %s15754_s27, 4  ;;  %s15572_s5 = int_to_ptr.vmem [resolvable:$false] %s15571_s5 }
 0x16a   : > { %s15573_s21 = scalar_lea.vmem %s15572_s5, 96  ;;  %p15574_p12 = scmp.lt.s32.totalorder %s708_s15, %s15572_s5 }
 0x16b   : > { %p15569_p13 = pnand %p15567_p10, %p18354_p8  ;;  %p15575_p1 = scmp.lt.s32.totalorder %s15573_s21, %s15566_s23 }
 0x16d   : > { %p15570_p2 = pneg %p15569_p13  ;;  %p15576_p6 = por %p15575_p1, %p15574_p12 }
 0x16f   : > { %p15577_p4 = pnand %p15576_p6, %p15570_p2 }
 0x171   : > { %15580 = shalt.err (!%p15577_p4)
}
 0x172   : > { %p18359_p7 = scmp.ne.s32.totalorder %s18338_s20, 0  ;;  %s18360_s9 = scalar_lea.sflag [#allocation16], %s15926_s0 }
 0x173   : > { %s13595_s19 = smul.u32 192, %s15733_s1  ;;  %s739_s14 = scalar_lea.vmem [#allocation20], %s13594_s24 }
 0x174   : > { %13674 = dma.hbm_to_vmem [thread:$0]  (!%p18359_p7), %s16275_s11, 48, %s708_s15, %s18360_s9  }
 0x175   : > { %s747_s7 = sshll.u32 %s739_s14, 4  ;;  %s18361_s30 = sld [smem:[#allocation51_spill]]  ;;  %s748_s7 = int_to_ptr.vmem [resolvable:$true] %s747_s7 }
 0x17b   : > { %s745_s22 = scalar_lea.hbm %s18361_s30, %s13595_s19  ;;  %s15586_s28 = scalar_lea.hbm %s18361_s30, 768 }
 0x17c   : > { %s15581_s13 = scalar_lea.hbm %s745_s22, 192  ;;  %p15587_p9 = scmp.lt.u32.totalorder %s745_s22, %s18361_s30 }
 0x17d   : > { %p15582_p0 = scmp.ne.s32.totalorder %s745_s22, %s15581_s13  ;;  %p15588_p11 = scmp.lt.u32.totalorder %s15586_s28, %s15581_s13 }
 0x17e   : > { %p15590_p10 = scmp.lt.u32.totalorder %s15581_s13, %s745_s22 }
 0x17f   : > { %p15584_p6 = pnand %p15582_p0, %p18354_p8  ;;  %p15589_p3 = por %p15588_p11, %p15587_p9 }
 0x181   : > { %p15585_p5 = pneg %p15584_p6  ;;  %p15591_p13 = por %p15590_p10, %p15589_p3 }
 0x183   : > { %p15592_p2 = pnand %p15591_p13, %p15585_p5 }
 0x185   : > { %15595 = shalt.err (!%p15592_p2)
}
 0x186   : > { %s15596_s1 = scalar_lea.vmem %s748_s7, 192  ;;  %s15755_s11 = smov [#allocation20]  }
 0x187   : > { %p15597_p12 = scmp.ne.s32.totalorder %s748_s7, %s15596_s1  ;;  %s15601_s15 = sshll.u32 %s15755_s11, 4  ;;  %s15602_s15 = int_to_ptr.vmem [resolvable:$false] %s15601_s15 }
 0x188   : > { %s15603_s24 = scalar_lea.vmem %s15602_s15, 384  ;;  %p15604_p0 = scmp.lt.s32.totalorder %s748_s7, %s15602_s15 }
 0x189   : > { %p15599_p1 = pnand %p15597_p12, %p18354_p8  ;;  %p15605_p6 = scmp.lt.s32.totalorder %s15603_s24, %s15596_s1 }
 0x18b   : > { %p15600_p4 = pneg %p15599_p1  ;;  %p15606_p7 = por %p15605_p6, %p15604_p0 }
 0x18d   : > { %p15607_p9 = pnand %p15606_p7, %p15600_p4 }
 0x18f   : > { %15610 = shalt.err (!%p15607_p9)
}
 0x190   : > { %p18362_p11 = scmp.ne.s32.totalorder %s18338_s20, 0  ;;  %s18363_s5 = scalar_lea.sflag [#allocation19], %s15926_s0 }
 0x191   : > { %s18364_s19 = sld [smem:[#allocation53_spill]]  ;;  %s779_s6 = scalar_lea.vmem [#allocation23], %s16016_s18 }
 0x192   : > { %13680 = dma.hbm_to_vmem [thread:$0]  (!%p18362_p11), %s745_s22, 192, %s748_s7, %s18363_s5  }
 0x193   : > { %s787_s16 = sshll.u32 %s779_s6, 4  ;;  %s788_s16 = int_to_ptr.vmem [resolvable:$true] %s787_s16 }
 0x197   : > { %s16320_s14 = scalar_lea.hbm %s18364_s19, %s16046_s25  ;;  %s15616_s7 = scalar_lea.hbm %s18364_s19, 192 }
 0x198   : > { %s15611_s13 = scalar_lea.hbm %s16320_s14, 48  ;;  %p15617_p10 = scmp.lt.u32.totalorder %s16320_s14, %s18364_s19 }
 0x199   : > { %p15612_p7 = scmp.ne.s32.totalorder %s16320_s14, %s15611_s13  ;;  %p15618_p13 = scmp.lt.u32.totalorder %s15616_s7, %s15611_s13 }
 0x19a   : > { %p15620_p12 = scmp.lt.u32.totalorder %s15611_s13, %s16320_s14 }
 0x19b   : > { %p15614_p5 = pnand %p15612_p7, %p18354_p8  ;;  %p15619_p2 = por %p15618_p13, %p15617_p10 }
 0x19d   : > { %p15615_p3 = pneg %p15614_p5  ;;  %p15621_p1 = por %p15620_p12, %p15619_p2 }
 0x19f   : > { %p15622_p4 = pnand %p15621_p1, %p15615_p3 }
 0x1a1   : > { %15625 = shalt.err (!%p15622_p4)
}
 0x1a2   : > { %s15626_s23 = scalar_lea.vmem %s788_s16, 48  ;;  %s15756_s27 = smov [#allocation23]  }
 0x1a3   : > { %p15627_p0 = scmp.ne.s32.totalorder %s788_s16, %s15626_s23  ;;  %s15631_s1 = sshll.u32 %s15756_s27, 4  ;;  %s15632_s1 = int_to_ptr.vmem [resolvable:$false] %s15631_s1 }
 0x1a4   : > { %s15633_s11 = scalar_lea.vmem %s15632_s1, 96  ;;  %p15634_p7 = scmp.lt.s32.totalorder %s788_s16, %s15632_s1 }
 0x1a5   : > { %p15629_p6 = pnand %p15627_p0, %p18354_p8  ;;  %p15635_p5 = scmp.lt.s32.totalorder %s15633_s11, %s15626_s23 }
 0x1a7   : > { %p15630_p9 = pneg %p15629_p6  ;;  %p15636_p11 = por %p15635_p5, %p15634_p7 }
 0x1a9   : > { %p15637_p10 = pnand %p15636_p11, %p15630_p9 }
 0x1ab   : > { %15640 = shalt.err (!%p15637_p10)
}
 0x1ac   : > { %p18365_p13 = scmp.ne.s32.totalorder %s18338_s20, 0  ;;  %s18366_s15 = scalar_lea.sflag [#allocation22], %s15926_s0 }
 0x1ad   : > { %s18367_s21 = sld [smem:[#allocation54_spill]]  ;;  %s817_s13 = scalar_lea.vmem [#allocation26], %s16016_s18 }
 0x1ae   : > { %13686 = dma.hbm_to_vmem [thread:$0]  (!%p18365_p13), %s16320_s14, 48, %s788_s16, %s18366_s15  }
 0x1af   : > { %s825_s3 = sshll.u32 %s817_s13, 4  ;;  %s826_s3 = int_to_ptr.vmem [resolvable:$true] %s825_s3 }
 0x1b3   : > { %s18368_s9 = smov %s18367_s21  ;;  %s16346_s6 = scalar_lea.hbm %s18367_s21, %s16046_s25 }
 0x1b4   : > { %s15641_s2 = scalar_lea.hbm %s16346_s6, 48  ;;  %s15646_s14 = scalar_lea.hbm %s18368_s9, 192 }
 0x1b5   : > { %p15642_p11 = scmp.ne.s32.totalorder %s16346_s6, %s15641_s2  ;;  %p15647_p12 = scmp.lt.u32.totalorder %s16346_s6, %s18368_s9 }
 0x1b6   : > { %p15648_p1 = scmp.lt.u32.totalorder %s15646_s14, %s15641_s2  ;;  %p15650_p0 = scmp.lt.u32.totalorder %s15641_s2, %s16346_s6 }
 0x1b7   : > { %p15644_p3 = pnand %p15642_p11, %p18354_p8 }
 0x1b8   : > { %p15649_p4 = por %p15648_p1, %p15647_p12 }
 0x1b9   : > { %p15645_p2 = pneg %p15644_p3 }
 0x1ba   : > { %p15651_p6 = por %p15650_p0, %p15649_p4 }
 0x1bc   : > { %p15652_p9 = pnand %p15651_p6, %p15645_p2 }
 0x1be   : > { %15655 = shalt.err (!%p15652_p9)
}
 0x1bf   : > { %s15656_s18 = scalar_lea.vmem %s826_s3, 48  ;;  %s15757_s25 = smov [#allocation26]  }
 0x1c0   : > { %p15657_p7 = scmp.ne.s32.totalorder %s826_s3, %s15656_s18  ;;  %s15661_s23 = sshll.u32 %s15757_s25, 4  ;;  %s15662_s23 = int_to_ptr.vmem [resolvable:$false] %s15661_s23 }
 0x1c1   : > { %s15663_s27 = scalar_lea.vmem %s15662_s23, 96  ;;  %p15664_p11 = scmp.lt.s32.totalorder %s826_s3, %s15662_s23 }
 0x1c2   : > { %p15659_p5 = pnand %p15657_p7, %p18354_p8  ;;  %p15665_p3 = scmp.lt.s32.totalorder %s15663_s27, %s15656_s18 }
 0x1c4   : > { %p15660_p10 = pneg %p15659_p5  ;;  %p15666_p13 = por %p15665_p3, %p15664_p11 }
 0x1c6   : > { %p15667_p1 = pnand %p15666_p13, %p15660_p10 }
 0x1c8   : > { %15670 = shalt.err (!%p15667_p1)
}
 0x1c9   : > { %p18369_p12 = scmp.ne.s32.totalorder %s18338_s20, 0  ;;  %s18370_s1 = scalar_lea.sflag [#allocation25], %s15926_s0 }
 0x1ca   : > { %s18371_s11 = sld [smem:[#allocation41_spill]] }
 0x1cb   : > { %13692 = dma.hbm_to_vmem [thread:$0]  (!%p18369_p12), %s16346_s6, 48, %s826_s3, %s18370_s1  }
 0x1d0   : > { %p18372_p2 = scmp.ne.s32.totalorder %s18371_s11, 0 }
 0x1d1   : > { %s18373_s29 = sld [smem:[#allocation37_spill]] (!%p18372_p2) }
 0x1d2   : > { %834 = sbr.rel (%p18372_p2) target bundleno = 9489 (0x2511), region = 96 }
 0x1d7   : > { %p18374_p8 = scmp.eq.s32.totalorder (!%p18372_p2), %s18373_s29, 0 }
 0x1d9   : > { %15688 = dma.done.wait (%p18374_p8), [#allocation5], 256   ;;  %p18375_p4 = pmov %p18374_p8 }
 0x1db   : > { %15690 = vsyncadd (%p18375_p4), [#allocation5], 4294967040  ;;  %p18376_p0 = pmov %p18375_p4 }
 0x1dd   : > { %15692 = dma.done.wait (%p18376_p0), [#allocation7], 240   ;;  %p18377_p13 = pmov %p18376_p0 }
 0x1de   : > { %s18378_s20 = sld [smem:[#allocation35_spill]]  ;;  %s18379_s0 = sld [smem:[#allocation40_spill]] }
 0x1df   : > { %15694 = vsyncadd (%p18377_p13), [#allocation7], 4294967056  ;;  %s16379_s15 = sand.u32 1, %s18373_s29  }
 0x1e0   : > { %s849_s21 = scalar_lea.sflag [#allocation10], %s16379_s15 }
 0x1e4   : > { %s850_s24 = sand.u32 1, %s18378_s20   ;;  %p18380_p6 = scmp.ne.s32.totalorder %s18379_s0, 0 }
 0x1e5   : > { %s13604_s5 = smul.u32 1728, %s850_s24 }
 0x1e7   : > { %s16383_s6 = scalar_lea.vmem [#allocation9], %s13604_s5 }
 0x1e8   : > { %15696 = dma.done.wait (%p18380_p6), %s849_s21, 27792  }
 0x1e9   : > { %15698 = vsyncadd (%p18380_p6), %s849_s21, 4294939504  ;;  %s13605_s13 = smul.u32 9, %s850_s24  ;;  %s867_s7 = scalar_lea.sflag [#allocation13], %s16379_s15 }
 0x1ea   : > { %s13606_s3 = smul.u32 576, %s850_s24 }
 0x1eb   : > { %s16389_s2 = scalar_lea.vmem [#allocation11], %s13605_s13 }
 0x1ec   : > { %s16392_s22 = scalar_lea.vmem [#allocation12], %s13606_s3 }
 0x1ed   : > { %15700 = dma.done.wait (%p18380_p6), %s867_s7, 9264  }
 0x1ee   : > { %15702 = vsyncadd (%p18380_p6), %s867_s7, 4294958032  ;;  %s16398_s14 = smul.u32 3, %s850_s24  ;;  %s885_s28 = scalar_lea.sflag [#allocation16], %s16379_s15 }
 0x1f0   : > { %s879_s16 = scalar_lea.vmem [#allocation14], %s16398_s14  ;;  %s888_s18 = scalar_lea.vmem [#allocation15], %s16398_s14 }
 0x1f1   : > { %15704 = dma.done.wait (%p18380_p6), %s885_s28, 96  }
 0x1f2   : > { %15706 = vsyncadd (%p18380_p6), %s885_s28, 4294967200  ;;  %s13608_s25 = smul.u32 2304, %s850_s24  ;;  %s897_s23 = scalar_lea.vmem [#allocation17], %s16398_s14 }
 0x1f3   : > { %s903_s27 = scalar_lea.sflag [#allocation19], %s16379_s15 }
 0x1f4   : > { %s16409_s1 = scalar_lea.vmem [#allocation18], %s13608_s25 }
 0x1f5   : > { %15708 = dma.done.wait (%p18380_p6), %s903_s27, 37056  }
 0x1f6   : > { %15710 = vsyncadd (%p18380_p6), %s903_s27, 4294930240  ;;  %s13609_s11 = smul.u32 12, %s850_s24  ;;  %s921_s5 = scalar_lea.sflag [#allocation22], %s16379_s15 }
 0x1f7   : > { %s16418_s21 = scalar_lea.vmem [#allocation21], %s13608_s25 }
 0x1f8   : > { %s16415_s20 = scalar_lea.vmem [#allocation20], %s13609_s11 }
 0x1f9   : > { %15712 = dma.done.wait (%p18380_p6), %s921_s5, 36912  }
 0x1fa   : > { %15714 = vsyncadd (%p18380_p6), %s921_s5, 4294930384  ;;  %s933_s13 = scalar_lea.vmem [#allocation23], %s16398_s14  ;;  %s939_s3 = scalar_lea.sflag [#allocation25], %s16379_s15 }
 0x1fb   : > { %s942_s7 = scalar_lea.vmem [#allocation24], %s16398_s14 }
 0x1fc   : > { %15716 = dma.done.wait (%p18380_p6), %s939_s3, 96  }
 0x1fd   : > { %15718 = vsyncadd (%p18380_p6), %s939_s3, 4294967200  ;;  %s951_s24 = scalar_lea.vmem [#allocation26], %s16398_s14  ;;  %p18381_p9 = scmp.ne.s32.totalorder %s18373_s29, 0 }
 0x1fe   : > { %v1064_v1 = vld [vmem:[#allocation6] sm:$0xff] (!%p18381_p9)  ;;  %vm1095_vm0 = vcmask (!%p18381_p9), 1043456   ;;  %v15758_v3 = vmov (!%p18381_p9), 0.0   ;;  %v13754_v5 = vld [vmem:[#allocation6 + $0x8] ss:$0 sps:$4 sm:$0xff] (!%p18381_p9)   ;;  %v15759_v6 = vmov (!%p18381_p9), 0   ;;  %v1068_v12 = vlaneseq (!%p18381_p9) }
 0x1ff   : > { %1060 = sbr.rel (%p18381_p9) target bundleno = 735 (0x2df), region = 160  ;;  %v11741_v2 = vcombine.high (!%p18381_p9), %v1064_v1, %v1064_v1  ;;  %13035 = vmatprep.subr.bf16.mxu1 (!%p18381_p9), %v15758_v3  ;;  %v11740_v4 = vcombine.low (!%p18381_p9), %v1064_v1, %v1064_v1  ;;  %1137 = vmatprep.mubr.bf16.mxu0 (!%p18381_p9), %v15759_v6  ;;  %v1061_v7 = vld [vmem:[#allocation4] sm:$0xff] (!%p18381_p9)  ;;  %v1062_v8 = vld [vmem:[#allocation4 + $0x8] sm:$0xff] (!%p18381_p9)  ;;  %vm15760_vm1 = vmmov (!%p18381_p9), 0   ;;  %v1103_v10 = vsel (!%p18381_p9), %vm1095_vm0, %v13754_v5, 0 }
 0x200   : > { %13037 = vmatprep.mubr.msk.bf16.mxu1 (!%p18381_p9), %vm15760_vm1, %v15758_v3  ;;  %v1063_v11 = vpack.c.bf16 (!%p18381_p9), %v1062_v8, %v1061_v7  ;;  %13036 = vmatpush3.bf16.msra.mxu1 (!%p18381_p9), %v1103_v10  ;;  %vm1091_vm2 = vcmask (!%p18381_p9), 64512   ;;  %v1069_v13 = vshrl.u32 (!%p18381_p9), %v1068_v12, 7  ;;  %v1066_v16 = vld [vmem:[#allocation8] sm:$0x7] (!%p18381_p9) }
 0x201   : > { %11743 = vmatprep.subr.msk.bf16.mxu0 (!%p18381_p9), %vm1095_vm0, %v11741_v2  ;;  %v1097_v9 = vsel (!%p18381_p9), %vm1095_vm0, %v11740_v4, 0 }
 0x202   : > { %1106 = vmatpush1.bf16.msra.mxu0 (!%p18381_p9), %v1097_v9  ;;  %v1070_v14 = vsub.s32 (!%p18381_p9), 0, %v1069_v13  ;;  %v1078_v15 = vsub.s32 (!%p18381_p9), 2, %v1069_v13  ;;  %v1074_v17 = vsub.s32 (!%p18381_p9), 1, %v1069_v13 }
 0x203   : > { %13038 = vmatmul.mubr.msk.bf16.vlgmr.msra.gmra.mrb[0].mxu1 (!%p18381_p9), %vm1091_vm2, %v1063_v11 }
 0x204   : > { %v1071_v18 = vrot.slane (!%p18381_p9), %v1066_v16, %v1070_v14  ;;  %v1079_v19 = vrot.slane (!%p18381_p9), %v1066_v16, %v1078_v15  ;;  %v1075_v20 = vrot.slane (!%p18381_p9), %v1066_v16, %v1074_v17 }
 0x205   : > { %11744 = vmatmul.mubr.msk.bf16.vlgmr.msra.gmra.mrb[0].mxu0 (!%p18381_p9), %vm1091_vm2, %v1063_v11 }
 0x2d6   : > { %v1182_v22 = vpop.f32.mrb[0].mxu1 }
 0x2d7   : > { %v1183_v24 = vadd.f32 %v1182_v22, %v1079_v19  ;;  %v13039_v26 = vpop.f32.mrb[1].mxu1 }
 0x2d8   : > { %v1139_v21 = vpop.f32.mrb[0].mxu0  ;;  %v1185_v29 = vpop.f32.mrb[2].mxu1 }
 0x2d9   : > { %v1140_v23 = vadd.f32 %v1139_v21, %v1071_v18  ;;  %v1141_v25 = vpop.f32.mrb[1].mxu0  ;;  %1191 = vst [vmem:[#allocation2 + $0x10] sm:$0xff] %v1183_v24  ;;  %v1186_v31 = vadd.f32 %v1185_v29, %v1079_v19  ;;  %v13040_v33 = vpop.f32.mrb[3].mxu1 }
 0x2da   : > { %v1142_v27 = vadd.f32 %v1141_v25, %v1075_v20  ;;  %v1143_v28 = vpop.f32.mrb[2].mxu0 }
 0x2db   : > { %1189 = vst [vmem:[#allocation2] sm:$0xff] %v1140_v23  ;;  %v1144_v30 = vadd.f32 %v1143_v28, %v1071_v18  ;;  %v1145_v32 = vpop.f32.mrb[3].mxu0  ;;  %1194 = vst [vmem:[#allocation2 + $0x28] sm:$0xff] %v1186_v31 }
 0x2dc   : > { %1190 = vst [vmem:[#allocation2 + $0x8] sm:$0xff] %v1142_v27  ;;  %v1146_v34 = vadd.f32 %v1145_v32, %v1075_v20 }
 0x2dd   : > { %1192 = vst [vmem:[#allocation2 + $0x18] sm:$0xff] %v1144_v30 }
 0x2de   : > { %1193 = vst [vmem:[#allocation2 + $0x20] sm:$0xff] %v1146_v34 }
 0x2df PF: > { %v13890_v35 = vld [vmem:[%s16383_s6 + $0x4] ss:$36 sps:$4 sm:$0xff]   ;;  %v15761_v37 = vmov 0   ;;  %v13893_v38 = vld [vmem:[%s16383_s6 + $0x4c] ss:$36 sps:$4 sm:$0xff]   ;;  %vm15763_vm3 = vmmov 0  }
 0x2e0   : > { %v13892_v36 = vld [vmem:[%s16383_s6] ss:$36 sps:$4 sm:$0xff]   ;;  %2672 = vmatprep.mubr.bf16.mxu0 %v15761_v37  ;;  %2597 = vmatprep.subr.bf16.mxu1 %v13890_v35  ;;  %v13895_v39 = vld [vmem:[%s16383_s6 + $0x48] ss:$36 sps:$4 sm:$0xff]   ;;  %v13896_v40 = vld [vmem:[%s16383_s6 + $0x94] ss:$36 sps:$4 sm:$0xff]  }
 0x2e1   : > { %2598 = vmatpush1.bf16.msra.mxu1 %v13892_v36  ;;  %v13898_v41 = vld [vmem:[%s16383_s6 + $0x90] ss:$36 sps:$4 sm:$0xff]   ;;  %v13899_v42 = vld [vmem:[%s16383_s6 + $0xdc] ss:$36 sps:$4 sm:$0xff]   ;;  %v13902_v44 = vld [vmem:[%s16383_s6 + $0x124] ss:$36 sps:$4 sm:$0xff]  }
 0x2e2   : > { %2599 = vmatprep.subr.bf16.mxu1 %v13893_v38  ;;  %v13901_v43 = vld [vmem:[%s16383_s6 + $0xd8] ss:$36 sps:$4 sm:$0xff]   ;;  %v13917_v45 = vld [vmem:[%s16383_s6 + $0x484] ss:$36 sps:$4 sm:$0xff]   ;;  %v13923_v48 = vld [vmem:[%s16383_s6 + $0x4cc] ss:$36 sps:$4 sm:$0xff]  }
 0x2e3   : > { %v13919_v46 = vld [vmem:[%s16383_s6 + $0x480] ss:$36 sps:$4 sm:$0xff]   ;;  %2640 = vmatprep.subr.bf16.mxu0 %v13917_v45  ;;  %v13925_v49 = vld [vmem:[%s16383_s6 + $0x4c8] ss:$36 sps:$4 sm:$0xff]   ;;  %v13929_v52 = vld [vmem:[%s16383_s6 + $0x514] ss:$36 sps:$4 sm:$0xff]  }
 0x2e4   : > { %v13904_v47 = vld [vmem:[%s16383_s6 + $0x120] ss:$36 sps:$4 sm:$0xff]   ;;  %2641 = vmatpush1.bf16.msra.mxu0 %v13919_v46  ;;  %v13905_v50 = vld [vmem:[%s16383_s6 + $0x16c] ss:$36 sps:$4 sm:$0xff]   ;;  %v13908_v53 = vld [vmem:[%s16383_s6 + $0x1b4] ss:$36 sps:$4 sm:$0xff]  }
 0x2e5   : > { %2600 = vmatpush1.bf16.msra.mxu1 %v13895_v39  ;;  %2642 = vmatprep.subr.bf16.mxu0 %v13923_v48  ;;  %v13907_v51 = vld [vmem:[%s16383_s6 + $0x168] ss:$36 sps:$4 sm:$0xff]   ;;  %v13931_v54 = vld [vmem:[%s16383_s6 + $0x510] ss:$36 sps:$4 sm:$0xff]   ;;  %v13935_v55 = vld [vmem:[%s16383_s6 + $0x55c] ss:$36 sps:$4 sm:$0xff]  }
 0x2e6   : > { %2601 = vmatprep.subr.bf16.mxu1 %v13896_v40  ;;  %v13910_v56 = vld [vmem:[%s16383_s6 + $0x1b0] ss:$36 sps:$4 sm:$0xff]   ;;  %v13911_v57 = vld [vmem:[%s16383_s6 + $0x1fc] ss:$36 sps:$4 sm:$0xff]   ;;  %v13941_v59 = vld [vmem:[%s16383_s6 + $0x5a4] ss:$36 sps:$4 sm:$0xff]  }
 0x2e7   : > { %v13937_v58 = vld [vmem:[%s16383_s6 + $0x558] ss:$36 sps:$4 sm:$0xff]   ;;  %v13914_v61 = vld [vmem:[%s16383_s6 + $0x244] ss:$36 sps:$4 sm:$0xff]   ;;  %v13947_v63 = vld [vmem:[%s16383_s6 + $0x5ec] ss:$36 sps:$4 sm:$0xff]  }
 0x2e8   : > { %2643 = vmatpush1.bf16.msra.mxu0 %v13925_v49  ;;  %v13913_v60 = vld [vmem:[%s16383_s6 + $0x1f8] ss:$36 sps:$4 sm:$0xff]   ;;  %v13943_v62 = vld [vmem:[%s16383_s6 + $0x5a0] ss:$36 sps:$4 sm:$0xff]   ;;  %v13949_v1 = vld [vmem:[%s16383_s6 + $0x5e8] ss:$36 sps:$4 sm:$0xff]  }
 0x2e9   : > { %2602 = vmatpush1.bf16.msra.mxu1 %v13898_v41  ;;  %2644 = vmatprep.subr.bf16.mxu0 %v13929_v52  ;;  %v13916_v0 = vld [vmem:[%s16383_s6 + $0x240] ss:$36 sps:$4 sm:$0xff]   ;;  %v1196_v2 = vld [vmem:[#allocation2 + $0x8] sm:$0xff]  ;;  %v13920_v3 = vld [vmem:[%s16383_s6 + $0x28c] ss:$36 sps:$4 sm:$0xff]   ;;  %s15764_s29 = smov 96  }
 0x2ea   : > { %2603 = vmatprep.subr.bf16.mxu1 %v13899_v42  ;;  %v13953_v4 = vld [vmem:[%s16383_s6 + $0x634] ss:$36 sps:$4 sm:$0xff]   ;;  %v13922_v7 = vld [vmem:[%s16383_s6 + $0x288] ss:$36 sps:$4 sm:$0xff]   ;;  %v13959_v10 = vld [vmem:[%s16383_s6 + $0x67c] ss:$36 sps:$4 sm:$0xff]  }
 0x2eb   : > { %v1199_v5 = vld [vmem:[#allocation2 + $0x20] sm:$0xff]  ;;  %v13961_v12 = vld [vmem:[%s16383_s6 + $0x678] ss:$36 sps:$4 sm:$0xff]   ;;  %v13938_v18 = vld [vmem:[%s16383_s6 + $0x364] ss:$36 sps:$4 sm:$0xff]   ;;  %vm3025_vm4 = vcmask 261120  }
 0x2ec   : > { %2645 = vmatpush1.bf16.msra.mxu0 %v13931_v54  ;;  %v16467_v6 = vpack.c.bf16 %v1199_v5, %v1196_v2  ;;  %v13955_v8 = vld [vmem:[%s16383_s6 + $0x630] ss:$36 sps:$4 sm:$0xff]   ;;  %v1197_v13 = vld [vmem:[#allocation2 + $0x10] sm:$0xff]  ;;  %v13946_v21 = vld [vmem:[%s16383_s6 + $0x3a8] ss:$36 sps:$4 sm:$0xff]   ;;  %vm3117_vm6 = vcmask 130048  }
 0x2ed   : > { %2604 = vmatpush1.bf16.msra.mxu1 %v13901_v43  ;;  %2646 = vmatprep.subr.bf16.mxu0 %v13935_v55  ;;  %v13926_v9 = vld [vmem:[%s16383_s6 + $0x2d4] ss:$36 sps:$4 sm:$0xff]   ;;  %v13932_v15 = vld [vmem:[%s16383_s6 + $0x31c] ss:$36 sps:$4 sm:$0xff]   ;;  %v13944_v20 = vld [vmem:[%s16383_s6 + $0x3ac] ss:$36 sps:$4 sm:$0xff]  }
 0x2ee   : > { %2605 = vmatprep.subr.bf16.mxu1 %v13902_v44  ;;  %v13928_v11 = vld [vmem:[%s16383_s6 + $0x2d0] ss:$36 sps:$4 sm:$0xff]   ;;  %2629 = vmatprep.mubr.bf16.mxu1 %v16467_v6  ;;  %v13934_v17 = vld [vmem:[%s16383_s6 + $0x318] ss:$36 sps:$4 sm:$0xff]   ;;  %v13940_v19 = vld [vmem:[%s16383_s6 + $0x360] ss:$36 sps:$4 sm:$0xff]  }
 0x2ef   : > { %v1200_v14 = vld [vmem:[#allocation2 + $0x28] sm:$0xff]  ;;  %v1195_v26 = vld [vmem:[#allocation2] sm:$0xff]  ;;  %v1198_v27 = vld [vmem:[#allocation2 + $0x18] sm:$0xff]  ;;  %s15765_s27 = smov 64   ;;  %s15766_s11 = smov 32   ;;  %vm5525_vm7 = vcmask 523264  }
 0x2f0   : > { %2647 = vmatpush1.bf16.msra.mxu0 %v13937_v58  ;;  %v16477_v16 = vpack.c.bf16 %v1200_v14, %v1197_v13  ;;  %v13950_v22 = vld [vmem:[%s16383_s6 + $0x3f4] ss:$36 sps:$4 sm:$0xff]   ;;  %v13956_v24 = vld [vmem:[%s16383_s6 + $0x43c] ss:$36 sps:$4 sm:$0xff]   ;;  %v13964_v28 = vld [vmem:[%s16383_s6 + $0xc] ss:$36 sps:$4 sm:$0xff]   ;;  %v16491_v29 = vpack.c.bf16 %v1198_v27, %v1195_v26 }
 0x2f1   : > { %2606 = vmatpush1.bf16.msra.mxu1 %v13904_v47  ;;  %2648 = vmatprep.subr.bf16.mxu0 %v13941_v59  ;;  %v13952_v23 = vld [vmem:[%s16383_s6 + $0x3f0] ss:$36 sps:$4 sm:$0xff]   ;;  %v13958_v25 = vld [vmem:[%s16383_s6 + $0x438] ss:$36 sps:$4 sm:$0xff]   ;;  %v13962_v30 = vld [vmem:[%s16383_s6 + $0x8] ss:$36 sps:$4 sm:$0xff]  }
 0x2f2   : > { %2607 = vmatprep.subr.bf16.mxu1 %v13905_v50  ;;  %v13967_v31 = vld [vmem:[%s16383_s6 + $0x54] ss:$36 sps:$4 sm:$0xff]   ;;  %v13970_v33 = vld [vmem:[%s16383_s6 + $0x9c] ss:$36 sps:$4 sm:$0xff]   ;;  %v13973_v35 = vld [vmem:[%s16383_s6 + $0xe4] ss:$36 sps:$4 sm:$0xff]  }
 0x2f3   : > { %v13965_v32 = vld [vmem:[%s16383_s6 + $0x50] ss:$36 sps:$4 sm:$0xff]   ;;  %v13968_v34 = vld [vmem:[%s16383_s6 + $0x98] ss:$36 sps:$4 sm:$0xff]   ;;  %v13971_v36 = vld [vmem:[%s16383_s6 + $0xe0] ss:$36 sps:$4 sm:$0xff]  }
 0x2f4   : > { %2649 = vmatpush1.bf16.msra.mxu0 %v13943_v62  ;;  %v13976_v38 = vld [vmem:[%s16383_s6 + $0x12c] ss:$36 sps:$4 sm:$0xff]   ;;  %v13979_v40 = vld [vmem:[%s16383_s6 + $0x174] ss:$36 sps:$4 sm:$0xff]   ;;  %v13982_v42 = vld [vmem:[%s16383_s6 + $0x1bc] ss:$36 sps:$4 sm:$0xff]  }
 0x2f5   : > { %2608 = vmatpush1.bf16.msra.mxu1 %v13907_v51  ;;  %2650 = vmatprep.subr.bf16.mxu0 %v13947_v63  ;;  %v13974_v39 = vld [vmem:[%s16383_s6 + $0x128] ss:$36 sps:$4 sm:$0xff]   ;;  %v13977_v41 = vld [vmem:[%s16383_s6 + $0x170] ss:$36 sps:$4 sm:$0xff]   ;;  %v13980_v43 = vld [vmem:[%s16383_s6 + $0x1b8] ss:$36 sps:$4 sm:$0xff]  }
 0x2f6   : > { %2609 = vmatprep.subr.bf16.mxu1 %v13908_v53  ;;  %v13985_v44 = vld [vmem:[%s16383_s6 + $0x204] ss:$36 sps:$4 sm:$0xff]   ;;  %v13988_v46 = vld [vmem:[%s16383_s6 + $0x24c] ss:$36 sps:$4 sm:$0xff]   ;;  %v13991_v48 = vld [vmem:[%s16383_s6 + $0x294] ss:$36 sps:$4 sm:$0xff]  }
 0x2f7   : > { %v13983_v45 = vld [vmem:[%s16383_s6 + $0x200] ss:$36 sps:$4 sm:$0xff]   ;;  %v13986_v47 = vld [vmem:[%s16383_s6 + $0x248] ss:$36 sps:$4 sm:$0xff]   ;;  %v13989_v49 = vld [vmem:[%s16383_s6 + $0x290] ss:$36 sps:$4 sm:$0xff]  }
 0x2f8   : > { %2651 = vmatpush1.bf16.msra.mxu0 %v13949_v1  ;;  %v13994_v50 = vld [vmem:[%s16383_s6 + $0x2dc] ss:$36 sps:$4 sm:$0xff]   ;;  %v13997_v52 = vld [vmem:[%s16383_s6 + $0x324] ss:$36 sps:$4 sm:$0xff]   ;;  %v14000_v54 = vld [vmem:[%s16383_s6 + $0x36c] ss:$36 sps:$4 sm:$0xff]  }
 0x2f9   : > { %2610 = vmatpush1.bf16.msra.mxu1 %v13910_v56  ;;  %2652 = vmatprep.subr.bf16.mxu0 %v13953_v4  ;;  %v13992_v51 = vld [vmem:[%s16383_s6 + $0x2d8] ss:$36 sps:$4 sm:$0xff]   ;;  %v13995_v53 = vld [vmem:[%s16383_s6 + $0x320] ss:$36 sps:$4 sm:$0xff]   ;;  %v13998_v55 = vld [vmem:[%s16383_s6 + $0x368] ss:$36 sps:$4 sm:$0xff]  }
 0x2fa   : > { %2611 = vmatprep.subr.bf16.mxu1 %v13911_v57  ;;  %v14003_v56 = vld [vmem:[%s16383_s6 + $0x3b4] ss:$36 sps:$4 sm:$0xff]   ;;  %v14006_v58 = vld [vmem:[%s16383_s6 + $0x3fc] ss:$36 sps:$4 sm:$0xff]   ;;  %v14012_v62 = vld [vmem:[%s16383_s6 + $0x48c] ss:$36 sps:$4 sm:$0xff]  }
 0x2fb   : > { %v14001_v57 = vld [vmem:[%s16383_s6 + $0x3b0] ss:$36 sps:$4 sm:$0xff]   ;;  %v14004_v59 = vld [vmem:[%s16383_s6 + $0x3f8] ss:$36 sps:$4 sm:$0xff]   ;;  %v14010_v63 = vld [vmem:[%s16383_s6 + $0x488] ss:$36 sps:$4 sm:$0xff]  }
 0x2fc   : > { %2653 = vmatpush1.bf16.msra.mxu0 %v13955_v8  ;;  %v14013_v1 = vld [vmem:[%s16383_s6 + $0x4d0] ss:$36 sps:$4 sm:$0xff]   ;;  %v14018_v2 = vld [vmem:[%s16383_s6 + $0x51c] ss:$36 sps:$4 sm:$0xff]   ;;  %v14021_v4 = vld [vmem:[%s16383_s6 + $0x564] ss:$36 sps:$4 sm:$0xff]  }
 0x2fd   : > { %2612 = vmatpush1.bf16.msra.mxu1 %v13913_v60  ;;  %2654 = vmatprep.subr.bf16.mxu0 %v13959_v10  ;;  %v14009_v60 = vld [vmem:[%s16383_s6 + $0x444] ss:$36 sps:$4 sm:$0xff]   ;;  %v14025_v10 = vld [vmem:[%s16383_s6 + $0x5f0] ss:$36 sps:$4 sm:$0xff]   ;;  %vm16726_vm5 = vmpackc.low %vm3025_vm4, %vm3025_vm4  ;;  %vm5528_vm8 = vcmask 785408  }
 0x2fe   : > { %2613 = vmatprep.subr.bf16.mxu1 %v13914_v61  ;;  %v14007_v61 = vld [vmem:[%s16383_s6 + $0x440] ss:$36 sps:$4 sm:$0xff]   ;;  %v14022_v8 = vld [vmem:[%s16383_s6 + $0x5a8] ss:$36 sps:$4 sm:$0xff]   ;;  %v14045_v27 = vld [vmem:[%s16383_s6 + $0xf4] ss:$36 sps:$4 sm:$0xff]  }
 0x2ff   : > { %v14019_v5 = vld [vmem:[%s16383_s6 + $0x560] ss:$36 sps:$4 sm:$0xff]  }
 0x300   : > { %2655 = vmatpush1.bf16.msra.mxu0 %v13961_v12  ;;  %v14028_v12 = vld [vmem:[%s16383_s6 + $0x638] ss:$36 sps:$4 sm:$0xff]   ;;  %v14033_v13 = vld [vmem:[%s16383_s6 + $0x684] ss:$36 sps:$4 sm:$0xff]  }
 0x301   : > { %2614 = vmatpush1.bf16.msra.mxu1 %v13916_v0  ;;  %v14015_v0 = vld [vmem:[%s16383_s6 + $0x4d4] ss:$36 sps:$4 sm:$0xff]   ;;  %v14031_v14 = vld [vmem:[%s16383_s6 + $0x680] ss:$36 sps:$4 sm:$0xff]  }
 0x302   : > { %2615 = vmatprep.subr.bf16.mxu1 %v13920_v3  ;;  %v14016_v3 = vld [vmem:[%s16383_s6 + $0x518] ss:$36 sps:$4 sm:$0xff]   ;;  %v14122_v26 = vld [vmem:[%s16383_s6 + $0xa4] ss:$36 sps:$4 sm:$0xff]  }
 0x303   : > { %2673 = vmatmul.mubr.bf16.vlgmr.msra.gmra.mrb[0].mxu0 %v16477_v16 }
 0x304   : > { %2801 = vmatprep.mubr.bf16.mxu0 %v16467_v6 }
 0x305   : > { %2616 = vmatpush1.bf16.msra.mxu1 %v13922_v7  ;;  %v14024_v7 = vld [vmem:[%s16383_s6 + $0x5ac] ss:$36 sps:$4 sm:$0xff]  }
 0x306   : > { %2617 = vmatprep.subr.bf16.mxu1 %v13926_v9  ;;  %v14027_v9 = vld [vmem:[%s16383_s6 + $0x5f4] ss:$36 sps:$4 sm:$0xff]  }
 0x309   : > { %2618 = vmatpush1.bf16.msra.mxu1 %v13928_v11  ;;  %v14030_v11 = vld [vmem:[%s16383_s6 + $0x63c] ss:$36 sps:$4 sm:$0xff]  }
 0x30a   : > { %2619 = vmatprep.subr.bf16.mxu1 %v13932_v15  ;;  %v14036_v15 = vld [vmem:[%s16383_s6 + $0x1c] ss:$36 sps:$4 sm:$0xff]  }
 0x30d   : > { %2620 = vmatpush1.bf16.msra.mxu1 %v13934_v17  ;;  %v14034_v17 = vld [vmem:[%s16383_s6 + $0x18] ss:$36 sps:$4 sm:$0xff]  }
 0x30e   : > { %2621 = vmatprep.subr.bf16.mxu1 %v13938_v18  ;;  %v14039_v18 = vld [vmem:[%s16383_s6 + $0x64] ss:$36 sps:$4 sm:$0xff]  }
 0x311   : > { %2622 = vmatpush1.bf16.msra.mxu1 %v13940_v19  ;;  %v14037_v19 = vld [vmem:[%s16383_s6 + $0x60] ss:$36 sps:$4 sm:$0xff]  }
 0x312   : > { %2623 = vmatprep.subr.bf16.mxu1 %v13944_v20  ;;  %v14114_v20 = vld [vmem:[%s16383_s6 + $0x10] ss:$36 sps:$4 sm:$0xff]  }
 0x315   : > { %2624 = vmatpush1.bf16.msra.mxu1 %v13946_v21  ;;  %v14116_v21 = vld [vmem:[%s16383_s6 + $0x14] ss:$36 sps:$4 sm:$0xff]  }
 0x316   : > { %2625 = vmatprep.subr.bf16.mxu1 %v13950_v22  ;;  %v14042_v22 = vld [vmem:[%s16383_s6 + $0xac] ss:$36 sps:$4 sm:$0xff]   ;;  %2769 = vmatprep.subr.bf16.mxu0 %v14116_v21  ;;  %v14146_v21 = vld [vmem:[%s16383_s6 + $0x2e4] ss:$36 sps:$4 sm:$0xff]  }
 0x317   : > { %2770 = vmatpush1.bf16.msra.mxu0 %v14114_v20  ;;  %v14102_v20 = vld [vmem:[%s16383_s6 + $0x64c] ss:$36 sps:$4 sm:$0xff]  }
 0x319   : > { %2626 = vmatpush1.bf16.msra.mxu1 %v13952_v23  ;;  %v14119_v23 = vld [vmem:[%s16383_s6 + $0x5c] ss:$36 sps:$4 sm:$0xff]  }
 0x31a   : > { %2627 = vmatprep.subr.bf16.mxu1 %v13956_v24  ;;  %v14117_v24 = vld [vmem:[%s16383_s6 + $0x58] ss:$36 sps:$4 sm:$0xff]   ;;  %2771 = vmatprep.subr.bf16.mxu0 %v14119_v23  ;;  %v14100_v23 = vld [vmem:[%s16383_s6 + $0x648] ss:$36 sps:$4 sm:$0xff]  }
 0x31b   : > { %2772 = vmatpush1.bf16.msra.mxu0 %v14117_v24  ;;  %v14105_v24 = vld [vmem:[%s16383_s6 + $0x694] ss:$36 sps:$4 sm:$0xff]  }
 0x31c   : > { %2773 = vmatprep.subr.bf16.mxu0 %v14122_v26  ;;  %v14147_v26 = vld [vmem:[%s16383_s6 + $0x328] ss:$36 sps:$4 sm:$0xff]  }
 0x31d   : > { %2628 = vmatpush1.bf16.msra.mxu1 %v13958_v25  ;;  %v14040_v25 = vld [vmem:[%s16383_s6 + $0xa8] ss:$36 sps:$4 sm:$0xff]  }
 0x31e   : > { %2683 = vmatprep.subr.bf16.mxu1 %v13964_v28  ;;  %v14043_v28 = vld [vmem:[%s16383_s6 + $0xf0] ss:$36 sps:$4 sm:$0xff]  }
 0x320   : > { %2630 = vmatmul.mubr.bf16.vlgmr.msra.gmra.mrb[0].mxu1 %v16491_v29 }
 0x321   : > { %2684 = vmatpush1.bf16.msra.mxu1 %v13962_v30  ;;  %2715 = vmatprep.mubr.bf16.mxu1 %v16467_v6  ;;  %v14120_v30 = vld [vmem:[%s16383_s6 + $0xa0] ss:$36 sps:$4 sm:$0xff]  }
 0x322   : > { %2685 = vmatprep.subr.bf16.mxu1 %v13967_v31  ;;  %v14125_v31 = vld [vmem:[%s16383_s6 + $0xec] ss:$36 sps:$4 sm:$0xff]   ;;  %2774 = vmatpush1.bf16.msra.mxu0 %v14120_v30  ;;  %v14152_v30 = vld [vmem:[%s16383_s6 + $0x374] ss:$36 sps:$4 sm:$0xff]  }
 0x323   : > { %2775 = vmatprep.subr.bf16.mxu0 %v14125_v31  ;;  %v14106_v31 = vld [vmem:[%s16383_s6 + $0x4a0] ss:$36 sps:$4 sm:$0xff]  }
 0x325   : > { %2686 = vmatpush1.bf16.msra.mxu1 %v13965_v32  ;;  %v14048_v32 = vld [vmem:[%s16383_s6 + $0x13c] ss:$36 sps:$4 sm:$0xff]  }
 0x326   : > { %2687 = vmatprep.subr.bf16.mxu1 %v13970_v33  ;;  %v14123_v33 = vld [vmem:[%s16383_s6 + $0xe8] ss:$36 sps:$4 sm:$0xff]  }
 0x327   : > { %2776 = vmatpush1.bf16.msra.mxu0 %v14123_v33  ;;  %v14155_v33 = vld [vmem:[%s16383_s6 + $0x3bc] ss:$36 sps:$4 sm:$0xff]  }
 0x329   : > { %2688 = vmatpush1.bf16.msra.mxu1 %v13968_v34  ;;  %v14046_v34 = vld [vmem:[%s16383_s6 + $0x138] ss:$36 sps:$4 sm:$0xff]  }
 0x32a   : > { %2689 = vmatprep.subr.bf16.mxu1 %v13973_v35  ;;  %v14128_v35 = vld [vmem:[%s16383_s6 + $0x134] ss:$36 sps:$4 sm:$0xff]  }
 0x32b   : > { %2777 = vmatprep.subr.bf16.mxu0 %v14128_v35  ;;  %v14107_v35 = vld [vmem:[%s16383_s6 + $0x4e8] ss:$36 sps:$4 sm:$0xff]  }
 0x32d   : > { %2690 = vmatpush1.bf16.msra.mxu1 %v13971_v36  ;;  %v14051_v36 = vld [vmem:[%s16383_s6 + $0x184] ss:$36 sps:$4 sm:$0xff]  }
 0x32e   : > { %2691 = vmatprep.subr.bf16.mxu1 %v13976_v38  ;;  %v14126_v38 = vld [vmem:[%s16383_s6 + $0x130] ss:$36 sps:$4 sm:$0xff]  }
 0x32f   : > { %2778 = vmatpush1.bf16.msra.mxu0 %v14126_v38  ;;  %v14156_v38 = vld [vmem:[%s16383_s6 + $0x400] ss:$36 sps:$4 sm:$0xff]  }
 0x331   : > { %2692 = vmatpush1.bf16.msra.mxu1 %v13974_v39  ;;  %v14049_v39 = vld [vmem:[%s16383_s6 + $0x180] ss:$36 sps:$4 sm:$0xff]  }
 0x332   : > { %2693 = vmatprep.subr.bf16.mxu1 %v13979_v40  ;;  %v14131_v40 = vld [vmem:[%s16383_s6 + $0x17c] ss:$36 sps:$4 sm:$0xff]  }
 0x333   : > { %2779 = vmatprep.subr.bf16.mxu0 %v14131_v40 }
 0x335   : > { %2694 = vmatpush1.bf16.msra.mxu1 %v13977_v41  ;;  %v14054_v41 = vld [vmem:[%s16383_s6 + $0x1cc] ss:$36 sps:$4 sm:$0xff]  }
 0x336   : > { %2695 = vmatprep.subr.bf16.mxu1 %v13982_v42  ;;  %v14129_v42 = vld [vmem:[%s16383_s6 + $0x178] ss:$36 sps:$4 sm:$0xff]  }
 0x337   : > { %2780 = vmatpush1.bf16.msra.mxu0 %v14129_v42 }
 0x339   : > { %2696 = vmatpush1.bf16.msra.mxu1 %v13980_v43  ;;  %v14052_v43 = vld [vmem:[%s16383_s6 + $0x1c8] ss:$36 sps:$4 sm:$0xff]  }
 0x33a   : > { %2697 = vmatprep.subr.bf16.mxu1 %v13985_v44  ;;  %v14134_v44 = vld [vmem:[%s16383_s6 + $0x1c4] ss:$36 sps:$4 sm:$0xff]  }
 0x33b   : > { %2781 = vmatprep.subr.bf16.mxu0 %v14134_v44  ;;  %v14159_v44 = vld [vmem:[%s16383_s6 + $0x448] ss:$36 sps:$4 sm:$0xff]  }
 0x33d   : > { %2698 = vmatpush1.bf16.msra.mxu1 %v13983_v45  ;;  %v14057_v45 = vld [vmem:[%s16383_s6 + $0x214] ss:$36 sps:$4 sm:$0xff]  }
 0x33e   : > { %2699 = vmatprep.subr.bf16.mxu1 %v13988_v46  ;;  %v14132_v46 = vld [vmem:[%s16383_s6 + $0x1c0] ss:$36 sps:$4 sm:$0xff]  }
 0x33f   : > { %2782 = vmatpush1.bf16.msra.mxu0 %v14132_v46  ;;  %v1448_v46 = vlaneseq }
 0x341   : > { %2700 = vmatpush1.bf16.msra.mxu1 %v13986_v47  ;;  %v14055_v47 = vld [vmem:[%s16383_s6 + $0x210] ss:$36 sps:$4 sm:$0xff]  }
 0x342   : > { %2701 = vmatprep.subr.bf16.mxu1 %v13991_v48  ;;  %v14137_v48 = vld [vmem:[%s16383_s6 + $0x20c] ss:$36 sps:$4 sm:$0xff]  }
 0x343   : > { %2783 = vmatprep.subr.bf16.mxu0 %v14137_v48  ;;  %v14162_v48 = vld [vmem:[%s16383_s6 + $0x490] ss:$36 sps:$4 sm:$0xff]  }
 0x345   : > { %2702 = vmatpush1.bf16.msra.mxu1 %v13989_v49  ;;  %v14060_v49 = vld [vmem:[%s16383_s6 + $0x25c] ss:$36 sps:$4 sm:$0xff]  }
 0x346   : > { %2703 = vmatprep.subr.bf16.mxu1 %v13994_v50  ;;  %v14135_v50 = vld [vmem:[%s16383_s6 + $0x208] ss:$36 sps:$4 sm:$0xff]  }
 0x347   : > { %2784 = vmatpush1.bf16.msra.mxu0 %v14135_v50  ;;  %v16646_v50 = vshrl.u32 %v1448_v46, 7 }
 0x349   : > { %2704 = vmatpush1.bf16.msra.mxu1 %v13992_v51  ;;  %v14058_v51 = vld [vmem:[%s16383_s6 + $0x258] ss:$36 sps:$4 sm:$0xff]  }
 0x34a   : > { %2705 = vmatprep.subr.bf16.mxu1 %v13997_v52  ;;  %v14140_v52 = vld [vmem:[%s16383_s6 + $0x254] ss:$36 sps:$4 sm:$0xff]  }
 0x34b   : > { %2785 = vmatprep.subr.bf16.mxu0 %v14140_v52  ;;  %v14165_v52 = vld [vmem:[%s16383_s6 + $0x4d8] ss:$36 sps:$4 sm:$0xff]  }
 0x34d   : > { %2706 = vmatpush1.bf16.msra.mxu1 %v13995_v53  ;;  %v14063_v53 = vld [vmem:[%s16383_s6 + $0x2a4] ss:$36 sps:$4 sm:$0xff]  }
 0x34e   : > { %2707 = vmatprep.subr.bf16.mxu1 %v14000_v54  ;;  %v14138_v54 = vld [vmem:[%s16383_s6 + $0x250] ss:$36 sps:$4 sm:$0xff]  }
 0x34f   : > { %2786 = vmatpush1.bf16.msra.mxu0 %v14138_v54  ;;  %v14110_v54 = vld [vmem:[%s16383_s6 + $0x5c0] ss:$36 sps:$4 sm:$0xff]  }
 0x351   : > { %2708 = vmatpush1.bf16.msra.mxu1 %v13998_v55  ;;  %v14061_v55 = vld [vmem:[%s16383_s6 + $0x2a0] ss:$36 sps:$4 sm:$0xff]  }
 0x352   : > { %2709 = vmatprep.subr.bf16.mxu1 %v14003_v56  ;;  %v14143_v56 = vld [vmem:[%s16383_s6 + $0x29c] ss:$36 sps:$4 sm:$0xff]  }
 0x353   : > { %2787 = vmatprep.subr.bf16.mxu0 %v14143_v56  ;;  %v16661_v56 = vsub.s32 1, %v16646_v50 }
 0x355   : > { %2710 = vmatpush1.bf16.msra.mxu1 %v14001_v57  ;;  %v14066_v57 = vld [vmem:[%s16383_s6 + $0x2ec] ss:$36 sps:$4 sm:$0xff]  }
 0x356   : > { %2711 = vmatprep.subr.bf16.mxu1 %v14006_v58  ;;  %v14141_v58 = vld [vmem:[%s16383_s6 + $0x298] ss:$36 sps:$4 sm:$0xff]  }
 0x357   : > { %2788 = vmatpush1.bf16.msra.mxu0 %v14141_v58 }
 0x358   : > { %2789 = vmatprep.subr.bf16.mxu0 %v14146_v21  ;;  %v14180_v21 = vld [vmem:[%s16383_s6 + $0x640] ss:$36 sps:$4 sm:$0xff]  }
 0x359   : > { %2712 = vmatpush1.bf16.msra.mxu1 %v14004_v59  ;;  %v14064_v59 = vld [vmem:[%s16383_s6 + $0x2e8] ss:$36 sps:$4 sm:$0xff]  }
 0x35a   : > { %2713 = vmatprep.subr.bf16.mxu1 %v14009_v60  ;;  %v14069_v60 = vld [vmem:[%s16383_s6 + $0x334] ss:$36 sps:$4 sm:$0xff]  }
 0x35d   : > { %2714 = vmatpush1.bf16.msra.mxu1 %v14007_v61  ;;  %v14067_v61 = vld [vmem:[%s16383_s6 + $0x330] ss:$36 sps:$4 sm:$0xff]  }
 0x35e   : > { %2726 = vmatprep.subr.bf16.mxu1 %v14012_v62  ;;  %v14072_v62 = vld [vmem:[%s16383_s6 + $0x37c] ss:$36 sps:$4 sm:$0xff]  }
 0x360   : > { %2716 = vmatmul.mubr.bf16.vlgmr.msra.gmra.mrb[4].mxu1 %v16491_v29 }
 0x361   : > { %2727 = vmatpush1.bf16.msra.mxu1 %v14010_v63  ;;  %2758 = vmatprep.mubr.bf16.mxu1 %v15761_v37  ;;  %v14070_v63 = vld [vmem:[%s16383_s6 + $0x378] ss:$36 sps:$4 sm:$0xff]  }
 0x362   : > { %2728 = vmatprep.subr.bf16.mxu1 %v14015_v0  ;;  %v14075_v0 = vld [vmem:[%s16383_s6 + $0x3c4] ss:$36 sps:$4 sm:$0xff]  }
 0x365   : > { %2729 = vmatpush1.bf16.msra.mxu1 %v14013_v1  ;;  %v14073_v1 = vld [vmem:[%s16383_s6 + $0x3c0] ss:$36 sps:$4 sm:$0xff]  }
 0x366   : > { %2730 = vmatprep.subr.bf16.mxu1 %v14018_v2  ;;  %v14078_v2 = vld [vmem:[%s16383_s6 + $0x40c] ss:$36 sps:$4 sm:$0xff]  }
 0x369   : > { %2731 = vmatpush1.bf16.msra.mxu1 %v14016_v3  ;;  %v14076_v3 = vld [vmem:[%s16383_s6 + $0x408] ss:$36 sps:$4 sm:$0xff]  }
 0x36a   : > { %2732 = vmatprep.subr.bf16.mxu1 %v14021_v4  ;;  %v14081_v4 = vld [vmem:[%s16383_s6 + $0x454] ss:$36 sps:$4 sm:$0xff]  }
 0x36d   : > { %2733 = vmatpush1.bf16.msra.mxu1 %v14019_v5  ;;  %v14079_v5 = vld [vmem:[%s16383_s6 + $0x450] ss:$36 sps:$4 sm:$0xff]  }
 0x36e   : > { %2734 = vmatprep.subr.bf16.mxu1 %v14024_v7  ;;  %v14084_v7 = vld [vmem:[%s16383_s6 + $0x49c] ss:$36 sps:$4 sm:$0xff]  }
 0x371   : > { %2735 = vmatpush1.bf16.msra.mxu1 %v14022_v8  ;;  %v14082_v8 = vld [vmem:[%s16383_s6 + $0x498] ss:$36 sps:$4 sm:$0xff]  }
 0x372   : > { %2736 = vmatprep.subr.bf16.mxu1 %v14027_v9  ;;  %v14087_v9 = vld [vmem:[%s16383_s6 + $0x4e4] ss:$36 sps:$4 sm:$0xff]  }
 0x375   : > { %2737 = vmatpush1.bf16.msra.mxu1 %v14025_v10  ;;  %v14085_v10 = vld [vmem:[%s16383_s6 + $0x4e0] ss:$36 sps:$4 sm:$0xff]  }
 0x376   : > { %2738 = vmatprep.subr.bf16.mxu1 %v14030_v11  ;;  %v14090_v11 = vld [vmem:[%s16383_s6 + $0x52c] ss:$36 sps:$4 sm:$0xff]  }
 0x379   : > { %2739 = vmatpush1.bf16.msra.mxu1 %v14028_v12  ;;  %v14088_v12 = vld [vmem:[%s16383_s6 + $0x528] ss:$36 sps:$4 sm:$0xff]  }
 0x37a   : > { %2740 = vmatprep.subr.bf16.mxu1 %v14033_v13  ;;  %v14093_v13 = vld [vmem:[%s16383_s6 + $0x574] ss:$36 sps:$4 sm:$0xff]  }
 0x37d   : > { %2741 = vmatpush1.bf16.msra.mxu1 %v14031_v14  ;;  %v14091_v14 = vld [vmem:[%s16383_s6 + $0x570] ss:$36 sps:$4 sm:$0xff]  }
 0x37e   : > { %2855 = vmatprep.subr.bf16.mxu1 %v14036_v15  ;;  %v14096_v15 = vld [vmem:[%s16383_s6 + $0x5bc] ss:$36 sps:$4 sm:$0xff]  }
 0x380   : > { %2759 = vmatmul.mubr.bf16.vlgmr.msra.gmra.mrb[4].mxu1 %v16477_v16 }
 0x381   : > { %2856 = vmatpush1.bf16.msra.mxu1 %v14034_v17  ;;  %2887 = vmatprep.mubr.bf16.mxu1 %v16467_v6  ;;  %v14094_v17 = vld [vmem:[%s16383_s6 + $0x5b8] ss:$36 sps:$4 sm:$0xff]  }
 0x382   : > { %2857 = vmatprep.subr.bf16.mxu1 %v14039_v18  ;;  %v14099_v18 = vld [vmem:[%s16383_s6 + $0x604] ss:$36 sps:$4 sm:$0xff]  }
 0x385   : > { %2858 = vmatpush1.bf16.msra.mxu1 %v14037_v19  ;;  %v14097_v19 = vld [vmem:[%s16383_s6 + $0x600] ss:$36 sps:$4 sm:$0xff]  }
 0x386   : > { %2859 = vmatprep.subr.bf16.mxu1 %v14042_v22  ;;  %v14144_v22 = vld [vmem:[%s16383_s6 + $0x2e0] ss:$36 sps:$4 sm:$0xff]  }
 0x387   : > { %2790 = vmatpush1.bf16.msra.mxu0 %v14144_v22  ;;  %v14185_v22 = vld [vmem:[%s16383_s6 + $0x68c] ss:$36 sps:$4 sm:$0xff]  }
 0x389   : > { %2860 = vmatpush1.bf16.msra.mxu1 %v14040_v25  ;;  %v14149_v25 = vld [vmem:[%s16383_s6 + $0x32c] ss:$36 sps:$4 sm:$0xff]  }
 0x38a   : > { %2861 = vmatprep.subr.bf16.mxu1 %v14045_v27  ;;  %v14103_v27 = vld [vmem:[%s16383_s6 + $0x690] ss:$36 sps:$4 sm:$0xff]   ;;  %2791 = vmatprep.subr.bf16.mxu0 %v14149_v25  ;;  %v14187_v25 = vld [vmem:[%s16383_s6 + $0x20] ss:$36 sps:$4 sm:$0xff]  }
 0x38b   : > { %2792 = vmatpush1.bf16.msra.mxu0 %v14147_v26  ;;  %v14188_v26 = vld [vmem:[%s16383_s6 + $0x2a8] ss:$36 sps:$4 sm:$0xff]  }
 0x38c   : > { %2793 = vmatprep.subr.bf16.mxu0 %v14152_v30  ;;  %v14191_v30 = vld [vmem:[%s16383_s6 + $0xb0] ss:$36 sps:$4 sm:$0xff]  }
 0x38d   : > { %2862 = vmatpush1.bf16.msra.mxu1 %v14043_v28  ;;  %v14150_v28 = vld [vmem:[%s16383_s6 + $0x370] ss:$36 sps:$4 sm:$0xff]  }
 0x38e   : > { %2863 = vmatprep.subr.bf16.mxu1 %v14048_v32  ;;  %v14153_v32 = vld [vmem:[%s16383_s6 + $0x3b8] ss:$36 sps:$4 sm:$0xff]  }
 0x38f   : > { %2794 = vmatpush1.bf16.msra.mxu0 %v14150_v28  ;;  %v14190_v28 = vld [vmem:[%s16383_s6 + $0x2f0] ss:$36 sps:$4 sm:$0xff]  }
 0x390   : > { %2795 = vmatprep.subr.bf16.mxu0 %v14155_v33  ;;  %v14194_v33 = vld [vmem:[%s16383_s6 + $0x380] ss:$36 sps:$4 sm:$0xff]  }
 0x391   : > { %2864 = vmatpush1.bf16.msra.mxu1 %v14046_v34  ;;  %v15762_v34 = vmov 0.0  }
 0x392   : > { %2865 = vmatprep.subr.bf16.mxu1 %v14051_v36 }
 0x393   : > { %2796 = vmatpush1.bf16.msra.mxu0 %v14153_v32  ;;  %v14193_v32 = vld [vmem:[%s16383_s6 + $0xf8] ss:$36 sps:$4 sm:$0xff]  }
 0x395   : > { %2866 = vmatpush1.bf16.msra.mxu1 %v14049_v39  ;;  %v14158_v39 = vld [vmem:[%s16383_s6 + $0x404] ss:$36 sps:$4 sm:$0xff]  }
 0x396   : > { %2867 = vmatprep.subr.bf16.mxu1 %v14054_v41  ;;  %2797 = vmatprep.subr.bf16.mxu0 %v14158_v39  ;;  %v14200_v39 = vld [vmem:[%s16383_s6 + $0x458] ss:$36 sps:$4 sm:$0xff]  }
 0x397   : > { %2798 = vmatpush1.bf16.msra.mxu0 %v14156_v38  ;;  %v14198_v38 = vld [vmem:[%s16383_s6 + $0x410] ss:$36 sps:$4 sm:$0xff]  }
 0x399   : > { %2868 = vmatpush1.bf16.msra.mxu1 %v14052_v43  ;;  %v14108_v43 = vld [vmem:[%s16383_s6 + $0x530] ss:$36 sps:$4 sm:$0xff]  }
 0x39a   : > { %2869 = vmatprep.subr.bf16.mxu1 %v14057_v45  ;;  %v14161_v45 = vld [vmem:[%s16383_s6 + $0x44c] ss:$36 sps:$4 sm:$0xff]  }
 0x39b   : > { %2799 = vmatprep.subr.bf16.mxu0 %v14161_v45 }
 0x39c   : > { %2800 = vmatpush1.bf16.msra.mxu0 %v14159_v44 }
 0x39d   : > { %2870 = vmatpush1.bf16.msra.mxu1 %v14055_v47  ;;  %v14164_v47 = vld [vmem:[%s16383_s6 + $0x494] ss:$36 sps:$4 sm:$0xff]  }
 0x39e   : > { %2871 = vmatprep.subr.bf16.mxu1 %v14060_v49  ;;  %v14109_v49 = vld [vmem:[%s16383_s6 + $0x578] ss:$36 sps:$4 sm:$0xff]   ;;  %2812 = vmatprep.subr.bf16.mxu0 %v14164_v47 }
 0x39f   : > { %2802 = vmatmul.mubr.bf16.vlgmr.msra.gmra.mrb[4].mxu0 %v16491_v29 }
 0x3a0   : > { %2813 = vmatpush1.bf16.msra.mxu0 %v14162_v48  ;;  %2844 = vmatprep.mubr.bf16.mxu0 %v15761_v37 }
 0x3a1   : > { %2872 = vmatpush1.bf16.msra.mxu1 %v14058_v51  ;;  %v16651_v51 = vsub.s32 0, %v16646_v50 }
 0x3a2   : > { %2873 = vmatprep.subr.bf16.mxu1 %v14063_v53  ;;  %v14167_v53 = vld [vmem:[%s16383_s6 + $0x4dc] ss:$36 sps:$4 sm:$0xff]  }
 0x3a3   : > { %2814 = vmatprep.subr.bf16.mxu0 %v14167_v53  ;;  %v1474_v53 = vsub.s32 6, %v16646_v50 }
 0x3a4   : > { %2815 = vmatpush1.bf16.msra.mxu0 %v14165_v52 }
 0x3a5   : > { %2874 = vmatpush1.bf16.msra.mxu1 %v14061_v55  ;;  %v16658_v55 = vld [vmem:[%s16389_s2] sm:$0xff] }
 0x3a6   : > { %2875 = vmatprep.subr.bf16.mxu1 %v14066_v57  ;;  %v14170_v57 = vld [vmem:[%s16383_s6 + $0x524] ss:$36 sps:$4 sm:$0xff]   ;;  %v1451_v58 = vrot.slane %v16658_v55, %v16651_v51 }
 0x3a7   : > { %2816 = vmatprep.subr.bf16.mxu0 %v14170_v57 }
 0x3a9   : > { %2876 = vmatpush1.bf16.msra.mxu1 %v14064_v59  ;;  %v14168_v59 = vld [vmem:[%s16383_s6 + $0x520] ss:$36 sps:$4 sm:$0xff]  }
 0x3aa   : > { %2877 = vmatprep.subr.bf16.mxu1 %v14069_v60  ;;  %v1455_v60 = vrot.slane %v16658_v55, %v16661_v56  ;;  %2817 = vmatpush1.bf16.msra.mxu0 %v14168_v59  ;;  %v1475_v59 = vrot.slane %v16658_v55, %v1474_v53 }
 0x3ad   : > { %2878 = vmatpush1.bf16.msra.mxu1 %v14067_v61  ;;  %v14111_v61 = vld [vmem:[%s16383_s6 + $0x608] ss:$36 sps:$4 sm:$0xff]  }
 0x3ae   : > { %2879 = vmatprep.subr.bf16.mxu1 %v14072_v62  ;;  %v14173_v62 = vld [vmem:[%s16383_s6 + $0x56c] ss:$36 sps:$4 sm:$0xff]  }
 0x3af   : > { %2818 = vmatprep.subr.bf16.mxu0 %v14173_v62 }
 0x3b1   : > { %2880 = vmatpush1.bf16.msra.mxu1 %v14070_v63 }
 0x3b2   : > { %2881 = vmatprep.subr.bf16.mxu1 %v14075_v0 }
 0x3b5   : > { %2882 = vmatpush1.bf16.msra.mxu1 %v14073_v1 }
 0x3b6   : > { %2883 = vmatprep.subr.bf16.mxu1 %v14078_v2  ;;  %v14171_v2 = vld [vmem:[%s16383_s6 + $0x568] ss:$36 sps:$4 sm:$0xff]  }
 0x3b7   : > { %2819 = vmatpush1.bf16.msra.mxu0 %v14171_v2 }
 0x3b9   : > { %2884 = vmatpush1.bf16.msra.mxu1 %v14076_v3 }
 0x3ba   : > { %2885 = vmatprep.subr.bf16.mxu1 %v14081_v4 }
 0x3bd   : > { %2886 = vmatpush1.bf16.msra.mxu1 %v14079_v5  ;;  %v14112_v5 = vld [vmem:[%s16383_s6 + $0x650] ss:$36 sps:$4 sm:$0xff]  }
 0x3be   : > { %2898 = vmatprep.subr.bf16.mxu1 %v14084_v7  ;;  %v14176_v7 = vld [vmem:[%s16383_s6 + $0x5b4] ss:$36 sps:$4 sm:$0xff]  }
 0x3bf   : > { %2820 = vmatprep.subr.bf16.mxu0 %v14176_v7 }
 0x3c0   : > { %2888 = vmatmul.mubr.bf16.vlgmr.msra.gmra.mrb[8].mxu1 %v16491_v29 }
 0x3c1   : > { %2899 = vmatpush1.bf16.msra.mxu1 %v14082_v8  ;;  %2930 = vmatprep.mubr.bf16.mxu1 %v15761_v37 }
 0x3c2   : > { %2900 = vmatprep.subr.bf16.mxu1 %v14087_v9 }
 0x3c5   : > { %2901 = vmatpush1.bf16.msra.mxu1 %v14085_v10 }
 0x3c6   : > { %2902 = vmatprep.subr.bf16.mxu1 %v14090_v11  ;;  %v14174_v11 = vld [vmem:[%s16383_s6 + $0x5b0] ss:$36 sps:$4 sm:$0xff]  }
 0x3c7   : > { %2821 = vmatpush1.bf16.msra.mxu0 %v14174_v11 }
 0x3c9   : > { %2903 = vmatpush1.bf16.msra.mxu1 %v14088_v12 }
 0x3ca   : > { %2904 = vmatprep.subr.bf16.mxu1 %v14093_v13 }
 0x3cd   : > { %2905 = vmatpush1.bf16.msra.mxu1 %v14091_v14  ;;  %v14113_v14 = vld [vmem:[%s16383_s6 + $0x698] ss:$36 sps:$4 sm:$0xff]  }
 0x3ce   : > { %2906 = vmatprep.subr.bf16.mxu1 %v14096_v15  ;;  %v14179_v15 = vld [vmem:[%s16383_s6 + $0x5fc] ss:$36 sps:$4 sm:$0xff]  }
 0x3cf   : > { %2822 = vmatprep.subr.bf16.mxu0 %v14179_v15 }
 0x3d1   : > { %2907 = vmatpush1.bf16.msra.mxu1 %v14094_v17 }
 0x3d2   : > { %2908 = vmatprep.subr.bf16.mxu1 %v14099_v18 }
 0x3d5   : > { %2909 = vmatpush1.bf16.msra.mxu1 %v14097_v19  ;;  %v14177_v19 = vld [vmem:[%s16383_s6 + $0x5f8] ss:$36 sps:$4 sm:$0xff]  }
 0x3d6   : > { %2910 = vmatprep.subr.bf16.mxu1 %v14102_v20  ;;  %v16627_v36 = vpop.f32.mrb[0].mxu0  ;;  %v14182_v20 = vld [vmem:[%s16383_s6 + $0x644] ss:$36 sps:$4 sm:$0xff]   ;;  %2823 = vmatpush1.bf16.msra.mxu0 %v14177_v19  ;;  %v1466_v19 = vsub.s32 4, %v16646_v50 }
 0x3d7   : > { %v16632_v40 = vpop.f32.mrb[1].mxu0  ;;  %2824 = vmatprep.subr.bf16.mxu0 %v14182_v20 }
 0x3d8   : > { %v16634_v41 = vpop.f32.mrb[2].mxu0 }
 0x3d9   : > { %2911 = vmatpush1.bf16.msra.mxu1 %v14100_v23  ;;  %v2680_v42 = vpop.f32.mrb[3].mxu0  ;;  %v14183_v23 = vld [vmem:[%s16383_s6 + $0x688] ss:$36 sps:$4 sm:$0xff]  }
 0x3da   : > { %2912 = vmatprep.subr.bf16.mxu1 %v14105_v24  ;;  %v14186_v24 = vld [vmem:[%s16383_s6 + $0x260] ss:$36 sps:$4 sm:$0xff]   ;;  %2825 = vmatpush1.bf16.msra.mxu0 %v14180_v21  ;;  %v1470_v21 = vsub.s32 5, %v16646_v50 }
 0x3db   : > { %2826 = vmatprep.subr.bf16.mxu0 %v14185_v22  ;;  %v16765_v22 = vld [vmem:[%s16389_s2] sm:$0xff] }
 0x3dd   : > { %2913 = vmatpush1.bf16.msra.mxu1 %v14103_v27  ;;  %v14189_v27 = vld [vmem:[%s16383_s6 + $0x68] ss:$36 sps:$4 sm:$0xff]  }
 0x3de   : > { %13041 = vmatprep.subr.bf16.mxu1 %v15762_v34  ;;  %2827 = vmatpush1.bf16.msra.mxu0 %v14183_v23  ;;  %v1467_v23 = vrot.slane %v16765_v22, %v1466_v19 }
 0x3df   : > { %12689 = vmatprep.subr.bf16.mxu0 %v14186_v24  ;;  %v1471_v24 = vrot.slane %v16765_v22, %v1470_v21 }
 0x3e0   : > { %2931 = vmatmul.mubr.bf16.vlgmr.msra.gmra.mrb[8].mxu1 %v16477_v16 }
 0x3e1   : > { %13042 = vmatpush3.bf16.msra.mxu1 %v14106_v31  ;;  %13057 = vmatprep.mubr.msk.bf16.mxu1 %vm15763_vm3, %v15762_v34  ;;  %v14192_v31 = vld [vmem:[%s16383_s6 + $0x338] ss:$36 sps:$4 sm:$0xff]  }
 0x3e2   : > { %13043 = vmatprep.subr.bf16.mxu1 %v15762_v34  ;;  %2845 = vmatmul.mubr.bf16.vlgmr.msra.gmra.mrb[4].mxu0 %v16477_v16 }
 0x3e3   : > { %12690 = vmatpush3.bf16.msra.mxu0 %v14187_v25  ;;  %2973 = vmatprep.mubr.bf16.mxu0 %v16467_v6  ;;  %v14199_v6 = vld [vmem:[%s16383_s6 + $0x1d0] ss:$36 sps:$4 sm:$0xff]  }
 0x3e4   : > { %12691 = vmatprep.subr.bf16.mxu0 %v14188_v26 }
 0x3e5   : > { %13044 = vmatpush3.bf16.msra.mxu1 %v14107_v35  ;;  %v14195_v35 = vld [vmem:[%s16383_s6 + $0x140] ss:$36 sps:$4 sm:$0xff]  }
 0x3e6   : > { %13045 = vmatprep.subr.bf16.mxu1 %v15762_v34 }
 0x3e7   : > { %12692 = vmatpush3.bf16.msra.mxu0 %v14189_v27 }
 0x3e8   : > { %12693 = vmatprep.subr.bf16.mxu0 %v14190_v28 }
 0x3e9   : > { %13046 = vmatpush3.bf16.msra.mxu1 %v14108_v43 }
 0x3ea   : > { %13047 = vmatprep.subr.bf16.mxu1 %v15762_v34 }
 0x3eb   : > { %12694 = vmatpush3.bf16.msra.mxu0 %v14191_v30 }
 0x3ec   : > { %12695 = vmatprep.subr.bf16.mxu0 %v14192_v31 }
 0x3ed   : > { %13048 = vmatpush3.bf16.msra.mxu1 %v14109_v49 }
 0x3ee   : > { %13049 = vmatprep.subr.bf16.mxu1 %v15762_v34 }
 0x3ef   : > { %12696 = vmatpush3.bf16.msra.mxu0 %v14193_v32 }
 0x3f0   : > { %12697 = vmatprep.subr.bf16.mxu0 %v14194_v33 }
 0x3f1   : > { %13050 = vmatpush3.bf16.msra.mxu1 %v14110_v54  ;;  %v1478_v54 = vsub.s32 7, %v16646_v50 }
 0x3f2   : > { %13051 = vmatprep.subr.bf16.mxu1 %v15762_v34 }
 0x3f3   : > { %v2631_v63 = vpop.f32.mrb[0].mxu1  ;;  %12698 = vmatpush3.bf16.msra.mxu0 %v14195_v35 }
 0x3f4   : > { %v2632_v0 = vadd.f32 %v2631_v63, %v1451_v58  ;;  %v2633_v1 = vpop.f32.mrb[1].mxu1 }
 0x3f5   : > { %v2634_v3 = vadd.f32 %v2633_v1, %v1455_v60  ;;  %v2635_v4 = vpop.f32.mrb[2].mxu1  ;;  %13052 = vmatpush3.bf16.msra.mxu1 %v14111_v61 }
 0x3f6   : > { %v2636_v8 = vadd.f32 %v2635_v4, %v1451_v58  ;;  %v16677_v9 = vadd.f32 %v16627_v36, %v2632_v0  ;;  %v2637_v10 = vpop.f32.mrb[3].mxu1  ;;  %13053 = vmatprep.subr.bf16.mxu1 %v15762_v34  ;;  %v14197_v36 = vld [vmem:[%s16383_s6 + $0x188] ss:$36 sps:$4 sm:$0xff]  }
 0x3f7   : > { %v2638_v12 = vadd.f32 %v2637_v10, %v1455_v60  ;;  %v16682_v13 = vadd.f32 %v16632_v40, %v2634_v3  ;;  %v14201_v40 = vld [vmem:[%s16383_s6 + $0x218] ss:$36 sps:$4 sm:$0xff]   ;;  %v1479_v60 = vrot.slane %v16658_v55, %v1478_v54 }
 0x3f8   : > { %v16687_v17 = vadd.f32 %v16634_v41, %v2636_v8  ;;  %v16722_v41 = vsub.s32 3, %v16646_v50 }
 0x3f9   : > { %v16689_v18 = vadd.f32 %v2680_v42, %v2638_v12  ;;  %13054 = vmatpush3.bf16.msra.mxu1 %v14112_v5 }
 0x3fa   : > { %3223 = vrot.lane.b32.xlu1 %v16687_v17, %s15764_s29  ;;  %13055 = vmatprep.subr.bf16.mxu1 %v15762_v34  ;;  %v1463_v44 = vrot.slane %v16658_v55, %v16722_v41 }
 0x3fd   : > { %13056 = vmatpush3.bf16.msra.mxu1 %v14113_v14 }
 0x400   : > { %13058 = vmatmul.mubr.bf16.vlgmr.msra.gmra.mrb[12].mxu1 %v16477_v16  ;;  %v14196_v16 = vld [vmem:[%s16383_s6 + $0x3c8] ss:$36 sps:$4 sm:$0xff]   ;;  %s18384_s6 = sld [smem:[#allocation44_spill]] }
 0x401   : > { %13065 = vmatprep.mubr.msk.f32.mxu1 %vm3025_vm4, %v16677_v9  ;;  %12699 = vmatprep.subr.bf16.mxu0 %v14196_v16 }
 0x402   : > { %12700 = vmatpush3.bf16.msra.mxu0 %v14197_v36 }
 0x403   : > { %12701 = vmatprep.subr.bf16.mxu0 %v14198_v38 }
 0x406   : > { %12702 = vmatpush3.bf16.msra.mxu0 %v14199_v6  ;;  %s18385_s28 = smov %s18384_s6 }
 0x407   : > { %12703 = vmatprep.subr.bf16.mxu0 %v14200_v39 }
 0x40a   : > { %12704 = vmatpush3.bf16.msra.mxu0 %v14201_v40 }
 0x40d   : > { %2974 = vmatmul.mubr.bf16.vlgmr.msra.gmra.mrb[8].mxu0 %v16491_v29 }
 0x453   : > { %v16730_v43 = vpop.f32.mrb[4].mxu1 }
 0x454   : > { %v2762_v45 = vpop.f32.mrb[5].mxu1 }
 0x455   : > { %v16734_v46 = vpop.f32.mrb[6].mxu1  ;;  %v13477_v48 = vadd.f32 %v2762_v45, %v1463_v44 }
 0x456   : > { %v2766_v47 = vpop.f32.mrb[7].mxu1 }
 0x457   : > { %v13479_v29 = vadd.f32 %v2766_v47, %v1463_v44  ;;  %v11746_v44 = vld [vmem:[%s16389_s2 + $0x8] ss:$0 sm:$0xff] }
 0x459   : > { %v16736_v49 = vpack.i.bf16 %v13479_v29, %v13477_v48  ;;  %v13284_v52 = vpack.c.bf16 %v13479_v29, %v13477_v48 }
 0x45b   : > { %13756 = vrot.lane.b32.xlu0 %v16736_v49, %s15764_s29  ;;  %13286 = vmatprep.subr.msk.bf16.mxu1 %vm16726_vm5, %v13284_v52 }
 0x45c   : > { %13289 = vmatpush3.bf16.xpose.msk.msra.mxu1 %vm16726_vm5, %v13284_v52 }
 0x45f   : > { %3221 = vrot.lane.b32.xlu0 %v16677_v9, %s15764_s29 }
 0x463   : > { %13066 = vmatmul.mubr.msk.f32.vlgmr.msra.gmra.mrb[16].mxu1 %vm3025_vm4, %v16687_v17 }
 0x46c   : > { %v3224_v20 = vpop.permute.xlu1 %3223 }
 0x4b3   : > { %v2932_v57 = vpop.f32.mrb[8].mxu1 }
 0x4b4   : > { %v2934_v58 = vpop.f32.mrb[9].mxu1  ;;  %v13484_v63 = vadd.f32 %v2932_v57, %v1475_v59 }
 0x4b5   : > { %v2936_v61 = vpop.f32.mrb[10].mxu1  ;;  %v13485_v0 = vadd.f32 %v2934_v58, %v1479_v60  ;;  %v2846_v25 = vpop.f32.mrb[4].mxu0 }
 0x4b6   : > { %v2938_v62 = vpop.f32.mrb[11].mxu1  ;;  %v13486_v1 = vadd.f32 %v2936_v61, %v1475_v59  ;;  %v2848_v26 = vpop.f32.mrb[5].mxu0  ;;  %v13480_v28 = vadd.f32 %v2846_v25, %v1467_v23 }
 0x4b7   : > { %v13487_v2 = vadd.f32 %v2938_v62, %v1479_v60  ;;  %v2850_v30 = vpop.f32.mrb[6].mxu0  ;;  %v13481_v32 = vadd.f32 %v2848_v26, %v1471_v24 }
 0x4b8   : > { %v13290_v3 = vpack.c.bf16 %v13486_v1, %v13484_v63  ;;  %v16773_v27 = vpack.i.bf16 %v13486_v1, %v13484_v63  ;;  %v13482_v33 = vadd.f32 %v2850_v30, %v1467_v23  ;;  %v2852_v35 = vpop.f32.mrb[7].mxu0 }
 0x4b9   : > { %v13330_v4 = vpack.c.bf16 %v13487_v2, %v13485_v0  ;;  %v16775_v31 = vpack.i.bf16 %v13487_v2, %v13485_v0  ;;  %v13483_v16 = vadd.f32 %v2852_v35, %v1471_v24  ;;  %v16793_v0 = vld [vmem:[%s18384_s6 + $0x8] sm:$0xff] }
 0x4ba   : > { %13291 = vmatprep.subr.bf16.mxu1 %v13290_v3  ;;  %v16777_v36 = vpack.c.bf16 %v13482_v33, %v13480_v28  ;;  %v16779_v38 = vpack.i.bf16 %v13482_v33, %v13480_v28 }
 0x4bb   : > { %13293 = vmatpush3.bf16.msra.mxu1 %v13290_v3  ;;  %v16781_v6 = vpack.c.bf16 %v13483_v16, %v13481_v32  ;;  %v16783_v39 = vpack.i.bf16 %v13483_v16, %v13481_v32  ;;  %v16798_v3 = vld [vmem:[%s18385_s28] sm:$0xff] }
 0x4cd   : > { %v13757_v5 = vpop.permute.xlu0 %13756 }
 0x4ce   : > { %v13759_v7 = vunpack.i.h.bf16 %v13757_v5  ;;  %v13758_v8 = vunpack.i.l.bf16 %v13757_v5 }
 0x4d0   : > { %v13294_v10 = vpack.c.bf16 %v13759_v7, %v13758_v8 }
 0x4d1   : > { %v3222_v11 = vpop.permute.xlu0 %3221 }
 0x4d2   : > { %13296 = vmatprep.subr.msk.bf16.mxu0 %vm16726_vm5, %v13294_v10  ;;  %13079 = vmatprep.mubr.msk.f32.mxu0 %vm3025_vm4, %v3222_v11 }
 0x4d3   : > { %13299 = vmatpush3.bf16.xpose.msk.msra.mxu0 %vm16726_vm5, %v13294_v10  ;;  %v3016_v55 = vpop.f32.mrb[12].mxu1 }
 0x4d4   : > { %v13059_v12 = vpop.f32.mrb[13].mxu1  ;;  %13331 = vmatprep.subr.bf16.mxu0 %v13330_v4 }
 0x4d5   : > { %v3019_v14 = vpop.f32.mrb[14].mxu1 }
 0x4d6   : > { %v13060_v15 = vpop.f32.mrb[15].mxu1 }
 0x4da   : > { %13080 = vmatmul.mubr.msk.f32.vlgmr.msra.gmra.mrb[12].mxu0 %vm3025_vm4, %v3224_v20 }
 0x4db   : > { %13333 = vmatpush3.bf16.msra.mxu0 %v13330_v4 }
 0x4e0   : > { %v12705_v40 = vpop.f32.mrb[8].mxu0 }
 0x4e1   : > { %v12706_v45 = vpop.f32.mrb[9].mxu0 }
 0x4e2   : > { %v12707_v47 = vadd.f32 %v12706_v45, %v12705_v40  ;;  %v12708_v48 = vpop.f32.mrb[10].mxu0 }
 0x4e3   : > { %v12709_v29 = vpop.f32.mrb[11].mxu0 }
 0x4e4   : > { %v2976_v52 = vadd.f32 %v12707_v47, %v11746_v44  ;;  %v12710_v57 = vadd.f32 %v12709_v29, %v12708_v48 }
 0x4e6   : > { %v3017_v58 = vadd.f32 %v3016_v55, %v2976_v52  ;;  %v2979_v59 = vadd.f32 %v12710_v57, %v11746_v44 }
 0x4e8   : > { %v3020_v60 = vadd.f32 %v3019_v14, %v2979_v59 }
 0x4ea   : > { %v16786_v61 = vpack.c.bf16 %v3020_v60, %v3017_v58  ;;  %v16788_v62 = vpack.i.bf16 %v3020_v60, %v3017_v58 }
 0x536   : > { %v13067_v63 = vpop.f32.mrb[16].mxu1 }
 0x537   : > { %v3114_v1 = vmul.f32 0.17677669, %v13067_v63  ;;  %v3104_v2 = vpop.f32.mrb[17].mxu1 }
 0x538   : > { %v3113_v4 = vmul.f32 0.17677669, %v3104_v2 }
 0x539   : > { %v3116_v5 = vadd.f32 %v3114_v1, %v16793_v0 }
 0x53a   : > { %v3115_v7 = vadd.f32 %v3113_v4, %v16798_v3 }
 0x53b   : > { %v3121_v8 = vsel %vm3117_vm6, %v3116_v5, -inf }
 0x53c   : > { %3122 = vmax.xlane.f32.xlu0 %v3121_v8  ;;  %v3118_v10 = vsel %vm3117_vm6, %v3115_v7, -inf }
 0x53d   : > { %3119 = vmax.xlane.f32.xlu1 %v3118_v10 }
 0x5ad   : > { %v13081_v11 = vpop.f32.mrb[12].mxu0 }
 0x5ae   : > { %v3313_v55 = vmul.f32 0.17677669, %v13081_v11  ;;  %v3303_v12 = vpop.f32.mrb[13].mxu0 }
 0x5af   : > { %v3312_v14 = vmul.f32 0.17677669, %v3303_v12 }
 0x5b0   : > { %v3315_v15 = vadd.f32 %v3313_v55, %v16793_v0 }
 0x5b1   : > { %v3314_v20 = vadd.f32 %v3312_v14, %v16798_v3 }
 0x5b2   : > { %v3319_v23 = vsel %vm3117_vm6, %v3315_v15, -inf }
 0x5b3   : > { %3320 = vmax.xlane.f32.xlu1 %v3319_v23  ;;  %v3316_v24 = vsel %vm3117_vm6, %v3314_v20, -inf }
 0x5b4   : > { %3317 = vmax.xlane.f32.xlu0 %v3316_v24 }
 0x5c9   : > { %v3123_v25 = vpop.xlane.xlu0 %3122 }
 0x5ca   : > { %v3125_v26 = vsub.f32 %v3116_v5, %v3123_v25  ;;  %v3120_v28 = vpop.xlane.xlu1 %3119 }
 0x5cb   : > { %v3124_v30 = vsub.f32 %v3115_v7, %v3120_v28 }
 0x5cc   : > { %v3128_v32 = vmul.f32 1.442695, %v3125_v26 }
 0x5cd   : > { %v3126_v33 = vmul.f32 1.442695, %v3124_v30 }
 0x5ce   : > { %15114 = vpow2.f32 %v3128_v32 }
 0x5cf   : > { %15116 = vpow2.f32 %v3126_v33 }
 0x5d8   : > { %v15115_v35 = vpop.eup %15114 }
 0x5d9   : > { %v15117_v16 = vpop.eup %15116  ;;  %v3133_v40 = vsel %vm3117_vm6, %v15115_v35, 0.0 }
 0x5da   : > { %3134 = vadd.xlane.f32.xlu1 %v3133_v40  ;;  %v3130_v44 = vsel %vm3117_vm6, %v15117_v16, 0.0 }
 0x5db   : > { %3131 = vadd.xlane.f32.xlu0 %v3130_v44 }
 0x640   : > { %v3321_v45 = vpop.xlane.xlu1 %3320 }
 0x641   : > { %v3323_v47 = vsub.f32 %v3315_v15, %v3321_v45  ;;  %v3318_v48 = vpop.xlane.xlu0 %3317 }
 0x642   : > { %v3322_v29 = vsub.f32 %v3314_v20, %v3318_v48 }
 0x643   : > { %v3326_v52 = vmul.f32 1.442695, %v3323_v47 }
 0x644   : > { %v3324_v57 = vmul.f32 1.442695, %v3322_v29 }
 0x645   : > { %15118 = vpow2.f32 %v3326_v52 }
 0x646   : > { %15120 = vpow2.f32 %v3324_v57 }
 0x64f   : > { %v15119_v58 = vpop.eup %15118 }
 0x650   : > { %v15121_v59 = vpop.eup %15120  ;;  %v3331_v60 = vsel %vm3117_vm6, %v15119_v58, 0.0 }
 0x651   : > { %3332 = vadd.xlane.f32.xlu1 %v3331_v60  ;;  %v3328_v63 = vsel %vm3117_vm6, %v15121_v59, 0.0 }
 0x652   : > { %3329 = vadd.xlane.f32.xlu0 %v3328_v63 }
 0x662   : > { %13766 = vrot.lane.b32.xlu1 %v16736_v49, %s15765_s27 }
 0x666   : > { %3427 = vrot.lane.b32.xlu1 %v16677_v9, %s15765_s27 }
 0x667   : > { %v3135_v1 = vpop.xlane.xlu1 %3134 }
 0x668   : > { %15122 = vrcp.f32 %v3135_v1  ;;  %13761 = vrot.lane.b32.xlu0 %v16773_v27, %s15764_s29  ;;  %v3132_v2 = vpop.xlane.xlu0 %3131 }
 0x669   : > { %15124 = vrcp.f32 %v3132_v2 }
 0x66c   : > { %3429 = vrot.lane.b32.xlu0 %v16687_v17, %s15765_s27 }
 0x672   : > { %v15123_v4 = vpop.eup %15122 }
 0x673   : > { %v15125_v5 = vpop.eup %15124  ;;  %v3139_v8 = vmul.f32 %v15123_v4, %v15115_v35 }
 0x674   : > { %v3138_v7 = vmul.f32 %v15125_v5, %v15117_v16 }
 0x676   : > { %13072 = vmatprep.mubr.msk.f32.mxu1 %vm3117_vm6, %v3138_v7 }
 0x677   : > { %13073 = vmatmul.mubr.msk.f32.vlgmr.msra.gmra.mrb[18].mxu1 %vm3117_vm6, %v3139_v8 }
 0x6de   : > { %v3333_v10 = vpop.xlane.xlu1 %3332 }
 0x6df   : > { %15126 = vrcp.f32 %v3333_v10  ;;  %v3330_v11 = vpop.xlane.xlu0 %3329 }
 0x6e0   : > { %15128 = vrcp.f32 %v3330_v11 }
 0x6e2   : > { %v13767_v55 = vpop.permute.xlu1 %13766 }
 0x6e3   : > { %v13762_v12 = vpop.permute.xlu0 %13761  ;;  %v13769_v14 = vunpack.i.h.bf16 %v13767_v55  ;;  %v13768_v15 = vunpack.i.l.bf16 %v13767_v55 }
 0x6e4   : > { %v13764_v20 = vunpack.i.h.bf16 %v13762_v12  ;;  %v13763_v23 = vunpack.i.l.bf16 %v13762_v12 }
 0x6e5   : > { %v13304_v25 = vpack.c.bf16 %v13769_v14, %v13768_v15 }
 0x6e6   : > { %v13300_v24 = vpack.c.bf16 %v13764_v20, %v13763_v23  ;;  %v3428_v33 = vpop.permute.xlu1 %3427 }
 0x6e7   : > { %v3430_v35 = vpop.permute.xlu0 %3429 }
 0x6e8   : > { %13301 = vmatprep.subr.bf16.mxu1 %v13300_v24 }
 0x6e9   : > { %v15127_v26 = vpop.eup %15126  ;;  %13303 = vmatpush3.bf16.msra.mxu1 %v13300_v24 }
 0x6ea   : > { %v15129_v28 = vpop.eup %15128  ;;  %13306 = vmatprep.subr.msk.bf16.mxu1 %vm16726_vm5, %v13304_v25  ;;  %v3337_v32 = vmul.f32 %v15127_v26, %v15119_v58 }
 0x6eb   : > { %v3336_v30 = vmul.f32 %v15129_v28, %v15121_v59 }
 0x6ed   : > { %13086 = vmatprep.mubr.msk.f32.mxu1 %vm3117_vm6, %v3336_v30 }
 0x6ee   : > { %13087 = vmatmul.mubr.msk.f32.vlgmr.msra.gmra.mrb[20].mxu1 %vm3117_vm6, %v3337_v32 }
 0x6ef   : > { %13093 = vmatprep.mubr.msk.f32.mxu1 %vm3025_vm4, %v3428_v33 }
 0x6f2   : > { %13309 = vmatpush3.bf16.xpose.msk.msra.mxu1 %vm16726_vm5, %v13304_v25 }
 0x6f9   : > { %13094 = vmatmul.mubr.msk.f32.vlgmr.msra.gmra.mrb[22].mxu1 %vm3025_vm4, %v3430_v35 }
 0x74a   : > { %v16830_v16 = vpop.f32.mrb[18].mxu1 }
 0x74b   : > { %v16832_v40 = vpop.f32.mrb[19].mxu1 }
 0x7c1   : > { %v16834_v44 = vpop.f32.mrb[20].mxu1 }
 0x7c2   : > { %v16836_v45 = vpop.f32.mrb[21].mxu1 }
 0x7c3   : > { %v13850_v47 = vpack.i.bf16 %v16834_v44, %v16836_v45  ;;  %v14223_v44 = vld [vmem:[%s16392_s22 + $0xb0] ss:$12 sps:$4 sm:$0xff]  }
 0x7cc   : > { %v13095_v48 = vpop.f32.mrb[22].mxu1 }
 0x7cd   : > { %v3519_v29 = vmul.f32 0.17677669, %v13095_v48  ;;  %v3509_v52 = vpop.f32.mrb[23].mxu1 }
 0x7ce   : > { %v3518_v57 = vmul.f32 0.17677669, %v3509_v52 }
 0x7cf   : > { %v3521_v58 = vadd.f32 %v3519_v29, %v16793_v0 }
 0x7d0   : > { %v3520_v59 = vadd.f32 %v3518_v57, %v16798_v3 }
 0x7d1   : > { %v3525_v60 = vsel %vm3117_vm6, %v3521_v58, -inf }
 0x7d2   : > { %3526 = vmax.xlane.f32.xlu0 %v3525_v60  ;;  %v3522_v63 = vsel %vm3117_vm6, %v3520_v59, -inf }
 0x7d3   : > { %3523 = vmax.xlane.f32.xlu1 %v3522_v63 }
 0x85f   : > { %v3527_v1 = vpop.xlane.xlu0 %3526 }
 0x860   : > { %v3529_v2 = vsub.f32 %v3521_v58, %v3527_v1  ;;  %v3524_v4 = vpop.xlane.xlu1 %3523 }
 0x861   : > { %v3528_v5 = vsub.f32 %v3520_v59, %v3524_v4 }
 0x862   : > { %v3532_v7 = vmul.f32 1.442695, %v3529_v2 }
 0x863   : > { %v3530_v8 = vmul.f32 1.442695, %v3528_v5 }
 0x864   : > { %15130 = vpow2.f32 %v3532_v7 }
 0x865   : > { %15132 = vpow2.f32 %v3530_v8 }
 0x86e   : > { %v15131_v10 = vpop.eup %15130 }
 0x86f   : > { %v15133_v11 = vpop.eup %15132  ;;  %v3537_v55 = vsel %vm3117_vm6, %v15131_v10, 0.0 }
 0x870   : > { %3538 = vadd.xlane.f32.xlu1 %v3537_v55  ;;  %v3534_v12 = vsel %vm3117_vm6, %v15133_v11, 0.0 }
 0x871   : > { %3535 = vadd.xlane.f32.xlu0 %v3534_v12 }
 0x881   : > { %13776 = vrot.lane.b32.xlu1 %v16736_v49, %s15766_s11 }
 0x885   : > { %3631 = vrot.lane.b32.xlu1 %v16677_v9, %s15766_s11 }
 0x887   : > { %13771 = vrot.lane.b32.xlu0 %v16773_v27, %s15765_s27 }
 0x88b   : > { %3633 = vrot.lane.b32.xlu0 %v16687_v17, %s15766_s11 }
 0x8fd   : > { %v3539_v14 = vpop.xlane.xlu1 %3538 }
 0x8fe   : > { %15134 = vrcp.f32 %v3539_v14  ;;  %v3536_v15 = vpop.xlane.xlu0 %3535 }
 0x8ff   : > { %15136 = vrcp.f32 %v3536_v15 }
 0x901   : > { %v13777_v20 = vpop.permute.xlu1 %13776 }
 0x902   : > { %v13772_v23 = vpop.permute.xlu0 %13771  ;;  %v13779_v24 = vunpack.i.h.bf16 %v13777_v20  ;;  %v13778_v25 = vunpack.i.l.bf16 %v13777_v20 }
 0x903   : > { %v13774_v26 = vunpack.i.h.bf16 %v13772_v23  ;;  %v13773_v28 = vunpack.i.l.bf16 %v13772_v23 }
 0x904   : > { %v13314_v30 = vpack.c.bf16 %v13779_v24, %v13778_v25 }
 0x905   : > { %v13310_v49 = vpack.c.bf16 %v13774_v26, %v13773_v28  ;;  %v3632_v35 = vpop.permute.xlu1 %3631 }
 0x906   : > { %v3634_v48 = vpop.permute.xlu0 %3633 }
 0x907   : > { %13311 = vmatprep.subr.bf16.mxu1 %v13310_v49 }
 0x908   : > { %v15135_v9 = vpop.eup %15134  ;;  %13313 = vmatpush3.bf16.msra.mxu1 %v13310_v49 }
 0x909   : > { %v15137_v32 = vpop.eup %15136  ;;  %13316 = vmatprep.subr.msk.bf16.mxu1 %vm16726_vm5, %v13314_v30  ;;  %v3543_v33 = vmul.f32 %v15135_v9, %v15131_v10 }
 0x90a   : > { %v3542_v17 = vmul.f32 %v15137_v32, %v15133_v11 }
 0x90c   : > { %13100 = vmatprep.mubr.msk.f32.mxu1 %vm3117_vm6, %v3542_v17 }
 0x90d   : > { %13101 = vmatmul.mubr.msk.f32.vlgmr.msra.gmra.mrb[24].mxu1 %vm3117_vm6, %v3543_v33 }
 0x90e   : > { %13107 = vmatprep.mubr.msk.f32.mxu1 %vm3025_vm4, %v3632_v35 }
 0x911   : > { %13319 = vmatpush3.bf16.xpose.msk.msra.mxu1 %vm16726_vm5, %v13314_v30 }
 0x918   : > { %13108 = vmatmul.mubr.msk.f32.vlgmr.msra.gmra.mrb[26].mxu1 %vm3025_vm4, %v3634_v48 }
 0x9e0   : > { %v16862_v29 = vpop.f32.mrb[24].mxu1 }
 0x9e1   : > { %v16864_v52 = vpop.f32.mrb[25].mxu1 }
 0x9e2   : > { %v13860_v57 = vpack.i.bf16 %v16862_v29, %v16864_v52 }
 0x9eb   : > { %v13109_v58 = vpop.f32.mrb[26].mxu1 }
 0x9ec   : > { %v3723_v59 = vmul.f32 0.17677669, %v13109_v58  ;;  %v3713_v60 = vpop.f32.mrb[27].mxu1 }
 0x9ed   : > { %v3722_v63 = vmul.f32 0.17677669, %v3713_v60 }
 0x9ee   : > { %v3725_v1 = vadd.f32 %v3723_v59, %v16793_v0 }
 0x9ef   : > { %v3724_v2 = vadd.f32 %v3722_v63, %v16798_v3 }
 0x9f0   : > { %v3729_v4 = vsel %vm3117_vm6, %v3725_v1, -inf }
 0x9f1   : > { %3730 = vmax.xlane.f32.xlu0 %v3729_v4  ;;  %v3726_v5 = vsel %vm3117_vm6, %v3724_v2, -inf }
 0x9f2   : > { %3727 = vmax.xlane.f32.xlu1 %v3726_v5 }
 0xa7e   : > { %v3731_v7 = vpop.xlane.xlu0 %3730 }
 0xa7f   : > { %v3733_v8 = vsub.f32 %v3725_v1, %v3731_v7  ;;  %v3728_v10 = vpop.xlane.xlu1 %3727 }
 0xa80   : > { %v3732_v11 = vsub.f32 %v3724_v2, %v3728_v10 }
 0xa81   : > { %v3736_v55 = vmul.f32 1.442695, %v3733_v8 }
 0xa82   : > { %v3734_v12 = vmul.f32 1.442695, %v3732_v11 }
 0xa83   : > { %15138 = vpow2.f32 %v3736_v55 }
 0xa84   : > { %15140 = vpow2.f32 %v3734_v12 }
 0xa8d   : > { %v15139_v14 = vpop.eup %15138 }
 0xa8e   : > { %v15141_v15 = vpop.eup %15140  ;;  %v3741_v20 = vsel %vm3117_vm6, %v15139_v14, 0.0 }
 0xa8f   : > { %3742 = vadd.xlane.f32.xlu1 %v3741_v20  ;;  %v3738_v23 = vsel %vm3117_vm6, %v15141_v15, 0.0 }
 0xa90   : > { %3739 = vadd.xlane.f32.xlu0 %v3738_v23 }
 0xaa6   : > { %13781 = vrot.lane.b32.xlu0 %v16773_v27, %s15766_s11 }
 0xaaa   : > { %4029 = vrot.lane.b32.xlu0 %v16682_v13, %s15764_s29 }
 0xaae   : > { %4031 = vrot.lane.b32.xlu0 %v16689_v18, %s15764_s29 }
 0xb1c   : > { %v3743_v24 = vpop.xlane.xlu1 %3742 }
 0xb1d   : > { %15142 = vrcp.f32 %v3743_v24  ;;  %v3740_v25 = vpop.xlane.xlu0 %3739 }
 0xb1e   : > { %15144 = vrcp.f32 %v3740_v25 }
 0xb21   : > { %v13782_v26 = vpop.permute.xlu0 %13781 }
 0xb22   : > { %v13784_v28 = vunpack.i.h.bf16 %v13782_v26  ;;  %v13783_v49 = vunpack.i.l.bf16 %v13782_v26 }
 0xb24   : > { %v13320_v30 = vpack.c.bf16 %v13784_v28, %v13783_v49 }
 0xb26   : > { %13321 = vmatprep.subr.bf16.mxu1 %v13320_v30 }
 0xb27   : > { %v15143_v9 = vpop.eup %15142  ;;  %13323 = vmatpush3.bf16.msra.mxu1 %v13320_v30 }
 0xb28   : > { %v15145_v32 = vpop.eup %15144  ;;  %13326 = vmatprep.subr.msk.bf16.mxu1 %vm16726_vm5, %v16777_v36  ;;  %v3747_v17 = vmul.f32 %v15143_v9, %v15139_v14 }
 0xb29   : > { %v3746_v27 = vmul.f32 %v15145_v32, %v15141_v15 }
 0xb2b   : > { %13114 = vmatprep.mubr.msk.f32.mxu1 %vm3117_vm6, %v3746_v27 }
 0xb2c   : > { %13115 = vmatmul.mubr.msk.f32.vlgmr.msra.gmra.mrb[28].mxu1 %vm3117_vm6, %v3747_v17  ;;  %v4030_v17 = vpop.permute.xlu0 %4029 }
 0xb2d   : > { %13121 = vmatprep.mubr.msk.f32.mxu1 %vm3025_vm4, %v16682_v13 }
 0xb30   : > { %13329 = vmatpush3.bf16.xpose.msk.msra.mxu1 %vm16726_vm5, %v16777_v36 }
 0xb37   : > { %13122 = vmatmul.mubr.msk.f32.vlgmr.msra.gmra.mrb[30].mxu1 %vm3025_vm4, %v16689_v18 }
 0xbff   : > { %v16892_v33 = vpop.f32.mrb[28].mxu1 }
 0xc00   : > { %v16894_v35 = vpop.f32.mrb[29].mxu1 }
 0xc01   : > { %v13870_v48 = vpack.i.bf16 %v16892_v33, %v16894_v35 }
 0xc0a   : > { %v13123_v58 = vpop.f32.mrb[30].mxu1 }
 0xc0b   : > { %v3913_v59 = vpop.f32.mrb[31].mxu1  ;;  %v3923_v60 = vmul.f32 0.17677669, %v13123_v58  ;;  %v4032_v58 = vpop.permute.xlu0 %4031 }
 0xc0c   : > { %v3922_v63 = vmul.f32 0.17677669, %v3913_v59 }
 0xc0d   : > { %v3925_v36 = vadd.f32 %v3923_v60, %v16793_v0 }
 0xc0e   : > { %v3924_v1 = vadd.f32 %v3922_v63, %v16798_v3 }
 0xc0f   : > { %v3929_v4 = vsel %vm3117_vm6, %v3925_v36, -inf }
 0xc10   : > { %v3926_v2 = vsel %vm3117_vm6, %v3924_v1, -inf }
 0xc11   : > { %3927 = vmax.xlane.f32.xlu1 %v3926_v2 }
 0xc15   : > { %3930 = vmax.xlane.f32.xlu1 %v3929_v4 }
 0xc9e   : > { %v3928_v5 = vpop.xlane.xlu1 %3927 }
 0xc9f   : > { %v3932_v7 = vsub.f32 %v3924_v1, %v3928_v5 }
 0xca1   : > { %v3934_v11 = vmul.f32 1.442695, %v3932_v7 }
 0xca2   : > { %v3931_v8 = vpop.xlane.xlu1 %3930 }
 0xca3   : > { %v3933_v10 = vsub.f32 %v3925_v36, %v3931_v8 }
 0xca5   : > { %v3936_v55 = vmul.f32 1.442695, %v3933_v10 }
 0xca7   : > { %15146 = vpow2.f32 %v3936_v55 }
 0xca8   : > { %15148 = vpow2.f32 %v3934_v11 }
 0xcb1   : > { %v15147_v12 = vpop.eup %15146 }
 0xcb2   : > { %v3941_v14 = vsel %vm3117_vm6, %v15147_v12, 0.0  ;;  %v15149_v15 = vpop.eup %15148 }
 0xcb3   : > { %3942 = vadd.xlane.f32.xlu1 %v3941_v14  ;;  %v3938_v20 = vsel %vm3117_vm6, %v15149_v15, 0.0 }
 0xcb7   : > { %3939 = vadd.xlane.f32.xlu1 %v3938_v20 }
 0xcc8   : > { %13786 = vrot.lane.b32.xlu1 %v16779_v38, %s15764_s29 }
 0xd40   : > { %v3943_v23 = vpop.xlane.xlu1 %3942 }
 0xd41   : > { %15150 = vrcp.f32 %v3943_v23 }
 0xd44   : > { %v3940_v24 = vpop.xlane.xlu1 %3939 }
 0xd45   : > { %15152 = vrcp.f32 %v3940_v24 }
 0xd48   : > { %v13787_v25 = vpop.permute.xlu1 %13786 }
 0xd49   : > { %v13789_v26 = vunpack.i.h.bf16 %v13787_v25  ;;  %v13788_v28 = vunpack.i.l.bf16 %v13787_v25 }
 0xd4b   : > { %v13334_v49 = vpack.c.bf16 %v13789_v26, %v13788_v28  ;;  %v15151_v30 = vpop.eup %15150 }
 0xd4c   : > { %v3947_v27 = vmul.f32 %v15151_v30, %v15147_v12 }
 0xd4d   : > { %13336 = vmatprep.subr.msk.bf16.mxu0 %vm16726_vm5, %v13334_v49 }
 0xd4f   : > { %v15153_v9 = vpop.eup %15152 }
 0xd50   : > { %v3946_v32 = vmul.f32 %v15153_v9, %v15149_v15 }
 0xd52   : > { %13128 = vmatprep.mubr.msk.f32.mxu0 %vm3117_vm6, %v3946_v32 }
 0xd53   : > { %13129 = vmatmul.mubr.msk.f32.vlgmr.msra.gmra.mrb[14].mxu0 %vm3117_vm6, %v3947_v27 }
 0xd54   : > { %13339 = vmatpush3.bf16.xpose.msk.msra.mxu0 %vm16726_vm5, %v13334_v49  ;;  %13135 = vmatprep.mubr.msk.f32.mxu0 %vm3025_vm4, %v4030_v17 }
 0xd5b   : > { %13136 = vmatmul.mubr.msk.f32.vlgmr.msra.gmra.mrb[16].mxu0 %vm3025_vm4, %v4032_v58 }
 0xe26   : > { %v16914_v59 = vpop.f32.mrb[14].mxu0 }
 0xe27   : > { %v16916_v60 = vpop.f32.mrb[15].mxu0 }
 0xe2e   : > { %v13137_v63 = vpop.f32.mrb[16].mxu0 }
 0xe2f   : > { %v4121_v1 = vmul.f32 0.17677669, %v13137_v63  ;;  %v4111_v2 = vpop.f32.mrb[17].mxu0 }
 0xe30   : > { %v4120_v36 = vmul.f32 0.17677669, %v4111_v2 }
 0xe31   : > { %v4123_v4 = vadd.f32 %v4121_v1, %v16793_v0 }
 0xe32   : > { %v4122_v5 = vadd.f32 %v4120_v36, %v16798_v3 }
 0xe33   : > { %v4127_v7 = vsel %vm3117_vm6, %v4123_v4, -inf }
 0xe34   : > { %4128 = vmax.xlane.f32.xlu1 %v4127_v7  ;;  %v4124_v8 = vsel %vm3117_vm6, %v4122_v5, -inf }
 0xe35   : > { %4125 = vmax.xlane.f32.xlu0 %v4124_v8 }
 0xe45   : > { %13796 = vrot.lane.b32.xlu1 %v16779_v38, %s15765_s27 }
 0xe49   : > { %4235 = vrot.lane.b32.xlu1 %v16682_v13, %s15765_s27 }
 0xec1   : > { %v4129_v10 = vpop.xlane.xlu1 %4128 }
 0xec2   : > { %v4131_v11 = vsub.f32 %v4123_v4, %v4129_v10  ;;  %v4126_v55 = vpop.xlane.xlu0 %4125 }
 0xec3   : > { %v4130_v12 = vsub.f32 %v4122_v5, %v4126_v55 }
 0xec4   : > { %v4134_v14 = vmul.f32 1.442695, %v4131_v11 }
 0xec5   : > { %v4132_v15 = vmul.f32 1.442695, %v4130_v12  ;;  %v13797_v49 = vpop.permute.xlu1 %13796 }
 0xec6   : > { %15154 = vpow2.f32 %v4134_v14  ;;  %v13799_v9 = vunpack.i.h.bf16 %v13797_v49  ;;  %v13798_v32 = vunpack.i.l.bf16 %v13797_v49 }
 0xec7   : > { %15156 = vpow2.f32 %v4132_v15 }
 0xec8   : > { %v13344_v63 = vpack.c.bf16 %v13799_v9, %v13798_v32 }
 0xec9   : > { %v4236_v5 = vpop.permute.xlu1 %4235 }
 0xed0   : > { %v15155_v20 = vpop.eup %15154 }
 0xed1   : > { %v4139_v23 = vsel %vm3117_vm6, %v15155_v20, 0.0  ;;  %v15157_v24 = vpop.eup %15156 }
 0xed2   : > { %4140 = vadd.xlane.f32.xlu0 %v4139_v23  ;;  %v4136_v25 = vsel %vm3117_vm6, %v15157_v24, 0.0 }
 0xed6   : > { %4137 = vadd.xlane.f32.xlu0 %v4136_v25 }
 0xeec   : > { %13791 = vrot.lane.b32.xlu0 %v16775_v31, %s15764_s29 }
 0xef0   : > { %4237 = vrot.lane.b32.xlu0 %v16689_v18, %s15765_s27 }
 0xf5f   : > { %v4141_v26 = vpop.xlane.xlu0 %4140 }
 0xf60   : > { %15158 = vrcp.f32 %v4141_v26 }
 0xf63   : > { %v4138_v28 = vpop.xlane.xlu0 %4137 }
 0xf64   : > { %15160 = vrcp.f32 %v4138_v28 }
 0xf67   : > { %v13792_v30 = vpop.permute.xlu0 %13791 }
 0xf68   : > { %v13794_v27 = vunpack.i.h.bf16 %v13792_v30  ;;  %v13793_v17 = vunpack.i.l.bf16 %v13792_v30 }
 0xf6a   : > { %v13340_v58 = vpack.c.bf16 %v13794_v27, %v13793_v17  ;;  %v15159_v1 = vpop.eup %15158 }
 0xf6b   : > { %v4145_v4 = vmul.f32 %v15159_v1, %v15155_v20  ;;  %v4238_v7 = vpop.permute.xlu0 %4237 }
 0xf6c   : > { %13341 = vmatprep.subr.bf16.mxu1 %v13340_v58 }
 0xf6d   : > { %13343 = vmatpush3.bf16.msra.mxu1 %v13340_v58 }
 0xf6e   : > { %v15161_v2 = vpop.eup %15160  ;;  %13346 = vmatprep.subr.msk.bf16.mxu1 %vm16726_vm5, %v13344_v63 }
 0xf6f   : > { %v4144_v36 = vmul.f32 %v15161_v2, %v15157_v24 }
 0xf71   : > { %13142 = vmatprep.mubr.msk.f32.mxu1 %vm3117_vm6, %v4144_v36 }
 0xf72   : > { %13143 = vmatmul.mubr.msk.f32.vlgmr.msra.gmra.mrb[32].mxu1 %vm3117_vm6, %v4145_v4 }
 0xf73   : > { %13149 = vmatprep.mubr.msk.f32.mxu1 %vm3025_vm4, %v4236_v5 }
 0xf76   : > { %13349 = vmatpush3.bf16.xpose.msk.msra.mxu1 %vm16726_vm5, %v13344_v63 }
 0xf7d   : > { %13150 = vmatmul.mubr.msk.f32.vlgmr.msra.gmra.mrb[34].mxu1 %vm3025_vm4, %v4238_v7 }
0x1045   : > { %v16940_v8 = vpop.f32.mrb[32].mxu1 }
0x1046   : > { %v16942_v10 = vpop.f32.mrb[33].mxu1 }
0x1047   : > { %v13845_v11 = vpack.i.bf16 %v16940_v8, %v16942_v10  ;;  %v14214_v8 = vld [vmem:[%s16392_s22 + $0x158] ss:$12 sps:$4 sm:$0xff]  }
0x1048   : > { %v14218_v10 = vld [vmem:[%s16392_s22 + $0x98] ss:$12 sps:$4 sm:$0xff]  }
0x1050   : > { %v13151_v55 = vpop.f32.mrb[34].mxu1 }
0x1051   : > { %v4327_v12 = vmul.f32 0.17677669, %v13151_v55  ;;  %v4317_v14 = vpop.f32.mrb[35].mxu1 }
0x1052   : > { %v4326_v15 = vmul.f32 0.17677669, %v4317_v14 }
0x1053   : > { %v4329_v20 = vadd.f32 %v4327_v12, %v16793_v0 }
0x1054   : > { %v4328_v23 = vadd.f32 %v4326_v15, %v16798_v3 }
0x1055   : > { %v4333_v24 = vsel %vm3117_vm6, %v4329_v20, -inf }
0x1056   : > { %4334 = vmax.xlane.f32.xlu0 %v4333_v24  ;;  %v4330_v25 = vsel %vm3117_vm6, %v4328_v23, -inf }
0x1057   : > { %4331 = vmax.xlane.f32.xlu1 %v4330_v25 }
0x10e3   : > { %v4335_v26 = vpop.xlane.xlu0 %4334 }
0x10e4   : > { %v4337_v28 = vsub.f32 %v4329_v20, %v4335_v26  ;;  %v4332_v49 = vpop.xlane.xlu1 %4331 }
0x10e5   : > { %v4336_v30 = vsub.f32 %v4328_v23, %v4332_v49 }
0x10e6   : > { %v4340_v9 = vmul.f32 1.442695, %v4337_v28 }
0x10e7   : > { %v4338_v32 = vmul.f32 1.442695, %v4336_v30 }
0x10e8   : > { %15162 = vpow2.f32 %v4340_v9 }
0x10e9   : > { %15164 = vpow2.f32 %v4338_v32 }
0x10f2   : > { %v15163_v27 = vpop.eup %15162 }
0x10f3   : > { %v15165_v17 = vpop.eup %15164  ;;  %v4345_v58 = vsel %vm3117_vm6, %v15163_v27, 0.0 }
0x10f4   : > { %4346 = vadd.xlane.f32.xlu1 %v4345_v58  ;;  %v4342_v63 = vsel %vm3117_vm6, %v15165_v17, 0.0 }
0x10f5   : > { %4343 = vadd.xlane.f32.xlu0 %v4342_v63 }
0x1105   : > { %13806 = vrot.lane.b32.xlu1 %v16779_v38, %s15766_s11 }
0x1109   : > { %4439 = vrot.lane.b32.xlu1 %v16682_v13, %s15766_s11 }
0x110b   : > { %13801 = vrot.lane.b32.xlu0 %v16775_v31, %s15765_s27 }
0x110f   : > { %4441 = vrot.lane.b32.xlu0 %v16689_v18, %s15766_s11 }
0x1181   : > { %v4347_v1 = vpop.xlane.xlu1 %4346 }
0x1182   : > { %15166 = vrcp.f32 %v4347_v1  ;;  %v4344_v2 = vpop.xlane.xlu0 %4343 }
0x1183   : > { %15168 = vrcp.f32 %v4344_v2 }
0x1185   : > { %v13807_v36 = vpop.permute.xlu1 %13806 }
0x1186   : > { %v13802_v4 = vpop.permute.xlu0 %13801  ;;  %v13809_v5 = vunpack.i.h.bf16 %v13807_v36  ;;  %v13808_v7 = vunpack.i.l.bf16 %v13807_v36 }
0x1187   : > { %v13804_v55 = vunpack.i.h.bf16 %v13802_v4  ;;  %v13803_v12 = vunpack.i.l.bf16 %v13802_v4 }
0x1188   : > { %v13354_v14 = vpack.c.bf16 %v13809_v5, %v13808_v7 }
0x1189   : > { %v13350_v38 = vpack.c.bf16 %v13804_v55, %v13803_v12  ;;  %v4440_v23 = vpop.permute.xlu1 %4439 }
0x118a   : > { %v4442_v24 = vpop.permute.xlu0 %4441 }
0x118b   : > { %13351 = vmatprep.subr.bf16.mxu0 %v13350_v38 }
0x118c   : > { %v15167_v13 = vpop.eup %15166  ;;  %13353 = vmatpush3.bf16.msra.mxu0 %v13350_v38 }
0x118d   : > { %v15169_v15 = vpop.eup %15168  ;;  %13356 = vmatprep.subr.msk.bf16.mxu0 %vm16726_vm5, %v13354_v14  ;;  %v4351_v20 = vmul.f32 %v15167_v13, %v15163_v27 }
0x118e   : > { %v4350_v18 = vmul.f32 %v15169_v15, %v15165_v17 }
0x1190   : > { %13156 = vmatprep.mubr.msk.f32.mxu0 %vm3117_vm6, %v4350_v18 }
0x1191   : > { %13157 = vmatmul.mubr.msk.f32.vlgmr.msra.gmra.mrb[18].mxu0 %vm3117_vm6, %v4351_v20 }
0x1192   : > { %13163 = vmatprep.mubr.msk.f32.mxu0 %vm3025_vm4, %v4440_v23 }
0x1195   : > { %13359 = vmatpush3.bf16.xpose.msk.msra.mxu0 %vm16726_vm5, %v13354_v14  ;;  %v16983_v14 = vsub.s32 2, %v16646_v50 }
0x1196   : > { %13371 = vmatprep.subr.bf16.mxu0 %v16786_v61 }
0x1197   : > { %v1459_v13 = vrot.slane %v16765_v22, %v16983_v14 }
0x1199   : > { %v16990_v15 = vadd.f32 %v16730_v43, %v1459_v13  ;;  %v16995_v18 = vadd.f32 %v16734_v46, %v1459_v13 }
0x119c   : > { %13164 = vmatmul.mubr.msk.f32.vlgmr.msra.gmra.mrb[20].mxu0 %vm3025_vm4, %v4442_v24 }
0x119d   : > { %13373 = vmatpush3.bf16.msra.mxu0 %v16786_v61 }
0x1264   : > { %v16970_v25 = vpop.f32.mrb[18].mxu0 }
0x1265   : > { %v16972_v26 = vpop.f32.mrb[19].mxu0 }
0x1266   : > { %v13855_v28 = vpack.i.bf16 %v16970_v25, %v16972_v26  ;;  %v14217_v25 = vld [vmem:[%s16392_s22 + $0x4] ss:$12 sps:$4 sm:$0xff]  }
0x126f   : > { %v13165_v49 = vpop.f32.mrb[20].mxu0 }
0x1270   : > { %v4531_v30 = vmul.f32 0.17677669, %v13165_v49  ;;  %v4521_v9 = vpop.f32.mrb[21].mxu0 }
0x1271   : > { %v4530_v32 = vmul.f32 0.17677669, %v4521_v9 }
0x1272   : > { %v4533_v27 = vadd.f32 %v4531_v30, %v16793_v0 }
0x1273   : > { %v4532_v17 = vadd.f32 %v4530_v32, %v16798_v3 }
0x1274   : > { %v4537_v58 = vsel %vm3117_vm6, %v4533_v27, -inf }
0x1275   : > { %4538 = vmax.xlane.f32.xlu0 %v4537_v58  ;;  %v4534_v61 = vsel %vm3117_vm6, %v4532_v17, -inf }
0x1276   : > { %4535 = vmax.xlane.f32.xlu1 %v4534_v61 }
0x1302   : > { %v4539_v63 = vpop.xlane.xlu0 %4538 }
0x1303   : > { %v4541_v1 = vsub.f32 %v4533_v27, %v4539_v63  ;;  %v4536_v2 = vpop.xlane.xlu1 %4535 }
0x1304   : > { %v4540_v36 = vsub.f32 %v4532_v17, %v4536_v2 }
0x1305   : > { %v4544_v4 = vmul.f32 1.442695, %v4541_v1 }
0x1306   : > { %v4542_v5 = vmul.f32 1.442695, %v4540_v36 }
0x1307   : > { %15170 = vpow2.f32 %v4544_v4 }
0x1308   : > { %15172 = vpow2.f32 %v4542_v5 }
0x1311   : > { %v15171_v7 = vpop.eup %15170 }
0x1312   : > { %v15173_v55 = vpop.eup %15172  ;;  %v4549_v12 = vsel %vm3117_vm6, %v15171_v7, 0.0 }
0x1313   : > { %4550 = vadd.xlane.f32.xlu1 %v4549_v12  ;;  %v4546_v38 = vsel %vm3117_vm6, %v15173_v55, 0.0 }
0x1314   : > { %4547 = vadd.xlane.f32.xlu0 %v4546_v38 }
0x132a   : > { %13811 = vrot.lane.b32.xlu0 %v16775_v31, %s15766_s11 }
0x132e   : > { %4837 = vrot.lane.b32.xlu0 %v16990_v15, %s15764_s29 }
0x1332   : > { %4839 = vrot.lane.b32.xlu0 %v16995_v18, %s15764_s29 }
0x13a0   : > { %v4551_v20 = vpop.xlane.xlu1 %4550 }
0x13a1   : > { %15174 = vrcp.f32 %v4551_v20  ;;  %v4548_v23 = vpop.xlane.xlu0 %4547 }
0x13a2   : > { %15176 = vrcp.f32 %v4548_v23 }
0x13a5   : > { %v13812_v22 = vpop.permute.xlu0 %13811 }
0x13a6   : > { %v13814_v24 = vunpack.i.h.bf16 %v13812_v22  ;;  %v13813_v49 = vunpack.i.l.bf16 %v13812_v22 }
0x13a8   : > { %v13360_v31 = vpack.c.bf16 %v13814_v24, %v13813_v49 }
0x13aa   : > { %13361 = vmatprep.subr.bf16.mxu1 %v13360_v31 }
0x13ab   : > { %v15175_v43 = vpop.eup %15174  ;;  %13363 = vmatpush3.bf16.msra.mxu1 %v13360_v31 }
0x13ac   : > { %v15177_v30 = vpop.eup %15176  ;;  %13366 = vmatprep.subr.msk.bf16.mxu1 %vm16726_vm5, %v16781_v6  ;;  %v4555_v9 = vmul.f32 %v15175_v43, %v15171_v7 }
0x13ad   : > { %v4554_v46 = vmul.f32 %v15177_v30, %v15173_v55 }
0x13af   : > { %13170 = vmatprep.mubr.msk.f32.mxu1 %vm3117_vm6, %v4554_v46 }
0x13b0   : > { %13171 = vmatmul.mubr.msk.f32.vlgmr.msra.gmra.mrb[36].mxu1 %vm3117_vm6, %v4555_v9 }
0x13b1   : > { %13177 = vmatprep.mubr.msk.f32.mxu1 %vm3025_vm4, %v16990_v15 }
0x13b4   : > { %13369 = vmatpush3.bf16.xpose.msk.msra.mxu1 %vm16726_vm5, %v16781_v6 }
0x13bb   : > { %13178 = vmatmul.mubr.msk.f32.vlgmr.msra.gmra.mrb[38].mxu1 %vm3025_vm4, %v16995_v18 }
0x1483   : > { %v17011_v32 = vpop.f32.mrb[36].mxu1 }
0x1484   : > { %v17013_v27 = vpop.f32.mrb[37].mxu1 }
0x1485   : > { %v13865_v17 = vpack.i.bf16 %v17011_v32, %v17013_v27 }
0x148e   : > { %v13179_v58 = vpop.f32.mrb[38].mxu1 }
0x148f   : > { %v4721_v61 = vpop.f32.mrb[39].mxu1  ;;  %v4731_v63 = vmul.f32 0.17677669, %v13179_v58 }
0x1490   : > { %v4730_v1 = vmul.f32 0.17677669, %v4721_v61 }
0x1491   : > { %v4733_v6 = vadd.f32 %v4731_v63, %v16793_v0 }
0x1492   : > { %v4732_v2 = vadd.f32 %v4730_v1, %v16798_v3 }
0x1493   : > { %v4737_v4 = vsel %vm3117_vm6, %v4733_v6, -inf }
0x1494   : > { %v4734_v36 = vsel %vm3117_vm6, %v4732_v2, -inf }
0x1495   : > { %4735 = vmax.xlane.f32.xlu1 %v4734_v36 }
0x1499   : > { %4738 = vmax.xlane.f32.xlu1 %v4737_v4 }
0x1522   : > { %v4736_v5 = vpop.xlane.xlu1 %4735 }
0x1523   : > { %v4740_v7 = vsub.f32 %v4732_v2, %v4736_v5  ;;  %v4838_v2 = vpop.permute.xlu0 %4837 }
0x1525   : > { %v4742_v38 = vmul.f32 1.442695, %v4740_v7 }
0x1526   : > { %v4739_v55 = vpop.xlane.xlu1 %4738 }
0x1527   : > { %v4741_v12 = vsub.f32 %v4733_v6, %v4739_v55  ;;  %v4840_v36 = vpop.permute.xlu0 %4839 }
0x1529   : > { %v4744_v13 = vmul.f32 1.442695, %v4741_v12 }
0x152b   : > { %15178 = vpow2.f32 %v4744_v13 }
0x152c   : > { %15180 = vpow2.f32 %v4742_v38 }
0x1535   : > { %v15179_v20 = vpop.eup %15178 }
0x1536   : > { %v4749_v23 = vsel %vm3117_vm6, %v15179_v20, 0.0  ;;  %v15181_v22 = vpop.eup %15180 }
0x1537   : > { %4750 = vadd.xlane.f32.xlu1 %v4749_v23  ;;  %v4746_v24 = vsel %vm3117_vm6, %v15181_v22, 0.0 }
0x153b   : > { %4747 = vadd.xlane.f32.xlu1 %v4746_v24 }
0x154c   : > { %13816 = vrot.lane.b32.xlu1 %v16783_v39, %s15764_s29 }
0x15c4   : > { %v4751_v49 = vpop.xlane.xlu1 %4750 }
0x15c5   : > { %15182 = vrcp.f32 %v4751_v49 }
0x15c8   : > { %v4748_v31 = vpop.xlane.xlu1 %4747 }
0x15c9   : > { %15184 = vrcp.f32 %v4748_v31 }
0x15cc   : > { %v13817_v43 = vpop.permute.xlu1 %13816 }
0x15cd   : > { %v13819_v30 = vunpack.i.h.bf16 %v13817_v43  ;;  %v13818_v46 = vunpack.i.l.bf16 %v13817_v43 }
0x15cf   : > { %v13374_v9 = vpack.c.bf16 %v13819_v30, %v13818_v46  ;;  %v15183_v58 = vpop.eup %15182 }
0x15d0   : > { %v4755_v1 = vmul.f32 %v15183_v58, %v15179_v20 }
0x15d1   : > { %13376 = vmatprep.subr.msk.bf16.mxu0 %vm16726_vm5, %v13374_v9 }
0x15d3   : > { %v15185_v61 = vpop.eup %15184 }
0x15d4   : > { %v4754_v63 = vmul.f32 %v15185_v61, %v15181_v22 }
0x15d6   : > { %13184 = vmatprep.mubr.msk.f32.mxu0 %vm3117_vm6, %v4754_v63 }
0x15d7   : > { %13185 = vmatmul.mubr.msk.f32.vlgmr.msra.gmra.mrb[22].mxu0 %vm3117_vm6, %v4755_v1 }
0x15d8   : > { %13379 = vmatpush3.bf16.xpose.msk.msra.mxu0 %vm16726_vm5, %v13374_v9  ;;  %13191 = vmatprep.mubr.msk.f32.mxu0 %vm3025_vm4, %v4838_v2 }
0x15df   : > { %13192 = vmatmul.mubr.msk.f32.vlgmr.msra.gmra.mrb[24].mxu0 %vm3025_vm4, %v4840_v36 }
0x16aa   : > { %v17033_v6 = vpop.f32.mrb[22].mxu0 }
0x16ab   : > { %v17035_v4 = vpop.f32.mrb[23].mxu0 }
0x16b2   : > { %v13193_v5 = vpop.f32.mrb[24].mxu0 }
0x16b3   : > { %v4929_v7 = vmul.f32 0.17677669, %v13193_v5  ;;  %v4919_v55 = vpop.f32.mrb[25].mxu0 }
0x16b4   : > { %v4928_v12 = vmul.f32 0.17677669, %v4919_v55 }
0x16b5   : > { %v4931_v38 = vadd.f32 %v4929_v7, %v16793_v0 }
0x16b6   : > { %v4930_v13 = vadd.f32 %v4928_v12, %v16798_v3 }
0x16b7   : > { %v4935_v20 = vsel %vm3117_vm6, %v4931_v38, -inf }
0x16b8   : > { %4936 = vmax.xlane.f32.xlu1 %v4935_v20  ;;  %v4932_v23 = vsel %vm3117_vm6, %v4930_v13, -inf }
0x16b9   : > { %4933 = vmax.xlane.f32.xlu0 %v4932_v23 }
0x16c9   : > { %13826 = vrot.lane.b32.xlu1 %v16783_v39, %s15765_s27 }
0x16cd   : > { %5043 = vrot.lane.b32.xlu1 %v16990_v15, %s15765_s27 }
0x1745   : > { %v4937_v22 = vpop.xlane.xlu1 %4936 }
0x1746   : > { %v4939_v24 = vsub.f32 %v4931_v38, %v4937_v22  ;;  %v4934_v49 = vpop.xlane.xlu0 %4933 }
0x1747   : > { %v4938_v31 = vsub.f32 %v4930_v13, %v4934_v49 }
0x1748   : > { %v4942_v43 = vmul.f32 1.442695, %v4939_v24 }
0x1749   : > { %v4940_v0 = vmul.f32 1.442695, %v4938_v31  ;;  %v13827_v63 = vpop.permute.xlu1 %13826 }
0x174a   : > { %15186 = vpow2.f32 %v4942_v43  ;;  %v13829_v2 = vunpack.i.h.bf16 %v13827_v63  ;;  %v13828_v36 = vunpack.i.l.bf16 %v13827_v63 }
0x174b   : > { %15188 = vpow2.f32 %v4940_v0 }
0x174c   : > { %v13384_v12 = vpack.c.bf16 %v13829_v2, %v13828_v36 }
0x174d   : > { %v5044_v22 = vpop.permute.xlu1 %5043 }
0x1754   : > { %v15187_v3 = vpop.eup %15186 }
0x1755   : > { %v4947_v30 = vsel %vm3117_vm6, %v15187_v3, 0.0  ;;  %v15189_v46 = vpop.eup %15188 }
0x1756   : > { %4948 = vadd.xlane.f32.xlu0 %v4947_v30  ;;  %v4944_v9 = vsel %vm3117_vm6, %v15189_v46, 0.0 }
0x175a   : > { %4945 = vadd.xlane.f32.xlu0 %v4944_v9  ;;  %v15219_v9 = vld [vmem:[%s18385_s28 + $0x8] sm:$0xff] }
0x1770   : > { %13821 = vrot.lane.b32.xlu0 %v16788_v62, %s15764_s29 }
0x1774   : > { %5045 = vrot.lane.b32.xlu0 %v16995_v18, %s15765_s27 }
0x17e3   : > { %v4949_v58 = vpop.xlane.xlu0 %4948 }
0x17e4   : > { %15190 = vrcp.f32 %v4949_v58 }
0x17e7   : > { %v4946_v61 = vpop.xlane.xlu0 %4945 }
0x17e8   : > { %15192 = vrcp.f32 %v4946_v61  ;;  %v15220_v61 = vld [vmem:[%s18385_s28] sm:$0xff] }
0x17eb   : > { %v13822_v1 = vpop.permute.xlu0 %13821 }
0x17ec   : > { %v13824_v5 = vunpack.i.h.bf16 %v13822_v1  ;;  %v13823_v7 = vunpack.i.l.bf16 %v13822_v1 }
0x17ee   : > { %v13380_v55 = vpack.c.bf16 %v13824_v5, %v13823_v7  ;;  %v15191_v38 = vpop.eup %15190 }
0x17ef   : > { %v4953_v23 = vmul.f32 %v15191_v38, %v15187_v3  ;;  %v5046_v24 = vpop.permute.xlu0 %5045 }
0x17f0   : > { %13381 = vmatprep.subr.bf16.mxu1 %v13380_v55 }
0x17f1   : > { %13383 = vmatpush3.bf16.msra.mxu1 %v13380_v55 }
0x17f2   : > { %v15193_v13 = vpop.eup %15192  ;;  %13386 = vmatprep.subr.msk.bf16.mxu1 %vm16726_vm5, %v13384_v12 }
0x17f3   : > { %v4952_v20 = vmul.f32 %v15193_v13, %v15189_v46 }
0x17f5   : > { %13198 = vmatprep.mubr.msk.f32.mxu1 %vm3117_vm6, %v4952_v20 }
0x17f6   : > { %13199 = vmatmul.mubr.msk.f32.vlgmr.msra.gmra.mrb[40].mxu1 %vm3117_vm6, %v4953_v23 }
0x17f7   : > { %13205 = vmatprep.mubr.msk.f32.mxu1 %vm3025_vm4, %v5044_v22 }
0x17fa   : > { %13389 = vmatpush3.bf16.xpose.msk.msra.mxu1 %vm16726_vm5, %v13384_v12 }
0x1801   : > { %13206 = vmatmul.mubr.msk.f32.vlgmr.msra.gmra.mrb[42].mxu1 %vm3025_vm4, %v5046_v24 }
0x18c9   : > { %v17059_v49 = vpop.f32.mrb[40].mxu1 }
0x18ca   : > { %v17061_v31 = vpop.f32.mrb[41].mxu1 }
0x18cb   : > { %v13875_v43 = vpack.i.bf16 %v17059_v49, %v17061_v31 }
0x18d4   : > { %v13207_v0 = vpop.f32.mrb[42].mxu1 }
0x18d5   : > { %v5135_v3 = vmul.f32 0.17677669, %v13207_v0  ;;  %v5125_v30 = vpop.f32.mrb[43].mxu1 }
0x18d6   : > { %v5134_v46 = vmul.f32 0.17677669, %v5125_v30 }
0x18d7   : > { %v5137_v58 = vadd.f32 %v15219_v9, %v5135_v3 }
0x18d8   : > { %v5136_v63 = vadd.f32 %v15220_v61, %v5134_v46 }
0x18d9   : > { %v5141_v1 = vsel %vm3117_vm6, %v5137_v58, -inf }
0x18da   : > { %5142 = vmax.xlane.f32.xlu0 %v5141_v1  ;;  %v5138_v2 = vsel %vm3117_vm6, %v5136_v63, -inf }
0x18db   : > { %5139 = vmax.xlane.f32.xlu1 %v5138_v2 }
0x1967   : > { %v5143_v36 = vpop.xlane.xlu0 %5142 }
0x1968   : > { %v5145_v5 = vsub.f32 %v5137_v58, %v5143_v36  ;;  %v5140_v7 = vpop.xlane.xlu1 %5139 }
0x1969   : > { %v5144_v55 = vsub.f32 %v5136_v63, %v5140_v7 }
0x196a   : > { %v5148_v12 = vmul.f32 1.442695, %v5145_v5 }
0x196b   : > { %v5146_v38 = vmul.f32 1.442695, %v5144_v55 }
0x196c   : > { %15194 = vpow2.f32 %v5148_v12 }
0x196d   : > { %15196 = vpow2.f32 %v5146_v38 }
0x1976   : > { %v15195_v13 = vpop.eup %15194 }
0x1977   : > { %v15197_v20 = vpop.eup %15196  ;;  %v5153_v23 = vsel %vm3117_vm6, %v15195_v13, 0.0 }
0x1978   : > { %5154 = vadd.xlane.f32.xlu1 %v5153_v23  ;;  %v5150_v22 = vsel %vm3117_vm6, %v15197_v20, 0.0 }
0x1979   : > { %5151 = vadd.xlane.f32.xlu0 %v5150_v22 }
0x1989   : > { %13836 = vrot.lane.b32.xlu1 %v16783_v39, %s15766_s11 }
0x198d   : > { %5247 = vrot.lane.b32.xlu1 %v16990_v15, %s15766_s11 }
0x198f   : > { %13831 = vrot.lane.b32.xlu0 %v16788_v62, %s15765_s27 }
0x1993   : > { %5249 = vrot.lane.b32.xlu0 %v16995_v18, %s15766_s11 }
0x1a05   : > { %v5155_v24 = vpop.xlane.xlu1 %5154 }
0x1a06   : > { %15198 = vrcp.f32 %v5155_v24  ;;  %v5152_v0 = vpop.xlane.xlu0 %5151 }
0x1a07   : > { %15200 = vrcp.f32 %v5152_v0 }
0x1a09   : > { %v13837_v3 = vpop.permute.xlu1 %13836 }
0x1a0a   : > { %v13832_v30 = vpop.permute.xlu0 %13831  ;;  %v13839_v46 = vunpack.i.h.bf16 %v13837_v3  ;;  %v13838_v58 = vunpack.i.l.bf16 %v13837_v3 }
0x1a0b   : > { %v13834_v63 = vunpack.i.h.bf16 %v13832_v30  ;;  %v13833_v1 = vunpack.i.l.bf16 %v13832_v30 }
0x1a0c   : > { %v13394_v2 = vpack.c.bf16 %v13839_v46, %v13838_v58  ;;  %v14202_v46 = vld [vmem:[%s16392_s22 + $0xc8] ss:$12 sps:$4 sm:$0xff]  }
0x1a0d   : > { %v13390_v39 = vpack.c.bf16 %v13834_v63, %v13833_v1  ;;  %v5248_v7 = vpop.permute.xlu1 %5247  ;;  %v14203_v58 = vld [vmem:[%s16392_s22 + $0x8] ss:$12 sps:$4 sm:$0xff]   ;;  %v14204_v63 = vld [vmem:[%s16392_s22 + $0xe0] ss:$12 sps:$4 sm:$0xff]  }
0x1a0e   : > { %v5250_v55 = vpop.permute.xlu0 %5249  ;;  %v14205_v1 = vld [vmem:[%s16392_s22 + $0x20] ss:$12 sps:$4 sm:$0xff]  }
0x1a0f   : > { %13391 = vmatprep.subr.bf16.mxu0 %v13390_v39 }
0x1a10   : > { %v15199_v15 = vpop.eup %15198  ;;  %13393 = vmatpush3.bf16.msra.mxu0 %v13390_v39  ;;  %v14206_v39 = vld [vmem:[%s16392_s22 + $0xf8] ss:$12 sps:$4 sm:$0xff]  }
0x1a11   : > { %v15201_v36 = vpop.eup %15200  ;;  %13396 = vmatprep.subr.msk.bf16.mxu0 %vm16726_vm5, %v13394_v2  ;;  %v5159_v5 = vmul.f32 %v15199_v15, %v15195_v13 }
0x1a12   : > { %v5158_v18 = vmul.f32 %v15201_v36, %v15197_v20 }
0x1a14   : > { %13212 = vmatprep.mubr.msk.f32.mxu0 %vm3117_vm6, %v5158_v18 }
0x1a15   : > { %13213 = vmatmul.mubr.msk.f32.vlgmr.msra.gmra.mrb[26].mxu0 %vm3117_vm6, %v5159_v5 }
0x1a16   : > { %13219 = vmatprep.mubr.msk.f32.mxu0 %vm3025_vm4, %v5248_v7 }
0x1a19   : > { %13399 = vmatpush3.bf16.xpose.msk.msra.mxu0 %vm16726_vm5, %v13394_v2  ;;  %v14207_v2 = vld [vmem:[%s16392_s22 + $0x38] ss:$12 sps:$4 sm:$0xff]  }
0x1a1a   : > { %12816 = vmatprep.subr.bf16.mxu0 %v14202_v46 }
0x1a20   : > { %13220 = vmatmul.mubr.msk.f32.vlgmr.msra.gmra.mrb[28].mxu0 %vm3025_vm4, %v5250_v55 }
0x1a21   : > { %12817 = vmatpush3.bf16.msra.mxu0 %v14203_v58 }
0x1a22   : > { %12818 = vmatprep.subr.bf16.mxu0 %v14204_v63 }
0x1a25   : > { %12819 = vmatpush3.bf16.msra.mxu0 %v14205_v1  ;;  %v14215_v1 = vld [vmem:[%s16392_s22] ss:$12 sps:$4 sm:$0xff]  }
0x1a26   : > { %12820 = vmatprep.subr.bf16.mxu0 %v14206_v39 }
0x1a29   : > { %12821 = vmatpush3.bf16.msra.mxu0 %v14207_v2 }
0x1ae8   : > { %v17091_v12 = vpop.f32.mrb[26].mxu0 }
0x1ae9   : > { %v17093_v38 = vpop.f32.mrb[27].mxu0 }
0x1aea   : > { %v13880_v13 = vpack.i.bf16 %v17091_v12, %v17093_v38 }
0x1af3   : > { %v13221_v20 = vpop.f32.mrb[28].mxu0 }
0x1af4   : > { %v5339_v23 = vmul.f32 0.17677669, %v13221_v20  ;;  %v5329_v22 = vpop.f32.mrb[29].mxu0  ;;  %v14208_v20 = vld [vmem:[%s16392_s22 + $0x110] ss:$12 sps:$4 sm:$0xff]  }
0x1af5   : > { %v5338_v42 = vmul.f32 0.17677669, %v5329_v22  ;;  %12822 = vmatprep.subr.bf16.mxu0 %v14208_v20  ;;  %v14210_v22 = vld [vmem:[%s16392_s22 + $0x128] ss:$12 sps:$4 sm:$0xff]  }
0x1af6   : > { %v5341_v24 = vadd.f32 %v15219_v9, %v5339_v23  ;;  %v14209_v23 = vld [vmem:[%s16392_s22 + $0x50] ss:$12 sps:$4 sm:$0xff]  }
0x1af7   : > { %v5340_v0 = vadd.f32 %v15220_v61, %v5338_v42  ;;  %12823 = vmatpush3.bf16.msra.mxu0 %v14209_v23  ;;  %v14211_v42 = vld [vmem:[%s16392_s22 + $0x68] ss:$12 sps:$4 sm:$0xff]   ;;  %v14220_v23 = vld [vmem:[%s16392_s22 + $0x18] ss:$12 sps:$4 sm:$0xff]  }
0x1af8   : > { %v5345_v3 = vsel %vm3117_vm6, %v5341_v24, -inf  ;;  %12824 = vmatprep.subr.bf16.mxu0 %v14210_v22 }
0x1af9   : > { %5346 = vmax.xlane.f32.xlu0 %v5345_v3  ;;  %v5342_v30 = vsel %vm3117_vm6, %v5340_v0, -inf }
0x1afa   : > { %5343 = vmax.xlane.f32.xlu1 %v5342_v30 }
0x1afb   : > { %12825 = vmatpush3.bf16.msra.mxu0 %v14211_v42 }
0x1b86   : > { %v5347_v9 = vpop.xlane.xlu0 %5346 }
0x1b87   : > { %v5349_v61 = vsub.f32 %v5341_v24, %v5347_v9  ;;  %v5344_v15 = vpop.xlane.xlu1 %5343  ;;  %v14212_v24 = vld [vmem:[%s16392_s22 + $0x140] ss:$12 sps:$4 sm:$0xff]  }
0x1b88   : > { %v5348_v36 = vsub.f32 %v5340_v0, %v5344_v15  ;;  %v14213_v0 = vld [vmem:[%s16392_s22 + $0x80] ss:$12 sps:$4 sm:$0xff]   ;;  %12826 = vmatprep.subr.bf16.mxu0 %v14212_v24 }
0x1b89   : > { %v5352_v18 = vmul.f32 1.442695, %v5349_v61  ;;  %12827 = vmatpush3.bf16.msra.mxu0 %v14213_v0  ;;  %v14222_v61 = vld [vmem:[%s16392_s22 + $0x1c] ss:$12 sps:$4 sm:$0xff]  }
0x1b8a   : > { %v5350_v5 = vmul.f32 1.442695, %v5348_v36  ;;  %12828 = vmatprep.subr.bf16.mxu0 %v14214_v8  ;;  %v14226_v8 = vld [vmem:[%s16392_s22 + $0x34] ss:$12 sps:$4 sm:$0xff]  }
0x1b8b   : > { %15202 = vpow2.f32 %v5352_v18 }
0x1b8c   : > { %15204 = vpow2.f32 %v5350_v5 }
0x1b8d   : > { %12829 = vmatpush3.bf16.msra.mxu0 %v14218_v10 }
0x1b95   : > { %v15203_v7 = vpop.eup %15202 }
0x1b96   : > { %v17105_v55 = vpop.eup %15204  ;;  %v5357_v12 = vsel %vm3117_vm6, %v15203_v7, 0.0 }
0x1b97   : > { %5358 = vadd.xlane.f32.xlu1 %v5357_v12  ;;  %v5354_v38 = vsel %vm3117_vm6, %v17105_v55, 0.0 }
0x1b98   : > { %5355 = vadd.xlane.f32.xlu0 %v5354_v38 }
0x1ba8   : > { %13846 = vrot.lane.b32.xlu1 %v13845_v11, %s15766_s11 }
0x1bac   : > { %13851 = vrot.lane.b32.xlu1 %v13850_v47, %s15766_s11 }
0x1bae   : > { %13841 = vrot.lane.b32.xlu0 %v16788_v62, %s15766_s11  ;;  %v14219_v62 = vld [vmem:[%s16392_s22 + $0x170] ss:$12 sps:$4 sm:$0xff]  }
0x1baf   : > { %12830 = vmatprep.subr.bf16.mxu0 %v14219_v62 }
0x1bb0   : > { %13861 = vrot.lane.b32.xlu1 %v13860_v57, %s15765_s27  ;;  %12831 = vmatpush3.bf16.msra.mxu0 %v14223_v44 }
0x1bb1   : > { %13229 = vmatprep.subr.bf16.mxu0 %v15762_v34 }
0x1bb2   : > { %13856 = vrot.lane.b32.xlu0 %v13855_v28, %s15765_s27 }
0x1bb4   : > { %13871 = vrot.lane.b32.xlu1 %v13870_v48, %s15764_s29 }
0x1bb6   : > { %13866 = vrot.lane.b32.xlu0 %v13865_v17, %s15764_s29 }
0x1bb8   : > { %13881 = vrot.lane.b32.xlu1 %v13880_v13, %s15765_s27 }
0x1bba   : > { %13876 = vrot.lane.b32.xlu0 %v13875_v43, %s15766_s11 }
0x1c24   : > { %v5359_v45 = vpop.xlane.xlu1 %5358 }
0x1c25   : > { %15206 = vrcp.f32 %v5359_v45  ;;  %v5356_v47 = vpop.xlane.xlu0 %5355 }
0x1c26   : > { %15208 = vrcp.f32 %v5356_v47 }
0x1c28   : > { %v13847_v29 = vpop.permute.xlu1 %13846 }
0x1c29   : > { %v13842_v52 = vpop.permute.xlu0 %13841  ;;  %v13849_v35 = vunpack.i.h.bf16 %v13847_v29  ;;  %v13848_v26 = vunpack.i.l.bf16 %v13847_v29  ;;  %v14224_v29 = vld [vmem:[%s16392_s22 + $0x30] ss:$12 sps:$4 sm:$0xff]  }
0x1c2a   : > { %v13844_v57 = vunpack.i.h.bf16 %v13842_v52  ;;  %v13843_v33 = vunpack.i.l.bf16 %v13842_v52 }
0x1c2b   : > { %v5532_v31 = vsel %vm3025_vm4, %v16914_v59, %v13849_v35  ;;  %v5531_v30 = vsel %vm3025_vm4, %v16916_v60, %v13848_v26  ;;  %v14233_v26 = vld [vmem:[%s16392_s22 + $0x78] ss:$12 sps:$4 sm:$0xff]  }
0x1c2c   : > { %v13400_v48 = vpack.c.bf16 %v13844_v57, %v13843_v33  ;;  %v13852_v11 = vpop.permute.xlu1 %13851  ;;  %v14229_v33 = vld [vmem:[%s16392_s22 + $0x4c] ss:$12 sps:$4 sm:$0xff]  }
0x1c2d   : > { %v13857_v28 = vpop.permute.xlu0 %13856  ;;  %v13854_v43 = vunpack.i.h.bf16 %v13852_v11  ;;  %v13853_v46 = vunpack.i.l.bf16 %v13852_v11  ;;  %v14230_v11 = vld [vmem:[%s16392_s22 + $0x60] ss:$12 sps:$4 sm:$0xff]  }
0x1c2e   : > { %13401 = vmatprep.subr.bf16.mxu1 %v13400_v48  ;;  %v13859_v27 = vunpack.i.h.bf16 %v13857_v28  ;;  %v13858_v17 = vunpack.i.l.bf16 %v13857_v28  ;;  %v14238_v28 = vld [vmem:[%s16392_s22 + $0x94] ss:$12 sps:$4 sm:$0xff]  }
0x1c2f   : > { %v15207_v32 = vpop.eup %15206  ;;  %13403 = vmatpush3.bf16.msra.mxu1 %v13400_v48  ;;  %v5524_v60 = vsel %vm3025_vm4, %v16830_v16, %v13854_v43  ;;  %v14247_v43 = vld [vmem:[%s16392_s22 + $0xdc] ss:$12 sps:$4 sm:$0xff]  }
0x1c30   : > { %v15209_v49 = vpop.eup %15208  ;;  %v13862_v13 = vpop.permute.xlu1 %13861  ;;  %6043 = vmatprep.subr.bf16.mxu1 %v14217_v25  ;;  %v5363_v3 = vmul.f32 %v15207_v32, %v15203_v7  ;;  %v5533_v15 = vsel %vm5525_vm7, %v5531_v30, %v13858_v17  ;;  %v5534_v36 = vsel %vm5525_vm7, %v5532_v31, %v13859_v27  ;;  %v14235_v25 = vld [vmem:[%s16392_s22 + $0x7c] ss:$12 sps:$4 sm:$0xff]   ;;  %v14241_v27 = vld [vmem:[%s16392_s22 + $0xac] ss:$12 sps:$4 sm:$0xff]  }
0x1c31   : > { %v13867_v58 = vpop.permute.xlu0 %13866  ;;  %v5362_v63 = vmul.f32 %v15209_v49, %v17105_v55  ;;  %v13864_v39 = vunpack.i.h.bf16 %v13862_v13  ;;  %v13863_v2 = vunpack.i.l.bf16 %v13862_v13  ;;  %v5523_v55 = vsel %vm3025_vm4, %v16832_v40, %v13853_v46  ;;  %v14236_v32 = vld [vmem:[%s16392_s22 + $0x90] ss:$12 sps:$4 sm:$0xff]   ;;  %v14239_v17 = vld [vmem:[%s16392_s22 + $0xa8] ss:$12 sps:$4 sm:$0xff]   ;;  %v14242_v31 = vld [vmem:[%s16392_s22 + $0xc0] ss:$12 sps:$4 sm:$0xff]  }
0x1c32   : > { %v13869_v9 = vunpack.i.h.bf16 %v13867_v58  ;;  %v13868_v59 = vunpack.i.l.bf16 %v13867_v58  ;;  %v14244_v49 = vld [vmem:[%s16392_s22 + $0xc4] ss:$12 sps:$4 sm:$0xff]   ;;  %v14253_v46 = vld [vmem:[%s16392_s22 + $0x10c] ss:$12 sps:$4 sm:$0xff]   ;;  %v14251_v58 = vld [vmem:[%s16392_s22 + $0x108] ss:$12 sps:$4 sm:$0xff]  }
0x1c33   : > { %13226 = vmatprep.mubr.msk.f32.mxu1 %vm3117_vm6, %v5362_v63  ;;  %v5526_v16 = vsel %vm5525_vm7, %v5523_v55, %v13863_v2  ;;  %v5527_v42 = vsel %vm5525_vm7, %v5524_v60, %v13864_v39  ;;  %v14245_v13 = vld [vmem:[%s16392_s22 + $0xd8] ss:$12 sps:$4 sm:$0xff]   ;;  %v14248_v30 = vld [vmem:[%s16392_s22 + $0xf0] ss:$12 sps:$4 sm:$0xff]  }
0x1c34   : > { %13227 = vmatmul.mubr.msk.f32.vlgmr.msra.gmra.mrb[44].mxu1 %vm3117_vm6, %v5363_v3  ;;  %v13872_v18 = vpop.permute.xlu1 %13871  ;;  %v5535_v5 = vsel %vm5528_vm8, %v5533_v15, %v13868_v59  ;;  %v5536_v7 = vsel %vm5528_vm8, %v5534_v36, %v13869_v9  ;;  %v14250_v3 = vld [vmem:[%s16392_s22 + $0xf4] ss:$12 sps:$4 sm:$0xff]   ;;  %v14256_v63 = vld [vmem:[%s16392_s22 + $0x124] ss:$12 sps:$4 sm:$0xff]   ;;  %v14259_v39 = vld [vmem:[%s16392_s22 + $0x13c] ss:$12 sps:$4 sm:$0xff]  }
0x1c35   : > { %6044 = vmatpush1.bf16.msra.mxu1 %v14215_v1  ;;  %v13874_v12 = vunpack.i.h.bf16 %v13872_v18  ;;  %v13873_v38 = vunpack.i.l.bf16 %v13872_v18  ;;  %v13877_v20 = vpop.permute.xlu0 %13876  ;;  %v5544_v22 = vpack.c.bf16 %v5536_v7, %v5535_v5  ;;  %v14254_v1 = vld [vmem:[%s16392_s22 + $0x120] ss:$12 sps:$4 sm:$0xff]   ;;  %v14257_v2 = vld [vmem:[%s16392_s22 + $0x138] ss:$12 sps:$4 sm:$0xff]   ;;  %v14260_v59 = vld [vmem:[%s16392_s22 + $0x150] ss:$12 sps:$4 sm:$0xff]  }
0x1c36   : > { %v13879_v24 = vunpack.i.h.bf16 %v13877_v20  ;;  %v13878_v0 = vunpack.i.l.bf16 %v13877_v20  ;;  %6045 = vmatprep.subr.bf16.mxu1 %v14222_v61  ;;  %v14262_v9 = vld [vmem:[%s16392_s22 + $0x154] ss:$12 sps:$4 sm:$0xff]   ;;  %v14265_v61 = vld [vmem:[%s16392_s22 + $0x16c] ss:$12 sps:$4 sm:$0xff]   ;;  %v14268_v60 = vld [vmem:[%s16392_s22 + $0x184] ss:$12 sps:$4 sm:$0xff]  }
0x1c37   : > { %v5529_v10 = vsel %vm5528_vm8, %v5526_v16, %v13873_v38  ;;  %v5530_v40 = vsel %vm5528_vm8, %v5527_v42, %v13874_v12  ;;  %6075 = vmatprep.mubr.bf16.mxu1 %v5544_v22  ;;  %6161 = vmatprep.mubr.bf16.mxu0 %v5544_v22  ;;  %v14263_v15 = vld [vmem:[%s16392_s22 + $0x168] ss:$12 sps:$4 sm:$0xff]   ;;  %v14266_v36 = vld [vmem:[%s16392_s22 + $0x180] ss:$12 sps:$4 sm:$0xff]   ;;  %v14270_v55 = vld [vmem:[%s16392_s22 + $0x198] ss:$12 sps:$4 sm:$0xff]  }
0x1c38   : > { %v17176_v62 = vpack.c.bf16 %v5530_v40, %v5529_v10  ;;  %v13882_v44 = vpop.permute.xlu1 %13881  ;;  %v5538_v52 = vsel %vm3025_vm4, %v17033_v6, %v13879_v24  ;;  %v5537_v57 = vsel %vm3025_vm4, %v17035_v4, %v13878_v0  ;;  %v14227_v6 = vld [vmem:[%s16392_s22 + $0x48] ss:$12 sps:$4 sm:$0xff]   ;;  %v14232_v4 = vld [vmem:[%s16392_s22 + $0x64] ss:$12 sps:$4 sm:$0xff]   ;;  %v14273_v7 = vld [vmem:[%s16392_s22 + $0x1a0] ss:$12 sps:$4 sm:$0xff]  }
0x1c39   : > { %6046 = vmatpush1.bf16.msra.mxu1 %v14220_v23  ;;  %v13884_v45 = vunpack.i.h.bf16 %v13882_v44  ;;  %v13883_v47 = vunpack.i.l.bf16 %v13882_v44  ;;  %v14269_v18 = vld [vmem:[%s16392_s22 + $0x188] ss:$12 sps:$4 sm:$0xff]   ;;  %v14277_v38 = vld [vmem:[%s16392_s22 + $0x1b8] ss:$12 sps:$4 sm:$0xff]   ;;  %v14274_v20 = vld [vmem:[%s16392_s22 + $0x1b0] ss:$12 sps:$4 sm:$0xff]  }
0x1c3a   : > { %6162 = vmatmul.mubr.bf16.vlgmr.msra.gmra.mrb[32].mxu0 %v17176_v62  ;;  %6047 = vmatprep.subr.bf16.mxu1 %v14226_v8  ;;  %v14272_v5 = vld [vmem:[%s16392_s22 + $0x19c] ss:$12 sps:$4 sm:$0xff]   ;;  %v14276_v12 = vld [vmem:[%s16392_s22 + $0x1b4] ss:$12 sps:$4 sm:$0xff]   ;;  %v14280_v23 = vld [vmem:[%s16392_s22 + $0x1cc] ss:$12 sps:$4 sm:$0xff]  }
0x1c3b   : > { %v17186_v35 = vsel %vm5525_vm7, %v5538_v52, %v13884_v45  ;;  %v17189_v48 = vsel %vm5525_vm7, %v5537_v57, %v13883_v47  ;;  %13245 = vmatprep.mubr.msk.bf16.mxu0 %vm15763_vm3, %v15762_v34  ;;  %13230 = vmatpush3.bf16.msra.mxu0 %v14269_v18  ;;  %v14281_v22 = vld [vmem:[%s16392_s22 + $0x1d0] ss:$12 sps:$4 sm:$0xff]   ;;  %v14278_v16 = vld [vmem:[%s16392_s22 + $0x1c8] ss:$12 sps:$4 sm:$0xff]   ;;  %v14282_v0 = vld [vmem:[%s16392_s22 + $0x1e0] ss:$12 sps:$4 sm:$0xff]  }
0x1c3c   : > { %13231 = vmatprep.subr.bf16.mxu0 %v15762_v34  ;;  %v14284_v42 = vld [vmem:[%s16392_s22 + $0x1e4] ss:$12 sps:$4 sm:$0xff]   ;;  %v14285_v24 = vld [vmem:[%s16392_s22 + $0x1e8] ss:$12 sps:$4 sm:$0xff]   ;;  %v14289_v10 = vld [vmem:[%s16392_s22 + $0x200] ss:$12 sps:$4 sm:$0xff]  }
0x1c3d   : > { %6048 = vmatpush1.bf16.msra.mxu1 %v14224_v29  ;;  %v14288_v8 = vld [vmem:[%s16392_s22 + $0x1fc] ss:$12 sps:$4 sm:$0xff]   ;;  %v14286_v40 = vld [vmem:[%s16392_s22 + $0x1f8] ss:$12 sps:$4 sm:$0xff]  }
0x1c3e   : > { %6049 = vmatprep.subr.bf16.mxu1 %v14229_v33  ;;  %v14293_v44 = vld [vmem:[%s16392_s22 + $0x218] ss:$12 sps:$4 sm:$0xff]   ;;  %v14290_v45 = vld [vmem:[%s16392_s22 + $0x210] ss:$12 sps:$4 sm:$0xff]   ;;  %v14294_v29 = vld [vmem:[%s16392_s22 + $0x228] ss:$12 sps:$4 sm:$0xff]  }
0x1c3f   : > { %13232 = vmatpush3.bf16.msra.mxu0 %v14273_v7  ;;  %v14296_v47 = vld [vmem:[%s16392_s22 + $0x22c] ss:$12 sps:$4 sm:$0xff]   ;;  %v14297_v52 = vld [vmem:[%s16392_s22 + $0x230] ss:$12 sps:$4 sm:$0xff]  }
0x1c40   : > { %13233 = vmatprep.subr.bf16.mxu0 %v15762_v34 }
0x1c41   : > { %6050 = vmatpush1.bf16.msra.mxu1 %v14227_v6 }
0x1c42   : > { %6051 = vmatprep.subr.bf16.mxu1 %v14232_v4 }
0x1c43   : > { %13234 = vmatpush3.bf16.msra.mxu0 %v14277_v38 }
0x1c44   : > { %13235 = vmatprep.subr.bf16.mxu0 %v15762_v34 }
0x1c45   : > { %6052 = vmatpush1.bf16.msra.mxu1 %v14230_v11 }
0x1c46   : > { %6053 = vmatprep.subr.bf16.mxu1 %v14235_v25 }
0x1c47   : > { %13236 = vmatpush3.bf16.msra.mxu0 %v14281_v22 }
0x1c48   : > { %13237 = vmatprep.subr.bf16.mxu0 %v15762_v34 }
0x1c49   : > { %6054 = vmatpush1.bf16.msra.mxu1 %v14233_v26 }
0x1c4a   : > { %6055 = vmatprep.subr.bf16.mxu1 %v14238_v28 }
0x1c4b   : > { %13238 = vmatpush3.bf16.msra.mxu0 %v14285_v24  ;;  %v15225_v24 = vld [vmem:[#allocation2 + $0x20] sm:$0xff] }
0x1c4c   : > { %13239 = vmatprep.subr.bf16.mxu0 %v15762_v34 }
0x1c4d   : > { %6056 = vmatpush1.bf16.msra.mxu1 %v14236_v32 }
0x1c4e   : > { %6057 = vmatprep.subr.bf16.mxu1 %v14241_v27 }
0x1c4f   : > { %13240 = vmatpush3.bf16.msra.mxu0 %v14289_v10  ;;  %v15226_v10 = vld [vmem:[#allocation2 + $0x28] sm:$0xff] }
0x1c50   : > { %13241 = vmatprep.subr.bf16.mxu0 %v15762_v34 }
0x1c51   : > { %6058 = vmatpush1.bf16.msra.mxu1 %v14239_v17 }
0x1c52   : > { %6059 = vmatprep.subr.bf16.mxu1 %v14244_v49 }
0x1c53   : > { %13242 = vmatpush3.bf16.msra.mxu0 %v14293_v44 }
0x1c54   : > { %13243 = vmatprep.subr.bf16.mxu0 %v15762_v34 }
0x1c55   : > { %6060 = vmatpush1.bf16.msra.mxu1 %v14242_v31 }
0x1c56   : > { %6061 = vmatprep.subr.bf16.mxu1 %v14247_v43 }
0x1c57   : > { %13244 = vmatpush3.bf16.msra.mxu0 %v14297_v52  ;;  %v14301_v52 = vld [vmem:[%s16409_s1 + $0x8] ss:$48 sps:$4 sm:$0xff]  }
0x1c59   : > { %6062 = vmatpush1.bf16.msra.mxu1 %v14245_v13  ;;  %v5642_v13 = vld [vmem:[%s879_s16] sm:$0x7] }
0x1c5a   : > { %6063 = vmatprep.subr.bf16.mxu1 %v14250_v3  ;;  %v5655_v3 = vrot.slane %v5642_v13, %v16983_v14 }
0x1c5d   : > { %6064 = vmatpush1.bf16.msra.mxu1 %v14248_v30  ;;  %v5647_v30 = vrot.slane %v5642_v13, %v16651_v51 }
0x1c5e   : > { %6065 = vmatprep.subr.bf16.mxu1 %v14253_v46  ;;  %v5651_v46 = vrot.slane %v5642_v13, %v16661_v56  ;;  %v14322_v13 = vld [vmem:[%s16409_s1 + $0x180] ss:$48 sps:$4 sm:$0xff]  }
0x1c61   : > { %6066 = vmatpush1.bf16.msra.mxu1 %v14251_v58 }
0x1c62   : > { %6067 = vmatprep.subr.bf16.mxu1 %v14256_v63 }
0x1c65   : > { %6068 = vmatpush1.bf16.msra.mxu1 %v14254_v1 }
0x1c66   : > { %6069 = vmatprep.subr.bf16.mxu1 %v14259_v39 }
0x1c69   : > { %6070 = vmatpush1.bf16.msra.mxu1 %v14257_v2 }
0x1c6a   : > { %6071 = vmatprep.subr.bf16.mxu1 %v14262_v9 }
0x1c6d   : > { %6072 = vmatpush1.bf16.msra.mxu1 %v14260_v59 }
0x1c6e   : > { %6073 = vmatprep.subr.bf16.mxu1 %v14265_v61 }
0x1c71   : > { %6074 = vmatpush1.bf16.msra.mxu1 %v14263_v15 }
0x1c72   : > { %6086 = vmatprep.subr.bf16.mxu1 %v14268_v60 }
0x1c74   : > { %6076 = vmatmul.mubr.bf16.vlgmr.msra.gmra.mrb[48].mxu1 %v17176_v62  ;;  %v14292_v62 = vld [vmem:[%s16392_s22 + $0x214] ss:$12 sps:$4 sm:$0xff]   ;;  %s18386_s22 = sld [smem:[#allocation37_spill]] }
0x1c75   : > { %6118 = vmatprep.mubr.bf16.mxu1 %v15761_v37  ;;  %6087 = vmatpush1.bf16.msra.mxu1 %v14266_v36  ;;  %v15221_v36 = vld [vmem:[#allocation2] sm:$0xff] }
0x1c76   : > { %6088 = vmatprep.subr.bf16.mxu1 %v14272_v5 }
0x1c79   : > { %6089 = vmatpush1.bf16.msra.mxu1 %v14270_v55 }
0x1c7a   : > { %6090 = vmatprep.subr.bf16.mxu1 %v14276_v12  ;;  %v15222_v12 = vld [vmem:[#allocation2 + $0x8] sm:$0xff]  ;;  %p12683_p7 = scmp.ne.s32.totalorder %s18386_s22, 3 }
0x1c7b   : > { %s18388_s15 = sld [smem:[#allocation43_spill]] (!%p12683_p7)  ;;  %vm11409_vm10 = vcmask (!%p12683_p7), 7168  }
0x1c7d   : > { %6091 = vmatpush1.bf16.msra.mxu1 %v14274_v20 }
0x1c7e   : > { %6092 = vmatprep.subr.bf16.mxu1 %v14280_v23  ;;  %v15223_v23 = vld [vmem:[#allocation2 + $0x18] sm:$0xff] }
0x1c81   : > { %6093 = vmatpush1.bf16.msra.mxu1 %v14278_v16  ;;  %v15224_v16 = vld [vmem:[#allocation2 + $0x10] sm:$0xff] }
0x1c82   : > { %6094 = vmatprep.subr.bf16.mxu1 %v14284_v42 }
0x1c85   : > { %6095 = vmatpush1.bf16.msra.mxu1 %v14282_v0 }
0x1c86   : > { %6096 = vmatprep.subr.bf16.mxu1 %v14288_v8 }
0x1c89   : > { %6097 = vmatpush1.bf16.msra.mxu1 %v14286_v40 }
0x1c8a   : > { %6098 = vmatprep.subr.bf16.mxu1 %v14292_v62 }
0x1c8d   : > { %6099 = vmatpush1.bf16.msra.mxu1 %v14290_v45 }
0x1c8e   : > { %6100 = vmatprep.subr.bf16.mxu1 %v14296_v47  ;;  %v14298_v47 = vld [vmem:[%s16409_s1] ss:$48 sps:$4 sm:$0xff]  }
0x1c91   : > { %6101 = vmatpush1.bf16.msra.mxu1 %v14294_v29  ;;  %v14300_v29 = vld [vmem:[%s16409_s1 + $0x4] ss:$48 sps:$4 sm:$0xff]  }
0x1c92   : > { %8101 = vmatprep.subr.bf16.mxu0 %v14300_v29 }
0x1d07   : > { %v13228_v57 = vpop.f32.mrb[44].mxu1 }
0x1d08   : > { %v5442_v33 = vpop.f32.mrb[45].mxu1 }
0x1d09   : > { %v13885_v6 = vpack.i.bf16 %v13228_v57, %v5442_v33  ;;  %v14303_v57 = vld [vmem:[%s16409_s1 + $0xc] ss:$48 sps:$4 sm:$0xff]   ;;  %v14306_v33 = vld [vmem:[%s16409_s1 + $0x64] ss:$48 sps:$4 sm:$0xff]  }
0x1d0a   : > { %8187 = vmatprep.subr.bf16.mxu1 %v14303_v57 }
0x1d0b   : > { %13886 = vrot.lane.b32.xlu0 %v13885_v6, %s15764_s29  ;;  %v14309_v6 = vld [vmem:[%s16409_s1 + $0x6c] ss:$48 sps:$4 sm:$0xff]  }
0x1d0d   : > { %v12832_v4 = vpop.f32.mrb[32].mxu0 }
0x1d0e   : > { %v12833_v11 = vpop.f32.mrb[33].mxu0 }
0x1d0f   : > { %v12834_v25 = vadd.f32 %v12833_v11, %v12832_v4  ;;  %v12835_v26 = vpop.f32.mrb[34].mxu0  ;;  %v14304_v4 = vld [vmem:[%s16409_s1 + $0x60] ss:$48 sps:$4 sm:$0xff]   ;;  %v14307_v11 = vld [vmem:[%s16409_s1 + $0x68] ss:$48 sps:$4 sm:$0xff]  }
0x1d10   : > { %v12836_v28 = vpop.f32.mrb[35].mxu0 }
0x1d11   : > { %v12837_v32 = vadd.f32 %v12836_v28, %v12835_v26  ;;  %v6164_v58 = vadd.f32 %v12834_v25, %v5655_v3  ;;  %v14312_v25 = vld [vmem:[%s16409_s1 + $0xc4] ss:$48 sps:$4 sm:$0xff]   ;;  %v14315_v26 = vld [vmem:[%s16409_s1 + $0xcc] ss:$48 sps:$4 sm:$0xff]   ;;  %v14310_v28 = vld [vmem:[%s16409_s1 + $0xc0] ss:$48 sps:$4 sm:$0xff]  }
0x1d13   : > { %v6167_v59 = vadd.f32 %v12837_v32, %v5655_v3  ;;  %v14313_v32 = vld [vmem:[%s16409_s1 + $0xc8] ss:$48 sps:$4 sm:$0xff]  }
0x1d14   : > { %v14325_v3 = vld [vmem:[%s16409_s1 + $0x188] ss:$48 sps:$4 sm:$0xff]  }
0x1d7d   : > { %v13887_v27 = vpop.permute.xlu0 %13886 }
0x1d7e   : > { %v13889_v34 = vunpack.i.h.bf16 %v13887_v27  ;;  %v13888_v17 = vunpack.i.l.bf16 %v13887_v27  ;;  %v14318_v27 = vld [vmem:[%s16409_s1 + $0x124] ss:$48 sps:$4 sm:$0xff]  }
0x1d80   : > { %v5541_v49 = vsel %vm5528_vm8, %v17189_v48, %v13888_v17  ;;  %v5542_v31 = vsel %vm5528_vm8, %v17186_v35, %v13889_v34  ;;  %v14321_v34 = vld [vmem:[%s16409_s1 + $0x12c] ss:$48 sps:$4 sm:$0xff]   ;;  %v14316_v17 = vld [vmem:[%s16409_s1 + $0x120] ss:$48 sps:$4 sm:$0xff]  }
0x1d81   : > { %v5545_v43 = vpack.c.bf16 %v5542_v31, %v5541_v49  ;;  %v14319_v49 = vld [vmem:[%s16409_s1 + $0x128] ss:$48 sps:$4 sm:$0xff]   ;;  %v14324_v31 = vld [vmem:[%s16409_s1 + $0x184] ss:$48 sps:$4 sm:$0xff]  }
0x1d83   : > { %6119 = vmatmul.mubr.bf16.vlgmr.msra.gmra.mrb[48].mxu1 %v5545_v43  ;;  %13246 = vmatmul.mubr.bf16.vlgmr.msra.gmra.mrb[36].mxu0 %v5545_v43  ;;  %v14327_v43 = vld [vmem:[%s16409_s1 + $0x18c] ss:$48 sps:$4 sm:$0xff]  }
0x1d84   : > { %8102 = vmatpush1.bf16.msra.mxu0 %v14298_v47  ;;  %8188 = vmatpush1.bf16.msra.mxu1 %v14301_v52 }
0x1d85   : > { %8103 = vmatprep.subr.bf16.mxu0 %v14306_v33  ;;  %8189 = vmatprep.subr.bf16.mxu1 %v14309_v6 }
0x1d88   : > { %8104 = vmatpush1.bf16.msra.mxu0 %v14304_v4  ;;  %8190 = vmatpush1.bf16.msra.mxu1 %v14307_v11  ;;  %v14360_v4 = vld [vmem:[%s16409_s1 + $0x3c4] ss:$48 sps:$4 sm:$0xff]   ;;  %v14363_v11 = vld [vmem:[%s16409_s1 + $0x3cc] ss:$48 sps:$4 sm:$0xff]  }
0x1d89   : > { %8105 = vmatprep.subr.bf16.mxu0 %v14312_v25  ;;  %8191 = vmatprep.subr.bf16.mxu1 %v14315_v26  ;;  %v14358_v25 = vld [vmem:[%s16409_s1 + $0x3c0] ss:$48 sps:$4 sm:$0xff]   ;;  %v14361_v26 = vld [vmem:[%s16409_s1 + $0x3c8] ss:$48 sps:$4 sm:$0xff]  }
0x1d8c   : > { %8106 = vmatpush1.bf16.msra.mxu0 %v14310_v28  ;;  %8192 = vmatpush1.bf16.msra.mxu1 %v14313_v32  ;;  %v14366_v28 = vld [vmem:[%s16409_s1 + $0x424] ss:$48 sps:$4 sm:$0xff]   ;;  %v14369_v32 = vld [vmem:[%s16409_s1 + $0x42c] ss:$48 sps:$4 sm:$0xff]  }
0x1d8d   : > { %8107 = vmatprep.subr.bf16.mxu0 %v14318_v27  ;;  %8193 = vmatprep.subr.bf16.mxu1 %v14321_v34  ;;  %v14364_v27 = vld [vmem:[%s16409_s1 + $0x420] ss:$48 sps:$4 sm:$0xff]   ;;  %v14367_v34 = vld [vmem:[%s16409_s1 + $0x428] ss:$48 sps:$4 sm:$0xff]  }
0x1d90   : > { %8108 = vmatpush1.bf16.msra.mxu0 %v14316_v17  ;;  %8194 = vmatpush1.bf16.msra.mxu1 %v14319_v49  ;;  %v14372_v17 = vld [vmem:[%s16409_s1 + $0x484] ss:$48 sps:$4 sm:$0xff]   ;;  %v14370_v49 = vld [vmem:[%s16409_s1 + $0x480] ss:$48 sps:$4 sm:$0xff]  }
0x1d91   : > { %8109 = vmatprep.subr.bf16.mxu0 %v14324_v31  ;;  %8195 = vmatprep.subr.bf16.mxu1 %v14327_v43  ;;  %v14373_v31 = vld [vmem:[%s16409_s1 + $0x488] ss:$48 sps:$4 sm:$0xff]   ;;  %v14375_v43 = vld [vmem:[%s16409_s1 + $0x48c] ss:$48 sps:$4 sm:$0xff]  }
0x1d94   : > { %8110 = vmatpush1.bf16.msra.mxu0 %v14322_v13  ;;  %8196 = vmatpush1.bf16.msra.mxu1 %v14325_v3  ;;  %v14378_v13 = vld [vmem:[%s16409_s1 + $0x4e4] ss:$48 sps:$4 sm:$0xff]   ;;  %v14381_v3 = vld [vmem:[%s16409_s1 + $0x4ec] ss:$48 sps:$4 sm:$0xff]  }
0x1e56   : > { %v6120_v63 = vpop.f32.mrb[48].mxu1  ;;  %v6204_v1 = vpop.f32.mrb[36].mxu0 }
0x1e57   : > { %v13488_v39 = vadd.f32 %v6120_v63, %v5647_v30  ;;  %v6205_v2 = vadd.f32 %v6204_v1, %v6164_v58  ;;  %v6122_v48 = vpop.f32.mrb[49].mxu1  ;;  %v13247_v9 = vpop.f32.mrb[37].mxu0  ;;  %v14328_v58 = vld [vmem:[%s16409_s1 + $0x1e0] ss:$48 sps:$4 sm:$0xff]   ;;  %v14331_v63 = vld [vmem:[%s16409_s1 + $0x1e8] ss:$48 sps:$4 sm:$0xff]  }
0x1e58   : > { %v13489_v35 = vadd.f32 %v6122_v48, %v5651_v46  ;;  %v6124_v61 = vpop.f32.mrb[50].mxu1  ;;  %v6207_v15 = vpop.f32.mrb[38].mxu0  ;;  %v14336_v1 = vld [vmem:[%s16409_s1 + $0x244] ss:$48 sps:$4 sm:$0xff]   ;;  %v14337_v48 = vld [vmem:[%s16409_s1 + $0x248] ss:$48 sps:$4 sm:$0xff]  }
0x1e59   : > { %v17261_v60 = vadd.f32 %v15221_v36, %v13488_v39  ;;  %v13490_v18 = vadd.f32 %v6124_v61, %v5647_v30  ;;  %v6208_v5 = vadd.f32 %v6207_v15, %v6167_v59  ;;  %v6126_v7 = vpop.f32.mrb[51].mxu1  ;;  %v13248_v55 = vpop.f32.mrb[39].mxu0  ;;  %v17267_v42 = vadd.f32 %v15224_v16, %v6205_v2  ;;  %v14330_v30 = vld [vmem:[%s16409_s1 + $0x1e4] ss:$48 sps:$4 sm:$0xff]   ;;  %v14339_v39 = vld [vmem:[%s16409_s1 + $0x24c] ss:$48 sps:$4 sm:$0xff]  }
0x1e5a   : > { %v17263_v38 = vadd.f32 %v15222_v12, %v13489_v35  ;;  %v13491_v20 = vadd.f32 %v6126_v7, %v5651_v46  ;;  %v14333_v46 = vld [vmem:[%s16409_s1 + $0x1ec] ss:$48 sps:$4 sm:$0xff]   ;;  %8111 = vmatprep.subr.bf16.mxu0 %v14330_v30  ;;  %v14334_v2 = vld [vmem:[%s16409_s1 + $0x240] ss:$48 sps:$4 sm:$0xff]   ;;  %v14342_v9 = vld [vmem:[%s16409_s1 + $0x2a4] ss:$48 sps:$4 sm:$0xff]  }
0x1e5b   : > { %v17265_v22 = vadd.f32 %v15223_v23, %v13490_v18  ;;  %v17273_v40 = vadd.f32 %v15226_v10, %v6208_v5  ;;  %8197 = vmatprep.subr.bf16.mxu1 %v14333_v46  ;;  %8112 = vmatpush1.bf16.msra.mxu0 %v14328_v58  ;;  %v14345_v59 = vld [vmem:[%s16409_s1 + $0x2ac] ss:$48 sps:$4 sm:$0xff]   ;;  %v14340_v35 = vld [vmem:[%s16409_s1 + $0x2a0] ss:$48 sps:$4 sm:$0xff]   ;;  %v14343_v61 = vld [vmem:[%s16409_s1 + $0x2a8] ss:$48 sps:$4 sm:$0xff]  }
0x1e5c   : > { %v17269_v0 = vadd.f32 %v15225_v24, %v13491_v20  ;;  %v6219_v8 = vadd.f32 %v17263_v38, %v17261_v60  ;;  %8198 = vmatpush1.bf16.msra.mxu1 %v14331_v63  ;;  %8113 = vmatprep.subr.bf16.mxu0 %v14336_v1  ;;  %v14348_v15 = vld [vmem:[%s16409_s1 + $0x304] ss:$48 sps:$4 sm:$0xff]   ;;  %v14351_v36 = vld [vmem:[%s16409_s1 + $0x30c] ss:$48 sps:$4 sm:$0xff]   ;;  %v14346_v18 = vld [vmem:[%s16409_s1 + $0x300] ss:$48 sps:$4 sm:$0xff]  }
0x1e5d   : > { %8199 = vmatprep.subr.bf16.mxu1 %v14339_v39  ;;  %v14349_v5 = vld [vmem:[%s16409_s1 + $0x308] ss:$48 sps:$4 sm:$0xff]   ;;  %v14354_v7 = vld [vmem:[%s16409_s1 + $0x364] ss:$48 sps:$4 sm:$0xff]   ;;  %v14357_v55 = vld [vmem:[%s16409_s1 + $0x36c] ss:$48 sps:$4 sm:$0xff]  }
0x1e5e   : > { %v6220_v62 = vadd.f32 %v6219_v8, %v17267_v42  ;;  %v6223_v44 = vadd.f32 %v17269_v0, %v17265_v22  ;;  %v14352_v12 = vld [vmem:[%s16409_s1 + $0x360] ss:$48 sps:$4 sm:$0xff]   ;;  %v14355_v20 = vld [vmem:[%s16409_s1 + $0x368] ss:$48 sps:$4 sm:$0xff]   ;;  %v14384_v58 = vld [vmem:[%s16409_s1 + $0x544] ss:$48 sps:$4 sm:$0xff]  }
0x1e5f   : > { %8114 = vmatpush1.bf16.msra.mxu0 %v14334_v2  ;;  %v14376_v30 = vld [vmem:[%s16409_s1 + $0x4e0] ss:$48 sps:$4 sm:$0xff]   ;;  %v14379_v46 = vld [vmem:[%s16409_s1 + $0x4e8] ss:$48 sps:$4 sm:$0xff]   ;;  %v14387_v63 = vld [vmem:[%s16409_s1 + $0x54c] ss:$48 sps:$4 sm:$0xff]  }
0x1e60   : > { %6221 = vadd.xlane.f32.xlu1 %v6220_v62  ;;  %v6224_v45 = vadd.f32 %v6223_v44, %v17273_v40  ;;  %8200 = vmatpush1.bf16.msra.mxu1 %v14337_v48  ;;  %v14382_v1 = vld [vmem:[%s16409_s1 + $0x540] ss:$48 sps:$4 sm:$0xff]   ;;  %v14385_v39 = vld [vmem:[%s16409_s1 + $0x548] ss:$48 sps:$4 sm:$0xff]   ;;  %v14390_v2 = vld [vmem:[%s16409_s1 + $0x5a4] ss:$48 sps:$4 sm:$0xff]  }
0x1e61   : > { %8115 = vmatprep.subr.bf16.mxu0 %v14342_v9  ;;  %8201 = vmatprep.subr.bf16.mxu1 %v14345_v59  ;;  %v14393_v48 = vld [vmem:[%s16409_s1 + $0x5ac] ss:$48 sps:$4 sm:$0xff]   ;;  %v14388_v9 = vld [vmem:[%s16409_s1 + $0x5a0] ss:$48 sps:$4 sm:$0xff]   ;;  %v14391_v59 = vld [vmem:[%s16409_s1 + $0x5a8] ss:$48 sps:$4 sm:$0xff]  }
0x1e62   : > { %6225 = vadd.xlane.f32.xlu0 %v6224_v45 }
0x1e63   : > { %8116 = vmatpush1.bf16.msra.mxu0 %v14340_v35  ;;  %v14396_v35 = vld [vmem:[%s16409_s1 + $0x604] ss:$48 sps:$4 sm:$0xff]  }
0x1e64   : > { %8202 = vmatpush1.bf16.msra.mxu1 %v14343_v61  ;;  %8117 = vmatprep.subr.bf16.mxu0 %v14348_v15  ;;  %v14399_v61 = vld [vmem:[%s16409_s1 + $0x60c] ss:$48 sps:$4 sm:$0xff]  }
0x1e65   : > { %8203 = vmatprep.subr.bf16.mxu1 %v14351_v36 }
0x1e67   : > { %8118 = vmatpush1.bf16.msra.mxu0 %v14346_v18 }
0x1e68   : > { %8204 = vmatpush1.bf16.msra.mxu1 %v14349_v5  ;;  %8119 = vmatprep.subr.bf16.mxu0 %v14354_v7 }
0x1e69   : > { %8205 = vmatprep.subr.bf16.mxu1 %v14357_v55 }
0x1e6b   : > { %8120 = vmatpush1.bf16.msra.mxu0 %v14352_v12  ;;  %v17377_v12 = vld [vmem:[%s888_s18] sm:$0x7]  ;;  %s18387_s18 = sld [smem:[#allocation46_spill]] (!%p12683_p7) }
0x1e6c   : > { %8206 = vmatpush1.bf16.msra.mxu1 %v14355_v20  ;;  %8121 = vmatprep.subr.bf16.mxu0 %v14360_v4  ;;  %v17381_v20 = vld [vmem:[%s897_s23] sm:$0x7] }
0x1e6d   : > { %8207 = vmatprep.subr.bf16.mxu1 %v14363_v11  ;;  %v14394_v11 = vld [vmem:[%s16409_s1 + $0x600] ss:$48 sps:$4 sm:$0xff]  }
0x1e6f   : > { %8122 = vmatpush1.bf16.msra.mxu0 %v14358_v25  ;;  %v14397_v25 = vld [vmem:[%s16409_s1 + $0x608] ss:$48 sps:$4 sm:$0xff]  }
0x1e70   : > { %8208 = vmatpush1.bf16.msra.mxu1 %v14361_v26  ;;  %8123 = vmatprep.subr.bf16.mxu0 %v14366_v28  ;;  %v14402_v28 = vld [vmem:[%s16409_s1 + $0x664] ss:$48 sps:$4 sm:$0xff]  }
0x1e71   : > { %8209 = vmatprep.subr.bf16.mxu1 %v14369_v32  ;;  %v14405_v32 = vld [vmem:[%s16409_s1 + $0x66c] ss:$48 sps:$4 sm:$0xff]  }
0x1e73   : > { %8124 = vmatpush1.bf16.msra.mxu0 %v14364_v27  ;;  %v14400_v27 = vld [vmem:[%s16409_s1 + $0x660] ss:$48 sps:$4 sm:$0xff]  }
0x1e74   : > { %8210 = vmatpush1.bf16.msra.mxu1 %v14367_v34  ;;  %8125 = vmatprep.subr.bf16.mxu0 %v14372_v17  ;;  %v14403_v34 = vld [vmem:[%s16409_s1 + $0x668] ss:$48 sps:$4 sm:$0xff]   ;;  %v14408_v17 = vld [vmem:[%s16409_s1 + $0x6c4] ss:$48 sps:$4 sm:$0xff]  }
0x1e75   : > { %8211 = vmatprep.subr.bf16.mxu1 %v14375_v43  ;;  %v14409_v43 = vld [vmem:[%s16409_s1 + $0x6c8] ss:$48 sps:$4 sm:$0xff]  }
0x1e77   : > { %8126 = vmatpush1.bf16.msra.mxu0 %v14370_v49  ;;  %v14411_v49 = vld [vmem:[%s16409_s1 + $0x6cc] ss:$48 sps:$4 sm:$0xff]  }
0x1e78   : > { %8212 = vmatpush1.bf16.msra.mxu1 %v14373_v31  ;;  %8127 = vmatprep.subr.bf16.mxu0 %v14378_v13  ;;  %v14406_v31 = vld [vmem:[%s16409_s1 + $0x6c0] ss:$48 sps:$4 sm:$0xff]   ;;  %v14414_v13 = vld [vmem:[%s16409_s1 + $0x724] ss:$48 sps:$4 sm:$0xff]  }
0x1e79   : > { %8213 = vmatprep.subr.bf16.mxu1 %v14381_v3  ;;  %v14417_v3 = vld [vmem:[%s16409_s1 + $0x72c] ss:$48 sps:$4 sm:$0xff]  }
0x1e7b   : > { %8128 = vmatpush1.bf16.msra.mxu0 %v14376_v30  ;;  %v14412_v30 = vld [vmem:[%s16409_s1 + $0x720] ss:$48 sps:$4 sm:$0xff]  }
0x1e7c   : > { %8214 = vmatpush1.bf16.msra.mxu1 %v14379_v46  ;;  %8129 = vmatprep.subr.bf16.mxu0 %v14384_v58  ;;  %v14415_v46 = vld [vmem:[%s16409_s1 + $0x728] ss:$48 sps:$4 sm:$0xff]   ;;  %v14420_v58 = vld [vmem:[%s16409_s1 + $0x784] ss:$48 sps:$4 sm:$0xff]  }
0x1e7d   : > { %8215 = vmatprep.subr.bf16.mxu1 %v14387_v63  ;;  %v14423_v63 = vld [vmem:[%s16409_s1 + $0x78c] ss:$48 sps:$4 sm:$0xff]  }
0x1e7f   : > { %8130 = vmatpush1.bf16.msra.mxu0 %v14382_v1  ;;  %v14418_v1 = vld [vmem:[%s16409_s1 + $0x780] ss:$48 sps:$4 sm:$0xff]  }
0x1e80   : > { %8216 = vmatpush1.bf16.msra.mxu1 %v14385_v39  ;;  %8131 = vmatprep.subr.bf16.mxu0 %v14390_v2  ;;  %v14421_v39 = vld [vmem:[%s16409_s1 + $0x788] ss:$48 sps:$4 sm:$0xff]   ;;  %v14426_v2 = vld [vmem:[%s16409_s1 + $0x7e4] ss:$48 sps:$4 sm:$0xff]  }
0x1e81   : > { %8217 = vmatprep.subr.bf16.mxu1 %v14393_v48  ;;  %v14429_v48 = vld [vmem:[%s16409_s1 + $0x7ec] ss:$48 sps:$4 sm:$0xff]  }
0x1e83   : > { %8132 = vmatpush1.bf16.msra.mxu0 %v14388_v9  ;;  %v14424_v9 = vld [vmem:[%s16409_s1 + $0x7e0] ss:$48 sps:$4 sm:$0xff]  }
0x1e84   : > { %8218 = vmatpush1.bf16.msra.mxu1 %v14391_v59  ;;  %8144 = vmatprep.subr.bf16.mxu0 %v14396_v35  ;;  %v14427_v59 = vld [vmem:[%s16409_s1 + $0x7e8] ss:$48 sps:$4 sm:$0xff]   ;;  %v14432_v35 = vld [vmem:[%s16409_s1 + $0x844] ss:$48 sps:$4 sm:$0xff]  }
0x1e85   : > { %8230 = vmatprep.subr.bf16.mxu1 %v14399_v61  ;;  %v14435_v61 = vld [vmem:[%s16409_s1 + $0x84c] ss:$48 sps:$4 sm:$0xff]  }
0x1eed   : > { %v6222_v23 = vpop.xlane.xlu1 %6221 }
0x1eee   : > { %v6228_v16 = vmul.f32 0.0026041667, %v6222_v23  ;;  %v6270_v23 = vrot.slane %v17377_v12, %v16661_v56 }
0x1eef   : > { %v6226_v24 = vpop.xlane.xlu0 %6225 }
0x1ef0   : > { %v17320_v8 = vsub.f32 %v17261_v60, %v6228_v16  ;;  %v17323_v10 = vsub.f32 %v17263_v38, %v6228_v16  ;;  %v6229_v62 = vmul.f32 0.0026041667, %v6226_v24  ;;  %v17326_v44 = vsub.f32 %v17267_v42, %v6228_v16 }
0x1ef1   : > { %v6266_v16 = vrot.slane %v17377_v12, %v16651_v51 }
0x1ef2   : > { %v17329_v45 = vsub.f32 %v17265_v22, %v6229_v62  ;;  %v17332_v47 = vsub.f32 %v17269_v0, %v6229_v62  ;;  %v17335_v29 = vsub.f32 %v17273_v40, %v6229_v62  ;;  %v6236_v60 = vmul.f32 %v17320_v8, %v17320_v8 }
0x1ef3   : > { %v6237_v38 = vmul.f32 %v17323_v10, %v17323_v10  ;;  %v6238_v0 = vmul.f32 %v17326_v44, %v17326_v44 }
0x1ef4   : > { %v6239_v42 = vmul.f32 %v17329_v45, %v17329_v45  ;;  %v6240_v22 = vmul.f32 %v17332_v47, %v17332_v47  ;;  %v6241_v40 = vmul.f32 %v17335_v29, %v17335_v29 }
0x1ef5   : > { %v6242_v52 = vadd.f32 %v6237_v38, %v6236_v60 }
0x1ef6   : > { %v6246_v57 = vadd.f32 %v6240_v22, %v6239_v42  ;;  %v6292_v22 = vrot.slane %v17381_v20, %v16661_v56 }
0x1ef7   : > { %v6243_v33 = vadd.f32 %v6242_v52, %v6238_v0  ;;  %v6288_v52 = vrot.slane %v17381_v20, %v16651_v51 }
0x1ef8   : > { %v6247_v6 = vadd.f32 %v6246_v57, %v6241_v40 }
0x1ef9   : > { %6244 = vadd.xlane.f32.xlu0 %v6243_v33 }
0x1efa   : > { %6248 = vadd.xlane.f32.xlu1 %v6247_v6 }
0x1f86   : > { %v6245_v15 = vpop.xlane.xlu0 %6244 }
0x1f87   : > { %v6250_v36 = vmul.f32 0.0026041667, %v6245_v15  ;;  %v6249_v18 = vpop.xlane.xlu1 %6248 }
0x1f88   : > { %v6251_v5 = vmul.f32 0.0026041667, %v6249_v18  ;;  %v6274_v18 = vrot.slane %v17377_v12, %v16983_v14  ;;  %v14436_v12 = vld [vmem:[%s16409_s1 + $0x8a0] ss:$48 sps:$4 sm:$0xff]  }
0x1f89   : > { %v6252_v7 = vadd.f32 1e-05, %v6250_v36 }
0x1f8a   : > { %v6253_v55 = vadd.f32 1e-05, %v6251_v5  ;;  %v14430_v5 = vld [vmem:[%s16409_s1 + $0x840] ss:$48 sps:$4 sm:$0xff]  }
0x1f8b   : > { %15210 = vrsqrt.f32 %v6252_v7  ;;  %v14433_v7 = vld [vmem:[%s16409_s1 + $0x848] ss:$48 sps:$4 sm:$0xff]  }
0x1f8c   : > { %15212 = vrsqrt.f32 %v6253_v55  ;;  %v14438_v55 = vld [vmem:[%s16409_s1 + $0x8a4] ss:$48 sps:$4 sm:$0xff]  }
0x1f95   : > { %v17387_v24 = vpop.eup %15210 }
0x1f96   : > { %v17389_v62 = vpop.eup %15212  ;;  %v6257_v60 = vmul.f32 %v17387_v24, %v17323_v10  ;;  %v6256_v38 = vmul.f32 %v17387_v24, %v17320_v8  ;;  %v6258_v36 = vmul.f32 %v17387_v24, %v17326_v44  ;;  %v6296_v44 = vrot.slane %v17381_v20, %v16983_v14  ;;  %v14439_v24 = vld [vmem:[%s16409_s1 + $0x8a8] ss:$48 sps:$4 sm:$0xff]   ;;  %v14442_v20 = vld [vmem:[%s16409_s1 + $0x10] ss:$48 sps:$4 sm:$0xff]  }
0x1f97   : > { %v6260_v42 = vmul.f32 %v17389_v62, %v17332_v47  ;;  %v6259_v0 = vmul.f32 %v17389_v62, %v17329_v45  ;;  %v6261_v15 = vmul.f32 %v17389_v62, %v17335_v29 }
0x1f98   : > { %v6279_v40 = vmul.f32 %v6270_v23, %v6257_v60  ;;  %v6278_v10 = vmul.f32 %v6266_v16, %v6256_v38  ;;  %v14444_v60 = vld [vmem:[%s16409_s1 + $0x14] ss:$48 sps:$4 sm:$0xff]   ;;  %v14447_v38 = vld [vmem:[%s16409_s1 + $0x1c] ss:$48 sps:$4 sm:$0xff]  }
0x1f99   : > { %v6282_v57 = vmul.f32 %v6270_v23, %v6260_v42  ;;  %v6281_v33 = vmul.f32 %v6266_v16, %v6259_v0  ;;  %v14441_v23 = vld [vmem:[%s16409_s1 + $0x8ac] ss:$48 sps:$4 sm:$0xff]   ;;  %v6283_v29 = vmul.f32 %v6274_v18, %v6261_v15  ;;  %v6280_v16 = vmul.f32 %v6274_v18, %v6258_v36  ;;  %v14445_v0 = vld [vmem:[%s16409_s1 + $0x18] ss:$48 sps:$4 sm:$0xff]   ;;  %v14490_v36 = vld [vmem:[%s16409_s1 + $0x310] ss:$48 sps:$4 sm:$0xff]  }
0x1f9a   : > { %v17403_v6 = vadd.f32 %v6292_v22, %v6279_v40  ;;  %v17407_v47 = vadd.f32 %v6288_v52, %v6278_v10  ;;  %v14453_v40 = vld [vmem:[%s16409_s1 + $0x7c] ss:$48 sps:$4 sm:$0xff]   ;;  %v14448_v10 = vld [vmem:[%s16409_s1 + $0x70] ss:$48 sps:$4 sm:$0xff]   ;;  %v14493_v18 = vld [vmem:[%s16409_s1 + $0x318] ss:$48 sps:$4 sm:$0xff]  }
0x1f9b   : > { %v17405_v8 = vadd.f32 %v6292_v22, %v6282_v57  ;;  %v17409_v4 = vadd.f32 %v6288_v52, %v6281_v33  ;;  %v17463_v62 = vadd.f32 %v6296_v44, %v6283_v29  ;;  %v17467_v42 = vadd.f32 %v6296_v44, %v6280_v16  ;;  %v14450_v52 = vld [vmem:[%s16409_s1 + $0x74] ss:$48 sps:$4 sm:$0xff]   ;;  %v14451_v57 = vld [vmem:[%s16409_s1 + $0x78] ss:$48 sps:$4 sm:$0xff]   ;;  %v14495_v15 = vld [vmem:[%s16409_s1 + $0x31c] ss:$48 sps:$4 sm:$0xff]  }
0x1f9c   : > { %v14456_v33 = vld [vmem:[%s16409_s1 + $0xd4] ss:$48 sps:$4 sm:$0xff]   ;;  %v14507_v16 = vld [vmem:[%s16409_s1 + $0x3dc] ss:$48 sps:$4 sm:$0xff]   ;;  %v14502_v44 = vld [vmem:[%s16409_s1 + $0x3d0] ss:$48 sps:$4 sm:$0xff]  }
0x1f9d   : > { %v17413_v45 = vpack.c.bf16 %v17405_v8, %v17403_v6  ;;  %v17419_v26 = vpack.c.bf16 %v17409_v4, %v17407_v47  ;;  %v17472_v22 = vpack.c.bf16 %v17463_v62, %v17467_v42  ;;  %v14504_v29 = vld [vmem:[%s16409_s1 + $0x3d4] ss:$48 sps:$4 sm:$0xff]  }
0x1f9f   : > { %8133 = vmatprep.mubr.bf16.mxu0 %v17413_v45  ;;  %8219 = vmatprep.mubr.bf16.mxu1 %v17413_v45 }
0x1fa0   : > { %8134 = vmatmul.mubr.bf16.vlgmr.msra.gmra.mrb[40].mxu0 %v17419_v26  ;;  %8220 = vmatmul.mubr.bf16.vlgmr.msra.gmra.mrb[52].mxu1 %v17419_v26 }
0x1fa1   : > { %8145 = vmatpush1.bf16.msra.mxu0 %v14394_v11  ;;  %8231 = vmatpush1.bf16.msra.mxu1 %v14397_v25  ;;  %v14459_v11 = vld [vmem:[%s16409_s1 + $0xdc] ss:$48 sps:$4 sm:$0xff]   ;;  %v14454_v25 = vld [vmem:[%s16409_s1 + $0xd0] ss:$48 sps:$4 sm:$0xff]  }
0x1fa2   : > { %8146 = vmatprep.subr.bf16.mxu0 %v14402_v28  ;;  %8232 = vmatprep.subr.bf16.mxu1 %v14405_v32  ;;  %v14457_v28 = vld [vmem:[%s16409_s1 + $0xd8] ss:$48 sps:$4 sm:$0xff]   ;;  %v14462_v32 = vld [vmem:[%s16409_s1 + $0x134] ss:$48 sps:$4 sm:$0xff]  }
0x1fa3   : > { %8176 = vmatprep.mubr.bf16.mxu0 %v15761_v37  ;;  %8262 = vmatprep.mubr.bf16.mxu1 %v15761_v37 }
0x1fa5   : > { %8147 = vmatpush1.bf16.msra.mxu0 %v14400_v27  ;;  %8233 = vmatpush1.bf16.msra.mxu1 %v14403_v34  ;;  %v14465_v27 = vld [vmem:[%s16409_s1 + $0x13c] ss:$48 sps:$4 sm:$0xff]   ;;  %v14460_v34 = vld [vmem:[%s16409_s1 + $0x130] ss:$48 sps:$4 sm:$0xff]  }
0x1fa6   : > { %8148 = vmatprep.subr.bf16.mxu0 %v14408_v17  ;;  %8234 = vmatprep.subr.bf16.mxu1 %v14411_v49  ;;  %v14463_v17 = vld [vmem:[%s16409_s1 + $0x138] ss:$48 sps:$4 sm:$0xff]   ;;  %v14468_v49 = vld [vmem:[%s16409_s1 + $0x194] ss:$48 sps:$4 sm:$0xff]  }
0x1fa9   : > { %8149 = vmatpush1.bf16.msra.mxu0 %v14406_v31  ;;  %8235 = vmatpush1.bf16.msra.mxu1 %v14409_v43  ;;  %v14471_v31 = vld [vmem:[%s16409_s1 + $0x19c] ss:$48 sps:$4 sm:$0xff]   ;;  %v14466_v43 = vld [vmem:[%s16409_s1 + $0x190] ss:$48 sps:$4 sm:$0xff]  }
0x1faa   : > { %8150 = vmatprep.subr.bf16.mxu0 %v14414_v13  ;;  %8236 = vmatprep.subr.bf16.mxu1 %v14417_v3  ;;  %v14469_v13 = vld [vmem:[%s16409_s1 + $0x198] ss:$48 sps:$4 sm:$0xff]   ;;  %v14474_v3 = vld [vmem:[%s16409_s1 + $0x1f4] ss:$48 sps:$4 sm:$0xff]  }
0x1fad   : > { %8151 = vmatpush1.bf16.msra.mxu0 %v14412_v30  ;;  %8237 = vmatpush1.bf16.msra.mxu1 %v14415_v46  ;;  %v14477_v30 = vld [vmem:[%s16409_s1 + $0x1fc] ss:$48 sps:$4 sm:$0xff]   ;;  %v14472_v46 = vld [vmem:[%s16409_s1 + $0x1f0] ss:$48 sps:$4 sm:$0xff]  }
0x1fae   : > { %8152 = vmatprep.subr.bf16.mxu0 %v14420_v58  ;;  %8238 = vmatprep.subr.bf16.mxu1 %v14423_v63  ;;  %v14475_v58 = vld [vmem:[%s16409_s1 + $0x1f8] ss:$48 sps:$4 sm:$0xff]   ;;  %v14480_v63 = vld [vmem:[%s16409_s1 + $0x254] ss:$48 sps:$4 sm:$0xff]  }
0x1fb1   : > { %8153 = vmatpush1.bf16.msra.mxu0 %v14418_v1  ;;  %8239 = vmatpush1.bf16.msra.mxu1 %v14421_v39  ;;  %v14483_v1 = vld [vmem:[%s16409_s1 + $0x25c] ss:$48 sps:$4 sm:$0xff]   ;;  %v14478_v39 = vld [vmem:[%s16409_s1 + $0x250] ss:$48 sps:$4 sm:$0xff]  }
0x1fb2   : > { %8154 = vmatprep.subr.bf16.mxu0 %v14426_v2  ;;  %8240 = vmatprep.subr.bf16.mxu1 %v14429_v48  ;;  %v14481_v2 = vld [vmem:[%s16409_s1 + $0x258] ss:$48 sps:$4 sm:$0xff]   ;;  %v14486_v48 = vld [vmem:[%s16409_s1 + $0x2b4] ss:$48 sps:$4 sm:$0xff]  }
0x1fb5   : > { %8155 = vmatpush1.bf16.msra.mxu0 %v14424_v9  ;;  %8241 = vmatpush1.bf16.msra.mxu1 %v14427_v59  ;;  %v14489_v9 = vld [vmem:[%s16409_s1 + $0x2bc] ss:$48 sps:$4 sm:$0xff]   ;;  %v14484_v59 = vld [vmem:[%s16409_s1 + $0x2b0] ss:$48 sps:$4 sm:$0xff]  }
0x1fb6   : > { %8156 = vmatprep.subr.bf16.mxu0 %v14432_v35  ;;  %8242 = vmatprep.subr.bf16.mxu1 %v14435_v61  ;;  %v14487_v35 = vld [vmem:[%s16409_s1 + $0x2b8] ss:$48 sps:$4 sm:$0xff]   ;;  %v14492_v61 = vld [vmem:[%s16409_s1 + $0x314] ss:$48 sps:$4 sm:$0xff]  }
0x1fb9   : > { %8157 = vmatpush1.bf16.msra.mxu0 %v14430_v5  ;;  %8243 = vmatpush1.bf16.msra.mxu1 %v14433_v7  ;;  %v14498_v5 = vld [vmem:[%s16409_s1 + $0x374] ss:$48 sps:$4 sm:$0xff]   ;;  %v14501_v7 = vld [vmem:[%s16409_s1 + $0x37c] ss:$48 sps:$4 sm:$0xff]  }
0x1fba   : > { %8158 = vmatprep.subr.bf16.mxu0 %v14438_v55  ;;  %8244 = vmatprep.subr.bf16.mxu1 %v14441_v23  ;;  %v14496_v55 = vld [vmem:[%s16409_s1 + $0x370] ss:$48 sps:$4 sm:$0xff]   ;;  %v14499_v23 = vld [vmem:[%s16409_s1 + $0x378] ss:$48 sps:$4 sm:$0xff]  }
0x1fbd   : > { %8159 = vmatpush1.bf16.msra.mxu0 %v14436_v12  ;;  %8245 = vmatpush1.bf16.msra.mxu1 %v14439_v24  ;;  %v14505_v12 = vld [vmem:[%s16409_s1 + $0x3d8] ss:$48 sps:$4 sm:$0xff]   ;;  %v14510_v24 = vld [vmem:[%s16409_s1 + $0x434] ss:$48 sps:$4 sm:$0xff]  }
0x1fbe   : > { %8273 = vmatprep.subr.bf16.mxu0 %v14444_v60  ;;  %8359 = vmatprep.subr.bf16.mxu1 %v14447_v38  ;;  %v14513_v60 = vld [vmem:[%s16409_s1 + $0x43c] ss:$48 sps:$4 sm:$0xff]   ;;  %v14508_v38 = vld [vmem:[%s16409_s1 + $0x430] ss:$48 sps:$4 sm:$0xff]  }
0x1fc0   : > { %8177 = vmatmul.mubr.bf16.vlgmr.msra.gmra.mrb[40].mxu0 %v17472_v22  ;;  %8263 = vmatmul.mubr.bf16.vlgmr.msra.gmra.mrb[52].mxu1 %v17472_v22 }
0x1fc1   : > { %8274 = vmatpush1.bf16.msra.mxu0 %v14442_v20  ;;  %8305 = vmatprep.mubr.bf16.mxu0 %v17413_v45  ;;  %v14511_v20 = vld [vmem:[%s16409_s1 + $0x438] ss:$48 sps:$4 sm:$0xff]  }
0x1fc2   : > { %8360 = vmatpush1.bf16.msra.mxu1 %v14445_v0  ;;  %8391 = vmatprep.mubr.bf16.mxu1 %v17413_v45  ;;  %v14516_v0 = vld [vmem:[%s16409_s1 + $0x494] ss:$48 sps:$4 sm:$0xff]  }
0x1fc3   : > { %8275 = vmatprep.subr.bf16.mxu0 %v14450_v52  ;;  %8361 = vmatprep.subr.bf16.mxu1 %v14453_v40  ;;  %v14519_v52 = vld [vmem:[%s16409_s1 + $0x49c] ss:$48 sps:$4 sm:$0xff]   ;;  %v14514_v40 = vld [vmem:[%s16409_s1 + $0x490] ss:$48 sps:$4 sm:$0xff]  }
0x1fc5   : > { %8276 = vmatpush1.bf16.msra.mxu0 %v14448_v10  ;;  %v14517_v10 = vld [vmem:[%s16409_s1 + $0x498] ss:$48 sps:$4 sm:$0xff]  }
0x1fc6   : > { %8362 = vmatpush1.bf16.msra.mxu1 %v14451_v57  ;;  %8277 = vmatprep.subr.bf16.mxu0 %v14456_v33  ;;  %v14522_v57 = vld [vmem:[%s16409_s1 + $0x4f4] ss:$48 sps:$4 sm:$0xff]   ;;  %v14525_v33 = vld [vmem:[%s16409_s1 + $0x4fc] ss:$48 sps:$4 sm:$0xff]  }
0x1fc7   : > { %8363 = vmatprep.subr.bf16.mxu1 %v14459_v11  ;;  %v14520_v11 = vld [vmem:[%s16409_s1 + $0x4f0] ss:$48 sps:$4 sm:$0xff]  }
0x1fc9   : > { %8278 = vmatpush1.bf16.msra.mxu0 %v14454_v25  ;;  %v14523_v25 = vld [vmem:[%s16409_s1 + $0x4f8] ss:$48 sps:$4 sm:$0xff]  }
0x1fca   : > { %8364 = vmatpush1.bf16.msra.mxu1 %v14457_v28  ;;  %8279 = vmatprep.subr.bf16.mxu0 %v14462_v32  ;;  %v14528_v28 = vld [vmem:[%s16409_s1 + $0x554] ss:$48 sps:$4 sm:$0xff]   ;;  %v14531_v32 = vld [vmem:[%s16409_s1 + $0x55c] ss:$48 sps:$4 sm:$0xff]  }
0x1fcb   : > { %8365 = vmatprep.subr.bf16.mxu1 %v14465_v27  ;;  %v14526_v27 = vld [vmem:[%s16409_s1 + $0x550] ss:$48 sps:$4 sm:$0xff]  }
0x1fcd   : > { %8280 = vmatpush1.bf16.msra.mxu0 %v14460_v34  ;;  %v14529_v34 = vld [vmem:[%s16409_s1 + $0x558] ss:$48 sps:$4 sm:$0xff]  }
0x1fce   : > { %8366 = vmatpush1.bf16.msra.mxu1 %v14463_v17  ;;  %8281 = vmatprep.subr.bf16.mxu0 %v14468_v49  ;;  %v14534_v17 = vld [vmem:[%s16409_s1 + $0x5b4] ss:$48 sps:$4 sm:$0xff]   ;;  %v14537_v49 = vld [vmem:[%s16409_s1 + $0x5bc] ss:$48 sps:$4 sm:$0xff]  }
0x1fcf   : > { %8367 = vmatprep.subr.bf16.mxu1 %v14471_v31  ;;  %v14532_v31 = vld [vmem:[%s16409_s1 + $0x5b0] ss:$48 sps:$4 sm:$0xff]  }
0x1fd1   : > { %8282 = vmatpush1.bf16.msra.mxu0 %v14466_v43  ;;  %v14535_v43 = vld [vmem:[%s16409_s1 + $0x5b8] ss:$48 sps:$4 sm:$0xff]  }
0x1fd2   : > { %8368 = vmatpush1.bf16.msra.mxu1 %v14469_v13  ;;  %8283 = vmatprep.subr.bf16.mxu0 %v14474_v3  ;;  %v14540_v13 = vld [vmem:[%s16409_s1 + $0x614] ss:$48 sps:$4 sm:$0xff]   ;;  %v14543_v3 = vld [vmem:[%s16409_s1 + $0x61c] ss:$48 sps:$4 sm:$0xff]  }
0x1fd3   : > { %8369 = vmatprep.subr.bf16.mxu1 %v14477_v30  ;;  %v14538_v30 = vld [vmem:[%s16409_s1 + $0x610] ss:$48 sps:$4 sm:$0xff]  }
0x1fd5   : > { %8284 = vmatpush1.bf16.msra.mxu0 %v14472_v46  ;;  %v14541_v46 = vld [vmem:[%s16409_s1 + $0x618] ss:$48 sps:$4 sm:$0xff]  }
0x1fd6   : > { %8370 = vmatpush1.bf16.msra.mxu1 %v14475_v58  ;;  %8285 = vmatprep.subr.bf16.mxu0 %v14480_v63  ;;  %v14546_v58 = vld [vmem:[%s16409_s1 + $0x674] ss:$48 sps:$4 sm:$0xff]   ;;  %v14549_v63 = vld [vmem:[%s16409_s1 + $0x67c] ss:$48 sps:$4 sm:$0xff]  }
0x1fd7   : > { %8371 = vmatprep.subr.bf16.mxu1 %v14483_v1  ;;  %v14544_v1 = vld [vmem:[%s16409_s1 + $0x670] ss:$48 sps:$4 sm:$0xff]  }
0x1fd9   : > { %8286 = vmatpush1.bf16.msra.mxu0 %v14478_v39  ;;  %v14547_v39 = vld [vmem:[%s16409_s1 + $0x678] ss:$48 sps:$4 sm:$0xff]  }
0x1fda   : > { %8372 = vmatpush1.bf16.msra.mxu1 %v14481_v2  ;;  %8287 = vmatprep.subr.bf16.mxu0 %v14486_v48  ;;  %v14552_v2 = vld [vmem:[%s16409_s1 + $0x6d4] ss:$48 sps:$4 sm:$0xff]   ;;  %v14555_v48 = vld [vmem:[%s16409_s1 + $0x6dc] ss:$48 sps:$4 sm:$0xff]  }
0x1fdb   : > { %8373 = vmatprep.subr.bf16.mxu1 %v14489_v9  ;;  %v14550_v9 = vld [vmem:[%s16409_s1 + $0x6d0] ss:$48 sps:$4 sm:$0xff]  }
0x1fdd   : > { %8288 = vmatpush1.bf16.msra.mxu0 %v14484_v59  ;;  %v14553_v59 = vld [vmem:[%s16409_s1 + $0x6d8] ss:$48 sps:$4 sm:$0xff]  }
0x1fde   : > { %8374 = vmatpush1.bf16.msra.mxu1 %v14487_v35  ;;  %8289 = vmatprep.subr.bf16.mxu0 %v14492_v61  ;;  %v14558_v35 = vld [vmem:[%s16409_s1 + $0x734] ss:$48 sps:$4 sm:$0xff]   ;;  %v14561_v61 = vld [vmem:[%s16409_s1 + $0x73c] ss:$48 sps:$4 sm:$0xff]  }
0x1fdf   : > { %8375 = vmatprep.subr.bf16.mxu1 %v14495_v15  ;;  %v14556_v15 = vld [vmem:[%s16409_s1 + $0x730] ss:$48 sps:$4 sm:$0xff]  }
0x1fe1   : > { %8290 = vmatpush1.bf16.msra.mxu0 %v14490_v36  ;;  %v14559_v36 = vld [vmem:[%s16409_s1 + $0x738] ss:$48 sps:$4 sm:$0xff]  }
0x1fe2   : > { %8376 = vmatpush1.bf16.msra.mxu1 %v14493_v18  ;;  %8291 = vmatprep.subr.bf16.mxu0 %v14498_v5  ;;  %v14564_v18 = vld [vmem:[%s16409_s1 + $0x794] ss:$48 sps:$4 sm:$0xff]   ;;  %v14567_v5 = vld [vmem:[%s16409_s1 + $0x79c] ss:$48 sps:$4 sm:$0xff]  }
0x1fe3   : > { %8377 = vmatprep.subr.bf16.mxu1 %v14501_v7  ;;  %v14562_v7 = vld [vmem:[%s16409_s1 + $0x790] ss:$48 sps:$4 sm:$0xff]  }
0x1fe5   : > { %8292 = vmatpush1.bf16.msra.mxu0 %v14496_v55  ;;  %v14565_v55 = vld [vmem:[%s16409_s1 + $0x798] ss:$48 sps:$4 sm:$0xff]  }
0x1fe6   : > { %8378 = vmatpush1.bf16.msra.mxu1 %v14499_v23  ;;  %8293 = vmatprep.subr.bf16.mxu0 %v14504_v29  ;;  %v14570_v23 = vld [vmem:[%s16409_s1 + $0x7f4] ss:$48 sps:$4 sm:$0xff]   ;;  %v14573_v29 = vld [vmem:[%s16409_s1 + $0x7fc] ss:$48 sps:$4 sm:$0xff]  }
0x1fe7   : > { %8379 = vmatprep.subr.bf16.mxu1 %v14507_v16  ;;  %v14568_v16 = vld [vmem:[%s16409_s1 + $0x7f0] ss:$48 sps:$4 sm:$0xff]  }
0x1fe9   : > { %8294 = vmatpush1.bf16.msra.mxu0 %v14502_v44  ;;  %v14571_v44 = vld [vmem:[%s16409_s1 + $0x7f8] ss:$48 sps:$4 sm:$0xff]  }
0x1fea   : > { %8380 = vmatpush1.bf16.msra.mxu1 %v14505_v12  ;;  %8295 = vmatprep.subr.bf16.mxu0 %v14510_v24  ;;  %v14576_v12 = vld [vmem:[%s16409_s1 + $0x854] ss:$48 sps:$4 sm:$0xff]   ;;  %v14579_v24 = vld [vmem:[%s16409_s1 + $0x85c] ss:$48 sps:$4 sm:$0xff]  }
0x1feb   : > { %8381 = vmatprep.subr.bf16.mxu1 %v14513_v60  ;;  %v14574_v60 = vld [vmem:[%s16409_s1 + $0x850] ss:$48 sps:$4 sm:$0xff]  }
0x1fed   : > { %8296 = vmatpush1.bf16.msra.mxu0 %v14508_v38  ;;  %v14577_v38 = vld [vmem:[%s16409_s1 + $0x858] ss:$48 sps:$4 sm:$0xff]  }
0x1fee   : > { %8382 = vmatpush1.bf16.msra.mxu1 %v14511_v20  ;;  %8297 = vmatprep.subr.bf16.mxu0 %v14516_v0  ;;  %v14582_v20 = vld [vmem:[%s16409_s1 + $0x8b4] ss:$48 sps:$4 sm:$0xff]   ;;  %v14585_v0 = vld [vmem:[%s16409_s1 + $0x8bc] ss:$48 sps:$4 sm:$0xff]  }
0x1fef   : > { %8383 = vmatprep.subr.bf16.mxu1 %v14519_v52  ;;  %v14580_v52 = vld [vmem:[%s16409_s1 + $0x8b0] ss:$48 sps:$4 sm:$0xff]  }
0x1ff1   : > { %8298 = vmatpush1.bf16.msra.mxu0 %v14514_v40  ;;  %v14583_v40 = vld [vmem:[%s16409_s1 + $0x8b8] ss:$48 sps:$4 sm:$0xff]  }
0x1ff2   : > { %8384 = vmatpush1.bf16.msra.mxu1 %v14517_v10  ;;  %8299 = vmatprep.subr.bf16.mxu0 %v14522_v57  ;;  %v14588_v10 = vld [vmem:[%s16409_s1 + $0x24] ss:$48 sps:$4 sm:$0xff]   ;;  %v14591_v57 = vld [vmem:[%s16409_s1 + $0x2c] ss:$48 sps:$4 sm:$0xff]  }
0x1ff3   : > { %8385 = vmatprep.subr.bf16.mxu1 %v14525_v33  ;;  %v14586_v33 = vld [vmem:[%s16409_s1 + $0x20] ss:$48 sps:$4 sm:$0xff]  }
0x1ff5   : > { %8300 = vmatpush1.bf16.msra.mxu0 %v14520_v11  ;;  %v14589_v11 = vld [vmem:[%s16409_s1 + $0x28] ss:$48 sps:$4 sm:$0xff]  }
0x1ff6   : > { %8386 = vmatpush1.bf16.msra.mxu1 %v14523_v25  ;;  %8301 = vmatprep.subr.bf16.mxu0 %v14528_v28  ;;  %v14594_v25 = vld [vmem:[%s16409_s1 + $0x84] ss:$48 sps:$4 sm:$0xff]   ;;  %v14597_v28 = vld [vmem:[%s16409_s1 + $0x8c] ss:$48 sps:$4 sm:$0xff]  }
0x1ff7   : > { %8387 = vmatprep.subr.bf16.mxu1 %v14531_v32  ;;  %v14592_v32 = vld [vmem:[%s16409_s1 + $0x80] ss:$48 sps:$4 sm:$0xff]  }
0x1ff9   : > { %8302 = vmatpush1.bf16.msra.mxu0 %v14526_v27  ;;  %v14595_v27 = vld [vmem:[%s16409_s1 + $0x88] ss:$48 sps:$4 sm:$0xff]  }
0x1ffa   : > { %8388 = vmatpush1.bf16.msra.mxu1 %v14529_v34  ;;  %8303 = vmatprep.subr.bf16.mxu0 %v14534_v17  ;;  %v14600_v34 = vld [vmem:[%s16409_s1 + $0xe4] ss:$48 sps:$4 sm:$0xff]   ;;  %v14603_v17 = vld [vmem:[%s16409_s1 + $0xec] ss:$48 sps:$4 sm:$0xff]  }
0x1ffb   : > { %8389 = vmatprep.subr.bf16.mxu1 %v14537_v49  ;;  %v14598_v49 = vld [vmem:[%s16409_s1 + $0xe0] ss:$48 sps:$4 sm:$0xff]  }
0x1ffd   : > { %8304 = vmatpush1.bf16.msra.mxu0 %v14532_v31  ;;  %v14601_v31 = vld [vmem:[%s16409_s1 + $0xe8] ss:$48 sps:$4 sm:$0xff]  }
0x1ffe   : > { %8390 = vmatpush1.bf16.msra.mxu1 %v14535_v43  ;;  %8316 = vmatprep.subr.bf16.mxu0 %v14540_v13  ;;  %v14606_v43 = vld [vmem:[%s16409_s1 + $0x144] ss:$48 sps:$4 sm:$0xff]   ;;  %v14609_v13 = vld [vmem:[%s16409_s1 + $0x14c] ss:$48 sps:$4 sm:$0xff]  }
0x1fff   : > { %8402 = vmatprep.subr.bf16.mxu1 %v14543_v3  ;;  %v14607_v3 = vld [vmem:[%s16409_s1 + $0x148] ss:$48 sps:$4 sm:$0xff]  }
0x2000   : > { %8306 = vmatmul.mubr.bf16.vlgmr.msra.gmra.mrb[44].mxu0 %v17419_v26 }
0x2001   : > { %8392 = vmatmul.mubr.bf16.vlgmr.msra.gmra.mrb[56].mxu1 %v17419_v26  ;;  %8317 = vmatpush1.bf16.msra.mxu0 %v14538_v30  ;;  %v14612_v30 = vld [vmem:[%s16409_s1 + $0x1a4] ss:$48 sps:$4 sm:$0xff]  }
0x2002   : > { %8403 = vmatpush1.bf16.msra.mxu1 %v14541_v46  ;;  %8318 = vmatprep.subr.bf16.mxu0 %v14546_v58  ;;  %v14615_v46 = vld [vmem:[%s16409_s1 + $0x1ac] ss:$48 sps:$4 sm:$0xff]   ;;  %v14610_v58 = vld [vmem:[%s16409_s1 + $0x1a0] ss:$48 sps:$4 sm:$0xff]  }
0x2003   : > { %8404 = vmatprep.subr.bf16.mxu1 %v14549_v63  ;;  %8348 = vmatprep.mubr.bf16.mxu0 %v15761_v37  ;;  %v14613_v63 = vld [vmem:[%s16409_s1 + $0x1a8] ss:$48 sps:$4 sm:$0xff]  }
0x2004   : > { %8434 = vmatprep.mubr.bf16.mxu1 %v15761_v37 }
0x2005   : > { %8319 = vmatpush1.bf16.msra.mxu0 %v14544_v1  ;;  %v14618_v1 = vld [vmem:[%s16409_s1 + $0x204] ss:$48 sps:$4 sm:$0xff]  }
0x2006   : > { %8405 = vmatpush1.bf16.msra.mxu1 %v14547_v39  ;;  %8320 = vmatprep.subr.bf16.mxu0 %v14552_v2  ;;  %v14621_v39 = vld [vmem:[%s16409_s1 + $0x20c] ss:$48 sps:$4 sm:$0xff]   ;;  %v14616_v2 = vld [vmem:[%s16409_s1 + $0x200] ss:$48 sps:$4 sm:$0xff]  }
0x2007   : > { %8406 = vmatprep.subr.bf16.mxu1 %v14555_v48  ;;  %v14619_v48 = vld [vmem:[%s16409_s1 + $0x208] ss:$48 sps:$4 sm:$0xff]  }
0x2009   : > { %8321 = vmatpush1.bf16.msra.mxu0 %v14550_v9  ;;  %v14624_v9 = vld [vmem:[%s16409_s1 + $0x264] ss:$48 sps:$4 sm:$0xff]  }
0x200a   : > { %8407 = vmatpush1.bf16.msra.mxu1 %v14553_v59  ;;  %8322 = vmatprep.subr.bf16.mxu0 %v14558_v35  ;;  %v14627_v59 = vld [vmem:[%s16409_s1 + $0x26c] ss:$48 sps:$4 sm:$0xff]   ;;  %v14622_v35 = vld [vmem:[%s16409_s1 + $0x260] ss:$48 sps:$4 sm:$0xff]  }
0x200b   : > { %8408 = vmatprep.subr.bf16.mxu1 %v14561_v61  ;;  %v14625_v61 = vld [vmem:[%s16409_s1 + $0x268] ss:$48 sps:$4 sm:$0xff]  }
0x200d   : > { %8323 = vmatpush1.bf16.msra.mxu0 %v14556_v15  ;;  %v14630_v15 = vld [vmem:[%s16409_s1 + $0x2c4] ss:$48 sps:$4 sm:$0xff]  }
0x200e   : > { %8409 = vmatpush1.bf16.msra.mxu1 %v14559_v36  ;;  %8324 = vmatprep.subr.bf16.mxu0 %v14564_v18  ;;  %v14633_v36 = vld [vmem:[%s16409_s1 + $0x2cc] ss:$48 sps:$4 sm:$0xff]   ;;  %v14628_v18 = vld [vmem:[%s16409_s1 + $0x2c0] ss:$48 sps:$4 sm:$0xff]  }
0x200f   : > { %8410 = vmatprep.subr.bf16.mxu1 %v14567_v5  ;;  %v14631_v5 = vld [vmem:[%s16409_s1 + $0x2c8] ss:$48 sps:$4 sm:$0xff]  }
0x2011   : > { %8325 = vmatpush1.bf16.msra.mxu0 %v14562_v7  ;;  %v14636_v7 = vld [vmem:[%s16409_s1 + $0x324] ss:$48 sps:$4 sm:$0xff]  }
0x2012   : > { %8411 = vmatpush1.bf16.msra.mxu1 %v14565_v55  ;;  %8326 = vmatprep.subr.bf16.mxu0 %v14570_v23  ;;  %v14639_v55 = vld [vmem:[%s16409_s1 + $0x32c] ss:$48 sps:$4 sm:$0xff]   ;;  %v14634_v23 = vld [vmem:[%s16409_s1 + $0x320] ss:$48 sps:$4 sm:$0xff]  }
0x2013   : > { %8412 = vmatprep.subr.bf16.mxu1 %v14573_v29  ;;  %v14637_v29 = vld [vmem:[%s16409_s1 + $0x328] ss:$48 sps:$4 sm:$0xff]  }
0x2015   : > { %8327 = vmatpush1.bf16.msra.mxu0 %v14568_v16  ;;  %v14642_v16 = vld [vmem:[%s16409_s1 + $0x384] ss:$48 sps:$4 sm:$0xff]  }
0x2016   : > { %8413 = vmatpush1.bf16.msra.mxu1 %v14571_v44  ;;  %8328 = vmatprep.subr.bf16.mxu0 %v14576_v12  ;;  %v14645_v44 = vld [vmem:[%s16409_s1 + $0x38c] ss:$48 sps:$4 sm:$0xff]   ;;  %v14640_v12 = vld [vmem:[%s16409_s1 + $0x380] ss:$48 sps:$4 sm:$0xff]  }
0x2017   : > { %8414 = vmatprep.subr.bf16.mxu1 %v14579_v24  ;;  %v14643_v24 = vld [vmem:[%s16409_s1 + $0x388] ss:$48 sps:$4 sm:$0xff]  }
0x2019   : > { %8329 = vmatpush1.bf16.msra.mxu0 %v14574_v60  ;;  %v14648_v60 = vld [vmem:[%s16409_s1 + $0x3e4] ss:$48 sps:$4 sm:$0xff]  }
0x201a   : > { %8415 = vmatpush1.bf16.msra.mxu1 %v14577_v38  ;;  %8330 = vmatprep.subr.bf16.mxu0 %v14582_v20  ;;  %v14651_v38 = vld [vmem:[%s16409_s1 + $0x3ec] ss:$48 sps:$4 sm:$0xff]   ;;  %v14646_v20 = vld [vmem:[%s16409_s1 + $0x3e0] ss:$48 sps:$4 sm:$0xff]  }
0x201b   : > { %8416 = vmatprep.subr.bf16.mxu1 %v14585_v0  ;;  %v14649_v0 = vld [vmem:[%s16409_s1 + $0x3e8] ss:$48 sps:$4 sm:$0xff]  }
0x201d   : > { %8331 = vmatpush1.bf16.msra.mxu0 %v14580_v52  ;;  %v14654_v52 = vld [vmem:[%s16409_s1 + $0x444] ss:$48 sps:$4 sm:$0xff]  }
0x201e   : > { %8417 = vmatpush1.bf16.msra.mxu1 %v14583_v40  ;;  %8445 = vmatprep.subr.bf16.mxu0 %v14588_v10  ;;  %v14657_v40 = vld [vmem:[%s16409_s1 + $0x44c] ss:$48 sps:$4 sm:$0xff]   ;;  %v14652_v10 = vld [vmem:[%s16409_s1 + $0x440] ss:$48 sps:$4 sm:$0xff]  }
0x201f   : > { %8531 = vmatprep.subr.bf16.mxu1 %v14591_v57  ;;  %v14655_v57 = vld [vmem:[%s16409_s1 + $0x448] ss:$48 sps:$4 sm:$0xff]  }
0x2020   : > { %8349 = vmatmul.mubr.bf16.vlgmr.msra.gmra.mrb[44].mxu0 %v17472_v22 }
0x2021   : > { %8435 = vmatmul.mubr.bf16.vlgmr.msra.gmra.mrb[56].mxu1 %v17472_v22  ;;  %8446 = vmatpush1.bf16.msra.mxu0 %v14586_v33  ;;  %v14660_v33 = vld [vmem:[%s16409_s1 + $0x4a4] ss:$48 sps:$4 sm:$0xff]  }
0x2022   : > { %8477 = vmatprep.mubr.bf16.mxu0 %v17413_v45  ;;  %8532 = vmatpush1.bf16.msra.mxu1 %v14589_v11  ;;  %v14663_v11 = vld [vmem:[%s16409_s1 + $0x4ac] ss:$48 sps:$4 sm:$0xff]  }
0x2023   : > { %8563 = vmatprep.mubr.bf16.mxu1 %v17413_v45  ;;  %8447 = vmatprep.subr.bf16.mxu0 %v14594_v25  ;;  %v14604_v45 = vld [vmem:[%s16409_s1 + $0x140] ss:$48 sps:$4 sm:$0xff]  }
0x2024   : > { %8533 = vmatprep.subr.bf16.mxu1 %v14597_v28  ;;  %v14658_v25 = vld [vmem:[%s16409_s1 + $0x4a0] ss:$48 sps:$4 sm:$0xff]   ;;  %v14661_v28 = vld [vmem:[%s16409_s1 + $0x4a8] ss:$48 sps:$4 sm:$0xff]  }
0x2025   : > { %8448 = vmatpush1.bf16.msra.mxu0 %v14592_v32  ;;  %v14666_v32 = vld [vmem:[%s16409_s1 + $0x504] ss:$48 sps:$4 sm:$0xff]  }
0x2026   : > { %8534 = vmatpush1.bf16.msra.mxu1 %v14595_v27  ;;  %8449 = vmatprep.subr.bf16.mxu0 %v14600_v34  ;;  %v14669_v27 = vld [vmem:[%s16409_s1 + $0x50c] ss:$48 sps:$4 sm:$0xff]   ;;  %v14664_v34 = vld [vmem:[%s16409_s1 + $0x500] ss:$48 sps:$4 sm:$0xff]  }
0x2027   : > { %8535 = vmatprep.subr.bf16.mxu1 %v14603_v17  ;;  %v14667_v17 = vld [vmem:[%s16409_s1 + $0x508] ss:$48 sps:$4 sm:$0xff]  }
0x2029   : > { %8450 = vmatpush1.bf16.msra.mxu0 %v14598_v49  ;;  %v14672_v49 = vld [vmem:[%s16409_s1 + $0x564] ss:$48 sps:$4 sm:$0xff]  }
0x202a   : > { %8536 = vmatpush1.bf16.msra.mxu1 %v14601_v31  ;;  %8451 = vmatprep.subr.bf16.mxu0 %v14606_v43  ;;  %v14675_v31 = vld [vmem:[%s16409_s1 + $0x56c] ss:$48 sps:$4 sm:$0xff]   ;;  %v14670_v43 = vld [vmem:[%s16409_s1 + $0x560] ss:$48 sps:$4 sm:$0xff]  }
0x202b   : > { %8537 = vmatprep.subr.bf16.mxu1 %v14609_v13  ;;  %v14673_v13 = vld [vmem:[%s16409_s1 + $0x568] ss:$48 sps:$4 sm:$0xff]  }
0x202d   : > { %8452 = vmatpush1.bf16.msra.mxu0 %v14604_v45  ;;  %v14678_v45 = vld [vmem:[%s16409_s1 + $0x5c4] ss:$48 sps:$4 sm:$0xff]  }
0x202e   : > { %8538 = vmatpush1.bf16.msra.mxu1 %v14607_v3  ;;  %8453 = vmatprep.subr.bf16.mxu0 %v14612_v30  ;;  %v14681_v3 = vld [vmem:[%s16409_s1 + $0x5cc] ss:$48 sps:$4 sm:$0xff]   ;;  %v14676_v30 = vld [vmem:[%s16409_s1 + $0x5c0] ss:$48 sps:$4 sm:$0xff]  }
0x202f   : > { %8539 = vmatprep.subr.bf16.mxu1 %v14615_v46  ;;  %v14679_v46 = vld [vmem:[%s16409_s1 + $0x5c8] ss:$48 sps:$4 sm:$0xff]  }
0x2031   : > { %8454 = vmatpush1.bf16.msra.mxu0 %v14610_v58  ;;  %v14684_v58 = vld [vmem:[%s16409_s1 + $0x624] ss:$48 sps:$4 sm:$0xff]  }
0x2032   : > { %8540 = vmatpush1.bf16.msra.mxu1 %v14613_v63  ;;  %8455 = vmatprep.subr.bf16.mxu0 %v14618_v1  ;;  %v14687_v63 = vld [vmem:[%s16409_s1 + $0x62c] ss:$48 sps:$4 sm:$0xff]   ;;  %v14682_v1 = vld [vmem:[%s16409_s1 + $0x620] ss:$48 sps:$4 sm:$0xff]  }
0x2033   : > { %8541 = vmatprep.subr.bf16.mxu1 %v14621_v39  ;;  %v14685_v39 = vld [vmem:[%s16409_s1 + $0x628] ss:$48 sps:$4 sm:$0xff]  }
0x2035   : > { %8456 = vmatpush1.bf16.msra.mxu0 %v14616_v2  ;;  %v14690_v2 = vld [vmem:[%s16409_s1 + $0x684] ss:$48 sps:$4 sm:$0xff]  }
0x2036   : > { %8542 = vmatpush1.bf16.msra.mxu1 %v14619_v48  ;;  %8457 = vmatprep.subr.bf16.mxu0 %v14624_v9  ;;  %v14693_v48 = vld [vmem:[%s16409_s1 + $0x68c] ss:$48 sps:$4 sm:$0xff]   ;;  %v14688_v9 = vld [vmem:[%s16409_s1 + $0x680] ss:$48 sps:$4 sm:$0xff]  }
0x2037   : > { %8543 = vmatprep.subr.bf16.mxu1 %v14627_v59  ;;  %v14691_v59 = vld [vmem:[%s16409_s1 + $0x688] ss:$48 sps:$4 sm:$0xff]  }
0x2039   : > { %8458 = vmatpush1.bf16.msra.mxu0 %v14622_v35  ;;  %v14696_v35 = vld [vmem:[%s16409_s1 + $0x6e4] ss:$48 sps:$4 sm:$0xff]  }
0x203a   : > { %8544 = vmatpush1.bf16.msra.mxu1 %v14625_v61  ;;  %8459 = vmatprep.subr.bf16.mxu0 %v14630_v15  ;;  %v14699_v61 = vld [vmem:[%s16409_s1 + $0x6ec] ss:$48 sps:$4 sm:$0xff]   ;;  %v14697_v15 = vld [vmem:[%s16409_s1 + $0x6e8] ss:$48 sps:$4 sm:$0xff]  }
0x203b   : > { %8545 = vmatprep.subr.bf16.mxu1 %v14633_v36  ;;  %v14702_v36 = vld [vmem:[%s16409_s1 + $0x744] ss:$48 sps:$4 sm:$0xff]  }
0x203d   : > { %8460 = vmatpush1.bf16.msra.mxu0 %v14628_v18  ;;  %v14705_v18 = vld [vmem:[%s16409_s1 + $0x74c] ss:$48 sps:$4 sm:$0xff]  }
0x203e   : > { %8546 = vmatpush1.bf16.msra.mxu1 %v14631_v5  ;;  %8461 = vmatprep.subr.bf16.mxu0 %v14636_v7  ;;  %v14700_v5 = vld [vmem:[%s16409_s1 + $0x740] ss:$48 sps:$4 sm:$0xff]   ;;  %v14703_v7 = vld [vmem:[%s16409_s1 + $0x748] ss:$48 sps:$4 sm:$0xff]  }
0x203f   : > { %8547 = vmatprep.subr.bf16.mxu1 %v14639_v55  ;;  %v14711_v55 = vld [vmem:[%s16409_s1 + $0x7ac] ss:$48 sps:$4 sm:$0xff]  }
0x2041   : > { %8462 = vmatpush1.bf16.msra.mxu0 %v14634_v23  ;;  %v14706_v23 = vld [vmem:[%s16409_s1 + $0x7a0] ss:$48 sps:$4 sm:$0xff]  }
0x2042   : > { %8548 = vmatpush1.bf16.msra.mxu1 %v14637_v29  ;;  %8463 = vmatprep.subr.bf16.mxu0 %v14642_v16  ;;  %v14709_v29 = vld [vmem:[%s16409_s1 + $0x7a8] ss:$48 sps:$4 sm:$0xff]   ;;  %v14714_v16 = vld [vmem:[%s16409_s1 + $0x804] ss:$48 sps:$4 sm:$0xff]  }
0x2043   : > { %8549 = vmatprep.subr.bf16.mxu1 %v14645_v44  ;;  %v14717_v44 = vld [vmem:[%s16409_s1 + $0x80c] ss:$48 sps:$4 sm:$0xff]  }
0x2045   : > { %8464 = vmatpush1.bf16.msra.mxu0 %v14640_v12  ;;  %v14712_v12 = vld [vmem:[%s16409_s1 + $0x800] ss:$48 sps:$4 sm:$0xff]  }
0x2046   : > { %8550 = vmatpush1.bf16.msra.mxu1 %v14643_v24  ;;  %8465 = vmatprep.subr.bf16.mxu0 %v14648_v60  ;;  %v14715_v24 = vld [vmem:[%s16409_s1 + $0x808] ss:$48 sps:$4 sm:$0xff]   ;;  %v14720_v60 = vld [vmem:[%s16409_s1 + $0x864] ss:$48 sps:$4 sm:$0xff]  }
0x2047   : > { %8551 = vmatprep.subr.bf16.mxu1 %v14651_v38  ;;  %v14723_v38 = vld [vmem:[%s16409_s1 + $0x86c] ss:$48 sps:$4 sm:$0xff]  }
0x2049   : > { %8466 = vmatpush1.bf16.msra.mxu0 %v14646_v20  ;;  %v14718_v20 = vld [vmem:[%s16409_s1 + $0x860] ss:$48 sps:$4 sm:$0xff]  }
0x204a   : > { %8552 = vmatpush1.bf16.msra.mxu1 %v14649_v0  ;;  %8467 = vmatprep.subr.bf16.mxu0 %v14654_v52  ;;  %v14721_v0 = vld [vmem:[%s16409_s1 + $0x868] ss:$48 sps:$4 sm:$0xff]   ;;  %v14726_v52 = vld [vmem:[%s16409_s1 + $0x8c4] ss:$48 sps:$4 sm:$0xff]  }
0x204b   : > { %8553 = vmatprep.subr.bf16.mxu1 %v14657_v40  ;;  %v14729_v40 = vld [vmem:[%s16409_s1 + $0x8cc] ss:$48 sps:$4 sm:$0xff]  }
0x204d   : > { %8468 = vmatpush1.bf16.msra.mxu0 %v14652_v10  ;;  %v14724_v10 = vld [vmem:[%s16409_s1 + $0x8c0] ss:$48 sps:$4 sm:$0xff]  }
0x204e   : > { %8554 = vmatpush1.bf16.msra.mxu1 %v14655_v57  ;;  %8469 = vmatprep.subr.bf16.mxu0 %v14660_v33  ;;  %v14727_v57 = vld [vmem:[%s16409_s1 + $0x8c8] ss:$48 sps:$4 sm:$0xff]  }
0x204f   : > { %8555 = vmatprep.subr.bf16.mxu1 %v14663_v11  ;;  %v14732_v33 = vld [vmem:[%s16418_s21 + $0x4] ss:$12 sps:$4 sm:$0xff]   ;;  %v14733_v11 = vld [vmem:[%s16418_s21 + $0xc8] ss:$12 sps:$4 sm:$0xff]  }
0x2051   : > { %8470 = vmatpush1.bf16.msra.mxu0 %v14658_v25  ;;  %v14730_v25 = vld [vmem:[%s16418_s21] ss:$12 sps:$4 sm:$0xff]  }
0x2052   : > { %8556 = vmatpush1.bf16.msra.mxu1 %v14661_v28  ;;  %8471 = vmatprep.subr.bf16.mxu0 %v14666_v32  ;;  %v14734_v28 = vld [vmem:[%s16418_s21 + $0x8] ss:$12 sps:$4 sm:$0xff]  }
0x2053   : > { %8557 = vmatprep.subr.bf16.mxu1 %v14669_v27  ;;  %v14737_v32 = vld [vmem:[%s16418_s21 + $0x1c] ss:$12 sps:$4 sm:$0xff]   ;;  %v14738_v27 = vld [vmem:[%s16418_s21 + $0xe0] ss:$12 sps:$4 sm:$0xff]  }
0x2055   : > { %8472 = vmatpush1.bf16.msra.mxu0 %v14664_v34  ;;  %v14735_v34 = vld [vmem:[%s16418_s21 + $0x18] ss:$12 sps:$4 sm:$0xff]  }
0x2056   : > { %8558 = vmatpush1.bf16.msra.mxu1 %v14667_v17  ;;  %8473 = vmatprep.subr.bf16.mxu0 %v14672_v49  ;;  %v14739_v17 = vld [vmem:[%s16418_s21 + $0x20] ss:$12 sps:$4 sm:$0xff]  }
0x2057   : > { %8559 = vmatprep.subr.bf16.mxu1 %v14675_v31  ;;  %v14742_v49 = vld [vmem:[%s16418_s21 + $0x34] ss:$12 sps:$4 sm:$0xff]   ;;  %v14743_v31 = vld [vmem:[%s16418_s21 + $0xf8] ss:$12 sps:$4 sm:$0xff]  }
0x2059   : > { %8474 = vmatpush1.bf16.msra.mxu0 %v14670_v43  ;;  %v14740_v43 = vld [vmem:[%s16418_s21 + $0x30] ss:$12 sps:$4 sm:$0xff]  }
0x205a   : > { %8560 = vmatpush1.bf16.msra.mxu1 %v14673_v13  ;;  %8475 = vmatprep.subr.bf16.mxu0 %v14678_v45  ;;  %v14747_v13 = vld [vmem:[%s16418_s21 + $0x4c] ss:$12 sps:$4 sm:$0xff]   ;;  %v14748_v45 = vld [vmem:[%s16418_s21 + $0x110] ss:$12 sps:$4 sm:$0xff]  }
0x205b   : > { %8561 = vmatprep.subr.bf16.mxu1 %v14681_v3  ;;  %v14745_v3 = vld [vmem:[%s16418_s21 + $0x48] ss:$12 sps:$4 sm:$0xff]  }
0x205d   : > { %8476 = vmatpush1.bf16.msra.mxu0 %v14676_v30  ;;  %v14749_v30 = vld [vmem:[%s16418_s21 + $0x50] ss:$12 sps:$4 sm:$0xff]  }
0x205e   : > { %8562 = vmatpush1.bf16.msra.mxu1 %v14679_v46  ;;  %8488 = vmatprep.subr.bf16.mxu0 %v14684_v58  ;;  %v14752_v46 = vld [vmem:[%s16418_s21 + $0x64] ss:$12 sps:$4 sm:$0xff]   ;;  %v14753_v58 = vld [vmem:[%s16418_s21 + $0x128] ss:$12 sps:$4 sm:$0xff]  }
0x205f   : > { %8574 = vmatprep.subr.bf16.mxu1 %v14687_v63  ;;  %v14750_v63 = vld [vmem:[%s16418_s21 + $0x60] ss:$12 sps:$4 sm:$0xff]  }
0x2060   : > { %8478 = vmatmul.mubr.bf16.vlgmr.msra.gmra.mrb[48].mxu0 %v17419_v26 }
0x2061   : > { %8564 = vmatmul.mubr.bf16.vlgmr.msra.gmra.mrb[60].mxu1 %v17419_v26  ;;  %8489 = vmatpush1.bf16.msra.mxu0 %v14682_v1  ;;  %v14694_v26 = vld [vmem:[%s16409_s1 + $0x6e0] ss:$48 sps:$4 sm:$0xff]  }
0x2062   : > { %8575 = vmatpush1.bf16.msra.mxu1 %v14685_v39  ;;  %8490 = vmatprep.subr.bf16.mxu0 %v14690_v2  ;;  %v17701_v1 = vld [vmem:[%s16415_s20] sm:$0xff] }
0x2063   : > { %8576 = vmatprep.subr.bf16.mxu1 %v14693_v48  ;;  %8520 = vmatprep.mubr.bf16.mxu0 %v15761_v37  ;;  %v14754_v39 = vld [vmem:[%s16418_s21 + $0x68] ss:$12 sps:$4 sm:$0xff]   ;;  %v14758_v48 = vld [vmem:[%s16418_s21 + $0x140] ss:$12 sps:$4 sm:$0xff]  }
0x2064   : > { %8606 = vmatprep.mubr.bf16.mxu1 %v15761_v37  ;;  %v14708_v37 = vld [vmem:[%s16409_s1 + $0x7a4] ss:$48 sps:$4 sm:$0xff]   ;;  %s18389_s1 = sld [smem:[#allocation55_spill]] (!%p12683_p7) }
0x2065   : > { %8491 = vmatpush1.bf16.msra.mxu0 %v14688_v9  ;;  %v14757_v2 = vld [vmem:[%s16418_s21 + $0x7c] ss:$12 sps:$4 sm:$0xff]   ;;  %v6604_v9 = vrot.slane %v17701_v1, %v16651_v51 }
0x2066   : > { %8577 = vmatpush1.bf16.msra.mxu1 %v14691_v59  ;;  %8492 = vmatprep.subr.bf16.mxu0 %v14696_v35  ;;  %v6612_v59 = vrot.slane %v17701_v1, %v16983_v14  ;;  %v6608_v35 = vrot.slane %v17701_v1, %v16661_v56 }
0x2067   : > { %8578 = vmatprep.subr.bf16.mxu1 %v14699_v61  ;;  %v6616_v61 = vrot.slane %v17701_v1, %v16722_v41 }
0x2069   : > { %8493 = vmatpush1.bf16.msra.mxu0 %v14694_v26  ;;  %v14755_v26 = vld [vmem:[%s16418_s21 + $0x78] ss:$12 sps:$4 sm:$0xff]  }
0x206a   : > { %8579 = vmatpush1.bf16.msra.mxu1 %v14697_v15  ;;  %8494 = vmatprep.subr.bf16.mxu0 %v14702_v36  ;;  %v14759_v15 = vld [vmem:[%s16418_s21 + $0x80] ss:$12 sps:$4 sm:$0xff]  }
0x206b   : > { %8580 = vmatprep.subr.bf16.mxu1 %v14705_v18  ;;  %v14762_v36 = vld [vmem:[%s16418_s21 + $0x94] ss:$12 sps:$4 sm:$0xff]  }
0x206d   : > { %8495 = vmatpush1.bf16.msra.mxu0 %v14700_v5 }
0x206e   : > { %8581 = vmatpush1.bf16.msra.mxu1 %v14703_v7  ;;  %8496 = vmatprep.subr.bf16.mxu0 %v14708_v37  ;;  %v14763_v7 = vld [vmem:[%s16418_s21 + $0x158] ss:$12 sps:$4 sm:$0xff]  }
0x206f   : > { %8582 = vmatprep.subr.bf16.mxu1 %v14711_v55 }
0x2071   : > { %8497 = vmatpush1.bf16.msra.mxu0 %v14706_v23 }
0x2072   : > { %8583 = vmatpush1.bf16.msra.mxu1 %v14709_v29  ;;  %8498 = vmatprep.subr.bf16.mxu0 %v14714_v16 }
0x2073   : > { %8584 = vmatprep.subr.bf16.mxu1 %v14717_v44 }
0x2075   : > { %8499 = vmatpush1.bf16.msra.mxu0 %v14712_v12 }
0x2076   : > { %8585 = vmatpush1.bf16.msra.mxu1 %v14715_v24  ;;  %8500 = vmatprep.subr.bf16.mxu0 %v14720_v60  ;;  %v14760_v60 = vld [vmem:[%s16418_s21 + $0x90] ss:$12 sps:$4 sm:$0xff]  }
0x2077   : > { %8586 = vmatprep.subr.bf16.mxu1 %v14723_v38 }
0x2079   : > { %8501 = vmatpush1.bf16.msra.mxu0 %v14718_v20 }
0x207a   : > { %8587 = vmatpush1.bf16.msra.mxu1 %v14721_v0  ;;  %8502 = vmatprep.subr.bf16.mxu0 %v14726_v52 }
0x207b   : > { %8588 = vmatprep.subr.bf16.mxu1 %v14729_v40  ;;  %v14764_v40 = vld [vmem:[%s16418_s21 + $0x98] ss:$12 sps:$4 sm:$0xff]  }
0x207d   : > { %8503 = vmatpush1.bf16.msra.mxu0 %v14724_v10  ;;  %v14767_v10 = vld [vmem:[%s16418_s21 + $0xac] ss:$12 sps:$4 sm:$0xff]  }
0x207e   : > { %8589 = vmatpush1.bf16.msra.mxu1 %v14727_v57  ;;  %10590 = vmatprep.subr.bf16.mxu0 %v14732_v33 }
0x207f   : > { %12847 = vmatprep.subr.bf16.mxu1 %v14733_v11  ;;  %v14768_v11 = vld [vmem:[%s16418_s21 + $0x170] ss:$12 sps:$4 sm:$0xff]  }
0x2080   : > { %8521 = vmatmul.mubr.bf16.vlgmr.msra.gmra.mrb[48].mxu0 %v17472_v22 }
0x2081   : > { %8607 = vmatmul.mubr.bf16.vlgmr.msra.gmra.mrb[60].mxu1 %v17472_v22  ;;  %10591 = vmatpush1.bf16.msra.mxu0 %v14730_v25  ;;  %v14744_v22 = vld [vmem:[%s16418_s21 + $0x38] ss:$12 sps:$4 sm:$0xff]  }
0x2082   : > { %12848 = vmatpush3.bf16.msra.mxu1 %v14734_v28  ;;  %10592 = vmatprep.subr.bf16.mxu0 %v14737_v32 }
0x2083   : > { %12849 = vmatprep.subr.bf16.mxu1 %v14738_v27 }
0x2085   : > { %10593 = vmatpush1.bf16.msra.mxu0 %v14735_v34 }
0x2086   : > { %12850 = vmatpush3.bf16.msra.mxu1 %v14739_v17  ;;  %10594 = vmatprep.subr.bf16.mxu0 %v14742_v49 }
0x2087   : > { %12851 = vmatprep.subr.bf16.mxu1 %v14743_v31 }
0x2089   : > { %10595 = vmatpush1.bf16.msra.mxu0 %v14740_v43  ;;  %v14765_v43 = vld [vmem:[%s16418_s21 + $0xa8] ss:$12 sps:$4 sm:$0xff]  }
0x208a   : > { %12852 = vmatpush3.bf16.msra.mxu1 %v14744_v22  ;;  %10596 = vmatprep.subr.bf16.mxu0 %v14747_v13 }
0x208b   : > { %12853 = vmatprep.subr.bf16.mxu1 %v14748_v45  ;;  %v14769_v45 = vld [vmem:[%s16418_s21 + $0xb0] ss:$12 sps:$4 sm:$0xff]  }
0x208d   : > { %10597 = vmatpush1.bf16.msra.mxu0 %v14745_v3 }
0x208e   : > { %12854 = vmatpush3.bf16.msra.mxu1 %v14749_v30  ;;  %10598 = vmatprep.subr.bf16.mxu0 %v14752_v46  ;;  %v14772_v46 = vld [vmem:[%s16418_s21 + $0xc4] ss:$12 sps:$4 sm:$0xff]  }
0x208f   : > { %12855 = vmatprep.subr.bf16.mxu1 %v14753_v58  ;;  %v14773_v58 = vld [vmem:[%s16418_s21 + $0x248] ss:$12 sps:$4 sm:$0xff]  }
0x2091   : > { %10599 = vmatpush1.bf16.msra.mxu0 %v14750_v63  ;;  %v14770_v63 = vld [vmem:[%s16418_s21 + $0xc0] ss:$12 sps:$4 sm:$0xff]  }
0x2092   : > { %12856 = vmatpush3.bf16.msra.mxu1 %v14754_v39  ;;  %10600 = vmatprep.subr.bf16.mxu0 %v14757_v2  ;;  %v14774_v39 = vld [vmem:[%s16418_s21 + $0x188] ss:$12 sps:$4 sm:$0xff]  }
0x2093   : > { %v8178_v18 = vpop.f32.mrb[40].mxu0  ;;  %v8264_v5 = vpop.f32.mrb[52].mxu1  ;;  %12857 = vmatprep.subr.bf16.mxu1 %v14758_v48  ;;  %v14777_v2 = vld [vmem:[%s16418_s21 + $0xdc] ss:$12 sps:$4 sm:$0xff]   ;;  %v14778_v48 = vld [vmem:[%s16418_s21 + $0x260] ss:$12 sps:$4 sm:$0xff]  }
0x2094   : > { %v13492_v37 = vadd.f32 %v8178_v18, %v6604_v9  ;;  %v13496_v55 = vadd.f32 %v8264_v5, %v6612_v59  ;;  %v8180_v23 = vpop.f32.mrb[41].mxu0  ;;  %v8266_v29 = vpop.f32.mrb[53].mxu1  ;;  %v14788_v18 = vld [vmem:[%s16418_s21 + $0x290] ss:$12 sps:$4 sm:$0xff]   ;;  %v14785_v5 = vld [vmem:[%s16418_s21 + $0x108] ss:$12 sps:$4 sm:$0xff]  }
0x2095   : > { %v13493_v16 = vadd.f32 %v8180_v23, %v6608_v35  ;;  %v13497_v44 = vadd.f32 %v8266_v29, %v6616_v61  ;;  %v8182_v12 = vpop.f32.mrb[42].mxu0  ;;  %v8268_v24 = vpop.f32.mrb[54].mxu1  ;;  %10601 = vmatpush1.bf16.msra.mxu0 %v14755_v26  ;;  %v14780_v26 = vld [vmem:[%s16418_s21 + $0xf0] ss:$12 sps:$4 sm:$0xff]   ;;  %v14790_v23 = vld [vmem:[%s16418_s21 + $0x120] ss:$12 sps:$4 sm:$0xff]  }
0x2096   : > { %v13494_v38 = vadd.f32 %v8182_v12, %v6604_v9  ;;  %v13498_v20 = vadd.f32 %v8268_v24, %v6612_v59  ;;  %12858 = vmatpush3.bf16.msra.mxu1 %v14759_v15  ;;  %v8184_v0 = vpop.f32.mrb[43].mxu0  ;;  %v8270_v52 = vpop.f32.mrb[55].mxu1  ;;  %10602 = vmatprep.subr.bf16.mxu0 %v14762_v36  ;;  %v8617_v25 = vmax.f32 %v13492_v37, 0.0  ;;  %v8619_v28 = vmax.f32 %v13496_v55, 0.0  ;;  %v14775_v9 = vld [vmem:[%s16418_s21 + $0xd8] ss:$12 sps:$4 sm:$0xff]  }
0x2097   : > { %v13495_v57 = vadd.f32 %v8184_v0, %v6608_v35  ;;  %v13499_v33 = vadd.f32 %v8270_v52, %v6616_v61  ;;  %12859 = vmatprep.subr.bf16.mxu1 %v14763_v7  ;;  %v8618_v34 = vmax.f32 %v13493_v16, 0.0  ;;  %v8620_v17 = vmax.f32 %v13497_v44, 0.0  ;;  %v14779_v59 = vld [vmem:[%s16418_s21 + $0x1a0] ss:$12 sps:$4 sm:$0xff]   ;;  %v14783_v61 = vld [vmem:[%s16418_s21 + $0x278] ss:$12 sps:$4 sm:$0xff]  }
0x2098   : > { %v8629_v32 = vmax.f32 %v13494_v38, 0.0  ;;  %v8631_v27 = vmax.f32 %v13498_v20, 0.0  ;;  %v14782_v35 = vld [vmem:[%s16418_s21 + $0xf4] ss:$12 sps:$4 sm:$0xff]   ;;  %v14784_v15 = vld [vmem:[%s16418_s21 + $0x1b8] ss:$12 sps:$4 sm:$0xff]  }
0x2099   : > { %v8630_v49 = vmax.f32 %v13495_v57, 0.0  ;;  %v8632_v31 = vmax.f32 %v13499_v33, 0.0  ;;  %10603 = vmatpush1.bf16.msra.mxu0 %v14760_v60  ;;  %v14787_v36 = vld [vmem:[%s16418_s21 + $0x10c] ss:$12 sps:$4 sm:$0xff]   ;;  %v14789_v7 = vld [vmem:[%s16418_s21 + $0x1d0] ss:$12 sps:$4 sm:$0xff]  }
0x209a   : > { %v17723_v22 = vpack.c.bf16 %v8629_v32, %v8617_v25  ;;  %v17725_v13 = vpack.c.bf16 %v8631_v27, %v8619_v28  ;;  %12860 = vmatpush3.bf16.msra.mxu1 %v14764_v40  ;;  %10604 = vmatprep.subr.bf16.mxu0 %v14767_v10  ;;  %v14792_v37 = vld [vmem:[%s16418_s21 + $0x124] ss:$12 sps:$4 sm:$0xff]   ;;  %v14793_v55 = vld [vmem:[%s16418_s21 + $0x2a8] ss:$12 sps:$4 sm:$0xff]   ;;  %v14798_v44 = vld [vmem:[%s16418_s21 + $0x2c0] ss:$12 sps:$4 sm:$0xff]  }
0x209b   : > { %v8642_v3 = vpack.c.bf16 %v8630_v49, %v8618_v34  ;;  %v17728_v30 = vpack.c.bf16 %v8632_v31, %v8620_v17  ;;  %12861 = vmatprep.subr.bf16.mxu1 %v14768_v11  ;;  %v14794_v29 = vld [vmem:[%s16418_s21 + $0x1e8] ss:$12 sps:$4 sm:$0xff]   ;;  %v14795_v12 = vld [vmem:[%s16418_s21 + $0x138] ss:$12 sps:$4 sm:$0xff]   ;;  %v14799_v24 = vld [vmem:[%s16418_s21 + $0x200] ss:$12 sps:$4 sm:$0xff]  }
0x209c   : > { %v14797_v16 = vld [vmem:[%s16418_s21 + $0x13c] ss:$12 sps:$4 sm:$0xff]   ;;  %v14802_v60 = vld [vmem:[%s16418_s21 + $0x154] ss:$12 sps:$4 sm:$0xff]   ;;  %v14803_v38 = vld [vmem:[%s16418_s21 + $0x2d8] ss:$12 sps:$4 sm:$0xff]  }
0x209d   : > { %10605 = vmatpush1.bf16.msra.mxu0 %v14765_v43  ;;  %10622 = vmatprep.mubr.bf16.mxu0 %v8642_v3  ;;  %v14800_v20 = vld [vmem:[%s16418_s21 + $0x150] ss:$12 sps:$4 sm:$0xff]   ;;  %v14804_v0 = vld [vmem:[%s16418_s21 + $0x218] ss:$12 sps:$4 sm:$0xff]   ;;  %v14805_v10 = vld [vmem:[%s16418_s21 + $0x168] ss:$12 sps:$4 sm:$0xff]  }
0x209e   : > { %12862 = vmatpush3.bf16.msra.mxu1 %v14769_v45  ;;  %10880 = vmatprep.mubr.bf16.mxu1 %v8642_v3  ;;  %v14807_v52 = vld [vmem:[%s16418_s21 + $0x16c] ss:$12 sps:$4 sm:$0xff]   ;;  %v14808_v40 = vld [vmem:[%s16418_s21 + $0x2f0] ss:$12 sps:$4 sm:$0xff]   ;;  %v14834_v11 = vld [vmem:[%s16418_s21 + $0x3c8] ss:$12 sps:$4 sm:$0xff]  }
0x209f   : > { %10606 = vmatprep.subr.bf16.mxu0 %v14772_v46  ;;  %12869 = vmatprep.subr.bf16.mxu1 %v14773_v58  ;;  %v14809_v57 = vld [vmem:[%s16418_s21 + $0x230] ss:$12 sps:$4 sm:$0xff]   ;;  %v14810_v25 = vld [vmem:[%s16418_s21 + $0x180] ss:$12 sps:$4 sm:$0xff]   ;;  %v14835_v32 = vld [vmem:[%s16418_s21 + $0x308] ss:$12 sps:$4 sm:$0xff]  }
0x20a0   : > { %v14812_v33 = vld [vmem:[%s16418_s21 + $0x184] ss:$12 sps:$4 sm:$0xff]   ;;  %v14815_v28 = vld [vmem:[%s16418_s21 + $0x19c] ss:$12 sps:$4 sm:$0xff]   ;;  %v14839_v27 = vld [vmem:[%s16418_s21 + $0x3e0] ss:$12 sps:$4 sm:$0xff]  }
0x20a1   : > { %10881 = vmatmul.mubr.bf16.vlgmr.msra.gmra.mrb[64].mxu1 %v17723_v22  ;;  %10607 = vmatpush1.bf16.msra.mxu0 %v14770_v63  ;;  %v14813_v34 = vld [vmem:[%s16418_s21 + $0x198] ss:$12 sps:$4 sm:$0xff]   ;;  %v14818_v17 = vld [vmem:[%s16418_s21 + $0x1b4] ss:$12 sps:$4 sm:$0xff]   ;;  %v14816_v43 = vld [vmem:[%s16418_s21 + $0x1b0] ss:$12 sps:$4 sm:$0xff]  }
0x20a2   : > { %12870 = vmatpush3.bf16.msra.mxu1 %v14774_v39  ;;  %10921 = vmatprep.mubr.bf16.mxu1 %v17728_v30  ;;  %v14840_v49 = vld [vmem:[%s16418_s21 + $0x320] ss:$12 sps:$4 sm:$0xff]   ;;  %v14844_v31 = vld [vmem:[%s16418_s21 + $0x3f8] ss:$12 sps:$4 sm:$0xff]   ;;  %v14849_v3 = vld [vmem:[%s16418_s21 + $0x410] ss:$12 sps:$4 sm:$0xff]  }
0x20a3   : > { %10608 = vmatprep.subr.bf16.mxu0 %v14777_v2  ;;  %12871 = vmatprep.subr.bf16.mxu1 %v14778_v48  ;;  %v14845_v45 = vld [vmem:[%s16418_s21 + $0x338] ss:$12 sps:$4 sm:$0xff]   ;;  %v14850_v58 = vld [vmem:[%s16418_s21 + $0x350] ss:$12 sps:$4 sm:$0xff]   ;;  %v14854_v63 = vld [vmem:[%s16418_s21 + $0x428] ss:$12 sps:$4 sm:$0xff]  }
0x20a4   : > { %v14824_v46 = vld [vmem:[%s16418_s21 + $0x1e4] ss:$12 sps:$4 sm:$0xff]   ;;  %v14822_v39 = vld [vmem:[%s16418_s21 + $0x1e0] ss:$12 sps:$4 sm:$0xff]   ;;  %v14827_v2 = vld [vmem:[%s16418_s21 + $0x1fc] ss:$12 sps:$4 sm:$0xff]  }
0x20a5   : > { %10609 = vmatpush1.bf16.msra.mxu0 %v14775_v9  ;;  %v14855_v48 = vld [vmem:[%s16418_s21 + $0x368] ss:$12 sps:$4 sm:$0xff]   ;;  %v14859_v9 = vld [vmem:[%s16418_s21 + $0x440] ss:$12 sps:$4 sm:$0xff]  }
0x20a6   : > { %12872 = vmatpush3.bf16.msra.mxu1 %v14779_v59  ;;  %10610 = vmatprep.subr.bf16.mxu0 %v14782_v35  ;;  %v14825_v59 = vld [vmem:[%s16418_s21 + $0x1f8] ss:$12 sps:$4 sm:$0xff]   ;;  %v14830_v35 = vld [vmem:[%s16418_s21 + $0x214] ss:$12 sps:$4 sm:$0xff]  }
0x20a7   : > { %12873 = vmatprep.subr.bf16.mxu1 %v14783_v61  ;;  %v14860_v61 = vld [vmem:[%s16418_s21 + $0x380] ss:$12 sps:$4 sm:$0xff]  }
0x20a9   : > { %10611 = vmatpush1.bf16.msra.mxu0 %v14780_v26  ;;  %v14864_v26 = vld [vmem:[%s16418_s21 + $0x458] ss:$12 sps:$4 sm:$0xff]  }
0x20aa   : > { %12874 = vmatpush3.bf16.msra.mxu1 %v14784_v15  ;;  %10612 = vmatprep.subr.bf16.mxu0 %v14787_v36  ;;  %v14828_v15 = vld [vmem:[%s16418_s21 + $0x210] ss:$12 sps:$4 sm:$0xff]   ;;  %v14833_v36 = vld [vmem:[%s16418_s21 + $0x22c] ss:$12 sps:$4 sm:$0xff]  }
0x20ab   : > { %12875 = vmatprep.subr.bf16.mxu1 %v14788_v18  ;;  %v14865_v18 = vld [vmem:[%s16418_s21 + $0x398] ss:$12 sps:$4 sm:$0xff]  }
0x20ad   : > { %10613 = vmatpush1.bf16.msra.mxu0 %v14785_v5  ;;  %v14869_v5 = vld [vmem:[%s16418_s21 + $0x470] ss:$12 sps:$4 sm:$0xff]  }
0x20ae   : > { %12876 = vmatpush3.bf16.msra.mxu1 %v14789_v7  ;;  %10614 = vmatprep.subr.bf16.mxu0 %v14792_v37  ;;  %v14831_v7 = vld [vmem:[%s16418_s21 + $0x228] ss:$12 sps:$4 sm:$0xff]   ;;  %v14838_v37 = vld [vmem:[%s16418_s21 + $0x244] ss:$12 sps:$4 sm:$0xff]  }
0x20af   : > { %12877 = vmatprep.subr.bf16.mxu1 %v14793_v55  ;;  %v14870_v55 = vld [vmem:[%s16418_s21 + $0x3b0] ss:$12 sps:$4 sm:$0xff]  }
0x20b1   : > { %10615 = vmatpush1.bf16.msra.mxu0 %v14790_v23  ;;  %v14874_v23 = vld [vmem:[%s16418_s21 + $0x548] ss:$12 sps:$4 sm:$0xff]  }
0x20b2   : > { %12878 = vmatpush3.bf16.msra.mxu1 %v14794_v29  ;;  %10616 = vmatprep.subr.bf16.mxu0 %v14797_v16  ;;  %v14836_v29 = vld [vmem:[%s16418_s21 + $0x240] ss:$12 sps:$4 sm:$0xff]   ;;  %v14843_v16 = vld [vmem:[%s16418_s21 + $0x25c] ss:$12 sps:$4 sm:$0xff]  }
0x20b3   : > { %12879 = vmatprep.subr.bf16.mxu1 %v14798_v44  ;;  %v14841_v44 = vld [vmem:[%s16418_s21 + $0x258] ss:$12 sps:$4 sm:$0xff]  }
0x20b5   : > { %10617 = vmatpush1.bf16.msra.mxu0 %v14795_v12  ;;  %v14848_v12 = vld [vmem:[%s16418_s21 + $0x274] ss:$12 sps:$4 sm:$0xff]  }
0x20b6   : > { %12880 = vmatpush3.bf16.msra.mxu1 %v14799_v24  ;;  %10618 = vmatprep.subr.bf16.mxu0 %v14802_v60  ;;  %v14846_v24 = vld [vmem:[%s16418_s21 + $0x270] ss:$12 sps:$4 sm:$0xff]   ;;  %v14853_v60 = vld [vmem:[%s16418_s21 + $0x28c] ss:$12 sps:$4 sm:$0xff]  }
0x20b7   : > { %12881 = vmatprep.subr.bf16.mxu1 %v14803_v38  ;;  %v14851_v38 = vld [vmem:[%s16418_s21 + $0x288] ss:$12 sps:$4 sm:$0xff]  }
0x20b9   : > { %10619 = vmatpush1.bf16.msra.mxu0 %v14800_v20  ;;  %v14858_v20 = vld [vmem:[%s16418_s21 + $0x2a4] ss:$12 sps:$4 sm:$0xff]  }
0x20ba   : > { %12882 = vmatpush3.bf16.msra.mxu1 %v14804_v0  ;;  %10620 = vmatprep.subr.bf16.mxu0 %v14807_v52  ;;  %v14856_v0 = vld [vmem:[%s16418_s21 + $0x2a0] ss:$12 sps:$4 sm:$0xff]   ;;  %v14863_v52 = vld [vmem:[%s16418_s21 + $0x2bc] ss:$12 sps:$4 sm:$0xff]  }
0x20bb   : > { %12883 = vmatprep.subr.bf16.mxu1 %v14808_v40  ;;  %v6620_v40 = vrot.slane %v17701_v1, %v1466_v19 }
0x20bd   : > { %10621 = vmatpush1.bf16.msra.mxu0 %v14805_v10  ;;  %v6628_v10 = vrot.slane %v17701_v1, %v1474_v53 }
0x20be   : > { %12884 = vmatpush3.bf16.msra.mxu1 %v14809_v57  ;;  %10633 = vmatprep.subr.bf16.mxu0 %v14812_v33  ;;  %v6624_v57 = vrot.slane %v17701_v1, %v1470_v21  ;;  %v14861_v33 = vld [vmem:[%s16418_s21 + $0x2b8] ss:$12 sps:$4 sm:$0xff]  }
0x20bf   : > { %12891 = vmatprep.subr.bf16.mxu1 %v14834_v11  ;;  %v6632_v11 = vrot.slane %v17701_v1, %v1478_v54  ;;  %v14873_v54 = vld [vmem:[%s16418_s21 + $0x2ec] ss:$12 sps:$4 sm:$0xff]  }
0x20c0   : > { %10623 = vmatmul.mubr.bf16.vlgmr.msra.gmra.mrb[52].mxu0 %v17723_v22  ;;  %v14821_v22 = vld [vmem:[%s16418_s21 + $0x1cc] ss:$12 sps:$4 sm:$0xff]  }
0x20c1   : > { %10922 = vmatmul.mubr.bf16.vlgmr.msra.gmra.mrb[68].mxu1 %v17725_v13  ;;  %10634 = vmatpush1.bf16.msra.mxu0 %v14810_v25  ;;  %v14868_v25 = vld [vmem:[%s16418_s21 + $0x2d4] ss:$12 sps:$4 sm:$0xff]  }
0x20c2   : > { %10665 = vmatprep.mubr.bf16.mxu0 %v17728_v30  ;;  %10635 = vmatprep.subr.bf16.mxu0 %v14815_v28  ;;  %v14819_v30 = vld [vmem:[%s16418_s21 + $0x1c8] ss:$12 sps:$4 sm:$0xff]  }
0x20c3   : > { %12892 = vmatpush3.bf16.msra.mxu1 %v14835_v32 }
0x20c4   : > { %12893 = vmatprep.subr.bf16.mxu1 %v14839_v27 }
0x20c5   : > { %10636 = vmatpush1.bf16.msra.mxu0 %v14813_v34 }
0x20c6   : > { %10637 = vmatprep.subr.bf16.mxu0 %v14818_v17 }
0x20c7   : > { %12894 = vmatpush3.bf16.msra.mxu1 %v14840_v49 }
0x20c8   : > { %12895 = vmatprep.subr.bf16.mxu1 %v14844_v31  ;;  %v14866_v31 = vld [vmem:[%s16418_s21 + $0x2d0] ss:$12 sps:$4 sm:$0xff]  }
0x20c9   : > { %10638 = vmatpush1.bf16.msra.mxu0 %v14816_v43 }
0x20ca   : > { %10639 = vmatprep.subr.bf16.mxu0 %v14821_v22 }
0x20cb   : > { %12896 = vmatpush3.bf16.msra.mxu1 %v14845_v45 }
0x20cc   : > { %12897 = vmatprep.subr.bf16.mxu1 %v14849_v3 }
0x20cd   : > { %10640 = vmatpush1.bf16.msra.mxu0 %v14819_v30 }
0x20ce   : > { %10641 = vmatprep.subr.bf16.mxu0 %v14824_v46 }
0x20cf   : > { %12898 = vmatpush3.bf16.msra.mxu1 %v14850_v58 }
0x20d0   : > { %12899 = vmatprep.subr.bf16.mxu1 %v14854_v63 }
0x20d1   : > { %10642 = vmatpush1.bf16.msra.mxu0 %v14822_v39 }
0x20d2   : > { %10643 = vmatprep.subr.bf16.mxu0 %v14827_v2 }
0x20d3   : > { %12900 = vmatpush3.bf16.msra.mxu1 %v14855_v48 }
0x20d4   : > { %12901 = vmatprep.subr.bf16.mxu1 %v14859_v9  ;;  %v14871_v9 = vld [vmem:[%s16418_s21 + $0x2e8] ss:$12 sps:$4 sm:$0xff]  }
0x20d5   : > { %10644 = vmatpush1.bf16.msra.mxu0 %v14825_v59 }
0x20d6   : > { %10645 = vmatprep.subr.bf16.mxu0 %v14830_v35 }
0x20d7   : > { %12902 = vmatpush3.bf16.msra.mxu1 %v14860_v61 }
0x20d8   : > { %12903 = vmatprep.subr.bf16.mxu1 %v14864_v26  ;;  %v14878_v26 = vld [vmem:[%s16418_s21 + $0x304] ss:$12 sps:$4 sm:$0xff]  }
0x20d9   : > { %10646 = vmatpush1.bf16.msra.mxu0 %v14828_v15 }
0x20da   : > { %10647 = vmatprep.subr.bf16.mxu0 %v14833_v36 }
0x20db   : > { %12904 = vmatpush3.bf16.msra.mxu1 %v14865_v18  ;;  %v14875_v18 = vld [vmem:[%s16418_s21 + $0x488] ss:$12 sps:$4 sm:$0xff]  }
0x20dc   : > { %12905 = vmatprep.subr.bf16.mxu1 %v14869_v5 }
0x20dd   : > { %10648 = vmatpush1.bf16.msra.mxu0 %v14831_v7  ;;  %v14879_v7 = vld [vmem:[%s16418_s21 + $0x560] ss:$12 sps:$4 sm:$0xff]  }
0x20de   : > { %10649 = vmatprep.subr.bf16.mxu0 %v14838_v37  ;;  %v14876_v37 = vld [vmem:[%s16418_s21 + $0x300] ss:$12 sps:$4 sm:$0xff]  }
0x20df   : > { %12906 = vmatpush3.bf16.msra.mxu1 %v14870_v55  ;;  %v14883_v55 = vld [vmem:[%s16418_s21 + $0x31c] ss:$12 sps:$4 sm:$0xff]  }
0x20e0   : > { %12913 = vmatprep.subr.bf16.mxu1 %v14874_v23  ;;  %v14880_v23 = vld [vmem:[%s16418_s21 + $0x4a0] ss:$12 sps:$4 sm:$0xff]  }
0x20e1   : > { %10650 = vmatpush1.bf16.msra.mxu0 %v14836_v29  ;;  %v14884_v29 = vld [vmem:[%s16418_s21 + $0x578] ss:$12 sps:$4 sm:$0xff]  }
0x20e2   : > { %10651 = vmatprep.subr.bf16.mxu0 %v14843_v16  ;;  %v14881_v16 = vld [vmem:[%s16418_s21 + $0x318] ss:$12 sps:$4 sm:$0xff]  }
0x20e5   : > { %10652 = vmatpush1.bf16.msra.mxu0 %v14841_v44  ;;  %v14888_v44 = vld [vmem:[%s16418_s21 + $0x334] ss:$12 sps:$4 sm:$0xff]  }
0x20e6   : > { %10653 = vmatprep.subr.bf16.mxu0 %v14848_v12  ;;  %v14885_v12 = vld [vmem:[%s16418_s21 + $0x4b8] ss:$12 sps:$4 sm:$0xff]  }
0x20e9   : > { %10654 = vmatpush1.bf16.msra.mxu0 %v14846_v24  ;;  %v14889_v24 = vld [vmem:[%s16418_s21 + $0x590] ss:$12 sps:$4 sm:$0xff]  }
0x20ea   : > { %10655 = vmatprep.subr.bf16.mxu0 %v14853_v60  ;;  %v14886_v60 = vld [vmem:[%s16418_s21 + $0x330] ss:$12 sps:$4 sm:$0xff]  }
0x20ed   : > { %10656 = vmatpush1.bf16.msra.mxu0 %v14851_v38  ;;  %v14890_v38 = vld [vmem:[%s16418_s21 + $0x4d0] ss:$12 sps:$4 sm:$0xff]  }
0x20ee   : > { %10657 = vmatprep.subr.bf16.mxu0 %v14858_v20  ;;  %v14894_v20 = vld [vmem:[%s16418_s21 + $0x5a8] ss:$12 sps:$4 sm:$0xff]  }
0x20f1   : > { %10658 = vmatpush1.bf16.msra.mxu0 %v14856_v0  ;;  %v14891_v0 = vld [vmem:[%s16418_s21 + $0x348] ss:$12 sps:$4 sm:$0xff]  }
0x20f2   : > { %10659 = vmatprep.subr.bf16.mxu0 %v14863_v52  ;;  %v14898_v52 = vld [vmem:[%s16418_s21 + $0x364] ss:$12 sps:$4 sm:$0xff]  }
0x20f3   : > { %v8350_v28 = vpop.f32.mrb[44].mxu0 }
0x20f4   : > { %v13500_v19 = vadd.f32 %v8350_v28, %v6620_v40  ;;  %v8436_v32 = vpop.f32.mrb[56].mxu1  ;;  %v8352_v27 = vpop.f32.mrb[45].mxu0  ;;  %v14901_v28 = vld [vmem:[%s16418_s21 + $0x378] ss:$12 sps:$4 sm:$0xff]  }
0x20f5   : > { %v13504_v34 = vadd.f32 %v8436_v32, %v6628_v10  ;;  %v13501_v17 = vadd.f32 %v8352_v27, %v6624_v57  ;;  %v8438_v49 = vpop.f32.mrb[57].mxu1  ;;  %v8354_v53 = vpop.f32.mrb[46].mxu0  ;;  %10660 = vmatpush1.bf16.msra.mxu0 %v14861_v33  ;;  %v14903_v33 = vld [vmem:[%s16418_s21 + $0x37c] ss:$12 sps:$4 sm:$0xff]   ;;  %v14905_v32 = vld [vmem:[%s16418_s21 + $0x518] ss:$12 sps:$4 sm:$0xff]  }
0x20f6   : > { %v13505_v43 = vadd.f32 %v8438_v49, %v6632_v11  ;;  %v13502_v21 = vadd.f32 %v8354_v53, %v6620_v40  ;;  %v8440_v22 = vpop.f32.mrb[58].mxu1  ;;  %v8356_v50 = vpop.f32.mrb[47].mxu0  ;;  %10661 = vmatprep.subr.bf16.mxu0 %v14868_v25  ;;  %v8621_v30 = vmax.f32 %v13500_v19, 0.0  ;;  %v14895_v40 = vld [vmem:[%s16418_s21 + $0x4e8] ss:$12 sps:$4 sm:$0xff]  }
0x20f7   : > { %v13506_v1 = vadd.f32 %v8440_v22, %v6628_v10  ;;  %v13503_v45 = vadd.f32 %v8356_v50, %v6624_v57  ;;  %v8442_v3 = vpop.f32.mrb[59].mxu1  ;;  %v8623_v63 = vmax.f32 %v13504_v34, 0.0  ;;  %v8622_v39 = vmax.f32 %v13501_v17, 0.0  ;;  %v14899_v10 = vld [vmem:[%s16418_s21 + $0x5c0] ss:$12 sps:$4 sm:$0xff]  }
0x20f8   : > { %v8633_v46 = vmax.f32 %v13502_v21, 0.0  ;;  %v13507_v58 = vadd.f32 %v8442_v3, %v6632_v11  ;;  %v8624_v59 = vmax.f32 %v13505_v43, 0.0  ;;  %v14896_v57 = vld [vmem:[%s16418_s21 + $0x360] ss:$12 sps:$4 sm:$0xff]   ;;  %v14904_v25 = vld [vmem:[%s16418_s21 + $0x5d8] ss:$12 sps:$4 sm:$0xff]  }
0x20f9   : > { %v8635_v2 = vmax.f32 %v13506_v1, 0.0  ;;  %v8634_v48 = vmax.f32 %v13503_v45, 0.0  ;;  %10662 = vmatpush1.bf16.msra.mxu0 %v14866_v31  ;;  %v14900_v11 = vld [vmem:[%s16418_s21 + $0x500] ss:$12 sps:$4 sm:$0xff]   ;;  %v14909_v27 = vld [vmem:[%s16418_s21 + $0x5f0] ss:$12 sps:$4 sm:$0xff]  }
0x20fa   : > { %v17828_v35 = vpack.c.bf16 %v8633_v46, %v8621_v30  ;;  %v8636_v61 = vmax.f32 %v13507_v58, 0.0  ;;  %10663 = vmatprep.subr.bf16.mxu0 %v14873_v54  ;;  %v14908_v19 = vld [vmem:[%s16418_s21 + $0x394] ss:$12 sps:$4 sm:$0xff]   ;;  %v14906_v34 = vld [vmem:[%s16418_s21 + $0x390] ss:$12 sps:$4 sm:$0xff]  }
0x20fb   : > { %v17831_v15 = vpack.c.bf16 %v8635_v2, %v8623_v63  ;;  %v8646_v36 = vpack.c.bf16 %v8634_v48, %v8622_v39  ;;  %v14913_v17 = vld [vmem:[%s16418_s21 + $0x3ac] ss:$12 sps:$4 sm:$0xff]   ;;  %v14910_v49 = vld [vmem:[%s16418_s21 + $0x530] ss:$12 sps:$4 sm:$0xff]   ;;  %v14938_v53 = vld [vmem:[%s16418_s21 + $0x6c8] ss:$12 sps:$4 sm:$0xff]  }
0x20fc   : > { %v17834_v5 = vpack.c.bf16 %v8636_v61, %v8624_v59  ;;  %v14911_v31 = vld [vmem:[%s16418_s21 + $0x3a8] ss:$12 sps:$4 sm:$0xff]   ;;  %v14916_v43 = vld [vmem:[%s16418_s21 + $0x3c4] ss:$12 sps:$4 sm:$0xff]   ;;  %v14943_v22 = vld [vmem:[%s16418_s21 + $0x6e0] ss:$12 sps:$4 sm:$0xff]  }
0x20fd   : > { %10664 = vmatpush1.bf16.msra.mxu0 %v14871_v9  ;;  %10962 = vmatprep.mubr.bf16.mxu1 %v8646_v36  ;;  %v14939_v21 = vld [vmem:[%s16418_s21 + $0x608] ss:$12 sps:$4 sm:$0xff]   ;;  %v14914_v50 = vld [vmem:[%s16418_s21 + $0x3c0] ss:$12 sps:$4 sm:$0xff]   ;;  %v14948_v45 = vld [vmem:[%s16418_s21 + $0x6f8] ss:$12 sps:$4 sm:$0xff]  }
0x20fe   : > { %10963 = vmatmul.mubr.bf16.vlgmr.msra.gmra.mrb[72].mxu1 %v17828_v35  ;;  %10676 = vmatprep.subr.bf16.mxu0 %v14878_v26  ;;  %v14919_v54 = vld [vmem:[%s16418_s21 + $0x3dc] ss:$12 sps:$4 sm:$0xff]   ;;  %v14944_v1 = vld [vmem:[%s16418_s21 + $0x620] ss:$12 sps:$4 sm:$0xff]   ;;  %v14917_v3 = vld [vmem:[%s16418_s21 + $0x3d8] ss:$12 sps:$4 sm:$0xff]  }
0x20ff   : > { %12914 = vmatpush3.bf16.msra.mxu1 %v14875_v18  ;;  %11003 = vmatprep.mubr.bf16.mxu1 %v17834_v5  ;;  %v14922_v30 = vld [vmem:[%s16418_s21 + $0x3f4] ss:$12 sps:$4 sm:$0xff]   ;;  %v14949_v46 = vld [vmem:[%s16418_s21 + $0x638] ss:$12 sps:$4 sm:$0xff]   ;;  %v14953_v58 = vld [vmem:[%s16418_s21 + $0x710] ss:$12 sps:$4 sm:$0xff]  }
0x2100   : > { %10666 = vmatmul.mubr.bf16.vlgmr.msra.gmra.mrb[52].mxu0 %v17725_v13  ;;  %12915 = vmatprep.subr.bf16.mxu1 %v14879_v7  ;;  %v14893_v13 = vld [vmem:[%s16418_s21 + $0x34c] ss:$12 sps:$4 sm:$0xff]   ;;  %v14920_v63 = vld [vmem:[%s16418_s21 + $0x3f0] ss:$12 sps:$4 sm:$0xff]   ;;  %v14958_v48 = vld [vmem:[%s16418_s21 + $0x728] ss:$12 sps:$4 sm:$0xff]  }
0x2101   : > { %10677 = vmatpush1.bf16.msra.mxu0 %v14876_v37  ;;  %10708 = vmatprep.mubr.bf16.mxu0 %v8646_v36  ;;  %v14925_v39 = vld [vmem:[%s16418_s21 + $0x40c] ss:$12 sps:$4 sm:$0xff]   ;;  %v14954_v2 = vld [vmem:[%s16418_s21 + $0x650] ss:$12 sps:$4 sm:$0xff]   ;;  %v14923_v9 = vld [vmem:[%s16418_s21 + $0x408] ss:$12 sps:$4 sm:$0xff]  }
0x2102   : > { %10678 = vmatprep.subr.bf16.mxu0 %v14883_v55  ;;  %v14928_v59 = vld [vmem:[%s16418_s21 + $0x424] ss:$12 sps:$4 sm:$0xff]   ;;  %v14959_v61 = vld [vmem:[%s16418_s21 + $0x668] ss:$12 sps:$4 sm:$0xff]   ;;  %v14963_v26 = vld [vmem:[%s16418_s21 + $0x740] ss:$12 sps:$4 sm:$0xff]  }
0x2103   : > { %12916 = vmatpush3.bf16.msra.mxu1 %v14880_v23  ;;  %v14926_v36 = vld [vmem:[%s16418_s21 + $0x420] ss:$12 sps:$4 sm:$0xff]   ;;  %v14931_v18 = vld [vmem:[%s16418_s21 + $0x43c] ss:$12 sps:$4 sm:$0xff]   ;;  %v14968_v37 = vld [vmem:[%s16418_s21 + $0x758] ss:$12 sps:$4 sm:$0xff]  }
0x2104   : > { %12917 = vmatprep.subr.bf16.mxu1 %v14884_v29  ;;  %v14964_v7 = vld [vmem:[%s16418_s21 + $0x680] ss:$12 sps:$4 sm:$0xff]   ;;  %v14929_v55 = vld [vmem:[%s16418_s21 + $0x438] ss:$12 sps:$4 sm:$0xff]  }
0x2105   : > { %10679 = vmatpush1.bf16.msra.mxu0 %v14881_v16  ;;  %v14934_v23 = vld [vmem:[%s16418_s21 + $0x454] ss:$12 sps:$4 sm:$0xff]   ;;  %v14969_v29 = vld [vmem:[%s16418_s21 + $0x698] ss:$12 sps:$4 sm:$0xff]   ;;  %v14973_v16 = vld [vmem:[%s16418_s21 + $0x770] ss:$12 sps:$4 sm:$0xff]  }
0x2106   : > { %10680 = vmatprep.subr.bf16.mxu0 %v14888_v44  ;;  %v14932_v44 = vld [vmem:[%s16418_s21 + $0x450] ss:$12 sps:$4 sm:$0xff]  }
0x2107   : > { %12918 = vmatpush3.bf16.msra.mxu1 %v14885_v12  ;;  %v14937_v12 = vld [vmem:[%s16418_s21 + $0x46c] ss:$12 sps:$4 sm:$0xff]  }
0x2108   : > { %12919 = vmatprep.subr.bf16.mxu1 %v14889_v24  ;;  %v14974_v24 = vld [vmem:[%s16418_s21 + $0x6b0] ss:$12 sps:$4 sm:$0xff]  }
0x2109   : > { %10681 = vmatpush1.bf16.msra.mxu0 %v14886_v60  ;;  %v14978_v60 = vld [vmem:[%s16418_s21 + $0x848] ss:$12 sps:$4 sm:$0xff]  }
0x210a   : > { %10682 = vmatprep.subr.bf16.mxu0 %v14893_v13  ;;  %v14935_v13 = vld [vmem:[%s16418_s21 + $0x468] ss:$12 sps:$4 sm:$0xff]  }
0x210b   : > { %12920 = vmatpush3.bf16.msra.mxu1 %v14890_v38  ;;  %v14942_v38 = vld [vmem:[%s16418_s21 + $0x484] ss:$12 sps:$4 sm:$0xff]  }
0x210c   : > { %12921 = vmatprep.subr.bf16.mxu1 %v14894_v20  ;;  %v14940_v20 = vld [vmem:[%s16418_s21 + $0x480] ss:$12 sps:$4 sm:$0xff]  }
0x210d   : > { %10683 = vmatpush1.bf16.msra.mxu0 %v14891_v0  ;;  %v14947_v0 = vld [vmem:[%s16418_s21 + $0x49c] ss:$12 sps:$4 sm:$0xff]  }
0x210e   : > { %10684 = vmatprep.subr.bf16.mxu0 %v14898_v52  ;;  %v14945_v52 = vld [vmem:[%s16418_s21 + $0x498] ss:$12 sps:$4 sm:$0xff]  }
0x210f   : > { %12922 = vmatpush3.bf16.msra.mxu1 %v14895_v40  ;;  %v14952_v40 = vld [vmem:[%s16418_s21 + $0x4b4] ss:$12 sps:$4 sm:$0xff]  }
0x2110   : > { %12923 = vmatprep.subr.bf16.mxu1 %v14899_v10  ;;  %v14950_v10 = vld [vmem:[%s16418_s21 + $0x4b0] ss:$12 sps:$4 sm:$0xff]  }
0x2111   : > { %10685 = vmatpush1.bf16.msra.mxu0 %v14896_v57  ;;  %v14957_v57 = vld [vmem:[%s16418_s21 + $0x4cc] ss:$12 sps:$4 sm:$0xff]  }
0x2112   : > { %10686 = vmatprep.subr.bf16.mxu0 %v14903_v33  ;;  %v14955_v33 = vld [vmem:[%s16418_s21 + $0x4c8] ss:$12 sps:$4 sm:$0xff]  }
0x2113   : > { %12924 = vmatpush3.bf16.msra.mxu1 %v14900_v11  ;;  %v14962_v11 = vld [vmem:[%s16418_s21 + $0x4e4] ss:$12 sps:$4 sm:$0xff]  }
0x2114   : > { %12925 = vmatprep.subr.bf16.mxu1 %v14904_v25  ;;  %v6598_v25 = vld [vmem:[%s16415_s20 + $0x8] sm:$0xf] }
0x2115   : > { %10687 = vmatpush1.bf16.msra.mxu0 %v14901_v28  ;;  %v14967_v28 = vld [vmem:[%s16418_s21 + $0x4fc] ss:$12 sps:$4 sm:$0xff]  }
0x2116   : > { %10688 = vmatprep.subr.bf16.mxu0 %v14908_v19  ;;  %v6644_v19 = vrot.slane %v6598_v25, %v16983_v14 }
0x2117   : > { %12926 = vmatpush3.bf16.msra.mxu1 %v14905_v32  ;;  %v6640_v32 = vrot.slane %v6598_v25, %v16661_v56 }
0x2118   : > { %12927 = vmatprep.subr.bf16.mxu1 %v14909_v27  ;;  %v14965_v27 = vld [vmem:[%s16418_s21 + $0x4f8] ss:$12 sps:$4 sm:$0xff]  }
0x2119   : > { %10689 = vmatpush1.bf16.msra.mxu0 %v14906_v34  ;;  %v6648_v34 = vrot.slane %v6598_v25, %v16722_v41  ;;  %v14977_v41 = vld [vmem:[%s16418_s21 + $0x52c] ss:$12 sps:$4 sm:$0xff]  }
0x211a   : > { %10690 = vmatprep.subr.bf16.mxu0 %v14913_v17  ;;  %v14972_v17 = vld [vmem:[%s16418_s21 + $0x514] ss:$12 sps:$4 sm:$0xff]  }
0x211b   : > { %12928 = vmatpush3.bf16.msra.mxu1 %v14910_v49 }
0x211c   : > { %12935 = vmatprep.subr.bf16.mxu1 %v14938_v53 }
0x211d   : > { %10691 = vmatpush1.bf16.msra.mxu0 %v14911_v31 }
0x211e   : > { %11004 = vmatmul.mubr.bf16.vlgmr.msra.gmra.mrb[76].mxu1 %v17831_v15  ;;  %10692 = vmatprep.subr.bf16.mxu0 %v14916_v43 }
0x211f   : > { %12936 = vmatpush3.bf16.msra.mxu1 %v14939_v21 }
0x2120   : > { %12937 = vmatprep.subr.bf16.mxu1 %v14943_v22 }
0x2121   : > { %10693 = vmatpush1.bf16.msra.mxu0 %v14914_v50 }
0x2122   : > { %10694 = vmatprep.subr.bf16.mxu0 %v14919_v54 }
0x2123   : > { %12938 = vmatpush3.bf16.msra.mxu1 %v14944_v1  ;;  %v14970_v1 = vld [vmem:[%s16418_s21 + $0x510] ss:$12 sps:$4 sm:$0xff]  }
0x2124   : > { %12939 = vmatprep.subr.bf16.mxu1 %v14948_v45 }
0x2125   : > { %10695 = vmatpush1.bf16.msra.mxu0 %v14917_v3 }
0x2126   : > { %10696 = vmatprep.subr.bf16.mxu0 %v14922_v30 }
0x2127   : > { %12940 = vmatpush3.bf16.msra.mxu1 %v14949_v46 }
0x2128   : > { %12941 = vmatprep.subr.bf16.mxu1 %v14953_v58 }
0x2129   : > { %10697 = vmatpush1.bf16.msra.mxu0 %v14920_v63 }
0x212a   : > { %10698 = vmatprep.subr.bf16.mxu0 %v14925_v39 }
0x212b   : > { %12942 = vmatpush3.bf16.msra.mxu1 %v14954_v2 }
0x212c   : > { %12943 = vmatprep.subr.bf16.mxu1 %v14958_v48 }
0x212d   : > { %10699 = vmatpush1.bf16.msra.mxu0 %v14923_v9 }
0x212e   : > { %10700 = vmatprep.subr.bf16.mxu0 %v14928_v59 }
0x212f   : > { %12944 = vmatpush3.bf16.msra.mxu1 %v14959_v61 }
0x2130   : > { %12945 = vmatprep.subr.bf16.mxu1 %v14963_v26 }
0x2131   : > { %10701 = vmatpush1.bf16.msra.mxu0 %v14926_v36 }
0x2132   : > { %10702 = vmatprep.subr.bf16.mxu0 %v14931_v18  ;;  %v14975_v18 = vld [vmem:[%s16418_s21 + $0x528] ss:$12 sps:$4 sm:$0xff]  }
0x2133   : > { %12946 = vmatpush3.bf16.msra.mxu1 %v14964_v7 }
0x2134   : > { %12947 = vmatprep.subr.bf16.mxu1 %v14968_v37 }
0x2135   : > { %10703 = vmatpush1.bf16.msra.mxu0 %v14929_v55 }
0x2136   : > { %10704 = vmatprep.subr.bf16.mxu0 %v14934_v23  ;;  %v14982_v23 = vld [vmem:[%s16418_s21 + $0x544] ss:$12 sps:$4 sm:$0xff]  }
0x2137   : > { %12948 = vmatpush3.bf16.msra.mxu1 %v14969_v29 }
0x2138   : > { %12949 = vmatprep.subr.bf16.mxu1 %v14973_v16 }
0x2139   : > { %10705 = vmatpush1.bf16.msra.mxu0 %v14932_v44  ;;  %v14979_v44 = vld [vmem:[%s16418_s21 + $0x788] ss:$12 sps:$4 sm:$0xff]  }
0x213a   : > { %10706 = vmatprep.subr.bf16.mxu0 %v14937_v12 }
0x213b   : > { %12950 = vmatpush3.bf16.msra.mxu1 %v14974_v24  ;;  %v14983_v24 = vld [vmem:[%s16418_s21 + $0x860] ss:$12 sps:$4 sm:$0xff]  }
0x213c   : > { %12957 = vmatprep.subr.bf16.mxu1 %v14978_v60  ;;  %v14980_v60 = vld [vmem:[%s16418_s21 + $0x540] ss:$12 sps:$4 sm:$0xff]  }
0x213d   : > { %10707 = vmatpush1.bf16.msra.mxu0 %v14935_v13  ;;  %v14987_v13 = vld [vmem:[%s16418_s21 + $0x55c] ss:$12 sps:$4 sm:$0xff]  }
0x213e   : > { %10719 = vmatprep.subr.bf16.mxu0 %v14942_v38  ;;  %v14984_v38 = vld [vmem:[%s16418_s21 + $0x7a0] ss:$12 sps:$4 sm:$0xff]  }
0x2140   : > { %10709 = vmatmul.mubr.bf16.vlgmr.msra.gmra.mrb[52].mxu0 %v17828_v35  ;;  %v14960_v35 = vld [vmem:[%s16418_s21 + $0x4e0] ss:$12 sps:$4 sm:$0xff]  }
0x2141   : > { %10720 = vmatpush1.bf16.msra.mxu0 %v14940_v20  ;;  %10751 = vmatprep.mubr.bf16.mxu0 %v17834_v5  ;;  %v6636_v5 = vrot.slane %v6598_v25, %v16651_v51  ;;  %v14988_v20 = vld [vmem:[%s16418_s21 + $0x878] ss:$12 sps:$4 sm:$0xff]   ;;  %v14995_v25 = vld [vmem:[%s16418_s21 + $0x588] ss:$12 sps:$4 sm:$0xff]  }
0x2142   : > { %10721 = vmatprep.subr.bf16.mxu0 %v14947_v0  ;;  %v14985_v0 = vld [vmem:[%s16418_s21 + $0x558] ss:$12 sps:$4 sm:$0xff]  }
0x2145   : > { %10722 = vmatpush1.bf16.msra.mxu0 %v14945_v52  ;;  %v14992_v52 = vld [vmem:[%s16418_s21 + $0x574] ss:$12 sps:$4 sm:$0xff]  }
0x2146   : > { %10723 = vmatprep.subr.bf16.mxu0 %v14952_v40  ;;  %v14989_v40 = vld [vmem:[%s16418_s21 + $0x7b8] ss:$12 sps:$4 sm:$0xff]  }
0x2149   : > { %10724 = vmatpush1.bf16.msra.mxu0 %v14950_v10  ;;  %v14993_v10 = vld [vmem:[%s16418_s21 + $0x890] ss:$12 sps:$4 sm:$0xff]  }
0x214a   : > { %10725 = vmatprep.subr.bf16.mxu0 %v14957_v57  ;;  %v14990_v57 = vld [vmem:[%s16418_s21 + $0x570] ss:$12 sps:$4 sm:$0xff]  }
0x214d   : > { %10726 = vmatpush1.bf16.msra.mxu0 %v14955_v33  ;;  %v14997_v33 = vld [vmem:[%s16418_s21 + $0x58c] ss:$12 sps:$4 sm:$0xff]  }
0x214e   : > { %10727 = vmatprep.subr.bf16.mxu0 %v14962_v11  ;;  %v14994_v11 = vld [vmem:[%s16418_s21 + $0x7d0] ss:$12 sps:$4 sm:$0xff]  }
0x2151   : > { %10728 = vmatpush1.bf16.msra.mxu0 %v14960_v35  ;;  %v14998_v35 = vld [vmem:[%s16418_s21 + $0x8a8] ss:$12 sps:$4 sm:$0xff]  }
0x2152   : > { %10729 = vmatprep.subr.bf16.mxu0 %v14967_v28  ;;  %v15002_v28 = vld [vmem:[%s16418_s21 + $0x5a4] ss:$12 sps:$4 sm:$0xff]  }
0x2153   : > { %v8522_v49 = vpop.f32.mrb[48].mxu0 }
0x2154   : > { %v13508_v53 = vadd.f32 %v8522_v49, %v6636_v5  ;;  %v8608_v31 = vpop.f32.mrb[60].mxu1  ;;  %v8524_v43 = vpop.f32.mrb[49].mxu0  ;;  %v15005_v49 = vld [vmem:[%s16418_s21 + $0x5b8] ss:$12 sps:$4 sm:$0xff]  }
0x2155   : > { %v13512_v21 = vadd.f32 %v8608_v31, %v6644_v19  ;;  %v13509_v22 = vadd.f32 %v8524_v43, %v6640_v32  ;;  %v8610_v50 = vpop.f32.mrb[61].mxu1  ;;  %v8526_v54 = vpop.f32.mrb[50].mxu0  ;;  %10730 = vmatpush1.bf16.msra.mxu0 %v14965_v27  ;;  %v15007_v27 = vld [vmem:[%s16418_s21 + $0x5bc] ss:$12 sps:$4 sm:$0xff]   ;;  %v15009_v31 = vld [vmem:[%s16418_s21 + $0x818] ss:$12 sps:$4 sm:$0xff]  }
0x2156   : > { %v13513_v45 = vadd.f32 %v8610_v50, %v6648_v34  ;;  %v13510_v3 = vadd.f32 %v8526_v54, %v6636_v5  ;;  %v8612_v30 = vpop.f32.mrb[62].mxu1  ;;  %v8528_v46 = vpop.f32.mrb[51].mxu0  ;;  %10731 = vmatprep.subr.bf16.mxu0 %v14972_v17  ;;  %v8625_v2 = vmax.f32 %v13508_v53, 0.0  ;;  %v14999_v5 = vld [vmem:[%s16418_s21 + $0x7e8] ss:$12 sps:$4 sm:$0xff]  }
0x2157   : > { %v13514_v58 = vadd.f32 %v8612_v30, %v6644_v19  ;;  %v13511_v63 = vadd.f32 %v8528_v46, %v6640_v32  ;;  %v8614_v39 = vpop.f32.mrb[63].mxu1  ;;  %v8627_v59 = vmax.f32 %v13512_v21, 0.0  ;;  %v8626_v61 = vmax.f32 %v13509_v22, 0.0  ;;  %v15003_v19 = vld [vmem:[%s16418_s21 + $0x8c0] ss:$12 sps:$4 sm:$0xff]  }
0x2158   : > { %v8637_v48 = vmax.f32 %v13510_v3, 0.0  ;;  %v13515_v9 = vadd.f32 %v8614_v39, %v6648_v34  ;;  %v8628_v7 = vmax.f32 %v13513_v45, 0.0  ;;  %v15000_v32 = vld [vmem:[%s16418_s21 + $0x5a0] ss:$12 sps:$4 sm:$0xff]   ;;  %v15008_v17 = vld [vmem:[%s16418_s21 + $0x8d8] ss:$12 sps:$4 sm:$0xff]  }
0x2159   : > { %v8639_v26 = vmax.f32 %v13514_v58, 0.0  ;;  %v8638_v36 = vmax.f32 %v13511_v63, 0.0  ;;  %10732 = vmatpush1.bf16.msra.mxu0 %v14970_v1  ;;  %v15004_v34 = vld [vmem:[%s16418_s21 + $0x800] ss:$12 sps:$4 sm:$0xff]   ;;  %v15013_v21 = vld [vmem:[%s16418_s21 + $0x8f0] ss:$12 sps:$4 sm:$0xff]  }
0x215a   : > { %v17925_v37 = vpack.c.bf16 %v8637_v48, %v8625_v2  ;;  %v8640_v55 = vmax.f32 %v13515_v9, 0.0  ;;  %10733 = vmatprep.subr.bf16.mxu0 %v14977_v41  ;;  %v15012_v53 = vld [vmem:[%s16418_s21 + $0x5d4] ss:$12 sps:$4 sm:$0xff]   ;;  %v15010_v50 = vld [vmem:[%s16418_s21 + $0x5d0] ss:$12 sps:$4 sm:$0xff]  }
0x215b   : > { %v17928_v29 = vpack.c.bf16 %v8639_v26, %v8627_v59  ;;  %v17930_v16 = vpack.c.bf16 %v8638_v36, %v8626_v61  ;;  %v15017_v45 = vld [vmem:[%s16418_s21 + $0x5ec] ss:$12 sps:$4 sm:$0xff]   ;;  %v15014_v30 = vld [vmem:[%s16418_s21 + $0x830] ss:$12 sps:$4 sm:$0xff]   ;;  %v15015_v41 = vld [vmem:[%s16418_s21 + $0x5e8] ss:$12 sps:$4 sm:$0xff]  }
0x215c   : > { %v17933_v12 = vpack.c.bf16 %v8640_v55, %v8628_v7  ;;  %v15020_v58 = vld [vmem:[%s16418_s21 + $0x604] ss:$12 sps:$4 sm:$0xff]   ;;  %v15018_v63 = vld [vmem:[%s16418_s21 + $0x600] ss:$12 sps:$4 sm:$0xff]   ;;  %v15023_v39 = vld [vmem:[%s16418_s21 + $0x61c] ss:$12 sps:$4 sm:$0xff]  }
0x215d   : > { %10734 = vmatpush1.bf16.msra.mxu0 %v14975_v18  ;;  %11044 = vmatprep.mubr.bf16.mxu1 %v17930_v16  ;;  %v15021_v2 = vld [vmem:[%s16418_s21 + $0x618] ss:$12 sps:$4 sm:$0xff]   ;;  %v15026_v48 = vld [vmem:[%s16418_s21 + $0x634] ss:$12 sps:$4 sm:$0xff]   ;;  %v15024_v9 = vld [vmem:[%s16418_s21 + $0x630] ss:$12 sps:$4 sm:$0xff]  }
0x215e   : > { %11045 = vmatmul.mubr.bf16.vlgmr.msra.gmra.mrb[80].mxu1 %v17925_v37  ;;  %10735 = vmatprep.subr.bf16.mxu0 %v14982_v23  ;;  %v15029_v59 = vld [vmem:[%s16418_s21 + $0x64c] ss:$12 sps:$4 sm:$0xff]   ;;  %v15027_v61 = vld [vmem:[%s16418_s21 + $0x648] ss:$12 sps:$4 sm:$0xff]   ;;  %v15032_v26 = vld [vmem:[%s16418_s21 + $0x664] ss:$12 sps:$4 sm:$0xff]  }
0x215f   : > { %12958 = vmatpush3.bf16.msra.mxu1 %v14979_v44  ;;  %11085 = vmatprep.mubr.bf16.mxu1 %v17933_v12  ;;  %v15035_v36 = vld [vmem:[%s16418_s21 + $0x67c] ss:$12 sps:$4 sm:$0xff]   ;;  %v17983_v18 = vld [vmem:[%s933_s13] sm:$0x7]  ;;  %s18390_s13 = smov (!%p12683_p7), %s18389_s1 }
0x2160   : > { %12959 = vmatprep.subr.bf16.mxu1 %v14983_v24  ;;  %v15033_v7 = vld [vmem:[%s16418_s21 + $0x678] ss:$12 sps:$4 sm:$0xff]   ;;  %v9050_v55 = vrot.slane %v17983_v18, %v16983_v14  ;;  %v15038_v23 = vld [vmem:[%s16418_s21 + $0x694] ss:$12 sps:$4 sm:$0xff]   ;;  %v15036_v24 = vld [vmem:[%s16418_s21 + $0x690] ss:$12 sps:$4 sm:$0xff]  }
0x2161   : > { %10736 = vmatpush1.bf16.msra.mxu0 %v14980_v60 }
0x2162   : > { %10737 = vmatprep.subr.bf16.mxu0 %v14987_v13 }
0x2163   : > { %12960 = vmatpush3.bf16.msra.mxu1 %v14984_v38 }
0x2164   : > { %12961 = vmatprep.subr.bf16.mxu1 %v14988_v20  ;;  %v15041_v20 = vld [vmem:[%s16418_s21 + $0x6ac] ss:$12 sps:$4 sm:$0xff]  }
0x2165   : > { %10738 = vmatpush1.bf16.msra.mxu0 %v14985_v0 }
0x2166   : > { %10739 = vmatprep.subr.bf16.mxu0 %v14992_v52 }
0x2167   : > { %12962 = vmatpush3.bf16.msra.mxu1 %v14989_v40 }
0x2168   : > { %12963 = vmatprep.subr.bf16.mxu1 %v14993_v10 }
0x2169   : > { %10740 = vmatpush1.bf16.msra.mxu0 %v14990_v57  ;;  %v15039_v57 = vld [vmem:[%s16418_s21 + $0x6a8] ss:$12 sps:$4 sm:$0xff]  }
0x216a   : > { %10741 = vmatprep.subr.bf16.mxu0 %v14997_v33 }
0x216b   : > { %12964 = vmatpush3.bf16.msra.mxu1 %v14994_v11  ;;  %v15044_v11 = vld [vmem:[%s16418_s21 + $0x6c4] ss:$12 sps:$4 sm:$0xff]  }
0x216c   : > { %12965 = vmatprep.subr.bf16.mxu1 %v14998_v35  ;;  %v15042_v35 = vld [vmem:[%s16418_s21 + $0x6c0] ss:$12 sps:$4 sm:$0xff]  }
0x216d   : > { %10742 = vmatpush1.bf16.msra.mxu0 %v14995_v25  ;;  %v15047_v25 = vld [vmem:[%s16418_s21 + $0x6dc] ss:$12 sps:$4 sm:$0xff]  }
0x216e   : > { %10743 = vmatprep.subr.bf16.mxu0 %v15002_v28  ;;  %v15045_v28 = vld [vmem:[%s16418_s21 + $0x6d8] ss:$12 sps:$4 sm:$0xff]  }
0x216f   : > { %12966 = vmatpush3.bf16.msra.mxu1 %v14999_v5  ;;  %v15050_v5 = vld [vmem:[%s16418_s21 + $0x6f4] ss:$12 sps:$4 sm:$0xff]  }
0x2170   : > { %12967 = vmatprep.subr.bf16.mxu1 %v15003_v19  ;;  %v15048_v19 = vld [vmem:[%s16418_s21 + $0x6f0] ss:$12 sps:$4 sm:$0xff]  }
0x2171   : > { %10744 = vmatpush1.bf16.msra.mxu0 %v15000_v32  ;;  %v15053_v32 = vld [vmem:[%s16418_s21 + $0x70c] ss:$12 sps:$4 sm:$0xff]  }
0x2172   : > { %10745 = vmatprep.subr.bf16.mxu0 %v15007_v27  ;;  %v15051_v27 = vld [vmem:[%s16418_s21 + $0x708] ss:$12 sps:$4 sm:$0xff]  }
0x2173   : > { %12968 = vmatpush3.bf16.msra.mxu1 %v15004_v34  ;;  %v15056_v34 = vld [vmem:[%s16418_s21 + $0x724] ss:$12 sps:$4 sm:$0xff]  }
0x2174   : > { %v12863_v43 = vpop.f32.mrb[64].mxu1  ;;  %12969 = vmatprep.subr.bf16.mxu1 %v15008_v17  ;;  %v15054_v17 = vld [vmem:[%s16418_s21 + $0x720] ss:$12 sps:$4 sm:$0xff]  }
0x2175   : > { %v12864_v22 = vpop.f32.mrb[65].mxu1  ;;  %10746 = vmatpush1.bf16.msra.mxu0 %v15005_v49  ;;  %v15059_v49 = vld [vmem:[%s16418_s21 + $0x73c] ss:$12 sps:$4 sm:$0xff]  }
0x2176   : > { %v12865_v54 = vadd.f32 %v12864_v22, %v12863_v43  ;;  %v12866_v1 = vpop.f32.mrb[66].mxu1  ;;  %10747 = vmatprep.subr.bf16.mxu0 %v15012_v53  ;;  %v15057_v53 = vld [vmem:[%s16418_s21 + $0x738] ss:$12 sps:$4 sm:$0xff]   ;;  %v15060_v43 = vld [vmem:[%s16418_s21 + $0x750] ss:$12 sps:$4 sm:$0xff]  }
0x2177   : > { %v12867_v3 = vpop.f32.mrb[67].mxu1  ;;  %12970 = vmatpush3.bf16.msra.mxu1 %v15009_v31  ;;  %v15062_v31 = vld [vmem:[%s16418_s21 + $0x754] ss:$12 sps:$4 sm:$0xff]  }
0x2178   : > { %v12868_v46 = vadd.f32 %v12867_v3, %v12866_v1  ;;  %12971 = vmatprep.subr.bf16.mxu1 %v15013_v21  ;;  %v10883_v60 = vadd.f32 %v12865_v54, %v9050_v55  ;;  %v15065_v21 = vld [vmem:[%s16418_s21 + $0x76c] ss:$12 sps:$4 sm:$0xff]   ;;  %v15063_v22 = vld [vmem:[%s16418_s21 + $0x768] ss:$12 sps:$4 sm:$0xff]  }
0x2179   : > { %10748 = vmatpush1.bf16.msra.mxu0 %v15010_v50  ;;  %v15068_v50 = vld [vmem:[%s16418_s21 + $0x784] ss:$12 sps:$4 sm:$0xff]   ;;  %v15066_v54 = vld [vmem:[%s16418_s21 + $0x780] ss:$12 sps:$4 sm:$0xff]   ;;  %v15071_v1 = vld [vmem:[%s16418_s21 + $0x79c] ss:$12 sps:$4 sm:$0xff]  }
0x217a   : > { %10749 = vmatprep.subr.bf16.mxu0 %v15017_v45  ;;  %v10886_v52 = vadd.f32 %v12868_v46, %v9050_v55  ;;  %v15069_v45 = vld [vmem:[%s16418_s21 + $0x798] ss:$12 sps:$4 sm:$0xff]   ;;  %v15074_v3 = vld [vmem:[%s16418_s21 + $0x7b4] ss:$12 sps:$4 sm:$0xff]  }
0x217b   : > { %12972 = vmatpush3.bf16.msra.mxu1 %v15014_v30  ;;  %v15072_v30 = vld [vmem:[%s16418_s21 + $0x7b0] ss:$12 sps:$4 sm:$0xff]   ;;  %v15077_v46 = vld [vmem:[%s16418_s21 + $0x7cc] ss:$12 sps:$4 sm:$0xff]  }
0x217d   : > { %10750 = vmatpush1.bf16.msra.mxu0 %v15015_v41  ;;  %v15075_v41 = vld [vmem:[%s16418_s21 + $0x7c8] ss:$12 sps:$4 sm:$0xff]  }
0x217e   : > { %11086 = vmatmul.mubr.bf16.vlgmr.msra.gmra.mrb[84].mxu1 %v17928_v29  ;;  %10762 = vmatprep.subr.bf16.mxu0 %v15020_v58  ;;  %v15080_v58 = vld [vmem:[%s16418_s21 + $0x7e4] ss:$12 sps:$4 sm:$0xff]  }
0x2180   : > { %10752 = vmatmul.mubr.bf16.vlgmr.msra.gmra.mrb[52].mxu0 %v17831_v15  ;;  %v15030_v15 = vld [vmem:[%s16418_s21 + $0x660] ss:$12 sps:$4 sm:$0xff]  }
0x2181   : > { %10763 = vmatpush1.bf16.msra.mxu0 %v15018_v63  ;;  %10794 = vmatprep.mubr.bf16.mxu0 %v17930_v16  ;;  %v15083_v63 = vld [vmem:[%s16418_s21 + $0x7fc] ss:$12 sps:$4 sm:$0xff]  }
0x2182   : > { %10764 = vmatprep.subr.bf16.mxu0 %v15023_v39  ;;  %v15081_v39 = vld [vmem:[%s16418_s21 + $0x7f8] ss:$12 sps:$4 sm:$0xff]  }
0x2185   : > { %10765 = vmatpush1.bf16.msra.mxu0 %v15021_v2 }
0x2186   : > { %10766 = vmatprep.subr.bf16.mxu0 %v15026_v48  ;;  %v15086_v48 = vld [vmem:[%s16418_s21 + $0x814] ss:$12 sps:$4 sm:$0xff]  }
0x2189   : > { %10767 = vmatpush1.bf16.msra.mxu0 %v15024_v9 }
0x218a   : > { %10768 = vmatprep.subr.bf16.mxu0 %v15029_v59 }
0x218d   : > { %10769 = vmatpush1.bf16.msra.mxu0 %v15027_v61 }
0x218e   : > { %10770 = vmatprep.subr.bf16.mxu0 %v15032_v26 }
0x2191   : > { %10771 = vmatpush1.bf16.msra.mxu0 %v15030_v15 }
0x2192   : > { %10772 = vmatprep.subr.bf16.mxu0 %v15035_v36  ;;  %v15084_v36 = vld [vmem:[%s16418_s21 + $0x810] ss:$12 sps:$4 sm:$0xff]  }
0x2194   : > { %v12885_v16 = vpop.f32.mrb[68].mxu1 }
0x2195   : > { %v12886_v44 = vpop.f32.mrb[69].mxu1  ;;  %10773 = vmatpush1.bf16.msra.mxu0 %v15033_v7  ;;  %v15089_v7 = vld [vmem:[%s16418_s21 + $0x82c] ss:$12 sps:$4 sm:$0xff]  }
0x2196   : > { %v12887_v13 = vadd.f32 %v12886_v44, %v12885_v16  ;;  %v12888_v38 = vpop.f32.mrb[70].mxu1  ;;  %10774 = vmatprep.subr.bf16.mxu0 %v15038_v23  ;;  %v15087_v23 = vld [vmem:[%s16418_s21 + $0x828] ss:$12 sps:$4 sm:$0xff]   ;;  %v15092_v16 = vld [vmem:[%s16418_s21 + $0x844] ss:$12 sps:$4 sm:$0xff]  }
0x2197   : > { %v12889_v0 = vpop.f32.mrb[71].mxu1  ;;  %v15090_v44 = vld [vmem:[%s16418_s21 + $0x840] ss:$12 sps:$4 sm:$0xff]  }
0x2198   : > { %v17991_v40 = vadd.f32 %v12887_v13, %v10883_v60  ;;  %v12890_v10 = vadd.f32 %v12889_v0, %v12888_v38  ;;  %v15093_v60 = vld [vmem:[%s16418_s21 + $0x858] ss:$12 sps:$4 sm:$0xff]   ;;  %v15098_v13 = vld [vmem:[%s16418_s21 + $0x874] ss:$12 sps:$4 sm:$0xff]   ;;  %v15096_v38 = vld [vmem:[%s16418_s21 + $0x870] ss:$12 sps:$4 sm:$0xff]  }
0x2199   : > { %10775 = vmatpush1.bf16.msra.mxu0 %v15036_v24  ;;  %v15095_v24 = vld [vmem:[%s16418_s21 + $0x85c] ss:$12 sps:$4 sm:$0xff]  }
0x219a   : > { %v17994_v33 = vadd.f32 %v12890_v10, %v10886_v52  ;;  %10776 = vmatprep.subr.bf16.mxu0 %v15041_v20  ;;  %v15101_v20 = vld [vmem:[%s16418_s21 + $0x88c] ss:$12 sps:$4 sm:$0xff]   ;;  %v15099_v0 = vld [vmem:[%s16418_s21 + $0x888] ss:$12 sps:$4 sm:$0xff]   ;;  %v15104_v52 = vld [vmem:[%s16418_s21 + $0x8a4] ss:$12 sps:$4 sm:$0xff]  }
0x219b   : > { %v15107_v10 = vld [vmem:[%s16418_s21 + $0x8bc] ss:$12 sps:$4 sm:$0xff]  }
0x219d   : > { %10777 = vmatpush1.bf16.msra.mxu0 %v15039_v57 }
0x219e   : > { %10778 = vmatprep.subr.bf16.mxu0 %v15044_v11 }
0x21a1   : > { %10779 = vmatpush1.bf16.msra.mxu0 %v15042_v35  ;;  %v15110_v35 = vld [vmem:[%s16418_s21 + $0x8d4] ss:$12 sps:$4 sm:$0xff]  }
0x21a2   : > { %10780 = vmatprep.subr.bf16.mxu0 %v15047_v25 }
0x21a5   : > { %10781 = vmatpush1.bf16.msra.mxu0 %v15045_v28 }
0x21a6   : > { %10782 = vmatprep.subr.bf16.mxu0 %v15050_v5 }
0x21a9   : > { %10783 = vmatpush1.bf16.msra.mxu0 %v15048_v19 }
0x21aa   : > { %10784 = vmatprep.subr.bf16.mxu0 %v15053_v32 }
0x21ad   : > { %10785 = vmatpush1.bf16.msra.mxu0 %v15051_v27  ;;  %v15108_v27 = vld [vmem:[%s16418_s21 + $0x8d0] ss:$12 sps:$4 sm:$0xff]  }
0x21ae   : > { %10786 = vmatprep.subr.bf16.mxu0 %v15056_v34  ;;  %v15113_v34 = vld [vmem:[%s16418_s21 + $0x8ec] ss:$12 sps:$4 sm:$0xff]  }
0x21b1   : > { %10787 = vmatpush1.bf16.msra.mxu0 %v15054_v17 }
0x21b2   : > { %10788 = vmatprep.subr.bf16.mxu0 %v15059_v49  ;;  %v15111_v49 = vld [vmem:[%s16418_s21 + $0x8e8] ss:$12 sps:$4 sm:$0xff]  }
0x21b5   : > { %10789 = vmatpush1.bf16.msra.mxu0 %v15057_v53 }
0x21b6   : > { %10790 = vmatprep.subr.bf16.mxu0 %v15062_v31 }
0x21b9   : > { %10791 = vmatpush1.bf16.msra.mxu0 %v15060_v43 }
0x21ba   : > { %10792 = vmatprep.subr.bf16.mxu0 %v15065_v21 }
0x21bd   : > { %10793 = vmatpush1.bf16.msra.mxu0 %v15063_v22 }
0x21be   : > { %10805 = vmatprep.subr.bf16.mxu0 %v15068_v50 }
0x21c0   : > { %10795 = vmatmul.mubr.bf16.vlgmr.msra.gmra.mrb[52].mxu0 %v17925_v37  ;;  %v15078_v37 = vld [vmem:[%s16418_s21 + $0x7e0] ss:$12 sps:$4 sm:$0xff]  }
0x21c1   : > { %10806 = vmatpush1.bf16.msra.mxu0 %v15066_v54  ;;  %10837 = vmatprep.mubr.bf16.mxu0 %v17933_v12 }
0x21c2   : > { %10807 = vmatprep.subr.bf16.mxu0 %v15071_v1 }
0x21c5   : > { %10808 = vmatpush1.bf16.msra.mxu0 %v15069_v45 }
0x21c6   : > { %10809 = vmatprep.subr.bf16.mxu0 %v15074_v3 }
0x21c9   : > { %10810 = vmatpush1.bf16.msra.mxu0 %v15072_v30 }
0x21ca   : > { %10811 = vmatprep.subr.bf16.mxu0 %v15077_v46 }
0x21cd   : > { %10812 = vmatpush1.bf16.msra.mxu0 %v15075_v41 }
0x21ce   : > { %10813 = vmatprep.subr.bf16.mxu0 %v15080_v58 }
0x21d1   : > { %10814 = vmatpush1.bf16.msra.mxu0 %v15078_v37  ;;  %v12907_v12 = vpop.f32.mrb[72].mxu1 }
0x21d2   : > { %v12908_v2 = vpop.f32.mrb[73].mxu1  ;;  %10815 = vmatprep.subr.bf16.mxu0 %v15083_v63 }
0x21d3   : > { %v12909_v9 = vadd.f32 %v12908_v2, %v12907_v12  ;;  %v12910_v59 = vpop.f32.mrb[74].mxu1  ;;  %v9042_v12 = vrot.slane %v17983_v18, %v16651_v51 }
0x21d4   : > { %v12911_v61 = vpop.f32.mrb[75].mxu1 }
0x21d5   : > { %v10965_v26 = vadd.f32 %v12909_v9, %v17991_v40  ;;  %v12912_v15 = vadd.f32 %v12911_v61, %v12910_v59  ;;  %10816 = vmatpush1.bf16.msra.mxu0 %v15081_v39  ;;  %v15102_v40 = vld [vmem:[%s16418_s21 + $0x8a0] ss:$12 sps:$4 sm:$0xff]  }
0x21d6   : > { %10817 = vmatprep.subr.bf16.mxu0 %v15086_v48 }
0x21d7   : > { %v10968_v55 = vadd.f32 %v12912_v15, %v17994_v33  ;;  %v15105_v33 = vld [vmem:[%s16418_s21 + $0x8b8] ss:$12 sps:$4 sm:$0xff]  }
0x21d9   : > { %10818 = vmatpush1.bf16.msra.mxu0 %v15084_v36 }
0x21da   : > { %10819 = vmatprep.subr.bf16.mxu0 %v15089_v7 }
0x21dd   : > { %10820 = vmatpush1.bf16.msra.mxu0 %v15087_v23 }
0x21de   : > { %10821 = vmatprep.subr.bf16.mxu0 %v15092_v16 }
0x21e1   : > { %10822 = vmatpush1.bf16.msra.mxu0 %v15090_v44 }
0x21e2   : > { %10823 = vmatprep.subr.bf16.mxu0 %v15095_v24 }
0x21e5   : > { %10824 = vmatpush1.bf16.msra.mxu0 %v15093_v60 }
0x21e6   : > { %10825 = vmatprep.subr.bf16.mxu0 %v15098_v13 }
0x21e9   : > { %10826 = vmatpush1.bf16.msra.mxu0 %v15096_v38 }
0x21ea   : > { %10827 = vmatprep.subr.bf16.mxu0 %v15101_v20 }
0x21ed   : > { %10828 = vmatpush1.bf16.msra.mxu0 %v15099_v0 }
0x21ee   : > { %10829 = vmatprep.subr.bf16.mxu0 %v15104_v52 }
0x21f1   : > { %v12929_v57 = vpop.f32.mrb[76].mxu1  ;;  %10830 = vmatpush1.bf16.msra.mxu0 %v15102_v40 }
0x21f2   : > { %v12930_v11 = vpop.f32.mrb[77].mxu1  ;;  %10831 = vmatprep.subr.bf16.mxu0 %v15107_v10 }
0x21f3   : > { %v12931_v25 = vadd.f32 %v12930_v11, %v12929_v57  ;;  %v12932_v28 = vpop.f32.mrb[78].mxu1 }
0x21f4   : > { %v12933_v5 = vpop.f32.mrb[79].mxu1 }
0x21f5   : > { %v11006_v19 = vadd.f32 %v12931_v25, %v10965_v26  ;;  %v12934_v32 = vadd.f32 %v12933_v5, %v12932_v28  ;;  %10832 = vmatpush1.bf16.msra.mxu0 %v15105_v33 }
0x21f6   : > { %10833 = vmatprep.subr.bf16.mxu0 %v15110_v35 }
0x21f7   : > { %v11009_v17 = vadd.f32 %v12934_v32, %v10968_v55 }
0x21f9   : > { %10834 = vmatpush1.bf16.msra.mxu0 %v15108_v27 }
0x21fa   : > { %10835 = vmatprep.subr.bf16.mxu0 %v15113_v34 }
0x21fd   : > { %10836 = vmatpush1.bf16.msra.mxu0 %v15111_v49 }
0x2200   : > { %10838 = vmatmul.mubr.bf16.vlgmr.msra.gmra.mrb[52].mxu0 %v17928_v29  ;;  %v9046_v29 = vrot.slane %v17983_v18, %v16661_v56 }
0x2231   : > { %v12951_v53 = vpop.f32.mrb[80].mxu1 }
0x2232   : > { %v12952_v31 = vpop.f32.mrb[81].mxu1 }
0x2233   : > { %v12953_v43 = vadd.f32 %v12952_v31, %v12951_v53  ;;  %v12954_v21 = vpop.f32.mrb[82].mxu1  ;;  %v11100_v31 = vld [vmem:[%s942_s7] sm:$0x7] }
0x2234   : > { %v12955_v22 = vpop.f32.mrb[83].mxu1 }
0x2235   : > { %v11047_v50 = vadd.f32 %v12953_v43, %v11006_v19  ;;  %v12956_v54 = vadd.f32 %v12955_v22, %v12954_v21  ;;  %v11101_v43 = vld [vmem:[%s951_s24] sm:$0x7]  ;;  %v11148_v21 = vrot.slane %v11100_v31, %v16651_v51  ;;  %v11152_v22 = vrot.slane %v11100_v31, %v16661_v56 }
0x2237   : > { %v11050_v1 = vadd.f32 %v12956_v54, %v11009_v17 }
0x2251   : > { %v12973_v45 = vpop.f32.mrb[84].mxu1 }
0x2252   : > { %v12974_v3 = vpop.f32.mrb[85].mxu1 }
0x2253   : > { %v12975_v30 = vadd.f32 %v12974_v3, %v12973_v45  ;;  %v12976_v46 = vpop.f32.mrb[86].mxu1  ;;  %v11174_v45 = vrot.slane %v11101_v43, %v16661_v56  ;;  %v11178_v3 = vrot.slane %v11101_v43, %v16983_v14 }
0x2254   : > { %v12977_v41 = vpop.f32.mrb[87].mxu1 }
0x2255   : > { %v11088_v58 = vadd.f32 %v12975_v30, %v11047_v50  ;;  %v12978_v37 = vadd.f32 %v12977_v41, %v12976_v46  ;;  %v11156_v50 = vrot.slane %v11100_v31, %v16983_v14 }
0x2257   : > { %v11091_v63 = vadd.f32 %v12978_v37, %v11050_v1  ;;  %v11096_v23 = vadd.f32 %v11088_v58, %v17467_v42  ;;  %v11170_v1 = vrot.slane %v11101_v43, %v16651_v51 }
0x2259   : > { %v11099_v24 = vadd.f32 %v11091_v63, %v17463_v62 }
0x22d3   : > { %v10839_v39 = vpop.f32.mrb[52].mxu0 }
0x22d4   : > { %v13516_v2 = vadd.f32 %v10839_v39, %v9042_v12  ;;  %v10841_v48 = vpop.f32.mrb[53].mxu0 }
0x22d5   : > { %v13517_v9 = vadd.f32 %v10841_v48, %v9046_v29  ;;  %v10843_v59 = vpop.f32.mrb[54].mxu0 }
0x22d6   : > { %v11094_v61 = vadd.f32 %v13516_v2, %v17407_v47  ;;  %v13518_v26 = vadd.f32 %v10843_v59, %v9042_v12  ;;  %v10845_v15 = vpop.f32.mrb[55].mxu0 }
0x22d7   : > { %v11095_v36 = vadd.f32 %v13517_v9, %v17403_v6  ;;  %v13519_v7 = vadd.f32 %v10845_v15, %v9046_v29 }
0x22d8   : > { %v11097_v55 = vadd.f32 %v13518_v26, %v17409_v4 }
0x22d9   : > { %v11102_v16 = vadd.f32 %v11095_v36, %v11094_v61  ;;  %v11098_v44 = vadd.f32 %v13519_v7, %v17405_v8  ;;  %v11215_v7 = vld [vmem:[%s18387_s18 + $0x88] sm:$0xff] (!%p12683_p7) }
0x22db   : > { %v11103_v18 = vadd.f32 %v11102_v16, %v11096_v23  ;;  %v11106_v60 = vadd.f32 %v11098_v44, %v11097_v55  ;;  %v11199_v16 = vld [vmem:[%s18387_s18 + $0x8] sm:$0xff] (!%p12683_p7) }
0x22dd   : > { %11104 = vadd.xlane.f32.xlu0 %v11103_v18  ;;  %v11107_v13 = vadd.f32 %v11106_v60, %v11099_v24  ;;  %v11217_v18 = vld [vmem:[%s18387_s18 + $0x98] sm:$0xff] (!%p12683_p7) }
0x22df   : > { %11108 = vadd.xlane.f32.xlu1 %v11107_v13  ;;  %v11230_v13 = vld [vmem:[%s18387_s18 + $0x100] sm:$0xff] (!%p12683_p7) }
0x236a   : > { %v11105_v47 = vpop.xlane.xlu0 %11104 }
0x236b   : > { %v11110_v38 = vmul.f32 0.0026041667, %v11105_v47  ;;  %v11231_v47 = vld [vmem:[%s18387_s18 + $0x108] sm:$0xff] (!%p12683_p7) }
0x236c   : > { %v11109_v20 = vpop.xlane.xlu1 %11108 }
0x236d   : > { %v11112_v0 = vsub.f32 %v11094_v61, %v11110_v38  ;;  %v11113_v6 = vsub.f32 %v11095_v36, %v11110_v38  ;;  %v11114_v52 = vsub.f32 %v11096_v23, %v11110_v38  ;;  %v11111_v40 = vmul.f32 0.0026041667, %v11109_v20  ;;  %v11214_v36 = vld [vmem:[%s18387_s18 + $0x80] sm:$0xff] (!%p12683_p7)  ;;  %v11200_v38 = vld [vmem:[%s18387_s18 + $0x10] sm:$0xff] (!%p12683_p7) }
0x236e   : > { %v13404_v23 = vpack.c.bf16 (!%p12683_p7), %v11215_v7, %v11214_v36  ;;  %v13436_v20 = vpack.c.bf16 (!%p12683_p7), %v11231_v47, %v11230_v13  ;;  %v11211_v36 = vld [vmem:[%s18387_s18 + $0x68] sm:$0xff] (!%p12683_p7)  ;;  %v11228_v7 = vld [vmem:[%s18387_s18 + $0xf0] sm:$0xff] (!%p12683_p7)  ;;  %v11213_v13 = vld [vmem:[%s18387_s18 + $0x78] sm:$0xff] (!%p12683_p7) }
0x236f   : > { %v11118_v4 = vmul.f32 %v11112_v0, %v11112_v0  ;;  %v11119_v10 = vmul.f32 %v11113_v6, %v11113_v6  ;;  %v11115_v42 = vsub.f32 %v11097_v55, %v11111_v40  ;;  %v11116_v57 = vsub.f32 %v11098_v44, %v11111_v40  ;;  %v11198_v55 = vld [vmem:[%s18387_s18] sm:$0xff] (!%p12683_p7)  ;;  %v11216_v44 = vld [vmem:[%s18387_s18 + $0x90] sm:$0xff] (!%p12683_p7) }
0x2370   : > { %v11117_v33 = vsub.f32 %v11099_v24, %v11111_v40  ;;  %v11120_v35 = vmul.f32 %v11114_v52, %v11114_v52  ;;  %v13406_v24 = vpack.c.bf16 (!%p12683_p7), %v11199_v16, %v11198_v55  ;;  %v13408_v60 = vpack.c.bf16 (!%p12683_p7), %v11217_v18, %v11216_v44  ;;  %13405 = vmatprep.subr.bf16.mxu0 (!%p12683_p7), %v13404_v23  ;;  %v11229_v55 = vld [vmem:[%s18387_s18 + $0xf8] sm:$0xff] (!%p12683_p7)  ;;  %v11244_v44 = vld [vmem:[%s18387_s18 + $0x170] sm:$0xff] (!%p12683_p7) }
0x2371   : > { %v11121_v8 = vmul.f32 %v11115_v42, %v11115_v42  ;;  %v11122_v11 = vmul.f32 %v11116_v57, %v11116_v57  ;;  %v11124_v62 = vadd.f32 %v11119_v10, %v11118_v4  ;;  %v11232_v4 = vld [vmem:[%s18387_s18 + $0x110] sm:$0xff] (!%p12683_p7)  ;;  %v11233_v10 = vld [vmem:[%s18387_s18 + $0x118] sm:$0xff] (!%p12683_p7)  ;;  %13437 = vmatprep.subr.bf16.mxu1 (!%p12683_p7), %v13436_v20 }
0x2372   : > { %v11123_v28 = vmul.f32 %v11117_v33, %v11117_v33  ;;  %13407 = vmatpush3.bf16.msra.mxu0 (!%p12683_p7), %v13406_v24  ;;  %13439 = vmatpush3.bf16.msra.mxu1 (!%p12683_p7), %v13436_v20  ;;  %v11245_v18 = vld [vmem:[%s18387_s18 + $0x178] sm:$0xff] (!%p12683_p7)  ;;  %v13432_v24 = vpack.c.bf16 (!%p12683_p7), %v11229_v55, %v11228_v7 }
0x2373   : > { %v11125_v25 = vadd.f32 %v11124_v62, %v11120_v35  ;;  %v11128_v5 = vadd.f32 %v11122_v11, %v11121_v8  ;;  %13409 = vmatprep.subr.bf16.mxu0 (!%p12683_p7), %v13408_v60  ;;  %v11203_v8 = vld [vmem:[%s18387_s18 + $0x28] sm:$0xff] (!%p12683_p7)  ;;  %v11220_v11 = vld [vmem:[%s18387_s18 + $0xb0] sm:$0xff] (!%p12683_p7)  ;;  %v11221_v35 = vld [vmem:[%s18387_s18 + $0xb8] sm:$0xff] (!%p12683_p7)  ;;  %v13464_v47 = vpack.c.bf16 (!%p12683_p7), %v11245_v18, %v11244_v44 }
0x2374   : > { %v11234_v62 = vld [vmem:[%s18387_s18 + $0x120] sm:$0xff] (!%p12683_p7)  ;;  %v11212_v60 = vld [vmem:[%s18387_s18 + $0x70] sm:$0xff] (!%p12683_p7) }
0x2375   : > { %11126 = vadd.xlane.f32.xlu0 %v11125_v25  ;;  %v11129_v19 = vadd.f32 %v11128_v5, %v11123_v28  ;;  %v11235_v25 = vld [vmem:[%s18387_s18 + $0x128] sm:$0xff] (!%p12683_p7) }
0x2376   : > { %v13444_v28 = vpack.c.bf16 (!%p12683_p7), %v11235_v25, %v11234_v62 }
0x2377   : > { %11130 = vadd.xlane.f32.xlu1 %v11129_v19  ;;  %v11236_v19 = vld [vmem:[%s18387_s18 + $0x130] sm:$0xff] (!%p12683_p7) }
0x2402   : > { %v11127_v32 = vpop.xlane.xlu0 %11126 }
0x2403   : > { %v11132_v27 = vmul.f32 0.0026041667, %v11127_v32  ;;  %v11237_v32 = vld [vmem:[%s18387_s18 + $0x138] sm:$0xff] (!%p12683_p7) }
0x2404   : > { %v11131_v34 = vpop.xlane.xlu1 %11130  ;;  %v13448_v31 = vpack.c.bf16 (!%p12683_p7), %v11237_v32, %v11236_v19 }
0x2405   : > { %v11134_v17 = vadd.f32 1e-05, %v11132_v27  ;;  %v11133_v49 = vmul.f32 0.0026041667, %v11131_v34  ;;  %v13416_v27 = vpack.c.bf16 (!%p12683_p7), %v11221_v35, %v11220_v11  ;;  %v11204_v34 = vld [vmem:[%s18387_s18 + $0x30] sm:$0xff] (!%p12683_p7) }
0x2407   : > { %15214 = vrsqrt.f32 %v11134_v17  ;;  %v11135_v53 = vadd.f32 1e-05, %v11133_v49  ;;  %v11205_v17 = vld [vmem:[%s18387_s18 + $0x38] sm:$0xff] (!%p12683_p7)  ;;  %v11222_v49 = vld [vmem:[%s18387_s18 + $0xc0] sm:$0xff] (!%p12683_p7) }
0x2408   : > { %v13418_v43 = vpack.c.bf16 (!%p12683_p7), %v11205_v17, %v11204_v34 }
0x2409   : > { %15216 = vrsqrt.f32 %v11135_v53  ;;  %v11223_v53 = vld [vmem:[%s18387_s18 + $0xc8] sm:$0xff] (!%p12683_p7) }
0x2411   : > { %v15215_v54 = vpop.eup %15214 }
0x2412   : > { %v11138_v30 = vmul.f32 %v15215_v54, %v11112_v0  ;;  %v11139_v46 = vmul.f32 %v15215_v54, %v11113_v6  ;;  %v11140_v41 = vmul.f32 %v15215_v54, %v11114_v52  ;;  %v11201_v0 = vld [vmem:[%s18387_s18 + $0x18] sm:$0xff] (!%p12683_p7)  ;;  %v11218_v6 = vld [vmem:[%s18387_s18 + $0xa0] sm:$0xff] (!%p12683_p7)  ;;  %v11219_v52 = vld [vmem:[%s18387_s18 + $0xa8] sm:$0xff] (!%p12683_p7) }
0x2413   : > { %v15217_v58 = vpop.eup %15216  ;;  %v13410_v40 = vpack.c.bf16 (!%p12683_p7), %v11201_v0, %v11200_v38  ;;  %v11206_v54 = vld [vmem:[%s18387_s18 + $0x40] sm:$0xff] (!%p12683_p7)  ;;  %v13434_v38 = vpack.c.bf16 (!%p12683_p7), %v11213_v13, %v11212_v60 }
0x2414   : > { %v11160_v37 = vmul.f32 %v11148_v21, %v11138_v30  ;;  %v11161_v63 = vmul.f32 %v11152_v22, %v11139_v46  ;;  %v11162_v12 = vmul.f32 %v11156_v50, %v11140_v41  ;;  %v11141_v29 = vmul.f32 %v15217_v58, %v11115_v42  ;;  %v11240_v41 = vld [vmem:[%s18387_s18 + $0x150] sm:$0xff] (!%p12683_p7) }
0x2415   : > { %v11142_v39 = vmul.f32 %v15217_v58, %v11116_v57  ;;  %v11143_v2 = vmul.f32 %v15217_v58, %v11117_v33  ;;  %11197 = sbr.rel (%p12683_p7) target bundleno = 9489 (0x2511), region = 164  ;;  %v13412_v42 = vpack.c.bf16 (!%p12683_p7), %v11219_v52, %v11218_v6  ;;  %v13440_v57 = vpack.c.bf16 (!%p12683_p7), %v11233_v10, %v11232_v4  ;;  %v11202_v33 = vld [vmem:[%s18387_s18 + $0x20] sm:$0xff] (!%p12683_p7)  ;;  %13411 = vmatpush3.bf16.msra.mxu0 (!%p12683_p7), %v13410_v40  ;;  %v11241_v58 = vld [vmem:[%s18387_s18 + $0x158] sm:$0xff] (!%p12683_p7)  ;;  %v12684_v6 = vld [vmem:[#allocation3] ss:$0 sm:$0xff] (!%p12683_p7) }
0x2416   : > { %v18069_v48 = vadd.f32 %v11170_v1, %v11160_v37  ;;  %v11183_v9 = vadd.f32 %v11174_v45, %v11161_v63  ;;  %v11184_v59 = vadd.f32 %v11178_v3, %v11162_v12  ;;  %v11163_v61 = vmul.f32 %v11148_v21, %v11141_v29  ;;  %v11238_v21 = vld [vmem:[%s18387_s18 + $0x140] sm:$0xff] (!%p12683_p7)  ;;  %v11208_v63 = vld [vmem:[%s18387_s18 + $0x50] sm:$0xff] (!%p12683_p7)  ;;  %v11209_v12 = vld [vmem:[%s18387_s18 + $0x58] sm:$0xff] (!%p12683_p7) }
0x2417   : > { %v11164_v51 = vmul.f32 %v11152_v22, %v11142_v39  ;;  %v11165_v26 = vmul.f32 %v11156_v50, %v11143_v2  ;;  %13441 = vmatprep.subr.bf16.mxu1 (!%p12683_p7), %v13440_v57  ;;  %v13414_v5 = vpack.c.bf16 (!%p12683_p7), %v11203_v8, %v11202_v33  ;;  %13413 = vmatprep.subr.bf16.mxu0 (!%p12683_p7), %v13412_v42  ;;  %v11239_v22 = vld [vmem:[%s18387_s18 + $0x148] sm:$0xff] (!%p12683_p7)  ;;  %v11226_v29 = vld [vmem:[%s18387_s18 + $0xe0] sm:$0xff] (!%p12683_p7) }
0x2418   : > { %11188 = vst [vmem:[#allocation2] sm:$0xff] %v18069_v48  ;;  %11189 = vst [vmem:[#allocation2 + $0x8] sm:$0xff] %v11183_v9  ;;  %v18072_v56 = vadd.f32 %v11170_v1, %v11163_v61  ;;  %11317 = vmatprep.mubr.f32.mxu0 (!%p12683_p7), %v11183_v9  ;;  %13281 = vmatprep.mubr.f32.mxu1 (!%p12683_p7), %v11184_v59  ;;  %v13420_v50 = vpack.c.bf16 (!%p12683_p7), %v11223_v53, %v11222_v49  ;;  %v11207_v1 = vld [vmem:[%s18387_s18 + $0x48] sm:$0xff] (!%p12683_p7)  ;;  %v11403_v4 = vld [vmem:[%s18388_s15] sm:$0xff] (!%p12683_p7) }
0x2419   : > { %11190 = vst [vmem:[#allocation2 + $0x10] sm:$0xff] %v11184_v59  ;;  %v18074_v14 = vadd.f32 %v11174_v45, %v11164_v51  ;;  %v18076_v15 = vadd.f32 %v11178_v3, %v11165_v26  ;;  %13443 = vmatpush3.bf16.msra.mxu1 (!%p12683_p7), %v13440_v57  ;;  %13415 = vmatpush3.bf16.msra.mxu0 (!%p12683_p7), %v13414_v5  ;;  %v11224_v45 = vld [vmem:[%s18387_s18 + $0xd0] sm:$0xff] (!%p12683_p7)  ;;  %v11225_v3 = vld [vmem:[%s18387_s18 + $0xd8] sm:$0xff] (!%p12683_p7)  ;;  %v11227_v39 = vld [vmem:[%s18387_s18 + $0xe8] sm:$0xff] (!%p12683_p7)  ;;  %vm11405_vm9 = vcmp.eq.s32.totalorder (!%p12683_p7), %v11403_v4, 4294967295 }
0x241a   : > { %11191 = vst [vmem:[#allocation2 + $0x18] sm:$0xff] %v18072_v56  ;;  %13445 = vmatprep.subr.bf16.mxu1 (!%p12683_p7), %v13444_v28  ;;  %13417 = vmatprep.subr.bf16.mxu0 (!%p12683_p7), %v13416_v27  ;;  %v13452_v30 = vpack.c.bf16 (!%p12683_p7), %v11239_v22, %v11238_v21  ;;  %v13422_v46 = vpack.c.bf16 (!%p12683_p7), %v11207_v1, %v11206_v54  ;;  %v11242_v59 = vld [vmem:[%s18387_s18 + $0x160] sm:$0xff] (!%p12683_p7)  ;;  %v11243_v61 = vld [vmem:[%s18387_s18 + $0x168] sm:$0xff] (!%p12683_p7) }
0x241b   : > { %11192 = vst [vmem:[#allocation2 + $0x20] sm:$0xff] %v18074_v14  ;;  %11193 = vst [vmem:[#allocation2 + $0x28] sm:$0xff] %v18076_v15  ;;  %v13424_v37 = vpack.c.bf16 (!%p12683_p7), %v11225_v3, %v11224_v45  ;;  %v13456_v2 = vpack.c.bf16 (!%p12683_p7), %v11241_v58, %v11240_v41  ;;  %v13426_v9 = vpack.c.bf16 (!%p12683_p7), %v11209_v12, %v11208_v63  ;;  %v11210_v26 = vld [vmem:[%s18387_s18 + $0x60] sm:$0xff] (!%p12683_p7) }
0x241c   : > { %v13428_v51 = vpack.c.bf16 %v11227_v39, %v11226_v29  ;;  %v13460_v23 = vpack.c.bf16 %v11243_v61, %v11242_v59  ;;  %v13430_v16 = vpack.c.bf16 %v11211_v36, %v11210_v26 }
0x241d   : > { %13447 = vmatpush3.bf16.msra.mxu1 %v13444_v28  ;;  %13419 = vmatpush3.bf16.msra.mxu0 %v13418_v43 }
0x241e   : > { %13449 = vmatprep.subr.bf16.mxu1 %v13448_v31  ;;  %13421 = vmatprep.subr.bf16.mxu0 %v13420_v50 }
0x2421   : > { %13451 = vmatpush3.bf16.msra.mxu1 %v13448_v31  ;;  %13423 = vmatpush3.bf16.msra.mxu0 %v13422_v46 }
0x2422   : > { %13453 = vmatprep.subr.bf16.mxu1 %v13452_v30  ;;  %13425 = vmatprep.subr.bf16.mxu0 %v13424_v37 }
0x2425   : > { %13455 = vmatpush3.bf16.msra.mxu1 %v13452_v30  ;;  %13427 = vmatpush3.bf16.msra.mxu0 %v13426_v9 }
0x2426   : > { %13457 = vmatprep.subr.bf16.mxu1 %v13456_v2  ;;  %13429 = vmatprep.subr.bf16.mxu0 %v13428_v51 }
0x2429   : > { %13459 = vmatpush3.bf16.msra.mxu1 %v13456_v2  ;;  %13431 = vmatpush3.bf16.msra.mxu0 %v13430_v16 }
0x242a   : > { %13461 = vmatprep.subr.bf16.mxu1 %v13460_v23  ;;  %13433 = vmatprep.subr.bf16.mxu0 %v13432_v24 }
0x242d   : > { %13463 = vmatpush3.bf16.msra.mxu1 %v13460_v23  ;;  %13435 = vmatpush3.bf16.msra.mxu0 %v13434_v38 }
0x242e   : > { %13465 = vmatprep.subr.bf16.mxu1 %v13464_v47 }
0x2430   : > { %11318 = vmatmul.mubr.f32.vlgmr.msra.gmra.mrb[0].mxu0 %v18069_v48 }
0x2431   : > { %13467 = vmatpush3.bf16.msra.mxu1 %v13464_v47  ;;  %11322 = vmatprep.mubr.f32.mxu0 %v18074_v14 }
0x2434   : > { %13282 = vmatmul.mubr.f32.vlgmr.msra.gmra.mrb[0].mxu1 %v18076_v15  ;;  %11323 = vmatmul.mubr.f32.gmra.mrb[2].mxu0 %v18072_v56  ;;  %v11404_v56 = vld [vmem:[%s18388_s15 + $0x8] sm:$0xff] }
0x2435   : > { %vm11406_vm11 = vcmp.eq.s32.totalorder %v11404_v56, 4294967295 }
0x2503   : > { %v13011_v20 = vpop.f32.mrb[0].mxu0 }
0x2504   : > { %v13012_v0 = vpop.f32.mrb[1].mxu0 }
0x2505   : > { %v13013_v52 = vadd.f32 %v13012_v0, %v13011_v20 }
0x2507   : > { %v13283_v40 = vpop.f32.mrb[0].mxu1  ;;  %v13014_v42 = vpop.f32.mrb[2].mxu0  ;;  %v11320_v57 = vadd.f32 %v13013_v52, %v12684_v6 }
0x2508   : > { %v11394_v10 = vpop.f32.mrb[1].mxu1  ;;  %v13015_v33 = vpop.f32.mrb[3].mxu0 }
0x2509   : > { %v13016_v48 = vadd.f32 %v13015_v33, %v13014_v42  ;;  %v11395_v14 = vadd.f32 %v11394_v10, %v11320_v57 }
0x250b   : > { %v11325_v15 = vadd.f32 %v13016_v48, %v12684_v6  ;;  %v11407_v8 = vsel %vm11405_vm9, 0.0, %v11395_v14 }
0x250c   : > { %11410 = vst.msk [vmem:[%s18389_s1] sm:$0xff] %vm11409_vm10, %v11407_v8 }
0x250d   : > { %v11400_v11 = vadd.f32 %v13283_v40, %v11325_v15 }
0x250f   : > { %v11408_v35 = vsel %vm11406_vm11, 0.0, %v11400_v11 }
0x2510   : > { %11411 = vst.msk [vmem:[%s18390_s13 + $0x8] sm:$0xff] %vm11409_vm10, %v11408_v35 }
0x2511 PF: > { %s18391_s1 = sld [smem:[#allocation38_spill]]  ;;  %s18392_s20 = sld [smem:[#allocation35_spill]] }
0x2512   : > { %s18393_s21 = sld [smem:[#allocation36_spill]]  ;;  %s18394_s6 = sld [smem:[#allocation39_spill]] }
0x2517   : > { %p48_p5 = scmp.ge.s32.totalorder %s18391_s1, 6  }
0x2519   :  { %50 = sbr.rel (!%p48_p5) target bundleno = 30 (0x1e), region = 284 }
0x2520   :  { %11423 = vsyncpa [#allocation5], 1 }
0x2521   :  { %11425 = vsyncpa [#allocation5 + $0x1], 1 }
0x2522   :  { %11426 = vsyncpa [#allocation7], 1 }
0x2523   :  { %11427 = vsyncpa [#allocation10], 1 }
0x2524   :  { %11429 = vsyncpa [#allocation10 + $0x1], 1 }
0x2525   :  { %11430 = vsyncpa [#allocation13], 1 }
0x2526   :  { %11432 = vsyncpa [#allocation13 + $0x1], 1 }
0x2527   :  { %11433 = vsyncpa [#allocation16], 1 }
0x2528   :  { %11435 = vsyncpa [#allocation16 + $0x1], 1 }
0x2529   :  { %11436 = vsyncpa [#allocation19], 1 }
0x252a   :  { %11438 = vsyncpa [#allocation19 + $0x1], 1 }
0x252b   :  { %11439 = vsyncpa [#allocation22], 1 }
0x252c   :  { %11441 = vsyncpa [#allocation22 + $0x1], 1 }
0x252d   :  { %11442 = vsyncpa [#allocation25], 1 }
0x252e   :  { %11444 = vsyncpa [#allocation25 + $0x1], 1 }

</bundles_post_ra>
